<compile_context>
chip_gen: v7x
topology: tpu7x:2x2x1
jax: 0.10.0
libtpu: 0.0.40
codegen_flags: <defaults>
</compile_context>

<pallas_src>
import jax
import jax.numpy as jnp
from jax import lax
from jax.experimental import pallas as pl
from jax.experimental.pallas import tpu as pltpu


# ---------------------------------------------------------------------------
# Fused SPPF kernel (batch_tile elements per grid step, NHWC)
# ---------------------------------------------------------------------------
def _sppf_kernel(x_ref, w1_ref, s1_ref, b1_ref, w2_ref, s2_ref, b2_ref,
                 o_ref, pad_ref, cat_ref):
    """x_ref  : (bt, H, W, C1)         input block
       w1_ref : (C1, C_)               cv1 1x1 weight, bf16
       s1/b1  : (1, C_)                cv1 folded BN scale / bias, f32
       w2_ref : (4*C_, C2)             cv2 1x1 weight (branch-major rows), bf16
       s2/b2  : (1, C2)                cv2 folded BN scale / bias, f32
       o_ref  : (bt, H, W, C2)         output block
       pad_ref: (bt, H+4, W+4, C_)     bf16 scratch; -inf border for max-pools
       cat_ref: (bt, H, W, 4*C_)       bf16 scratch; concat(z, y1, y2, y3)
    """
    bt, h, w, c1 = x_ref.shape
    c_ = w1_ref.shape[1]
    c2 = o_ref.shape[3]
    bf16 = jnp.bfloat16

    def silu(t):
        # sigmoid = rcp(1 + exp(-t)); exp and approx-rcp both land on the EUP slot
        return t * pl.reciprocal(1.0 + jnp.exp(-t), approx=True)

    # ---- cv1: 1x1 conv == one MXU matmul (bf16 operands, f32 accumulate) ----
    x2d = x_ref[...].reshape(bt * h * w, c1).astype(bf16)
    z = jnp.dot(x2d, w1_ref[...], preferred_element_type=jnp.float32)
    z = silu(z * s1_ref[...] + b1_ref[...])                     # (bt*h*w, c_) f32
    zb = z.astype(bf16).reshape(bt, h, w, c_)                   # pool chain in bf16

    # ---- -inf border strips only (interior is overwritten by every pool) ----
    # Written every grid step (NOT gated on program_id==0) so it stays correct
    # when the "parallel" batch axis is sharded across TensorCores.
    pad_ref[:, 0:2, :, :]         = jnp.full((bt, 2, w + 4, c_), -jnp.inf, bf16)
    pad_ref[:, h + 2:h + 4, :, :] = jnp.full((bt, 2, w + 4, c_), -jnp.inf, bf16)
    pad_ref[:, :, 0:2, :]         = jnp.full((bt, h + 4, 2, c_), -jnp.inf, bf16)
    pad_ref[:, :, w + 2:w + 4, :] = jnp.full((bt, h + 4, 2, c_), -jnp.inf, bf16)

    # ---- MaxPool2d(k=5, s=1, p=2), separable, 3+3 maxima (doubling trick) ----
    def maxpool5(a):                                # a: (bt, h, w, c_) bf16
        pad_ref[:, 2:h + 2, 2:w + 2, :] = a         # interior; border stays -inf
        # W axis (sublane): max over {j..j+4}
        t1 = jnp.maximum(pad_ref[:, :, 0:w + 3, :],
                         pad_ref[:, :, 1:w + 4, :])                   # {j, j+1}
        t2 = jnp.maximum(t1[:, :, 0:w + 1, :], t1[:, :, 2:w + 3, :])  # {j..j+3}
        m = jnp.maximum(t2[:, :, 0:w, :], pad_ref[:, :, 4:w + 4, :])  # {j..j+4}
        # H axis (outer dim): max over {i..i+4}
        u1 = jnp.maximum(m[:, 0:h + 3], m[:, 1:h + 4])
        u2 = jnp.maximum(u1[:, 0:h + 1], u1[:, 2:h + 3])
        return jnp.maximum(u2[:, 0:h], m[:, 4:h + 4])                 # (bt,h,w,c_)

    y1 = maxpool5(zb)
    y2 = maxpool5(y1)
    y3 = maxpool5(y2)

    # ---- cv2 on concat(z, y1, y2, y3): ONE fused MXU matmul ----
    # Lane-offset stores are fully aligned when c_ is a multiple of 128.
    cat_ref[:, :, :, 0 * c_:1 * c_] = zb
    cat_ref[:, :, :, 1 * c_:2 * c_] = y1
    cat_ref[:, :, :, 2 * c_:3 * c_] = y2
    cat_ref[:, :, :, 3 * c_:4 * c_] = y3
    cat2d = cat_ref[...].reshape(bt * h * w, 4 * c_)
    acc = jnp.dot(cat2d, w2_ref[...], preferred_element_type=jnp.float32)
    out = silu(acc * s2_ref[...] + b2_ref[...])                  # (bt*h*w, c2) f32
    o_ref[...] = out.reshape(bt, h, w, c2).astype(o_ref.dtype)


# ---------------------------------------------------------------------------
# VMEM budget (derived from the actual footprint, clamped to 64 MiB = v7x-safe)
# ---------------------------------------------------------------------------
def _vmem_limit_bytes(bt, h, w, c1, c_, c2, x_bytes, o_bytes):
    io = 2 * bt * h * w * (c1 * x_bytes + c2 * o_bytes)            # dbl-buffered blocks
    wts = 2 * (2 * (c1 * c_ + 4 * c_ * c2) + 4 * 2 * (c_ + c2))    # bf16 W + f32 scale/bias
    scr = 2 * bt * ((h + 4) * (w + 4) + 4 * h * w) * c_            # bf16 pad + cat scratch
    live = bt * h * w * (4 * c_ + 3 * 2 * c_ + 4 * c2)             # z f32, pool temps, acc f32
    need = io + wts + scr + live
    return int(min(max(2 * need, 16 * 2**20), 64 * 2**20))


# ---------------------------------------------------------------------------
# pallas_call wrapper (NHWC)
# ---------------------------------------------------------------------------
def sppf_pallas(x_nhwc, params, batch_tile=1):
    b, h, w, c1 = x_nhwc.shape
    c_ = params["w1"].shape[1]
    c2 = params["w2"].shape[1]
    bt = batch_tile
    assert b % bt == 0, "batch must be divisible by batch_tile"
    x_bytes = jnp.dtype(x_nhwc.dtype).itemsize
    return pl.pallas_call(
        _sppf_kernel,
        out_shape=jax.ShapeDtypeStruct((b, h, w, c2), x_nhwc.dtype),
        grid=(b // bt,),
        in_specs=[
            pl.BlockSpec((bt, h, w, c1), lambda i: (i, 0, 0, 0)),
            pl.BlockSpec((c1, c_), lambda i: (0, 0)),
            pl.BlockSpec((1, c_), lambda i: (0, 0)),
            pl.BlockSpec((1, c_), lambda i: (0, 0)),
            pl.BlockSpec((4 * c_, c2), lambda i: (0, 0)),
            pl.BlockSpec((1, c2), lambda i: (0, 0)),
            pl.BlockSpec((1, c2), lambda i: (0, 0)),
        ],
        out_specs=pl.BlockSpec((bt, h, w, c2), lambda i: (i, 0, 0, 0)),
        scratch_shapes=[
            pltpu.VMEM((bt, h + 4, w + 4, c_), jnp.bfloat16),   # -inf padded pool buf
            pltpu.VMEM((bt, h, w, 4 * c_), jnp.bfloat16),       # concat staging for cv2
        ],
        compiler_params=pltpu.CompilerParams(
            dimension_semantics=("parallel",),
            vmem_limit_bytes=_vmem_limit_bytes(bt, h, w, c1, c_, c2,
                                               x_bytes, x_bytes),
        ),
    )(x_nhwc, params["w1"], params["scale1"], params["bias1"],
      params["w2"], params["scale2"], params["bias2"])


# ---------------------------------------------------------------------------
# Parameter construction (deterministic, synthetic) + SPPF forward
# ---------------------------------------------------------------------------
def _fold_bn(gamma, beta, mean, var, eps=1e-5):
    scale = gamma / jnp.sqrt(var + eps)
    bias = beta - mean * scale
    return scale.astype(jnp.float32), bias.astype(jnp.float32)


def init_sppf_params(key, c1, c2, k=5):
    assert k == 5, "SPPF uses k=5 (equivalent to SPP(5,9,13))"
    c_ = c1 // 2
    ks = jax.random.split(key, 10)
    # 1x1 conv weights in PyTorch layout (Cout, Cin, 1, 1)
    w1_pt = 0.3 * jax.random.normal(ks[0], (c_, c1, 1, 1), jnp.float32)
    w2_pt = 0.3 * jax.random.normal(ks[1], (c2, 4 * c_, 1, 1), jnp.float32)
    # BatchNorm params (eval-mode running stats)
    g1 = 1.0 + 0.1 * jax.random.normal(ks[2], (c_,), jnp.float32)
    b1 = 0.1 * jax.random.normal(ks[3], (c_,), jnp.float32)
    m1 = 0.1 * jax.random.normal(ks[4], (c_,), jnp.float32)
    v1 = jnp.abs(jax.random.normal(ks[5], (c_,), jnp.float32)) + 0.5
    g2 = 1.0 + 0.1 * jax.random.normal(ks[6], (c2,), jnp.float32)
    b2 = 0.1 * jax.random.normal(ks[7], (c2,), jnp.float32)
    m2 = 0.1 * jax.random.normal(ks[8], (c2,), jnp.float32)
    v2 = jnp.abs(jax.random.normal(ks[9], (c2,), jnp.float32)) + 0.5

    s1, bi1 = _fold_bn(g1, b1, m1, v1)
    s2, bi2 = _fold_bn(g2, b2, m2, v2)

    # Kernel-side layouts: 1x1 conv == channel matmul. cv2 weight is (4*c_, c2)
    # with rows ordered [z | y1 | y2 | y3] (matches torch.cat channel order).
    w1 = jnp.transpose(w1_pt[:, :, 0, 0], (1, 0)).astype(jnp.bfloat16)   # (c1, c_)
    w2 = jnp.transpose(w2_pt[:, :, 0, 0], (1, 0)).astype(jnp.bfloat16)   # (4*c_, c2)
    return {
        "w1_pt": w1_pt, "w2_pt": w2_pt,
        "w1": w1, "w2": w2,
        "scale1": s1.reshape(1, -1), "bias1": bi1.reshape(1, -1),
        "scale2": s2.reshape(1, -1), "bias2": bi2.reshape(1, -1),
    }


def sppf_forward(x_nchw, params, batch_tile=1):
    x = jnp.transpose(x_nchw, (0, 2, 3, 1))        # NCHW -> NHWC (C on lanes)
    y = sppf_pallas(x, params, batch_tile=batch_tile)
    return jnp.transpose(y, (0, 3, 1, 2))          # back to NCHW


# ---------------------------------------------------------------------------
# Pure-JAX f32 reference (for correctness check)
# ---------------------------------------------------------------------------
def _ref_conv1x1_bn_silu(x_nhwc, w_pt, scale, bias):
    y = jnp.einsum("nhwc,oc->nhwo", x_nhwc, w_pt[:, :, 0, 0])
    y = y * scale + bias
    return y * jax.nn.sigmoid(y)


def _ref_maxpool5(x_nhwc):
    return lax.reduce_window(x_nhwc, -jnp.inf, lax.max,
                             (1, 5, 5, 1), (1, 1, 1, 1), "SAME")


def sppf_ref(x_nchw, params):
    x = jnp.transpose(x_nchw, (0, 2, 3, 1))
    z = _ref_conv1x1_bn_silu(x, params["w1_pt"],
                             params["scale1"][0], params["bias1"][0])
    y1 = _ref_maxpool5(z)
    y2 = _ref_maxpool5(y1)
    y3 = _ref_maxpool5(y2)
    cat = jnp.concatenate([z, y1, y2, y3], axis=-1)
    out = _ref_conv1x1_bn_silu(cat, params["w2_pt"],
                               params["scale2"][0], params["bias2"][0])
    return jnp.transpose(out, (0, 3, 1, 2))


# ---------------------------------------------------------------------------
if __name__ == "__main__":
    key = jax.random.PRNGKey(0)
    kx, kp = jax.random.split(key)

    # Correctness-only shapes (tiny channels). For perf work use real SPPF
    # widths (c_, c2 multiples of 128) so stores are lane-dense.
    B, C1, C2, H, W = 2, 4, 4, 16, 16          # SPPF(c1=4, c2=4, k=5) -> c_=2
    x = jax.random.normal(kx, (B, C1, H, W), jnp.float32)   # NCHW like PyTorch

    params = init_sppf_params(kp, C1, C2, k=5)

    out = jax.block_until_ready(sppf_forward(x, params, batch_tile=1))
    ref = sppf_ref(x, params)

    assert out.shape == (B, C2, H, W)
    # bf16 MXU operands / bf16 pooling + EUP approx-reciprocal sigmoid vs f32 ref
    assert jnp.allclose(out, ref, atol=2e-2, rtol=2e-2), "mismatch vs reference"

    print("KERNEL_OK")
</pallas_src>

<mosaic_0001>
module attributes {stable_mosaic.version = 11 : i64} {
  func.func @_sppf_kernel(%arg0: i32, %arg1: memref<1x16x16x4xf32, #tpu.memory_space<vmem>>, %arg2: memref<4x2xbf16, #tpu.memory_space<vmem>>, %arg3: memref<1x2xf32, #tpu.memory_space<vmem>>, %arg4: memref<1x2xf32, #tpu.memory_space<vmem>>, %arg5: memref<8x4xbf16, #tpu.memory_space<vmem>>, %arg6: memref<1x4xf32, #tpu.memory_space<vmem>>, %arg7: memref<1x4xf32, #tpu.memory_space<vmem>>, %arg8: memref<1x16x16x4xf32, #tpu.memory_space<vmem>>, %arg9: memref<1x20x20x2xbf16, #tpu.memory_space<vmem>>, %arg10: memref<1x16x16x8xbf16, #tpu.memory_space<vmem>>) attributes {dimension_semantics = [#tpu.dimension_semantics<parallel>], iteration_bounds = array<i64: 2>, scalar_prefetch = 0 : i64, scratch_operands = 2 : i64, tpu.core_type = #tpu.core_type<tc>, window_params = [{transform_indices = @transform_0, window_bounds = array<i64: 1, 16, 16, 4>}, {pipeline_mode = #tpu.pipeline_mode<synchronous>, transform_indices = @transform_1, window_bounds = array<i64: 4, 2>}, {pipeline_mode = #tpu.pipeline_mode<synchronous>, transform_indices = @transform_2, window_bounds = array<i64: 1, 2>}, {pipeline_mode = #tpu.pipeline_mode<synchronous>, transform_indices = @transform_3, window_bounds = array<i64: 1, 2>}, {pipeline_mode = #tpu.pipeline_mode<synchronous>, transform_indices = @transform_4, window_bounds = array<i64: 8, 4>}, {pipeline_mode = #tpu.pipeline_mode<synchronous>, transform_indices = @transform_5, window_bounds = array<i64: 1, 4>}, {pipeline_mode = #tpu.pipeline_mode<synchronous>, transform_indices = @transform_6, window_bounds = array<i64: 1, 4>}, {transform_indices = @transform_7, window_bounds = array<i64: 1, 16, 16, 4>}]} {
    %c0 = arith.constant 0 : index
    %c0_0 = arith.constant 0 : index
    %c0_1 = arith.constant 0 : index
    %c0_2 = arith.constant 0 : index
    %0 = vector.load %arg1[%c0, %c0_0, %c0_1, %c0_2] : memref<1x16x16x4xf32, #tpu.memory_space<vmem>>, vector<1x16x16x4xf32>
    %1 = vector.shape_cast %0 : vector<1x16x16x4xf32> to vector<256x4xf32>
    %2 = arith.truncf %1 : vector<256x4xf32> to vector<256x4xbf16>
    %c0_3 = arith.constant 0 : index
    %c0_4 = arith.constant 0 : index
    %3 = vector.load %arg2[%c0_3, %c0_4] : memref<4x2xbf16, #tpu.memory_space<vmem>>, vector<4x2xbf16>
    %cst = arith.constant dense<0.000000e+00> : vector<256x2xf32>
    %4 = tpu.matmul %2, %3, %cst {dimension_numbers = #tpu.dot_dimension_numbers<[1], [0], [0], [1], [0, 0, 1, 1], [], []>} : vector<256x4xbf16>, vector<4x2xbf16>, vector<256x2xf32> -> vector<256x2xf32>
    %c0_5 = arith.constant 0 : index
    %c0_6 = arith.constant 0 : index
    %5 = vector.load %arg3[%c0_5, %c0_6] : memref<1x2xf32, #tpu.memory_space<vmem>>, vector<1x2xf32>
    %6 = vector.broadcast %5 : vector<1x2xf32> to vector<256x2xf32>
    %7 = arith.mulf %4, %6 : vector<256x2xf32>
    %c0_7 = arith.constant 0 : index
    %c0_8 = arith.constant 0 : index
    %8 = vector.load %arg4[%c0_7, %c0_8] : memref<1x2xf32, #tpu.memory_space<vmem>>, vector<1x2xf32>
    %9 = vector.broadcast %8 : vector<1x2xf32> to vector<256x2xf32>
    %10 = arith.addf %7, %9 : vector<256x2xf32>
    %cst_9 = arith.constant 0.000000e+00 : f32
    %11 = vector.broadcast %cst_9 : f32 to vector<256x2xf32>
    %12 = arith.subf %11, %10 : vector<256x2xf32>
    %13 = math.exp %12 : vector<256x2xf32>
    %cst_10 = arith.constant 1.000000e+00 : f32
    %14 = vector.broadcast %cst_10 : f32 to vector<256x2xf32>
    %15 = arith.addf %14, %13 : vector<256x2xf32>
    %16 = tpu.reciprocal %15 {approx = true} : vector<256x2xf32> -> vector<256x2xf32>
    %17 = arith.mulf %10, %16 : vector<256x2xf32>
    %18 = arith.truncf %17 : vector<256x2xf32> to vector<256x2xbf16>
    %19 = vector.shape_cast %18 : vector<256x2xbf16> to vector<1x16x16x2xbf16>
    %cst_11 = arith.constant 0xFF80 : bf16
    %20 = vector.broadcast %cst_11 : bf16 to vector<1x2x20x2xbf16>
    %c0_12 = arith.constant 0 : index
    %c0_13 = arith.constant 0 : index
    %c0_14 = arith.constant 0 : index
    %c0_15 = arith.constant 0 : index
    %21 = vector.load %arg9[%c0_12, %c0_13, %c0_14, %c0_15] : memref<1x20x20x2xbf16, #tpu.memory_space<vmem>>, vector<1x2x20x2xbf16>
    tpu.vector_store %arg9[%c0_12, %c0_13, %c0_14, %c0_15], %20 {strides = array<i32>} : memref<1x20x20x2xbf16, #tpu.memory_space<vmem>>, vector<1x2x20x2xbf16>,
    %cst_16 = arith.constant 0xFF80 : bf16
    %22 = vector.broadcast %cst_16 : bf16 to vector<1x2x20x2xbf16>
    %c0_17 = arith.constant 0 : index
    %c18 = arith.constant 18 : index
    %c0_18 = arith.constant 0 : index
    %c0_19 = arith.constant 0 : index
    %23 = vector.load %arg9[%c0_17, %c18, %c0_18, %c0_19] : memref<1x20x20x2xbf16, #tpu.memory_space<vmem>>, vector<1x2x20x2xbf16>
    tpu.vector_store %arg9[%c0_17, %c18, %c0_18, %c0_19], %22 {strides = array<i32>} : memref<1x20x20x2xbf16, #tpu.memory_space<vmem>>, vector<1x2x20x2xbf16>,
    %cst_20 = arith.constant 0xFF80 : bf16
    %24 = vector.broadcast %cst_20 : bf16 to vector<1x20x2x2xbf16>
    %c0_21 = arith.constant 0 : index
    %c0_22 = arith.constant 0 : index
    %c0_23 = arith.constant 0 : index
    %c0_24 = arith.constant 0 : index
    %25 = vector.load %arg9[%c0_21, %c0_22, %c0_23, %c0_24] : memref<1x20x20x2xbf16, #tpu.memory_space<vmem>>, vector<1x20x2x2xbf16>
    tpu.vector_store %arg9[%c0_21, %c0_22, %c0_23, %c0_24], %24 {strides = array<i32>} : memref<1x20x20x2xbf16, #tpu.memory_space<vmem>>, vector<1x20x2x2xbf16>,
    %cst_25 = arith.constant 0xFF80 : bf16
    %26 = vector.broadcast %cst_25 : bf16 to vector<1x20x2x2xbf16>
    %c0_26 = arith.constant 0 : index
    %c0_27 = arith.constant 0 : index
    %c18_28 = arith.constant 18 : index
    %c0_29 = arith.constant 0 : index
    %27 = vector.load %arg9[%c0_26, %c0_27, %c18_28, %c0_29] : memref<1x20x20x2xbf16, #tpu.memory_space<vmem>>, vector<1x20x2x2xbf16>
    tpu.vector_store %arg9[%c0_26, %c0_27, %c18_28, %c0_29], %26 {strides = array<i32>} : memref<1x20x20x2xbf16, #tpu.memory_space<vmem>>, vector<1x20x2x2xbf16>,
    %c0_30 = arith.constant 0 : index
    %c2 = arith.constant 2 : index
    %c2_31 = arith.constant 2 : index
    %c0_32 = arith.constant 0 : index
    %28 = vector.load %arg9[%c0_30, %c2, %c2_31, %c0_32] : memref<1x20x20x2xbf16, #tpu.memory_space<vmem>>, vector<1x16x16x2xbf16>
    tpu.vector_store %arg9[%c0_30, %c2, %c2_31, %c0_32], %19 {strides = array<i32>} : memref<1x20x20x2xbf16, #tpu.memory_space<vmem>>, vector<1x16x16x2xbf16>,
    %c0_33 = arith.constant 0 : index
    %c0_34 = arith.constant 0 : index
    %c0_35 = arith.constant 0 : index
    %c0_36 = arith.constant 0 : index
    %29 = vector.load %arg9[%c0_33, %c0_34, %c0_35, %c0_36] : memref<1x20x20x2xbf16, #tpu.memory_space<vmem>>, vector<1x20x19x2xbf16>
    %c0_37 = arith.constant 0 : index
    %c0_38 = arith.constant 0 : index
    %c1 = arith.constant 1 : index
    %c0_39 = arith.constant 0 : index
    %30 = vector.load %arg9[%c0_37, %c0_38, %c1, %c0_39] : memref<1x20x20x2xbf16, #tpu.memory_space<vmem>>, vector<1x20x19x2xbf16>
    %31 = arith.maximumf %29, %30 : vector<1x20x19x2xbf16>
    %32 = vector.extract_strided_slice %31 {offsets = [0, 0, 0, 0], sizes = [1, 20, 17, 2], strides = [1, 1, 1, 1]} : vector<1x20x19x2xbf16> to vector<1x20x17x2xbf16>
    %33 = vector.extract_strided_slice %31 {offsets = [0, 0, 2, 0], sizes = [1, 20, 17, 2], strides = [1, 1, 1, 1]} : vector<1x20x19x2xbf16> to vector<1x20x17x2xbf16>
    %34 = arith.maximumf %32, %33 : vector<1x20x17x2xbf16>
    %35 = vector.extract_strided_slice %34 {offsets = [0, 0, 0, 0], sizes = [1, 20, 16, 2], strides = [1, 1, 1, 1]} : vector<1x20x17x2xbf16> to vector<1x20x16x2xbf16>
    %c0_40 = arith.constant 0 : index
    %c0_41 = arith.constant 0 : index
    %c4 = arith.constant 4 : index
    %c0_42 = arith.constant 0 : index
    %36 = vector.load %arg9[%c0_40, %c0_41, %c4, %c0_42] : memref<1x20x20x2xbf16, #tpu.memory_space<vmem>>, vector<1x20x16x2xbf16>
    %37 = arith.maximumf %35, %36 : vector<1x20x16x2xbf16>
    %38 = vector.extract_strided_slice %37 {offsets = [0, 0, 0, 0], sizes = [1, 19, 16, 2], strides = [1, 1, 1, 1]} : vector<1x20x16x2xbf16> to vector<1x19x16x2xbf16>
    %39 = vector.extract_strided_slice %37 {offsets = [0, 1, 0, 0], sizes = [1, 19, 16, 2], strides = [1, 1, 1, 1]} : vector<1x20x16x2xbf16> to vector<1x19x16x2xbf16>
    %40 = arith.maximumf %38, %39 : vector<1x19x16x2xbf16>
    %41 = vector.extract_strided_slice %40 {offsets = [0, 0, 0, 0], sizes = [1, 17, 16, 2], strides = [1, 1, 1, 1]} : vector<1x19x16x2xbf16> to vector<1x17x16x2xbf16>
    %42 = vector.extract_strided_slice %40 {offsets = [0, 2, 0, 0], sizes = [1, 17, 16, 2], strides = [1, 1, 1, 1]} : vector<1x19x16x2xbf16> to vector<1x17x16x2xbf16>
    %43 = arith.maximumf %41, %42 : vector<1x17x16x2xbf16>
    %44 = vector.extract_strided_slice %43 {offsets = [0, 0, 0, 0], sizes = [1, 16, 16, 2], strides = [1, 1, 1, 1]} : vector<1x17x16x2xbf16> to vector<1x16x16x2xbf16>
    %45 = vector.extract_strided_slice %37 {offsets = [0, 4, 0, 0], sizes = [1, 16, 16, 2], strides = [1, 1, 1, 1]} : vector<1x20x16x2xbf16> to vector<1x16x16x2xbf16>
    %46 = arith.maximumf %44, %45 : vector<1x16x16x2xbf16>
    %c0_43 = arith.constant 0 : index
    %c2_44 = arith.constant 2 : index
    %c2_45 = arith.constant 2 : index
    %c0_46 = arith.constant 0 : index
    %47 = vector.load %arg9[%c0_43, %c2_44, %c2_45, %c0_46] : memref<1x20x20x2xbf16, #tpu.memory_space<vmem>>, vector<1x16x16x2xbf16>
    tpu.vector_store %arg9[%c0_43, %c2_44, %c2_45, %c0_46], %46 {strides = array<i32>} : memref<1x20x20x2xbf16, #tpu.memory_space<vmem>>, vector<1x16x16x2xbf16>,
    %c0_47 = arith.constant 0 : index
    %c0_48 = arith.constant 0 : index
    %c0_49 = arith.constant 0 : index
    %c0_50 = arith.constant 0 : index
    %48 = vector.load %arg9[%c0_47, %c0_48, %c0_49, %c0_50] : memref<1x20x20x2xbf16, #tpu.memory_space<vmem>>, vector<1x20x19x2xbf16>
    %c0_51 = arith.constant 0 : index
    %c0_52 = arith.constant 0 : index
    %c1_53 = arith.constant 1 : index
    %c0_54 = arith.constant 0 : index
    %49 = vector.load %arg9[%c0_51, %c0_52, %c1_53, %c0_54] : memref<1x20x20x2xbf16, #tpu.memory_space<vmem>>, vector<1x20x19x2xbf16>
    %50 = arith.maximumf %48, %49 : vector<1x20x19x2xbf16>
    %51 = vector.extract_strided_slice %50 {offsets = [0, 0, 0, 0], sizes = [1, 20, 17, 2], strides = [1, 1, 1, 1]} : vector<1x20x19x2xbf16> to vector<1x20x17x2xbf16>
    %52 = vector.extract_strided_slice %50 {offsets = [0, 0, 2, 0], sizes = [1, 20, 17, 2], strides = [1, 1, 1, 1]} : vector<1x20x19x2xbf16> to vector<1x20x17x2xbf16>
    %53 = arith.maximumf %51, %52 : vector<1x20x17x2xbf16>
    %54 = vector.extract_strided_slice %53 {offsets = [0, 0, 0, 0], sizes = [1, 20, 16, 2], strides = [1, 1, 1, 1]} : vector<1x20x17x2xbf16> to vector<1x20x16x2xbf16>
    %c0_55 = arith.constant 0 : index
    %c0_56 = arith.constant 0 : index
    %c4_57 = arith.constant 4 : index
    %c0_58 = arith.constant 0 : index
    %55 = vector.load %arg9[%c0_55, %c0_56, %c4_57, %c0_58] : memref<1x20x20x2xbf16, #tpu.memory_space<vmem>>, vector<1x20x16x2xbf16>
    %56 = arith.maximumf %54, %55 : vector<1x20x16x2xbf16>
    %57 = vector.extract_strided_slice %56 {offsets = [0, 0, 0, 0], sizes = [1, 19, 16, 2], strides = [1, 1, 1, 1]} : vector<1x20x16x2xbf16> to vector<1x19x16x2xbf16>
    %58 = vector.extract_strided_slice %56 {offsets = [0, 1, 0, 0], sizes = [1, 19, 16, 2], strides = [1, 1, 1, 1]} : vector<1x20x16x2xbf16> to vector<1x19x16x2xbf16>
    %59 = arith.maximumf %57, %58 : vector<1x19x16x2xbf16>
    %60 = vector.extract_strided_slice %59 {offsets = [0, 0, 0, 0], sizes = [1, 17, 16, 2], strides = [1, 1, 1, 1]} : vector<1x19x16x2xbf16> to vector<1x17x16x2xbf16>
    %61 = vector.extract_strided_slice %59 {offsets = [0, 2, 0, 0], sizes = [1, 17, 16, 2], strides = [1, 1, 1, 1]} : vector<1x19x16x2xbf16> to vector<1x17x16x2xbf16>
    %62 = arith.maximumf %60, %61 : vector<1x17x16x2xbf16>
    %63 = vector.extract_strided_slice %62 {offsets = [0, 0, 0, 0], sizes = [1, 16, 16, 2], strides = [1, 1, 1, 1]} : vector<1x17x16x2xbf16> to vector<1x16x16x2xbf16>
    %64 = vector.extract_strided_slice %56 {offsets = [0, 4, 0, 0], sizes = [1, 16, 16, 2], strides = [1, 1, 1, 1]} : vector<1x20x16x2xbf16> to vector<1x16x16x2xbf16>
    %65 = arith.maximumf %63, %64 : vector<1x16x16x2xbf16>
    %c0_59 = arith.constant 0 : index
    %c2_60 = arith.constant 2 : index
    %c2_61 = arith.constant 2 : index
    %c0_62 = arith.constant 0 : index
    %66 = vector.load %arg9[%c0_59, %c2_60, %c2_61, %c0_62] : memref<1x20x20x2xbf16, #tpu.memory_space<vmem>>, vector<1x16x16x2xbf16>
    tpu.vector_store %arg9[%c0_59, %c2_60, %c2_61, %c0_62], %65 {strides = array<i32>} : memref<1x20x20x2xbf16, #tpu.memory_space<vmem>>, vector<1x16x16x2xbf16>,
    %c0_63 = arith.constant 0 : index
    %c0_64 = arith.constant 0 : index
    %c0_65 = arith.constant 0 : index
    %c0_66 = arith.constant 0 : index
    %67 = vector.load %arg9[%c0_63, %c0_64, %c0_65, %c0_66] : memref<1x20x20x2xbf16, #tpu.memory_space<vmem>>, vector<1x20x19x2xbf16>
    %c0_67 = arith.constant 0 : index
    %c0_68 = arith.constant 0 : index
    %c1_69 = arith.constant 1 : index
    %c0_70 = arith.constant 0 : index
    %68 = vector.load %arg9[%c0_67, %c0_68, %c1_69, %c0_70] : memref<1x20x20x2xbf16, #tpu.memory_space<vmem>>, vector<1x20x19x2xbf16>
    %69 = arith.maximumf %67, %68 : vector<1x20x19x2xbf16>
    %70 = vector.extract_strided_slice %69 {offsets = [0, 0, 0, 0], sizes = [1, 20, 17, 2], strides = [1, 1, 1, 1]} : vector<1x20x19x2xbf16> to vector<1x20x17x2xbf16>
    %71 = vector.extract_strided_slice %69 {offsets = [0, 0, 2, 0], sizes = [1, 20, 17, 2], strides = [1, 1, 1, 1]} : vector<1x20x19x2xbf16> to vector<1x20x17x2xbf16>
    %72 = arith.maximumf %70, %71 : vector<1x20x17x2xbf16>
    %73 = vector.extract_strided_slice %72 {offsets = [0, 0, 0, 0], sizes = [1, 20, 16, 2], strides = [1, 1, 1, 1]} : vector<1x20x17x2xbf16> to vector<1x20x16x2xbf16>
    %c0_71 = arith.constant 0 : index
    %c0_72 = arith.constant 0 : index
    %c4_73 = arith.constant 4 : index
    %c0_74 = arith.constant 0 : index
    %74 = vector.load %arg9[%c0_71, %c0_72, %c4_73, %c0_74] : memref<1x20x20x2xbf16, #tpu.memory_space<vmem>>, vector<1x20x16x2xbf16>
    %75 = arith.maximumf %73, %74 : vector<1x20x16x2xbf16>
    %76 = vector.extract_strided_slice %75 {offsets = [0, 0, 0, 0], sizes = [1, 19, 16, 2], strides = [1, 1, 1, 1]} : vector<1x20x16x2xbf16> to vector<1x19x16x2xbf16>
    %77 = vector.extract_strided_slice %75 {offsets = [0, 1, 0, 0], sizes = [1, 19, 16, 2], strides = [1, 1, 1, 1]} : vector<1x20x16x2xbf16> to vector<1x19x16x2xbf16>
    %78 = arith.maximumf %76, %77 : vector<1x19x16x2xbf16>
    %79 = vector.extract_strided_slice %78 {offsets = [0, 0, 0, 0], sizes = [1, 17, 16, 2], strides = [1, 1, 1, 1]} : vector<1x19x16x2xbf16> to vector<1x17x16x2xbf16>
    %80 = vector.extract_strided_slice %78 {offsets = [0, 2, 0, 0], sizes = [1, 17, 16, 2], strides = [1, 1, 1, 1]} : vector<1x19x16x2xbf16> to vector<1x17x16x2xbf16>
    %81 = arith.maximumf %79, %80 : vector<1x17x16x2xbf16>
    %82 = vector.extract_strided_slice %81 {offsets = [0, 0, 0, 0], sizes = [1, 16, 16, 2], strides = [1, 1, 1, 1]} : vector<1x17x16x2xbf16> to vector<1x16x16x2xbf16>
    %83 = vector.extract_strided_slice %75 {offsets = [0, 4, 0, 0], sizes = [1, 16, 16, 2], strides = [1, 1, 1, 1]} : vector<1x20x16x2xbf16> to vector<1x16x16x2xbf16>
    %84 = arith.maximumf %82, %83 : vector<1x16x16x2xbf16>
    %c0_75 = arith.constant 0 : index
    %c0_76 = arith.constant 0 : index
    %c0_77 = arith.constant 0 : index
    %c0_78 = arith.constant 0 : index
    %85 = vector.load %arg10[%c0_75, %c0_76, %c0_77, %c0_78] : memref<1x16x16x8xbf16, #tpu.memory_space<vmem>>, vector<1x16x16x2xbf16>
    tpu.vector_store %arg10[%c0_75, %c0_76, %c0_77, %c0_78], %19 {strides = array<i32>} : memref<1x16x16x8xbf16, #tpu.memory_space<vmem>>, vector<1x16x16x2xbf16>,
    %c0_79 = arith.constant 0 : index
    %c0_80 = arith.constant 0 : index
    %c0_81 = arith.constant 0 : index
    %c2_82 = arith.constant 2 : index
    %86 = vector.load %arg10[%c0_79, %c0_80, %c0_81, %c2_82] : memref<1x16x16x8xbf16, #tpu.memory_space<vmem>>, vector<1x16x16x2xbf16>
    tpu.vector_store %arg10[%c0_79, %c0_80, %c0_81, %c2_82], %46 {strides = array<i32>} : memref<1x16x16x8xbf16, #tpu.memory_space<vmem>>, vector<1x16x16x2xbf16>,
    %c0_83 = arith.constant 0 : index
    %c0_84 = arith.constant 0 : index
    %c0_85 = arith.constant 0 : index
    %c4_86 = arith.constant 4 : index
    %87 = vector.load %arg10[%c0_83, %c0_84, %c0_85, %c4_86] : memref<1x16x16x8xbf16, #tpu.memory_space<vmem>>, vector<1x16x16x2xbf16>
    tpu.vector_store %arg10[%c0_83, %c0_84, %c0_85, %c4_86], %65 {strides = array<i32>} : memref<1x16x16x8xbf16, #tpu.memory_space<vmem>>, vector<1x16x16x2xbf16>,
    %c0_87 = arith.constant 0 : index
    %c0_88 = arith.constant 0 : index
    %c0_89 = arith.constant 0 : index
    %c6 = arith.constant 6 : index
    %88 = vector.load %arg10[%c0_87, %c0_88, %c0_89, %c6] : memref<1x16x16x8xbf16, #tpu.memory_space<vmem>>, vector<1x16x16x2xbf16>
    tpu.vector_store %arg10[%c0_87, %c0_88, %c0_89, %c6], %84 {strides = array<i32>} : memref<1x16x16x8xbf16, #tpu.memory_space<vmem>>, vector<1x16x16x2xbf16>,
    %c0_90 = arith.constant 0 : index
    %c0_91 = arith.constant 0 : index
    %c0_92 = arith.constant 0 : index
    %c0_93 = arith.constant 0 : index
    %89 = vector.load %arg10[%c0_90, %c0_91, %c0_92, %c0_93] : memref<1x16x16x8xbf16, #tpu.memory_space<vmem>>, vector<1x16x16x8xbf16>
    %90 = vector.shape_cast %89 : vector<1x16x16x8xbf16> to vector<256x8xbf16>
    %c0_94 = arith.constant 0 : index
    %c0_95 = arith.constant 0 : index
    %91 = vector.load %arg5[%c0_94, %c0_95] : memref<8x4xbf16, #tpu.memory_space<vmem>>, vector<8x4xbf16>
    %cst_96 = arith.constant dense<0.000000e+00> : vector<256x4xf32>
    %92 = tpu.matmul %90, %91, %cst_96 {dimension_numbers = #tpu.dot_dimension_numbers<[1], [0], [0], [1], [0, 0, 1, 1], [], []>} : vector<256x8xbf16>, vector<8x4xbf16>, vector<256x4xf32> -> vector<256x4xf32>
    %c0_97 = arith.constant 0 : index
    %c0_98 = arith.constant 0 : index
    %93 = vector.load %arg6[%c0_97, %c0_98] : memref<1x4xf32, #tpu.memory_space<vmem>>, vector<1x4xf32>
    %94 = vector.broadcast %93 : vector<1x4xf32> to vector<256x4xf32>
    %95 = arith.mulf %92, %94 : vector<256x4xf32>
    %c0_99 = arith.constant 0 : index
    %c0_100 = arith.constant 0 : index
    %96 = vector.load %arg7[%c0_99, %c0_100] : memref<1x4xf32, #tpu.memory_space<vmem>>, vector<1x4xf32>
    %97 = vector.broadcast %96 : vector<1x4xf32> to vector<256x4xf32>
    %98 = arith.addf %95, %97 : vector<256x4xf32>
    %cst_101 = arith.constant 0.000000e+00 : f32
    %99 = vector.broadcast %cst_101 : f32 to vector<256x4xf32>
    %100 = arith.subf %99, %98 : vector<256x4xf32>
    %101 = math.exp %100 : vector<256x4xf32>
    %cst_102 = arith.constant 1.000000e+00 : f32
    %102 = vector.broadcast %cst_102 : f32 to vector<256x4xf32>
    %103 = arith.addf %102, %101 : vector<256x4xf32>
    %104 = tpu.reciprocal %103 {approx = true} : vector<256x4xf32> -> vector<256x4xf32>
    %105 = arith.mulf %98, %104 : vector<256x4xf32>
    %106 = vector.shape_cast %105 : vector<256x4xf32> to vector<1x16x16x4xf32>
    %c0_103 = arith.constant 0 : index
    %c0_104 = arith.constant 0 : index
    %c0_105 = arith.constant 0 : index
    %c0_106 = arith.constant 0 : index
    %107 = vector.load %arg8[%c0_103, %c0_104, %c0_105, %c0_106] : memref<1x16x16x4xf32, #tpu.memory_space<vmem>>, vector<1x16x16x4xf32>
    tpu.vector_store %arg8[%c0_103, %c0_104, %c0_105, %c0_106], %106 {strides = array<i32>} : memref<1x16x16x4xf32, #tpu.memory_space<vmem>>, vector<1x16x16x4xf32>,
    return
  }
  func.func @transform_0(%arg0: i32) -> (i32, i32, i32, i32) {
    %c0_i32 = arith.constant 0 : i32
    %c0_i32_0 = arith.constant 0 : i32
    %c0_i32_1 = arith.constant 0 : i32
    %c0_i32_2 = arith.constant 0 : i32
    return %arg0, %c0_i32, %c0_i32_0, %c0_i32_1 : i32, i32, i32, i32
  }
  func.func @transform_1(%arg0: i32) -> (i32, i32) {
    %c0_i32 = arith.constant 0 : i32
    %c0_i32_0 = arith.constant 0 : i32
    %c0_i32_1 = arith.constant 0 : i32
    return %c0_i32, %c0_i32_0 : i32, i32
  }
  func.func @transform_2(%arg0: i32) -> (i32, i32) {
    %c0_i32 = arith.constant 0 : i32
    %c0_i32_0 = arith.constant 0 : i32
    %c0_i32_1 = arith.constant 0 : i32
    return %c0_i32, %c0_i32_0 : i32, i32
  }
  func.func @transform_3(%arg0: i32) -> (i32, i32) {
    %c0_i32 = arith.constant 0 : i32
    %c0_i32_0 = arith.constant 0 : i32
    %c0_i32_1 = arith.constant 0 : i32
    return %c0_i32, %c0_i32_0 : i32, i32
  }
  func.func @transform_4(%arg0: i32) -> (i32, i32) {
    %c0_i32 = arith.constant 0 : i32
    %c0_i32_0 = arith.constant 0 : i32
    %c0_i32_1 = arith.constant 0 : i32
    return %c0_i32, %c0_i32_0 : i32, i32
  }
  func.func @transform_5(%arg0: i32) -> (i32, i32) {
    %c0_i32 = arith.constant 0 : i32
    %c0_i32_0 = arith.constant 0 : i32
    %c0_i32_1 = arith.constant 0 : i32
    return %c0_i32, %c0_i32_0 : i32, i32
  }
  func.func @transform_6(%arg0: i32) -> (i32, i32) {
    %c0_i32 = arith.constant 0 : i32
    %c0_i32_0 = arith.constant 0 : i32
    %c0_i32_1 = arith.constant 0 : i32
    return %c0_i32, %c0_i32_0 : i32, i32
  }
  func.func @transform_7(%arg0: i32) -> (i32, i32, i32, i32) {
    %c0_i32 = arith.constant 0 : i32
    %c0_i32_0 = arith.constant 0 : i32
    %c0_i32_1 = arith.constant 0 : i32
    %c0_i32_2 = arith.constant 0 : i32
    return %arg0, %c0_i32, %c0_i32_0, %c0_i32_1 : i32, i32, i32, i32
  }
}

</mosaic_0001>

<bundles_post_ra>
// kernel: tpu_custom_call.1
= control target key start
LH: loop header
LB: loop body
LE: loop exit
PB: predicated region body
PF: predicated region fallthrough
CT: control target
= control target key end

     0   :  { %s7580_s24 = smov 0   ;;  %s11329_s0 = inlined_call_operand.vmem [shape: f32[2,16,16,4], index: 0, kind: input, shape index: {}]   ;;  %s11330_s1 = inlined_call_operand.vmem [shape: bf16[4,2], index: 1, kind: input, shape index: {}]   ;;  %s11331_s2 = inlined_call_operand.vmem [shape: f32[1,2], index: 2, kind: input, shape index: {}]   ;;  %s11332_s3 = inlined_call_operand.vmem [shape: f32[1,2], index: 3, kind: input, shape index: {}]   ;;  %s11333_s4 = inlined_call_operand.vmem [shape: bf16[8,4], index: 4, kind: input, shape index: {}]   ;;  %s11334_s5 = inlined_call_operand.vmem [shape: f32[1,4], index: 5, kind: input, shape index: {}]   ;;  %s11335_s6 = inlined_call_operand.vmem [shape: f32[1,4], index: 6, kind: input, shape index: {}]   ;;  %s11336_s7 = inlined_call_operand.vmem [shape: f32[2,16,16,4], index: 7, kind: output, shape index: {}]  }
   0x1 LB: > { %s6869_s25 = sadd.s32 4294967295, %s7534_s24   ;;  %p6873_p0 = scmp.ge.s32.totalorder %s7534_s24, 1  ;;  %s7534_s24 = sphi %s7580_s24, %s17_s24  }
   0x2   : > { %p237_p1 = scmp.lt.s32.totalorder %s7534_s24, 3 }
   0x4   : > { %p238_p2 = pnand %p6873_p0, %p237_p1 }
   0x6   : > { %241 = sbr.rel (%p238_p2) target bundleno = 1425 (0x591), region = 48 }
   0xd   : > { %v329_v0 = vld [vmem:[%s11330_s1] sm:$0x3]  ;;  %vm379_vm0 = vcmask 1041408   ;;  %p269_p3 = scmp.lt.s32.totalorder %s6869_s25, 1  ;;  %vm330_vm1 = vcmask 31744   ;;  %vm830_vm2 = vcmask 11264  }
   0xe   : > { %7252 = vmatprep.subr.msk.bf16.mxu0 %vm379_vm0, %v329_v0  ;;  %v381_v1 = vsel %vm379_vm0, %v329_v0, 0  ;;  %vm845_vm3 = vcmask 8192   ;;  %v7536_v50 = vmov 4286644096   ;;  %vm866_vm4 = vcmask 9217   ;;  %s7537_s13 = smov 2  }
   0xf   : > { %7185 = vmatpush3.bf16.msra.mxu0 %v381_v1  ;;  %s11524_s25 = smov (!%p269_p3, %s6869_s25), 1  ;;  %861 = vst.msk [vmem:[#allocation2 + $0xb4] sm:$0x1] %vm845_vm3, %v7536_v50  ;;  %848 = vst.msk [vmem:[#allocation2 + $0x18] sm:$0x1] %vm845_vm3, %v7536_v50  ;;  %vm833_vm5 = vcmask 9216  }
  0x10   : > { %s7116_s28 = sshll.u32 %s11524_s25, 8  ;;  %831 = vst.msk [vmem:[#allocation2] sm:$0xf] %vm830_vm2, %v7536_v50  ;;  %832 = vst.msk [vmem:[#allocation2 + $0x4] sm:$0xf] %vm830_vm2, %v7536_v50  ;;  %vm1971_vm9 = vcmask 1042432  }
  0x11   : > { %s7601_s8 = scalar_lea.vmem %s11329_s0, %s7116_s28  ;;  %835 = vst.msk [vmem:[#allocation2 + $0xc] sm:$0xf] %vm830_vm2, %v7536_v50  ;;  %836 = vst.msk [vmem:[#allocation2 + $0x10] sm:$0xf] %vm830_vm2, %v7536_v50  ;;  %vm1208_vm6 = vsmask.f32 3328  ;;  %s11179_s26 = scalar_lea.vmem %s11336_s7, %s7116_s28 }
  0x12   : > { %v281_v2 = vld [vmem:[%s7601_s8] sm:$0xff]  ;;  %v282_v3 = vld [vmem:[%s7601_s8 + $0x8] sm:$0xff]  ;;  %v283_v4 = vld [vmem:[%s7601_s8 + $0x10] sm:$0xff]  ;;  %839 = vst.msk [vmem:[#allocation2 + $0xd8] sm:$0xf] %vm830_vm2, %v7536_v50  ;;  %vm1972_vm10 = vcmask 1046532  }
  0x13   : > { %v313_v5 = vpack.c.bf16 %v282_v3, %v281_v2  ;;  %v284_v6 = vld [vmem:[%s7601_s8 + $0x18] sm:$0xff]  ;;  %v285_v7 = vld [vmem:[%s7601_s8 + $0x20] sm:$0xff]  ;;  %v286_v8 = vld [vmem:[%s7601_s8 + $0x28] sm:$0xff]  ;;  %840 = vst.msk [vmem:[#allocation2 + $0xdc] sm:$0xf] %vm830_vm2, %v7536_v50  ;;  %vm967_vm11 = vcmask 1040384  }
  0x14   : > { %v314_v9 = vpack.c.bf16 %v284_v6, %v283_v4  ;;  %v315_v10 = vpack.c.bf16 %v286_v8, %v285_v7  ;;  %v287_v11 = vld [vmem:[%s7601_s8 + $0x30] sm:$0xff]  ;;  %v288_v12 = vld [vmem:[%s7601_s8 + $0x38] sm:$0xff]  ;;  %v289_v13 = vld [vmem:[%s7601_s8 + $0x40] sm:$0xff]  ;;  %842 = vst.msk [vmem:[#allocation2 + $0xe4] sm:$0xf] %vm830_vm2, %v7536_v50  ;;  %vm968_vm12 = vcmask 1044484  }
  0x15   : > { %7186 = vmatprep.mubr.msk.bf16.mxu0 %vm330_vm1, %v313_v5  ;;  %v290_v14 = vld [vmem:[%s7601_s8 + $0x48] sm:$0xff]  ;;  %v316_v15 = vpack.c.bf16 %v288_v12, %v287_v11  ;;  %v291_v17 = vld [vmem:[%s7601_s8 + $0x50] sm:$0xff]  ;;  %v292_v18 = vld [vmem:[%s7601_s8 + $0x58] sm:$0xff]  ;;  %843 = vst.msk [vmem:[#allocation2 + $0xe8] sm:$0xf] %vm830_vm2, %v7536_v50  ;;  %vm1099_vm13 = vcmask 11265  }
  0x16   : > { %7187 = vmatmul.mubr.msk.bf16.vlgmr.msra.gmra.mrb[0].mxu0 %vm330_vm1, %v314_v9  ;;  %v317_v16 = vpack.c.bf16 %v290_v14, %v289_v13  ;;  %v293_v19 = vld [vmem:[%s7601_s8 + $0x60] sm:$0xff]  ;;  %v294_v20 = vld [vmem:[%s7601_s8 + $0x68] sm:$0xff]  ;;  %v318_v21 = vpack.c.bf16 %v292_v18, %v291_v17  ;;  %v295_v23 = vld [vmem:[%s7601_s8 + $0x70] sm:$0xff]  ;;  %849 = vst.msk [vmem:[#allocation2 + $0x24] sm:$0x1] %vm845_vm3, %v7536_v50  ;;  %s7538_s14 = smov 4  }
  0x17   : > { %7190 = vmatprep.mubr.msk.bf16.mxu0 %vm330_vm1, %v315_v10  ;;  %v319_v22 = vpack.c.bf16 %v294_v20, %v293_v19  ;;  %v296_v24 = vld [vmem:[%s7601_s8 + $0x78] sm:$0xff]  ;;  %v297_v25 = vld [vmem:[%s7601_s8 + $0x80] sm:$0xff]  ;;  %v298_v26 = vld [vmem:[%s7601_s8 + $0x88] sm:$0xff]  ;;  %850 = vst.msk [vmem:[#allocation2 + $0x30] sm:$0x1] %vm845_vm3, %v7536_v50  ;;  %s7539_s15 = smov 6  }
  0x18   : > { %v320_v27 = vpack.c.bf16 %v296_v24, %v295_v23  ;;  %v321_v28 = vpack.c.bf16 %v298_v26, %v297_v25  ;;  %v299_v29 = vld [vmem:[%s7601_s8 + $0x90] sm:$0xff]  ;;  %v300_v30 = vld [vmem:[%s7601_s8 + $0x98] sm:$0xff]  ;;  %v301_v31 = vld [vmem:[%s7601_s8 + $0xa0] sm:$0xff]  ;;  %851 = vst.msk [vmem:[#allocation2 + $0x3c] sm:$0x1] %vm845_vm3, %v7536_v50 }
  0x19   : > { %v302_v32 = vld [vmem:[%s7601_s8 + $0xa8] sm:$0xff]  ;;  %v322_v33 = vpack.c.bf16 %v300_v30, %v299_v29  ;;  %v303_v35 = vld [vmem:[%s7601_s8 + $0xb0] sm:$0xff]  ;;  %v304_v36 = vld [vmem:[%s7601_s8 + $0xb8] sm:$0xff]  ;;  %852 = vst.msk [vmem:[#allocation2 + $0x48] sm:$0x1] %vm845_vm3, %v7536_v50 }
  0x1a   : > { %v323_v34 = vpack.c.bf16 %v302_v32, %v301_v31  ;;  %v305_v37 = vld [vmem:[%s7601_s8 + $0xc0] sm:$0xff]  ;;  %v306_v38 = vld [vmem:[%s7601_s8 + $0xc8] sm:$0xff]  ;;  %v324_v39 = vpack.c.bf16 %v304_v36, %v303_v35  ;;  %v307_v41 = vld [vmem:[%s7601_s8 + $0xd0] sm:$0xff]  ;;  %853 = vst.msk [vmem:[#allocation2 + $0x54] sm:$0x1] %vm845_vm3, %v7536_v50 }
  0x1b   : > { %v325_v40 = vpack.c.bf16 %v306_v38, %v305_v37  ;;  %v308_v42 = vld [vmem:[%s7601_s8 + $0xd8] sm:$0xff]  ;;  %v309_v43 = vld [vmem:[%s7601_s8 + $0xe0] sm:$0xff]  ;;  %v310_v44 = vld [vmem:[%s7601_s8 + $0xe8] sm:$0xff]  ;;  %854 = vst.msk [vmem:[#allocation2 + $0x60] sm:$0x1] %vm845_vm3, %v7536_v50 }
  0x1c   : > { %v326_v45 = vpack.c.bf16 %v308_v42, %v307_v41  ;;  %v327_v46 = vpack.c.bf16 %v310_v44, %v309_v43  ;;  %v311_v47 = vld [vmem:[%s7601_s8 + $0xf0] sm:$0xff]  ;;  %v312_v48 = vld [vmem:[%s7601_s8 + $0xf8] sm:$0xff]  ;;  %855 = vst.msk [vmem:[#allocation2 + $0x6c] sm:$0x1] %vm845_vm3, %v7536_v50  ;;  %856 = vst.msk [vmem:[#allocation2 + $0x78] sm:$0x1] %vm845_vm3, %v7536_v50 }
  0x1d   : > { %v328_v49 = vpack.c.bf16 %v312_v48, %v311_v47  ;;  %857 = vst.msk [vmem:[#allocation2 + $0x84] sm:$0x1] %vm845_vm3, %v7536_v50  ;;  %858 = vst.msk [vmem:[#allocation2 + $0x90] sm:$0x1] %vm845_vm3, %v7536_v50  ;;  %v1149_v52 = vld [vmem:[#allocation2 + $0x4] sm:$0xf] }
  0x1e   : > { %7191 = vmatmul.mubr.msk.bf16.gmra.mrb[4].mxu0 %vm330_vm1, %v316_v15  ;;  %859 = vst.msk [vmem:[#allocation2 + $0x9c] sm:$0x1] %vm845_vm3, %v7536_v50  ;;  %860 = vst.msk [vmem:[#allocation2 + $0xa8] sm:$0x1] %vm845_vm3, %v7536_v50  ;;  %v1221_v56 = vshll.u32 %v1149_v52, 16  ;;  %v1225_v57 = vshrl.u32 %v1149_v52, 16 }
  0x1f   : > { %7194 = vmatprep.mubr.msk.bf16.mxu0 %vm330_vm1, %v317_v16  ;;  %862 = vst.msk [vmem:[#allocation2 + $0xc0] sm:$0x1] %vm845_vm3, %v7536_v50  ;;  %863 = vst.msk [vmem:[#allocation2 + $0xcc] sm:$0x1] %vm845_vm3, %v7536_v50  ;;  %v1152_v59 = vld [vmem:[#allocation2 + $0x10] sm:$0xf] }
  0x20   : > { %846 = vst.msk [vmem:[#allocation2] sm:$0x1] %vm845_vm3, %v7536_v50  ;;  %847 = vst.msk [vmem:[#allocation2 + $0xc] sm:$0x1] %vm845_vm3, %v7536_v50  ;;  %v7699_v0 = vrot.slane %v1221_v56, 5  ;;  %v1227_v1 = vrot.slane %v1225_v57, 4 }
  0x21   : > { %864 = vst.msk [vmem:[#allocation2 + $0xd8] sm:$0x1] %vm845_vm3, %v7536_v50  ;;  %865 = vst.msk [vmem:[#allocation2 + $0xe4] sm:$0x1] %vm845_vm3, %v7536_v50  ;;  %v1250_v4 = vshll.u32 %v1152_v59, 16  ;;  %v1254_v5 = vshrl.u32 %v1152_v59, 16 }
  0x22   : > { %882 = vst.msk [vmem:[#allocation2 + $0xbc] sm:$0x2] %vm866_vm4, %v7536_v50  ;;  %869 = vst.msk [vmem:[#allocation2 + $0x20] sm:$0x2] %vm866_vm4, %v7536_v50  ;;  %v1228_v10 = vor.u32 %v1227_v1, %v7699_v0  ;;  %v7709_v18 = vld [vmem:[%s11331_s2] ss:$0 sm:$0xff] }
  0x23   : > { %870 = vst.msk [vmem:[#allocation2 + $0x2c] sm:$0x2] %vm866_vm4, %v7536_v50  ;;  %871 = vst.msk [vmem:[#allocation2 + $0x38] sm:$0x2] %vm866_vm4, %v7536_v50  ;;  %v7704_v13 = vrot.slane %v1250_v4, 5  ;;  %v1256_v14 = vrot.slane %v1254_v5, 4 }
  0x24   : > { %872 = vst.msk [vmem:[#allocation2 + $0x44] sm:$0x2] %vm866_vm4, %v7536_v50  ;;  %873 = vst.msk [vmem:[#allocation2 + $0x50] sm:$0x2] %vm866_vm4, %v7536_v50  ;;  %vm1209_vm7 = vsmask.f32 7440 }
  0x25   : > { %874 = vst.msk [vmem:[#allocation2 + $0x5c] sm:$0x2] %vm866_vm4, %v7536_v50  ;;  %875 = vst.msk [vmem:[#allocation2 + $0x68] sm:$0x2] %vm866_vm4, %v7536_v50  ;;  %v7713_v20 = vrot.slane %v1228_v10, 4 }
  0x26   : > { %7195 = vmatmul.mubr.msk.bf16.gmra.mrb[8].mxu0 %vm330_vm1, %v318_v21  ;;  %876 = vst.msk [vmem:[#allocation2 + $0x74] sm:$0x2] %vm866_vm4, %v7536_v50  ;;  %877 = vst.msk [vmem:[#allocation2 + $0x80] sm:$0x2] %vm866_vm4, %v7536_v50  ;;  %v7720_v24 = vld [vmem:[%s11332_s3] ss:$0 sm:$0xff] }
  0x27   : > { %7198 = vmatprep.mubr.msk.bf16.mxu0 %vm330_vm1, %v319_v22  ;;  %878 = vst.msk [vmem:[#allocation2 + $0x8c] sm:$0x2] %vm866_vm4, %v7536_v50  ;;  %879 = vst.msk [vmem:[#allocation2 + $0x98] sm:$0x2] %vm866_vm4, %v7536_v50  ;;  %v1148_v51 = vld [vmem:[#allocation2] sm:$0xf]  ;;  %v1257_v22 = vor.u32 %v1256_v14, %v7704_v13 }
  0x28   : > { %880 = vst.msk [vmem:[#allocation2 + $0xa4] sm:$0x2] %vm866_vm4, %v7536_v50  ;;  %881 = vst.msk [vmem:[#allocation2 + $0xb0] sm:$0x2] %vm866_vm4, %v7536_v50  ;;  %v1151_v53 = vld [vmem:[#allocation2 + $0xc] sm:$0xf] }
  0x29   : > { %883 = vst.msk [vmem:[#allocation2 + $0xc8] sm:$0x2] %vm866_vm4, %v7536_v50  ;;  %884 = vst.msk [vmem:[#allocation2 + $0xd4] sm:$0x2] %vm866_vm4, %v7536_v50  ;;  %v1212_v54 = vshrl.u32 %v1148_v51, 16  ;;  %v1215_v55 = vshll.u32 %v1148_v51, 16 }
  0x2a   : > { %841 = vst.msk [vmem:[#allocation2 + $0xe0] sm:$0x3] %vm833_vm5, %v7536_v50  ;;  %834 = vst.msk [vmem:[#allocation2 + $0x8] sm:$0x3] %vm833_vm5, %v7536_v50  ;;  %v1241_v60 = vshrl.u32 %v1151_v53, 16  ;;  %v1244_v61 = vshll.u32 %v1151_v53, 16 }
  0x2b   : > { %837 = vst.msk [vmem:[#allocation2 + $0x14] sm:$0x3] %vm833_vm5, %v7536_v50  ;;  %844 = vst.msk [vmem:[#allocation2 + $0xec] sm:$0x3] %vm833_vm5, %v7536_v50  ;;  %v1214_v62 = vrot.slane %v1212_v54, 4  ;;  %v1217_v63 = vrot.slane %v1215_v55, 5 }
  0x2c   : > { %885 = vst.msk [vmem:[#allocation2 + $0xe0] sm:$0x2] %vm866_vm4, %v7536_v50  ;;  %867 = vst.msk [vmem:[#allocation2 + $0x8] sm:$0x2] %vm866_vm4, %v7536_v50  ;;  %v1243_v6 = vrot.slane %v1241_v60, 4  ;;  %v1246_v7 = vrot.slane %v1244_v61, 5 }
  0x2d   : > { %868 = vst.msk [vmem:[#allocation2 + $0x14] sm:$0x2] %vm866_vm4, %v7536_v50  ;;  %886 = vst.msk [vmem:[#allocation2 + $0xec] sm:$0x2] %vm866_vm4, %v7536_v50  ;;  %v1218_v9 = vor.u32 %v1217_v63, %v1214_v62  ;;  %v7752_v41 = vrot.slane %v1257_v22, 4  ;;  %vm2275_vm4 = vcmask 1045508  }
  0x2e   : > { %7199 = vmatmul.mubr.msk.bf16.gmra.mrb[12].mxu0 %vm330_vm1, %v320_v27  ;;  %v1247_v15 = vor.u32 %v1246_v7, %v1243_v6  ;;  %vm7729_vm8 = vmor %vm1208_vm6, %vm1209_vm7  ;;  %vm6006_vm6 = vcmask 31760   ;;  %vm6347_vm7 = vcmask 1043456  }
  0x2f   : > { %7202 = vmatprep.mubr.msk.bf16.mxu0 %vm330_vm1, %v321_v28  ;;  %v7711_v19 = vrot.slane %v1218_v9, 4  ;;  %vm7864_vm14 = vmor %vm1971_vm9, %vm1972_vm10 }
  0x30   : > { %v7722_v25 = vrot.slane %v1247_v15, 4  ;;  %vm7903_vm15 = vmor %vm967_vm11, %vm968_vm12 }
  0x31   : > { %vm8160_vm5 = vmor %vm379_vm0, %vm2275_vm4  ;;  %vm5893_vm0 = vcmask 15360  }
  0x33   : > { %v1150_v58 = vld [vmem:[#allocation2 + $0x8] sm:$0x3]  ;;  %v7780_v7 = vld [vmem:[#allocation2 + $0xe0] sm:$0x3] }
  0x34   : > { %v1231_v2 = vshll.u32 %v1150_v58, 16  ;;  %v1235_v3 = vshrl.u32 %v1150_v58, 16  ;;  %v1153_v8 = vld [vmem:[#allocation2 + $0x14] sm:$0x3] }
  0x35   : > { %v1260_v16 = vshll.u32 %v1153_v8, 16  ;;  %v1264_v17 = vshrl.u32 %v1153_v8, 16 }
  0x36   : > { %7203 = vmatmul.mubr.msk.bf16.gmra.mrb[16].mxu0 %vm330_vm1, %v322_v33  ;;  %v7702_v11 = vrot.slane %v1231_v2, 5  ;;  %v1237_v12 = vrot.slane %v1235_v3, 4  ;;  %v7734_v33 = vld [vmem:[#allocation2 + $0xd8] sm:$0xf] }
  0x37   : > { %7206 = vmatprep.mubr.msk.bf16.mxu0 %vm330_vm1, %v323_v34  ;;  %v7724_v26 = vrot.slane %v1260_v16, 5  ;;  %v7726_v27 = vrot.slane %v1264_v17, 4  ;;  %v1734_v48 = vshrl.u32 %v7734_v33, 16 }
  0x38   : > { %v1238_v21 = vor.u32 %v1237_v12, %v7702_v11 }
  0x39   : > { %v1736_v56 = vrot.slane %v1734_v48, 4 }
  0x3e   : > { %7207 = vmatmul.mubr.msk.bf16.gmra.mrb[20].mxu0 %vm330_vm1, %v324_v39  ;;  %v7748_v39 = vld [vmem:[#allocation2 + $0xdc] sm:$0xf] }
  0x3f   : > { %7210 = vmatprep.mubr.msk.bf16.mxu0 %vm330_vm1, %v325_v40  ;;  %v7750_v40 = vrot.slane %v1238_v21, 4  ;;  %v1743_v52 = vshll.u32 %v7748_v39, 16  ;;  %v1747_v53 = vshrl.u32 %v7748_v39, 16 }
  0x41   : > { %v1745_v61 = vrot.slane %v1743_v52, 5  ;;  %v1749_v62 = vrot.slane %v1747_v53, 4 }
  0x43   : > { %v1750_v8 = vor.u32 %v1749_v62, %v1745_v61 }
  0x45   : > { %v1751_v17 = vrot.slane %v1750_v8, 4 }
  0x46   : > { %7211 = vmatmul.mubr.msk.bf16.gmra.mrb[24].mxu0 %vm330_vm1, %v326_v45  ;;  %v1267_v45 = vor.u32 %v7726_v27, %v7724_v26  ;;  %v1753_v27 = vshll.u32 %v7780_v7, 16 }
  0x47   : > { %7214 = vmatprep.mubr.msk.bf16.mxu0 %vm330_vm1, %v327_v46 }
  0x4e   : > { %7215 = vmatmul.mubr.msk.bf16.gmra.mrb[28].mxu0 %vm330_vm1, %v328_v49  ;;  %v1737_v49 = vshll.u32 %v7734_v33, 16 }
  0x50   : > { %v1739_v57 = vrot.slane %v1737_v49, 5 }
  0x52   : > { %v1740_v3 = vor.u32 %v1739_v57, %v1736_v56 }
  0x54   : > { %v1741_v14 = vrot.slane %v1740_v3, 4 }
  0xe9   : > { %v7188_v23 = vpop.f32.mrb[0].mxu0 }
  0xea   : > { %v553_v28 = vmul.f32 %v7188_v23, %v7709_v18  ;;  %v417_v29 = vpop.f32.mrb[1].mxu0  ;;  %v1746_v23 = vsel %vm7729_vm8, %v1741_v14, %v1745_v61 }
  0xeb   : > { %v551_v31 = vmul.f32 %v7709_v18, %v417_v29  ;;  %v7189_v32 = vpop.f32.mrb[2].mxu0  ;;  %v7811_v53 = vmax.bf16 %v1746_v23, %v7734_v33 }
  0xec   : > { %v7745_v36 = vadd.f32 %v7720_v24, %v553_v28  ;;  %v554_v37 = vmul.f32 %v7189_v32, %v7709_v18  ;;  %v420_v38 = vpop.f32.mrb[3].mxu0 }
  0xed   : > { %v7755_v42 = vadd.f32 %v7720_v24, %v551_v31  ;;  %v552_v43 = vmul.f32 %v7709_v18, %v420_v38  ;;  %v1757_v31 = vshrl.u32 %v7780_v7, 16 }
  0xee   : > { %v624_v46 = vsub.f32 0.0, %v7745_v36  ;;  %v7766_v47 = vadd.f32 %v7720_v24, %v554_v37 }
  0xef   : > { %v622_v50 = vsub.f32 0.0, %v7755_v42  ;;  %v7772_v51 = vadd.f32 %v7720_v24, %v552_v43  ;;  %v1755_v43 = vrot.slane %v1753_v27, 5  ;;  %v1759_v52 = vrot.slane %v1757_v31, 4 }
  0xf0   : > { %v658_v54 = vmul.f32 1.442695, %v624_v46  ;;  %v625_v55 = vsub.f32 0.0, %v7766_v47  ;;  %v7807_v46 = vrot.slane %v1267_v45, 4 }
  0xf1   : > { %v654_v58 = vmul.f32 1.442695, %v622_v50  ;;  %v623_v59 = vsub.f32 0.0, %v7772_v51  ;;  %v7192_v60 = vpop.f32.mrb[4].mxu0  ;;  %v1756_v57 = vsel %vm7729_vm8, %v1751_v17, %v1755_v43 }
  0xf2   : > { %7266 = vpow2.f32 %v658_v54  ;;  %v660_v63 = vmul.f32 1.442695, %v625_v55  ;;  %v557_v1 = vmul.f32 %v7192_v60, %v7709_v18  ;;  %v433_v2 = vpop.f32.mrb[5].mxu0  ;;  %v1760_v60 = vor.u32 %v1759_v52, %v1755_v43 }
  0xf3   : > { %7268 = vpow2.f32 %v654_v58  ;;  %v656_v4 = vmul.f32 1.442695, %v623_v59  ;;  %v555_v5 = vmul.f32 %v7709_v18, %v433_v2  ;;  %v7193_v6 = vpop.f32.mrb[6].mxu0 }
  0xf4   : > { %7270 = vpow2.f32 %v660_v63  ;;  %v7783_v9 = vadd.f32 %v7720_v24, %v557_v1  ;;  %v558_v10 = vmul.f32 %v7193_v6, %v7709_v18  ;;  %v436_v12 = vpop.f32.mrb[7].mxu0  ;;  %v7822_v1 = vmax.bf16 %v1756_v57, %v7748_v39 }
  0xf5   : > { %7272 = vpow2.f32 %v656_v4  ;;  %v7787_v15 = vadd.f32 %v7720_v24, %v555_v5  ;;  %v556_v16 = vmul.f32 %v7709_v18, %v436_v12  ;;  %v1761_v14 = vrot.slane %v1760_v60, 4 }
  0xf6   : > { %v628_v21 = vsub.f32 0.0, %v7783_v9  ;;  %v7792_v22 = vadd.f32 %v7720_v24, %v558_v10 }
  0xf7   : > { %v626_v28 = vsub.f32 0.0, %v7787_v15  ;;  %v7799_v29 = vadd.f32 %v7720_v24, %v556_v16 }
  0xf8   : > { %v666_v37 = vmul.f32 1.442695, %v628_v21  ;;  %v629_v38 = vsub.f32 0.0, %v7792_v22 }
  0xf9   : > { %v662_v48 = vmul.f32 1.442695, %v626_v28  ;;  %v627_v49 = vsub.f32 0.0, %v7799_v29  ;;  %v7196_v50 = vpop.f32.mrb[8].mxu0 }
  0xfa   : > { %7274 = vpow2.f32 %v666_v37  ;;  %v668_v54 = vmul.f32 1.442695, %v629_v38  ;;  %v561_v55 = vmul.f32 %v7196_v50, %v7709_v18  ;;  %v449_v56 = vpop.f32.mrb[9].mxu0 }
  0xfb   : > { %7276 = vpow2.f32 %v662_v48  ;;  %v664_v58 = vmul.f32 1.442695, %v627_v49  ;;  %v559_v45 = vmul.f32 %v7709_v18, %v449_v56  ;;  %v7197_v59 = vpop.f32.mrb[10].mxu0  ;;  %v1907_v48 = vmax.bf16 %v1761_v14, %v7780_v7 }
  0xfc   : > { %v7267_v61 = vpop.eup %7266  ;;  %7278 = vpow2.f32 %v668_v54  ;;  %v7818_v62 = vadd.f32 %v7720_v24, %v561_v55  ;;  %v562_v33 = vmul.f32 %v7197_v59, %v7709_v18  ;;  %v452_v63 = vpop.f32.mrb[11].mxu0  ;;  %v6946_v54 = vrot.slane %v7811_v53, 9 }
  0xfd   : > { %v7269_v2 = vpop.eup %7268  ;;  %v720_v3 = vadd.f32 1.0, %v7267_v61  ;;  %7280 = vpow2.f32 %v664_v58  ;;  %v7825_v4 = vadd.f32 %v7720_v24, %v559_v45  ;;  %v560_v5 = vmul.f32 %v7709_v18, %v452_v63 }
  0xfe   : > { %v7271_v6 = vpop.eup %7270  ;;  %v718_v8 = vadd.f32 1.0, %v7269_v2  ;;  %v632_v10 = vsub.f32 0.0, %v7818_v62  ;;  %v7830_v12 = vadd.f32 %v7720_v24, %v562_v33  ;;  %v11337_v58 = vrot.slane %v7822_v1, 5 }
  0xff   : > { %v7273_v16 = vpop.eup %7272  ;;  %7282 = vrcp.f32 %v720_v3  ;;  %v721_v17 = vadd.f32 1.0, %v7271_v6  ;;  %v630_v21 = vsub.f32 0.0, %v7825_v4  ;;  %v7834_v23 = vadd.f32 %v7720_v24, %v560_v5 }
 0x100   : > { %7284 = vrcp.f32 %v718_v8  ;;  %v719_v27 = vadd.f32 1.0, %v7273_v16  ;;  %v674_v28 = vmul.f32 1.442695, %v632_v10  ;;  %v633_v31 = vsub.f32 0.0, %v7830_v12 }
 0x101   : > { %7286 = vrcp.f32 %v721_v17  ;;  %v670_v37 = vmul.f32 1.442695, %v630_v21  ;;  %v631_v38 = vsub.f32 0.0, %v7834_v23  ;;  %v7200_v43 = vpop.f32.mrb[12].mxu0  ;;  %v7847_v33 = vrot.slane %v1907_v48, 5 }
 0x102   : > { %7288 = vrcp.f32 %v719_v27  ;;  %v676_v49 = vmul.f32 1.442695, %v633_v31  ;;  %v565_v50 = vmul.f32 %v7200_v43, %v7709_v18  ;;  %v465_v52 = vpop.f32.mrb[13].mxu0 }
 0x103   : > { %7290 = vpow2.f32 %v674_v28  ;;  %v672_v55 = vmul.f32 1.442695, %v631_v38  ;;  %v563_v56 = vmul.f32 %v7709_v18, %v465_v52  ;;  %v7201_v57 = vpop.f32.mrb[14].mxu0  ;;  %v7873_v52 = vsel %vm7864_vm14, %v6946_v54, %v11337_v58 }
 0x104   : > { %v7275_v45 = vpop.eup %7274  ;;  %7292 = vpow2.f32 %v670_v37  ;;  %v7844_v59 = vadd.f32 %v7720_v24, %v565_v50  ;;  %v566_v60 = vmul.f32 %v7201_v57, %v7709_v18  ;;  %v468_v61 = vpop.f32.mrb[15].mxu0 }
 0x105   : > { %v7277_v63 = vpop.eup %7276  ;;  %v724_v2 = vadd.f32 1.0, %v7275_v45  ;;  %7294 = vpow2.f32 %v676_v49  ;;  %v7850_v3 = vadd.f32 %v7720_v24, %v563_v56  ;;  %v564_v5 = vmul.f32 %v7709_v18, %v468_v61 }
 0x106   : > { %v7279_v6 = vpop.eup %7278  ;;  %v722_v8 = vadd.f32 1.0, %v7277_v63  ;;  %7296 = vpow2.f32 %v672_v55  ;;  %v636_v10 = vsub.f32 0.0, %v7844_v59  ;;  %v7855_v14 = vadd.f32 %v7720_v24, %v566_v60 }
 0x107   : > { %v7281_v16 = vpop.eup %7280  ;;  %7298 = vrcp.f32 %v724_v2  ;;  %v725_v17 = vadd.f32 1.0, %v7279_v6  ;;  %v634_v21 = vsub.f32 0.0, %v7850_v3  ;;  %v7859_v27 = vadd.f32 %v7720_v24, %v564_v5 }
 0x108   : > { %7300 = vrcp.f32 %v722_v8  ;;  %v723_v28 = vadd.f32 1.0, %v7281_v16  ;;  %v682_v31 = vmul.f32 1.442695, %v636_v10  ;;  %v637_v37 = vsub.f32 0.0, %v7855_v14 }
 0x109   : > { %v7283_v43 = vpop.eup %7282  ;;  %7302 = vrcp.f32 %v725_v17  ;;  %v678_v48 = vmul.f32 1.442695, %v634_v21  ;;  %v635_v49 = vsub.f32 0.0, %v7859_v27  ;;  %v7204_v50 = vpop.f32.mrb[16].mxu0 }
 0x10a   : > { %v7285_v55 = vpop.eup %7284  ;;  %v7876_v56 = vmul.f32 %v7283_v43, %v7745_v36  ;;  %7304 = vrcp.f32 %v723_v28  ;;  %v684_v57 = vmul.f32 1.442695, %v637_v37  ;;  %v569_v45 = vmul.f32 %v7204_v50, %v7709_v18  ;;  %v481_v60 = vpop.f32.mrb[17].mxu0 }
 0x10b   : > { %v7287_v61 = vpop.eup %7286  ;;  %v7880_v63 = vmul.f32 %v7285_v55, %v7755_v42  ;;  %7306 = vpow2.f32 %v682_v31  ;;  %v680_v2 = vmul.f32 1.442695, %v635_v49  ;;  %v567_v5 = vmul.f32 %v7709_v18, %v481_v60  ;;  %v7205_v6 = vpop.f32.mrb[18].mxu0 }
 0x10c   : > { %11394 = vst [vmem:[#allocation4_spill] sm:$0xff] %v7876_v56  ;;  %v7289_v54 = vpop.eup %7288  ;;  %v7120_v8 = vpack.c.bf16 %v7876_v56, %v7876_v56  ;;  %v7886_v36 = vmul.f32 %v7287_v61, %v7766_v47  ;;  %7308 = vpow2.f32 %v678_v48  ;;  %v7889_v10 = vadd.f32 %v7720_v24, %v569_v45  ;;  %v484_v16 = vpop.f32.mrb[19].mxu0 }
 0x10d   : > { %11395 = vst [vmem:[#allocation5_spill] sm:$0xff] %v7880_v63  ;;  %v7291_v17 = vpop.eup %7290  ;;  %v7118_v42 = vpack.c.bf16 %v7880_v63, %v7880_v63  ;;  %v7894_v21 = vmul.f32 %v7289_v54, %v7772_v51  ;;  %7310 = vpow2.f32 %v684_v57  ;;  %v7897_v28 = vadd.f32 %v7720_v24, %v567_v5 }
 0x10e   : > { %11396 = vst [vmem:[#allocation6_spill] sm:$0xff] %v7886_v36  ;;  %v7293_v31 = vpop.eup %7292  ;;  %v975_v37 = vrot.slane %v7120_v8, 7  ;;  %v7121_v47 = vpack.c.bf16 %v7886_v36, %v7886_v36  ;;  %v728_v43 = vadd.f32 1.0, %v7291_v17  ;;  %7312 = vpow2.f32 %v680_v2 }
 0x10f   : > { %11397 = vst [vmem:[#allocation7_spill] sm:$0xff] %v7894_v21  ;;  %v7295_v48 = vpop.eup %7294  ;;  %v970_v49 = vrot.slane %v7118_v42, 7  ;;  %v7119_v51 = vpack.c.bf16 %v7894_v21, %v7894_v21  ;;  %v726_v55 = vadd.f32 1.0, %v7293_v31  ;;  %v640_v57 = vsub.f32 0.0, %v7889_v10 }
 0x110   : > { %v7297_v45 = vpop.eup %7296  ;;  %v976_v60 = vrot.slane %v975_v37, 4  ;;  %1103 = vst.msk [vmem:[#allocation2 + $0x24] sm:$0xe] %vm1099_vm13, %v975_v37  ;;  %v977_v61 = vrot.slane %v7121_v47, 7  ;;  %7314 = vrcp.f32 %v728_v43  ;;  %v729_v2 = vadd.f32 1.0, %v7295_v48 }
 0x111   : > { %v7299_v5 = vpop.eup %7298  ;;  %v971_v54 = vrot.slane %v970_v49, 4  ;;  %1100 = vst.msk [vmem:[#allocation2 + $0x18] sm:$0xe] %vm1099_vm13, %v970_v49  ;;  %v972_v8 = vrot.slane %v7119_v51, 7  ;;  %7316 = vrcp.f32 %v726_v55  ;;  %v727_v17 = vadd.f32 1.0, %v7297_v45  ;;  %v7912_v42 = vpop.f32.mrb[20].mxu0 }
 0x112   : > { %v7301_v32 = vpop.eup %7300  ;;  %v978_v31 = vsel %vm7903_vm15, %v976_v60, %v977_v61  ;;  %v979_v44 = vrot.slane %v977_v61, 4  ;;  %v7917_v35 = vmul.f32 %v7299_v5, %v7783_v9  ;;  %7318 = vrcp.f32 %v729_v2  ;;  %v7919_v37 = vpop.f32.mrb[21].mxu0 }
 0x113   : > { %v7303_v47 = vpop.eup %7302  ;;  %1104 = vst.msk [vmem:[#allocation2 + $0x28] sm:$0xf] %vm830_vm2, %v978_v31  ;;  %v973_v43 = vsel %vm7903_vm15, %v971_v54, %v972_v8  ;;  %v974_v48 = vrot.slane %v972_v8, 4  ;;  %v7925_v49 = vmul.f32 %v7301_v32, %v7787_v15  ;;  %7320 = vrcp.f32 %v727_v17  ;;  %v7927_v51 = vpop.f32.mrb[22].mxu0 }
 0x114   : > { %11400 = vst [vmem:[#allocation8_spill] sm:$0xff] %v7917_v35  ;;  %v7305_v55 = vpop.eup %7304  ;;  %1105 = vst.msk [vmem:[#allocation2 + $0x2c] sm:$0x1] %vm845_vm3, %v979_v44  ;;  %v7124_v9 = vpack.c.bf16 %v7917_v35, %v7917_v35  ;;  %v7934_v45 = vmul.f32 %v7303_v47, %v7792_v22  ;;  %v690_v60 = vmul.f32 1.442695, %v640_v57  ;;  %v638_v61 = vsub.f32 0.0, %v7897_v28 }
 0x115   : > { %11401 = vst [vmem:[#allocation9_spill] sm:$0xff] %v7925_v49  ;;  %1101 = vst.msk [vmem:[#allocation2 + $0x1c] sm:$0xf] %vm830_vm2, %v973_v43  ;;  %v7937_v2 = vpop.f32.mrb[23].mxu0  ;;  %v7307_v15 = vpop.eup %7306  ;;  %v7122_v32 = vpack.c.bf16 %v7925_v49, %v7925_v49  ;;  %v7943_v44 = vmul.f32 %v7305_v55, %v7799_v29  ;;  %v570_v5 = vmul.f32 %v7205_v6, %v7709_v18 }
 0x116   : > { %11402 = vst [vmem:[#allocation10_spill] sm:$0xff] %v7934_v45  ;;  %1102 = vst.msk [vmem:[#allocation2 + $0x20] sm:$0x1] %vm845_vm3, %v974_v48  ;;  %v568_v54 = vmul.f32 %v7709_v18, %v484_v16  ;;  %v7309_v22 = vpop.eup %7308  ;;  %v985_v8 = vrot.slane %v7124_v9, 7  ;;  %v7125_v57 = vpack.c.bf16 %v7934_v45, %v7934_v45  ;;  %v732_v17 = vadd.f32 1.0, %v7307_v15 }
 0x117   : > { %11403 = vst [vmem:[#allocation11_spill] sm:$0xff] %v7943_v44  ;;  %7322 = vpow2.f32 %v690_v60  ;;  %v7311_v31 = vpop.eup %7310  ;;  %v980_v47 = vrot.slane %v7122_v32, 7  ;;  %v7123_v43 = vpack.c.bf16 %v7943_v44, %v7943_v44  ;;  %v730_v48 = vadd.f32 1.0, %v7309_v22 }
 0x118   : > { %v686_v34 = vmul.f32 1.442695, %v638_v61  ;;  %v7313_v29 = vpop.eup %7312  ;;  %v986_v55 = vrot.slane %v985_v8, 4  ;;  %1109 = vst.msk [vmem:[#allocation2 + $0x3c] sm:$0xe] %vm1099_vm13, %v985_v8  ;;  %v987_v6 = vrot.slane %v7125_v57, 7  ;;  %7324 = vrcp.f32 %v732_v17 }
 0x119   : > { %v733_v16 = vadd.f32 1.0, %v7311_v31  ;;  %v981_v9 = vrot.slane %v980_v47, 4  ;;  %1106 = vst.msk [vmem:[#allocation2 + $0x30] sm:$0xe] %vm1099_vm13, %v980_v47  ;;  %v982_v58 = vrot.slane %v7123_v43, 7  ;;  %7326 = vrcp.f32 %v730_v48  ;;  %v7953_v15 = vpop.f32.mrb[24].mxu0 }
 0x11a   : > { %v731_v60 = vadd.f32 1.0, %v7313_v29  ;;  %v7315_v32 = vpop.eup %7314  ;;  %v988_v22 = vsel %vm7903_vm15, %v986_v55, %v987_v6  ;;  %v989_v61 = vrot.slane %v987_v6, 4  ;;  %v7958_v45 = vadd.f32 %v7720_v24, %v570_v5  ;;  %v7960_v8 = vpop.f32.mrb[25].mxu0 }
 0x11b   : > { %7328 = vrcp.f32 %v733_v16  ;;  %v7317_v57 = vpop.eup %7316  ;;  %1110 = vst.msk [vmem:[#allocation2 + $0x40] sm:$0xf] %vm830_vm2, %v988_v22  ;;  %v983_v17 = vsel %vm7903_vm15, %v981_v9, %v982_v58  ;;  %v984_v31 = vrot.slane %v982_v58, 4  ;;  %v7966_v47 = vmul.f32 %v7315_v32, %v7818_v62  ;;  %v7968_v43 = vpop.f32.mrb[26].mxu0 }
 0x11c   : > { %7330 = vrcp.f32 %v731_v60  ;;  %v7319_v48 = vpop.eup %7318  ;;  %1111 = vst.msk [vmem:[#allocation2 + $0x44] sm:$0x1] %vm845_vm3, %v989_v61  ;;  %v7973_v5 = vmul.f32 %v7317_v57, %v7825_v4  ;;  %v641_v29 = vsub.f32 0.0, %v7958_v45  ;;  %v7977_v55 = vadd.f32 %v7720_v24, %v568_v54  ;;  %v7979_v58 = vpop.f32.mrb[27].mxu0 }
 0x11d   : > { %11404 = vst [vmem:[#allocation12_spill] sm:$0xff] %v7966_v47  ;;  %1107 = vst.msk [vmem:[#allocation2 + $0x34] sm:$0xf] %vm830_vm2, %v983_v17  ;;  %7332 = vpow2.f32 %v686_v34  ;;  %v7321_v62 = vpop.eup %7320  ;;  %v7128_v6 = vpack.c.bf16 %v7966_v47, %v7966_v47  ;;  %v7985_v16 = vmul.f32 %v7319_v48, %v7830_v12  ;;  %v573_v4 = vmul.f32 %v7912_v42, %v7709_v18 }
 0x11e   : > { %11405 = vst [vmem:[#allocation13_spill] sm:$0xff] %v7973_v5  ;;  %1108 = vst.msk [vmem:[#allocation2 + $0x38] sm:$0x1] %vm845_vm3, %v984_v31  ;;  %v571_v34 = vmul.f32 %v7709_v18, %v7919_v37  ;;  %v7126_v54 = vpack.c.bf16 %v7973_v5, %v7973_v5  ;;  %v7994_v9 = vmul.f32 %v7321_v62, %v7834_v23  ;;  %v692_v60 = vmul.f32 1.442695, %v641_v29 }
 0x11f   : > { %11406 = vst [vmem:[#allocation14_spill] sm:$0xff] %v7985_v16  ;;  %v639_v32 = vsub.f32 0.0, %v7977_v55  ;;  %v995_v22 = vrot.slane %v7128_v6, 7  ;;  %v7129_v12 = vpack.c.bf16 %v7985_v16, %v7985_v16  ;;  %v8000_v61 = vadd.f32 %v7720_v24, %v573_v4 }
 0x120   : > { %11407 = vst [vmem:[#allocation15_spill] sm:$0xff] %v7994_v9  ;;  %v8003_v42 = vadd.f32 %v7720_v24, %v571_v34  ;;  %v990_v57 = vrot.slane %v7126_v54, 7  ;;  %v7127_v17 = vpack.c.bf16 %v7994_v9, %v7994_v9  ;;  %7334 = vpow2.f32 %v692_v60 }
 0x121   : > { %v7323_v37 = vpop.eup %7322  ;;  %v688_v23 = vmul.f32 1.442695, %v639_v32  ;;  %v996_v31 = vrot.slane %v995_v22, 4  ;;  %1115 = vst.msk [vmem:[#allocation2 + $0x54] sm:$0xe] %vm1099_vm13, %v995_v22  ;;  %v997_v48 = vrot.slane %v7129_v12, 7 }
 0x122   : > { %v736_v29 = vadd.f32 1.0, %v7323_v37  ;;  %v644_v62 = vsub.f32 0.0, %v8000_v61  ;;  %v8009_v6 = vpop.f32.mrb[28].mxu0  ;;  %v7325_v4 = vpop.eup %7324  ;;  %v991_v16 = vrot.slane %v990_v57, 4  ;;  %1112 = vst.msk [vmem:[#allocation2 + $0x48] sm:$0xe] %vm1099_vm13, %v990_v57 }
 0x123   : > { %v992_v34 = vrot.slane %v7127_v17, 7  ;;  %7336 = vpow2.f32 %v688_v23  ;;  %v642_v54 = vsub.f32 0.0, %v8003_v42  ;;  %v8013_v47 = vpop.f32.mrb[29].mxu0  ;;  %v7327_v60 = vpop.eup %7326  ;;  %v998_v32 = vsel %vm7903_vm15, %v996_v31, %v997_v48 }
 0x124   : > { %v999_v22 = vrot.slane %v997_v48, 4  ;;  %v8018_v12 = vmul.f32 %v7325_v4, %v7844_v59  ;;  %7338 = vrcp.f32 %v736_v29  ;;  %v8020_v37 = vpop.f32.mrb[30].mxu0  ;;  %1116 = vst.msk [vmem:[#allocation2 + $0x58] sm:$0xf] %vm830_vm2, %v998_v32  ;;  %v8026_v23 = vmul.f32 %v7327_v60, %v7850_v3 }
 0x125   : > { %v7329_v9 = vpop.eup %7328  ;;  %v993_v57 = vsel %vm7903_vm15, %v991_v16, %v992_v34  ;;  %v994_v17 = vrot.slane %v992_v34, 4  ;;  %v698_v5 = vmul.f32 1.442695, %v644_v62  ;;  %v8028_v35 = vpop.f32.mrb[31].mxu0  ;;  %v694_v29 = vmul.f32 1.442695, %v642_v54 }
 0x126   : > { %11408 = vst [vmem:[#allocation16_spill] sm:$0xff] %v8018_v12  ;;  %11409 = vst [vmem:[#allocation17_spill] sm:$0xff] %v8026_v23  ;;  %v7331_v31 = vpop.eup %7330  ;;  %v7132_v59 = vpack.c.bf16 %v8018_v12, %v8018_v12  ;;  %v8035_v48 = vmul.f32 %v7329_v9, %v7855_v14  ;;  %v574_v16 = vmul.f32 %v7927_v51, %v7709_v18 }
 0x127   : > { %1117 = vst.msk [vmem:[#allocation2 + $0x5c] sm:$0x1] %vm845_vm3, %v999_v22  ;;  %v7333_v3 = vpop.eup %7332  ;;  %1114 = vst.msk [vmem:[#allocation2 + $0x50] sm:$0x1] %vm845_vm3, %v994_v17  ;;  %v7130_v62 = vpack.c.bf16 %v8026_v23, %v8026_v23  ;;  %v8043_v4 = vmul.f32 %v7331_v31, %v7859_v27  ;;  %7340 = vpow2.f32 %v698_v5  ;;  %v572_v34 = vmul.f32 %v7709_v18, %v7937_v2 }
 0x128   : > { %1113 = vst.msk [vmem:[#allocation2 + $0x4c] sm:$0xf] %vm830_vm2, %v993_v57  ;;  %11410 = vst [vmem:[#allocation18_spill] sm:$0xff] %v8035_v48  ;;  %v1005_v60 = vrot.slane %v7132_v59, 7  ;;  %v7133_v14 = vpack.c.bf16 %v8035_v48, %v8035_v48  ;;  %v734_v9 = vadd.f32 1.0, %v7333_v3  ;;  %7342 = vpow2.f32 %v694_v29 }
 0x129   : > { %11411 = vst [vmem:[#allocation19_spill] sm:$0xff] %v8043_v4  ;;  %v1000_v51 = vrot.slane %v7130_v62, 7  ;;  %v7131_v54 = vpack.c.bf16 %v8043_v4, %v8043_v4  ;;  %v8052_v32 = vadd.f32 %v7720_v24, %v574_v16  ;;  %v8055_v27 = vadd.f32 %v7720_v24, %v572_v34  ;;  %v7525_v48 = vld [vmem:[#allocation2 + $0xc] sm:$0xf] }
 0x12a   : > { %v1006_v5 = vrot.slane %v1005_v60, 4  ;;  %1121 = vst.msk [vmem:[#allocation2 + $0x6c] sm:$0xe] %vm1099_vm13, %v1005_v60  ;;  %v1007_v2 = vrot.slane %v7133_v14, 7  ;;  %7344 = vrcp.f32 %v734_v9  ;;  %v577_v22 = vmul.f32 %v7953_v15, %v7709_v18  ;;  %v7335_v57 = vpop.eup %7334 }
 0x12b   : > { %v1001_v17 = vrot.slane %v1000_v51, 4  ;;  %1118 = vst.msk [vmem:[#allocation2 + $0x60] sm:$0xe] %vm1099_vm13, %v1000_v51  ;;  %v1002_v31 = vrot.slane %v7131_v54, 7  ;;  %v645_v59 = vsub.f32 0.0, %v8052_v32  ;;  %v643_v29 = vsub.f32 0.0, %v8055_v27 }
 0x12c   : > { %v1008_v16 = vsel %vm7903_vm15, %v1006_v5, %v1007_v2  ;;  %v1009_v3 = vrot.slane %v1007_v2, 4  ;;  %v737_v62 = vadd.f32 1.0, %v7335_v57  ;;  %v8066_v34 = vadd.f32 %v7720_v24, %v577_v22 }
 0x12d   : > { %v7337_v60 = vpop.eup %7336  ;;  %1122 = vst.msk [vmem:[#allocation2 + $0x70] sm:$0xf] %vm830_vm2, %v1008_v16  ;;  %v1003_v15 = vsel %vm7903_vm15, %v1001_v17, %v1002_v31  ;;  %v1004_v14 = vrot.slane %v1002_v31, 4  ;;  %v700_v9 = vmul.f32 1.442695, %v645_v59  ;;  %v575_v22 = vmul.f32 %v7709_v18, %v7960_v8 }
 0x12e   : > { %v696_v51 = vmul.f32 1.442695, %v643_v29  ;;  %v7339_v54 = vpop.eup %7338  ;;  %1123 = vst.msk [vmem:[#allocation2 + $0x74] sm:$0x1] %vm845_vm3, %v1009_v3  ;;  %7346 = vrcp.f32 %v737_v62  ;;  %v735_v5 = vadd.f32 1.0, %v7337_v60  ;;  %v648_v2 = vsub.f32 0.0, %v8066_v34 }
 0x12f   : > { %1119 = vst.msk [vmem:[#allocation2 + $0x64] sm:$0xf] %vm830_vm2, %v1003_v15  ;;  %v8078_v57 = vmul.f32 %v7339_v54, %v7889_v10  ;;  %7348 = vpow2.f32 %v700_v9  ;;  %v578_v17 = vmul.f32 %v7968_v43, %v7709_v18  ;;  %v576_v31 = vmul.f32 %v7709_v18, %v7979_v58 }
 0x130   : > { %1120 = vst.msk [vmem:[#allocation2 + $0x68] sm:$0x1] %vm845_vm3, %v1004_v14  ;;  %7350 = vrcp.f32 %v735_v5  ;;  %v706_v59 = vmul.f32 1.442695, %v648_v2  ;;  %v8085_v29 = vadd.f32 %v7720_v24, %v575_v22  ;;  %v581_v8 = vmul.f32 %v8009_v6, %v7709_v18 }
 0x131   : > { %11412 = vst [vmem:[#allocation20_spill] sm:$0xff] %v8078_v57  ;;  %v7341_v16 = vpop.eup %7340  ;;  %v7136_v10 = vpack.c.bf16 %v8078_v57, %v8078_v57  ;;  %7352 = vpow2.f32 %v696_v51  ;;  %v8092_v3 = vadd.f32 %v7720_v24, %v578_v17  ;;  %v8095_v43 = vadd.f32 %v7720_v24, %v576_v31 }
 0x132   : > { %v7343_v58 = vpop.eup %7342  ;;  %v740_v62 = vadd.f32 1.0, %v7341_v16  ;;  %7354 = vpow2.f32 %v706_v59  ;;  %v646_v60 = vsub.f32 0.0, %v8085_v29  ;;  %v8099_v15 = vadd.f32 %v7720_v24, %v581_v8 }
 0x133   : > { %v1015_v6 = vrot.slane %v7136_v10, 7  ;;  %v738_v14 = vadd.f32 1.0, %v7343_v58  ;;  %v649_v9 = vsub.f32 0.0, %v8092_v3  ;;  %v647_v51 = vsub.f32 0.0, %v8095_v43 }
 0x134   : > { %v7345_v54 = vpop.eup %7344  ;;  %7356 = vrcp.f32 %v740_v62  ;;  %v702_v5 = vmul.f32 1.442695, %v646_v60  ;;  %v652_v2 = vsub.f32 0.0, %v8099_v15  ;;  %v579_v22 = vmul.f32 %v7709_v18, %v8013_v47 }
 0x135   : > { %v1016_v17 = vrot.slane %v1015_v6, 4  ;;  %1127 = vst.msk [vmem:[#allocation2 + $0x84] sm:$0xe] %vm1099_vm13, %v1015_v6  ;;  %v8108_v31 = vmul.f32 %v7345_v54, %v7897_v28  ;;  %7358 = vrcp.f32 %v738_v14  ;;  %v708_v59 = vmul.f32 1.442695, %v649_v9 }
 0x136   : > { %7360 = vpow2.f32 %v702_v5  ;;  %v704_v8 = vmul.f32 1.442695, %v647_v51  ;;  %v714_v16 = vmul.f32 1.442695, %v652_v2  ;;  %v8111_v10 = vadd.f32 %v7720_v24, %v579_v22 }
 0x137   : > { %11413 = vst [vmem:[#allocation21_spill] sm:$0xff] %v8108_v31  ;;  %v7134_v58 = vpack.c.bf16 %v8108_v31, %v8108_v31  ;;  %7362 = vpow2.f32 %v708_v59  ;;  %v582_v47 = vmul.f32 %v8020_v37, %v7709_v18  ;;  %v580_v28 = vmul.f32 %v7709_v18, %v8028_v35 }
 0x138   : > { %v7347_v62 = vpop.eup %7346  ;;  %7364 = vpow2.f32 %v704_v8  ;;  %v650_v60 = vsub.f32 0.0, %v8111_v10  ;;  %v11414_v6 = vrot.slane %v7822_v1, 5  ;;  %v11507_v30 = vld [vmem:[#allocation20_spill] sm:$0xff] }
 0x139   : > { %v7349_v51 = vpop.eup %7348  ;;  %v1010_v54 = vrot.slane %v7134_v58, 7  ;;  %v8125_v5 = vmul.f32 %v7347_v62, %v7958_v45  ;;  %7366 = vpow2.f32 %v714_v16  ;;  %v8128_v37 = vadd.f32 %v7720_v24, %v582_v47  ;;  %v2212_v47 = vld [vmem:[#allocation2 + $0xd8] sm:$0xc] }
 0x13a   : > { %v2104_v14 = vrot.slane %v11414_v6, 4  ;;  %v7351_v18 = vpop.eup %7350  ;;  %v741_v35 = vadd.f32 1.0, %v7349_v51  ;;  %v710_v2 = vmul.f32 1.442695, %v650_v60  ;;  %v8131_v22 = vadd.f32 %v7720_v24, %v580_v28 }
 0x13b   : > { %11415 = vst [vmem:[#allocation22_spill] sm:$0xff] %v8125_v5  ;;  %v7353_v8 = vpop.eup %7352  ;;  %v1011_v6 = vrot.slane %v1010_v54, 4  ;;  %1124 = vst.msk [vmem:[#allocation2 + $0x78] sm:$0xe] %vm1099_vm13, %v1010_v54  ;;  %v7137_v45 = vpack.c.bf16 %v8125_v5, %v8125_v5  ;;  %v8140_v16 = vmul.f32 %v7351_v18, %v7977_v55  ;;  %v653_v58 = vsub.f32 0.0, %v8128_v37 }
 0x13c   : > { %v2106_v59 = vsel %vm7864_vm14, %v2104_v14, %v7847_v33  ;;  %v7355_v62 = vpop.eup %7354  ;;  %7368 = vrcp.f32 %v741_v35  ;;  %v739_v24 = vadd.f32 1.0, %v7353_v8  ;;  %v651_v28 = vsub.f32 0.0, %v8131_v22 }
 0x13d   : > { %11416 = vst [vmem:[#allocation23_spill] sm:$0xff] %v8140_v16  ;;  %v2191_v33 = vmax.bf16 %v2106_v59, %v7822_v1  ;;  %v1017_v60 = vrot.slane %v7137_v45, 7  ;;  %v7135_v14 = vpack.c.bf16 %v8140_v16, %v8140_v16  ;;  %v744_v51 = vadd.f32 1.0, %v7355_v62 }
 0x13e   : > { %7370 = vpow2.f32 %v710_v2  ;;  %v7357_v54 = vpop.eup %7356  ;;  %v716_v55 = vmul.f32 1.442695, %v653_v58  ;;  %v712_v18 = vmul.f32 1.442695, %v651_v28  ;;  %v6966_v9 = vrot.slane %v2212_v47, 10 }
 0x13f   : > { %7372 = vrcp.f32 %v739_v24  ;;  %v7359_v5 = vpop.eup %7358  ;;  %v1018_v35 = vsel %vm7903_vm15, %v1016_v17, %v1017_v60  ;;  %v1019_v8 = vrot.slane %v1017_v60, 4  ;;  %v1012_v57 = vrot.slane %v7135_v14, 7  ;;  %v8174_v28 = vld [vmem:[#allocation2 + $0x18] sm:$0xf] }
 0x140   : > { %v8150_v31 = vmul.f32 %v7357_v54, %v8000_v61  ;;  %v7361_v1 = vpop.eup %7360  ;;  %1128 = vst.msk [vmem:[#allocation2 + $0x88] sm:$0xf] %vm830_vm2, %v1018_v35  ;;  %v8154_v59 = vmul.f32 %v7359_v5, %v8003_v42  ;;  %7374 = vrcp.f32 %v744_v51  ;;  %v2405_v2 = vrot.slane %v7748_v39, 6 }
 0x141   : > { %v2408_v45 = vrot.slane %v7780_v7, 6  ;;  %v7363_v58 = vpop.eup %7362  ;;  %1129 = vst.msk [vmem:[#allocation2 + $0x8c] sm:$0x1] %vm845_vm3, %v1019_v8  ;;  %v1013_v61 = vsel %vm7903_vm15, %v1011_v6, %v1012_v57  ;;  %v1014_v47 = vrot.slane %v1012_v57, 4  ;;  %v742_v5 = vadd.f32 1.0, %v7361_v1 }
 0x142   : > { %11417 = vst [vmem:[#allocation24_spill] sm:$0xff] %v8150_v31  ;;  %11418 = vst [vmem:[#allocation25_spill] sm:$0xff] %v8154_v59  ;;  %v7140_v42 = vpack.c.bf16 %v8150_v31, %v8150_v31  ;;  %v7365_v39 = vpop.eup %7364  ;;  %v7138_v7 = vpack.c.bf16 %v8154_v59, %v8154_v59  ;;  %v745_v62 = vadd.f32 1.0, %v7363_v58  ;;  %7376 = vpow2.f32 %v716_v55  ;;  %v8182_v55 = vld [vmem:[#allocation2 + $0x1c] sm:$0xf] }
 0x143   : > { %1125 = vst.msk [vmem:[#allocation2 + $0x7c] sm:$0xf] %vm830_vm2, %v1013_v61  ;;  %v2406_v24 = vsel %vm8160_vm5, %v6966_v9, %v2405_v2  ;;  %v7367_v60 = vpop.eup %7366  ;;  %7378 = vrcp.f32 %v742_v5  ;;  %v743_v6 = vadd.f32 1.0, %v7365_v39  ;;  %v2407_v14 = vrot.slane %v2405_v2, 4  ;;  %11422 = vst [vmem:[#allocation26_spill] sm:$0xff] %v8182_v55 }
 0x144   : > { %1126 = vst.msk [vmem:[#allocation2 + $0x80] sm:$0x1] %vm845_vm3, %v1014_v47  ;;  %v1025_v57 = vrot.slane %v7140_v42, 7  ;;  %v1020_v51 = vrot.slane %v7138_v7, 7  ;;  %7380 = vrcp.f32 %v745_v62  ;;  %v748_v54 = vadd.f32 1.0, %v7367_v60 }
 0x145   : > { %v11421_v35 = vmax.bf16 %v7873_v52, %v7811_v53  ;;  %7382 = vrcp.f32 %v743_v6  ;;  %v2409_v1 = vsel %vm8160_vm5, %v2407_v14, %v2408_v45  ;;  %v8187_v58 = vld [vmem:[#allocation2 + $0x20] sm:$0x3]  ;;  %v1270_v2 = vshrl.u32 %v8174_v28, 16  ;;  %v8205_v14 = vld [vmem:[#allocation2 + $0x24] sm:$0xf] }
 0x146   : > { %v1026_v9 = vrot.slane %v1025_v57, 4  ;;  %1133 = vst.msk [vmem:[#allocation2 + $0x9c] sm:$0xe] %vm1099_vm13, %v1025_v57  ;;  %11423 = vst [vmem:[#allocation27_spill] sm:$0xff] %v8187_v58  ;;  %v7369_v61 = vpop.eup %7368  ;;  %v1021_v47 = vrot.slane %v1020_v51, 4  ;;  %7384 = vrcp.f32 %v748_v54  ;;  %v8191_v53 = vmax.bf16 %v2409_v1, %v2191_v33 }
 0x147   : > { %v8180_v8 = vmax.bf16 %v2406_v24, %v11421_v35  ;;  %1130 = vst.msk [vmem:[#allocation2 + $0x90] sm:$0xe] %vm1099_vm13, %v1020_v51  ;;  %v1273_v52 = vshll.u32 %v8174_v28, 16  ;;  %v8195_v5 = vmul.f32 %v7369_v61, %v8052_v32  ;;  %7386 = vpow2.f32 %v712_v18 }
 0x148   : > { %v7371_v42 = vpop.eup %7370  ;;  %v1272_v39 = vrot.slane %v1270_v2, 4  ;;  %v1279_v45 = vshll.u32 %v8182_v55, 16  ;;  %v1283_v60 = vshrl.u32 %v8182_v55, 16  ;;  %v1289_v57 = vshll.u32 %v8187_v58, 16 }
 0x149   : > { %11424 = vst [vmem:[#allocation28_spill] sm:$0xff] %v8195_v5  ;;  %v7373_v7 = vpop.eup %7372  ;;  %v746_v62 = vadd.f32 1.0, %v7371_v42  ;;  %v1275_v24 = vrot.slane %v1273_v52, 5  ;;  %v7141_v33 = vpack.c.bf16 %v8195_v5, %v8195_v5  ;;  %v1293_v18 = vshrl.u32 %v8187_v58, 16 }
 0x14a   : > { %v8203_v6 = vmul.f32 %v7373_v7, %v8055_v27  ;;  %v8207_v32 = vrot.slane %v1279_v45, 5  ;;  %v7375_v51 = vpop.eup %7374  ;;  %v1285_v35 = vrot.slane %v1283_v60, 4  ;;  %v8210_v1 = vrot.slane %v1289_v57, 5 }
 0x14b   : > { %7388 = vrcp.f32 %v746_v62  ;;  %v1276_v54 = vor.u32 %v1275_v24, %v1272_v39  ;;  %v1027_v2 = vrot.slane %v7141_v33, 7  ;;  %v8215_v52 = vmul.f32 %v7375_v51, %v8066_v34 }
 0x14c   : > { %11425 = vst [vmem:[#allocation29_spill] sm:$0xff] %v8203_v6  ;;  %v7139_v61 = vpack.c.bf16 %v8203_v6, %v8203_v6  ;;  %v1295_v27 = vrot.slane %v1293_v18, 4  ;;  %v7377_v42 = vpop.eup %7376  ;;  %v1286_v45 = vor.u32 %v1285_v35, %v8207_v32  ;;  %v1299_v5 = vshrl.u32 %v8205_v14, 16 }
 0x14d   : > { %11426 = vst [vmem:[#allocation30_spill] sm:$0xff] %v8215_v52  ;;  %v8217_v7 = vrot.slane %v1276_v54, 4  ;;  %v1302_v39 = vshll.u32 %v8205_v14, 16  ;;  %v7379_v62 = vpop.eup %7378  ;;  %v1028_v24 = vsel %vm7903_vm15, %v1026_v9, %v1027_v2  ;;  %v1029_v60 = vrot.slane %v1027_v2, 4 }
 0x14e   : > { %v1022_v57 = vrot.slane %v7139_v61, 7  ;;  %v7144_v34 = vpack.c.bf16 %v8215_v52, %v8215_v52  ;;  %v7381_v33 = vpop.eup %7380  ;;  %1134 = vst.msk [vmem:[#allocation2 + $0xa0] sm:$0xf] %vm830_vm2, %v1028_v24  ;;  %v8228_v18 = vmul.f32 %v7379_v62, %v8085_v29  ;;  %v749_v51 = vadd.f32 1.0, %v7377_v42 }
 0x14f   : > { %v8234_v35 = vrot.slane %v1286_v45, 4  ;;  %v7383_v9 = vpop.eup %7382  ;;  %1135 = vst.msk [vmem:[#allocation2 + $0xa4] sm:$0x1] %vm845_vm3, %v1029_v60  ;;  %v8240_v24 = vmul.f32 %v7381_v33, %v8092_v3  ;;  %v1304_v54 = vrot.slane %v1302_v39, 5 }
 0x150   : > { %11427 = vst [vmem:[#allocation31_spill] sm:$0xff] %v8228_v18  ;;  %v1023_v2 = vsel %vm7903_vm15, %v1021_v47, %v1022_v57  ;;  %v1024_v61 = vrot.slane %v1022_v57, 4  ;;  %v1035_v52 = vrot.slane %v7144_v34, 7  ;;  %v7385_v29 = vpop.eup %7384  ;;  %v7142_v42 = vpack.c.bf16 %v8228_v18, %v8228_v18  ;;  %v8342_v18 = vld [vmem:[#allocation2 + $0x8] sm:$0x3] }
 0x151   : > { %11428 = vst [vmem:[#allocation32_spill] sm:$0xff] %v8240_v24  ;;  %1131 = vst.msk [vmem:[#allocation2 + $0x94] sm:$0xf] %vm830_vm2, %v1023_v2  ;;  %v8246_v45 = vmul.f32 %v7383_v9, %v8095_v43  ;;  %7390 = vrcp.f32 %v749_v51  ;;  %v7387_v62 = vpop.eup %7386  ;;  %v7145_v60 = vpack.c.bf16 %v8240_v24, %v8240_v24  ;;  %v8257_v57 = vmul.f32 %v7385_v29, %v8099_v15  ;;  %v8259_v43 = vld [vmem:[#allocation2 + $0x28] sm:$0xf] }
 0x152   : > { %1132 = vst.msk [vmem:[#allocation2 + $0x98] sm:$0x1] %vm845_vm3, %v1024_v61  ;;  %v1036_v3 = vrot.slane %v1035_v52, 4  ;;  %v1296_v34 = vor.u32 %v1295_v27, %v8210_v1  ;;  %v1030_v33 = vrot.slane %v7142_v42, 7  ;;  %v747_v9 = vadd.f32 1.0, %v7387_v62 }
 0x153   : > { %11429 = vst [vmem:[#allocation33_spill] sm:$0xff] %v8246_v45  ;;  %1139 = vst.msk [vmem:[#allocation2 + $0xb4] sm:$0xe] %vm1099_vm13, %v1035_v52  ;;  %v7143_v51 = vpack.c.bf16 %v8246_v45, %v8246_v45  ;;  %v1301_v2 = vrot.slane %v1299_v5, 4  ;;  %v1037_v61 = vrot.slane %v7145_v60, 7  ;;  %v7148_v52 = vpack.c.bf16 %v8257_v57, %v8257_v57 }
 0x154   : > { %11430 = vst [vmem:[#allocation34_spill] sm:$0xff] %v8257_v57  ;;  %v8266_v47 = vrot.slane %v1296_v34, 4  ;;  %v1031_v15 = vrot.slane %v1030_v33, 4  ;;  %1136 = vst.msk [vmem:[#allocation2 + $0xa8] sm:$0xe] %vm1099_vm13, %v1030_v33  ;;  %7392 = vrcp.f32 %v747_v9  ;;  %v1308_v42 = vshll.u32 %v8259_v43, 16 }
 0x155   : > { %v7389_v24 = vpop.eup %7388  ;;  %v1032_v29 = vrot.slane %v7143_v51, 7  ;;  %v8269_v27 = vld [vmem:[#allocation2 + $0x2c] sm:$0x3]  ;;  %v1038_v5 = vsel %vm7903_vm15, %v1036_v3, %v1037_v61  ;;  %v1039_v62 = vrot.slane %v1037_v61, 4  ;;  %v8274_v60 = vrot.slane %v7148_v52, 7 }
 0x156   : > { %11431 = vst [vmem:[#allocation35_spill] sm:$0xff] %v8266_v47  ;;  %v8277_v34 = vmul.f32 %v7389_v24, %v8111_v10  ;;  %1140 = vst.msk [vmem:[#allocation2 + $0xb8] sm:$0xf] %vm830_vm2, %v1038_v5  ;;  %v1305_v51 = vor.u32 %v1304_v54, %v1301_v2  ;;  %v8282_v9 = vrot.slane %v1308_v42, 5  ;;  %v1312_v24 = vshrl.u32 %v8259_v43, 16 }
 0x157   : > { %v1033_v39 = vsel %vm7903_vm15, %v1031_v15, %v1032_v29  ;;  %v1034_v33 = vrot.slane %v1032_v29, 4  ;;  %1141 = vst.msk [vmem:[#allocation2 + $0xbc] sm:$0x1] %vm845_vm3, %v1039_v62  ;;  %v1318_v61 = vshll.u32 %v8269_v27, 16  ;;  %v1322_v15 = vshrl.u32 %v8269_v27, 16 }
 0x158   : > { %11432 = vst [vmem:[#allocation36_spill] sm:$0xff] %v8277_v34  ;;  %1137 = vst.msk [vmem:[#allocation2 + $0xac] sm:$0xf] %vm830_vm2, %v1033_v39  ;;  %v7146_v10 = vpack.c.bf16 %v8277_v34, %v8277_v34  ;;  %v8298_v2 = vrot.slane %v1305_v51, 4  ;;  %v7522_v29 = vld [vmem:[#allocation2] sm:$0xf]  ;;  %v11433_v42 = vsel %vm7729_vm8, %v7711_v19, %v7699_v0  ;;  %v11435_v39 = vsel %vm7729_vm8, %v7713_v20, %v7702_v11 }
 0x159   : > { %1145 = vst.msk [vmem:[#allocation2 + $0xcc] sm:$0xe] %vm1099_vm13, %v8274_v60  ;;  %v8306_v5 = vmax.bf16 %v7522_v29, %v11433_v42  ;;  %v8308_v62 = vld [vmem:[#allocation2 + $0x4] sm:$0xf]  ;;  %v8327_v42 = vrot.slane %v1312_v24, 4  ;;  %v8329_v11 = vrot.slane %v1318_v61, 5 }
 0x15a   : > { %v8293_v52 = vld [vmem:[#allocation2 + $0xb4] sm:$0xf]  ;;  %1138 = vst.msk [vmem:[#allocation2 + $0xb0] sm:$0x1] %vm845_vm3, %v1034_v33  ;;  %11434 = vst [vmem:[#allocation37_spill] sm:$0xff] %v8308_v62  ;;  %v8316_v33 = vmax.bf16 %v8308_v62, %v11435_v39  ;;  %v8320_v57 = vrot.slane %v7146_v10, 7 }
 0x15b   : > { %v8295_v54 = vld [vmem:[#allocation2 + $0xb4] sm:$0xc]  ;;  %v1647_v51 = vshrl.u32 %v8293_v52, 16  ;;  %v1650_v3 = vshll.u32 %v8293_v52, 16  ;;  %v7391_v19 = vpop.eup %7390  ;;  %v8331_v20 = vrot.slane %v1322_v15, 4 }
 0x15c   : > { %v8333_v45 = vld [vmem:[#allocation2 + $0xa8] sm:$0xf]  ;;  %1142 = vst.msk [vmem:[#allocation2 + $0xc0] sm:$0xe] %vm1099_vm13, %v8320_v57  ;;  %v8340_v0 = vmul.f32 %v7391_v19, %v8128_v37 }
 0x15d   : > { %v1649_v39 = vrot.slane %v1647_v51, 4  ;;  %v1652_v34 = vrot.slane %v1650_v3, 5  ;;  %v8335_v10 = vld [vmem:[#allocation2 + $0xa8] sm:$0xc]  ;;  %v1618_v61 = vshrl.u32 %v8333_v45, 16  ;;  %v1621_v15 = vshll.u32 %v8333_v45, 16 }
 0x15e   : > { %11436 = vst [vmem:[#allocation38_spill] sm:$0xff] %v8340_v0  ;;  %v1041_v3 = vrot.slane %v8320_v57, 4  ;;  %v7149_v29 = vpack.c.bf16 %v8340_v0, %v8340_v0  ;;  %v7393_v6 = vpop.eup %7392  ;;  %v11437_v57 = vsel %vm7729_vm8, %v7722_v25, %v7704_v13  ;;  %v8382_v13 = vld [vmem:[#allocation2 + $0x14] sm:$0x3] }
 0x15f   : > { %v1653_v31 = vor.u32 %v1652_v34, %v1649_v39  ;;  %v1620_v24 = vrot.slane %v1618_v61, 4  ;;  %v1623_v59 = vrot.slane %v1621_v15, 5  ;;  %v8356_v16 = vld [vmem:[#allocation2 + $0xac] sm:$0xf]  ;;  %v8363_v51 = vmax.bf16 %v7525_v48, %v11437_v57  ;;  %v8365_v34 = vld [vmem:[#allocation2 + $0x10] sm:$0xf] }
 0x160   : > { %11438 = vst [vmem:[#allocation39_spill] sm:$0xff] %v8365_v34  ;;  %v11439_v39 = vsel %vm7729_vm8, %v7752_v41, %v7724_v26  ;;  %v8377_v19 = vld [vmem:[#allocation2 + $0xcc] sm:$0xf]  ;;  %v8380_v37 = vmul.f32 %v7393_v6, %v8131_v22  ;;  %v11441_v26 = vsel %vm7729_vm8, %v8217_v7, %v8207_v32  ;;  %v11443_v48 = vsel %vm7729_vm8, %v8234_v35, %v8210_v1 }
 0x161   : > { %v8373_v61 = vmax.bf16 %v8365_v34, %v11439_v39  ;;  %v8375_v15 = vld [vmem:[#allocation2 + $0xb0] sm:$0x3]  ;;  %v8392_v41 = vmax.bf16 %v11441_v26, %v8174_v28  ;;  %v8400_v22 = vmax.bf16 %v11443_v48, %v8182_v55  ;;  %v1705_v6 = vshrl.u32 %v8377_v19, 16  ;;  %v8409_v26 = vld [vmem:[#allocation2 + $0xb8] sm:$0xf] }
 0x162   : > { %11440 = vst [vmem:[#allocation40_spill] sm:$0xff] %v8380_v37  ;;  %v1708_v57 = vshll.u32 %v8377_v19, 16  ;;  %v1047_v39 = vrot.slane %v7149_v29, 7  ;;  %v1624_v25 = vor.u32 %v1623_v59, %v1620_v24  ;;  %v7147_v0 = vpack.c.bf16 %v8380_v37, %v8380_v37  ;;  %v8417_v29 = vld [vmem:[#allocation2 + $0xbc] sm:$0x3] }
 0x163   : > { %11442 = vst [vmem:[#allocation41_spill] sm:$0xff] %v8392_v41  ;;  %11444 = vst [vmem:[#allocation42_spill] sm:$0xff] %v8400_v22  ;;  %v1627_v28 = vshll.u32 %v8356_v16, 16  ;;  %v1631_v32 = vshrl.u32 %v8356_v16, 16  ;;  %v1637_v7 = vshll.u32 %v8375_v15, 16  ;;  %v1707_v1 = vrot.slane %v1705_v6, 4 }
 0x164   : > { %v1710_v35 = vrot.slane %v1708_v57, 5  ;;  %v11445_v48 = vrot.slane %v8274_v60, 4  ;;  %v1049_v24 = vrot.slane %v1047_v39, 4  ;;  %v1042_v37 = vrot.slane %v7147_v0, 7  ;;  %v8420_v44 = vld [vmem:[#allocation2 + $0xc0] sm:$0xf] }
 0x165   : > { %v1625_v4 = vrot.slane %v1624_v25, 4  ;;  %v1629_v23 = vrot.slane %v1627_v28, 5  ;;  %v1633_v6 = vrot.slane %v1631_v32, 4  ;;  %v1639_v57 = vrot.slane %v1637_v7, 5 }
 0x166   : > { %v1048_v12 = vsel %vm7903_vm15, %v11445_v48, %v1047_v39  ;;  %v1641_v60 = vshrl.u32 %v8375_v15, 16  ;;  %v8423_v49 = vrot.slane %v1653_v31, 4  ;;  %1147 = vst.msk [vmem:[#allocation2 + $0xd4] sm:$0x1] %vm845_vm3, %v1049_v24  ;;  %v1043_v48 = vsel %vm7903_vm15, %v1041_v3, %v1042_v37 }
 0x167   : > { %1146 = vst.msk [vmem:[#allocation2 + $0xd0] sm:$0xf] %vm830_vm2, %v1048_v12  ;;  %v1044_v59 = vrot.slane %v1042_v37, 4  ;;  %v1630_v12 = vsel %vm7729_vm8, %v1625_v4, %v1629_v23  ;;  %v1656_v0 = vshll.u32 %v8409_v26, 16  ;;  %1143 = vst.msk [vmem:[#allocation2 + $0xc4] sm:$0xf] %vm830_vm2, %v1043_v48  ;;  %v1634_v25 = vor.u32 %v1633_v6, %v1629_v23 }
 0x168   : > { %v1643_v39 = vrot.slane %v1641_v60, 4  ;;  %v1660_v28 = vshrl.u32 %v8409_v26, 16  ;;  %v1666_v31 = vshll.u32 %v8417_v29, 16  ;;  %v1670_v7 = vshrl.u32 %v8417_v29, 16 }
 0x169   : > { %1144 = vst.msk [vmem:[#allocation2 + $0xc8] sm:$0x1] %vm845_vm3, %v1044_v59  ;;  %v1658_v32 = vrot.slane %v1656_v0, 5  ;;  %v1676_v3 = vshrl.u32 %v8420_v44, 16  ;;  %v1679_v37 = vshll.u32 %v8420_v44, 16  ;;  %v1635_v4 = vrot.slane %v1634_v25, 4 }
 0x16a   : > { %v1644_v24 = vor.u32 %v1643_v39, %v1639_v57  ;;  %v1662_v36 = vrot.slane %v1660_v28, 4  ;;  %v1668_v56 = vrot.slane %v1666_v31, 5  ;;  %v1672_v6 = vrot.slane %v1670_v7, 4 }
 0x16b   : > { %v1659_v23 = vsel %vm7729_vm8, %v8423_v49, %v1658_v32  ;;  %v1678_v60 = vrot.slane %v1676_v3, 4  ;;  %v1681_v48 = vrot.slane %v1679_v37, 5  ;;  %v1640_v59 = vsel %vm7729_vm8, %v1635_v4, %v1639_v57 }
 0x16c   : > { %v1645_v0 = vrot.slane %v1644_v24, 4  ;;  %v1663_v63 = vor.u32 %v1662_v36, %v1658_v32  ;;  %v1711_v55 = vor.u32 %v1710_v35, %v1707_v1  ;;  %v1673_v34 = vor.u32 %v1672_v6, %v1668_v56 }
 0x16d   : > { %v1682_v25 = vor.u32 %v1681_v48, %v1678_v60  ;;  %v8447_v31 = vld [vmem:[#allocation2 + $0xd4] sm:$0x3]  ;;  %v8450_v3 = vmax.bf16 %v1630_v12, %v8333_v45  ;;  %v1894_v37 = vmax.bf16 %v1640_v59, %v8356_v16  ;;  %v8471_v41 = vmax.bf16 %v1659_v23, %v8293_v52 }
 0x16e   : > { %v8441_v21 = vld [vmem:[#allocation2 + $0xd0] sm:$0xf]  ;;  %v1664_v49 = vrot.slane %v1663_v63, 4  ;;  %v1712_v7 = vrot.slane %v1711_v55, 4  ;;  %v8453_v62 = vld [vmem:[#allocation2 + $0xc4] sm:$0xf] }
 0x16f   : > { %v1714_v39 = vshll.u32 %v8441_v21, 16  ;;  %v1718_v28 = vshrl.u32 %v8441_v21, 16  ;;  %v1674_v57 = vrot.slane %v1673_v34, 4  ;;  %v1683_v36 = vrot.slane %v1682_v25, 4 }
 0x170   : > { %v8455_v32 = vld [vmem:[#allocation2 + $0xc8] sm:$0x3]  ;;  %v1669_v4 = vsel %vm7729_vm8, %v1664_v49, %v1668_v56  ;;  %v1685_v24 = vshll.u32 %v8453_v62, 16  ;;  %v1689_v63 = vshrl.u32 %v8453_v62, 16  ;;  %v1724_v55 = vshll.u32 %v8447_v31, 16 }
 0x171   : > { %v1716_v1 = vrot.slane %v1714_v39, 5  ;;  %v1720_v35 = vrot.slane %v1718_v28, 4  ;;  %v1695_v45 = vshll.u32 %v8455_v32, 16  ;;  %v1699_v12 = vshrl.u32 %v8455_v32, 16 }
 0x172   : > { %v1687_v60 = vrot.slane %v1685_v24, 5  ;;  %v1691_v48 = vrot.slane %v1689_v63, 4  ;;  %v1726_v59 = vrot.slane %v1724_v55, 5  ;;  %v1728_v25 = vshrl.u32 %v8447_v31, 16 }
 0x173   : > { %v1717_v34 = vsel %vm7729_vm8, %v1712_v7, %v1716_v1  ;;  %v1721_v6 = vor.u32 %v1720_v35, %v1716_v1  ;;  %v1697_v56 = vrot.slane %v1695_v45, 5  ;;  %v1701_v39 = vrot.slane %v1699_v12, 4 }
 0x174   : > { %v1895_v49 = vmax.bf16 %v1645_v0, %v8375_v15  ;;  %v1688_v58 = vsel %vm7729_vm8, %v1683_v36, %v1687_v60  ;;  %v1692_v47 = vor.u32 %v1691_v48, %v1687_v60  ;;  %v1730_v22 = vrot.slane %v1728_v25, 4 }
 0x175   : > { %v1722_v28 = vrot.slane %v1721_v6, 4  ;;  %v1702_v7 = vor.u32 %v1701_v39, %v1697_v56  ;;  %v1897_v35 = vmax.bf16 %v1669_v4, %v8409_v26  ;;  %v1898_v24 = vmax.bf16 %v1674_v57, %v8417_v29 }
 0x176   : > { %v1693_v63 = vrot.slane %v1692_v47, 4  ;;  %v1731_v55 = vor.u32 %v1730_v22, %v1726_v59  ;;  %v8478_v0 = vmax.bf16 %v1688_v58, %v8420_v44  ;;  %v8481_v36 = vmax.bf16 %v1717_v34, %v8377_v19 }
 0x177   : > { %v1727_v1 = vsel %vm7729_vm8, %v1722_v28, %v1726_v59  ;;  %v1703_v45 = vrot.slane %v1702_v7, 4  ;;  %v6942_v23 = vrot.slane %v8450_v3, 9  ;;  %v2074_v12 = vrot.slane %v1894_v37, 5 }
 0x178   : > { %v1903_v52 = vmax.bf16 %v1727_v1, %v8441_v21  ;;  %v1698_v6 = vsel %vm7729_vm8, %v1693_v63, %v1697_v56  ;;  %v1732_v4 = vrot.slane %v1731_v55, 4  ;;  %v2077_v60 = vrot.slane %v1895_v49, 5 }
 0x179   : > { %v6943_v47 = vrot.slane %v8471_v41, 9  ;;  %v1900_v22 = vmax.bf16 %v1698_v6, %v8453_v62  ;;  %v1901_v44 = vmax.bf16 %v1703_v45, %v8455_v32  ;;  %v2075_v58 = vsel %vm7864_vm14, %v6942_v23, %v2074_v12 }
 0x17a   : > { %v2076_v19 = vrot.slane %v2074_v12, 4  ;;  %v1904_v57 = vmax.bf16 %v1732_v4, %v8447_v31  ;;  %v2081_v34 = vrot.slane %v1897_v35, 5  ;;  %v2084_v48 = vrot.slane %v1898_v24, 5  ;;  %v2210_v12 = vld [vmem:[#allocation2 + $0xc0] sm:$0xc] }
 0x17b   : > { %v6944_v59 = vrot.slane %v8478_v0, 9  ;;  %v2088_v56 = vrot.slane %v1900_v22, 5  ;;  %v2091_v39 = vrot.slane %v1901_v44, 5  ;;  %v6945_v28 = vrot.slane %v8481_v36, 9 }
 0x17c   : > { %v2078_v25 = vsel %vm7864_vm14, %v2076_v19, %v2077_v60  ;;  %v2082_v49 = vsel %vm7864_vm14, %v6943_v47, %v2081_v34  ;;  %v2083_v7 = vrot.slane %v2081_v34, 4  ;;  %v2095_v1 = vrot.slane %v1903_v52, 5 }
 0x17d   : > { %v2098_v63 = vrot.slane %v1904_v57, 5  ;;  %v2089_v55 = vsel %vm7864_vm14, %v6944_v59, %v2088_v56  ;;  %v2090_v45 = vrot.slane %v2088_v56, 4  ;;  %v2182_v24 = vmax.bf16 %v2075_v58, %v8450_v3  ;;  %v2211_v3 = vld [vmem:[#allocation2 + $0xcc] sm:$0xc] }
 0x17e   : > { %v2183_v23 = vmax.bf16 %v2078_v25, %v1894_v37  ;;  %v2085_v6 = vsel %vm7864_vm14, %v2083_v7, %v2084_v48  ;;  %v2096_v4 = vsel %vm7864_vm14, %v6945_v28, %v2095_v1  ;;  %v2097_v60 = vrot.slane %v2095_v1, 4 }
 0x17f   : > { %v2184_v47 = vmax.bf16 %v2082_v49, %v8471_v41  ;;  %v2092_v44 = vsel %vm7864_vm14, %v2090_v45, %v2091_v39  ;;  %v2185_v19 = vmax.bf16 %v2085_v6, %v1897_v35  ;;  %v2186_v57 = vmax.bf16 %v2089_v55, %v8478_v0  ;;  %v1160_v6 = vld [vmem:[#allocation2 + $0x30] sm:$0xf] }
 0x180   : > { %v2188_v34 = vmax.bf16 %v2096_v4, %v8481_v36  ;;  %v2099_v37 = vsel %vm7864_vm14, %v2097_v60, %v2098_v63  ;;  %v2187_v58 = vmax.bf16 %v2092_v44, %v1900_v22  ;;  %v2377_v48 = vrot.slane %v8356_v16, 6 }
 0x181   : > { %v2380_v59 = vrot.slane %v8375_v15, 6  ;;  %v2189_v25 = vmax.bf16 %v2099_v37, %v1903_v52  ;;  %v2384_v41 = vrot.slane %v8409_v26, 6  ;;  %v2387_v56 = vrot.slane %v8417_v29, 6 }
 0x182   : > { %v6964_v39 = vrot.slane %v2210_v12, 10  ;;  %v11446_v35 = vrot.slane %v8335_v10, 10  ;;  %v2379_v36 = vrot.slane %v2377_v48, 4  ;;  %v2391_v28 = vrot.slane %v8453_v62, 6 }
 0x183   : > { %v2394_v22 = vrot.slane %v8455_v32, 6  ;;  %v11447_v16 = vrot.slane %v8295_v54, 10  ;;  %v2386_v52 = vrot.slane %v2384_v41, 4  ;;  %v6965_v26 = vrot.slane %v2211_v3, 10 }
 0x184   : > { %v2378_v0 = vsel %vm8160_vm5, %v11446_v35, %v2377_v48  ;;  %v2398_v29 = vrot.slane %v8441_v21, 6  ;;  %v2381_v10 = vsel %vm8160_vm5, %v2379_v36, %v2380_v59  ;;  %v2392_v49 = vsel %vm8160_vm5, %v6964_v39, %v2391_v28 }
 0x185   : > { %v2385_v15 = vsel %vm8160_vm5, %v11447_v16, %v2384_v41  ;;  %v2393_v7 = vrot.slane %v2391_v28, 4  ;;  %v2401_v62 = vrot.slane %v8447_v31, 6  ;;  %v2388_v32 = vsel %vm8160_vm5, %v2386_v52, %v2387_v56 }
 0x186   : > { %v2399_v54 = vsel %vm8160_vm5, %v6965_v26, %v2398_v29  ;;  %v2400_v1 = vrot.slane %v2398_v29, 4  ;;  %v8537_v63 = vmax.bf16 %v2378_v0, %v2182_v24  ;;  %v8541_v55 = vmax.bf16 %v2381_v10, %v2183_v23  ;;  %v8555_v24 = vld [vmem:[#allocation2 + $0x34] sm:$0xf] }
 0x187   : > { %v2395_v21 = vsel %vm8160_vm5, %v2393_v7, %v2394_v22  ;;  %v8543_v45 = vmax.bf16 %v2385_v15, %v2184_v47  ;;  %v8545_v12 = vmax.bf16 %v2388_v32, %v2185_v19  ;;  %v8549_v4 = vmax.bf16 %v2392_v49, %v2186_v57  ;;  %v8567_v19 = vld [vmem:[#allocation2 + $0x38] sm:$0x3] }
 0x188   : > { %v2402_v31 = vsel %vm8160_vm5, %v2400_v1, %v2401_v62  ;;  %v8551_v60 = vmax.bf16 %v2395_v21, %v2187_v58  ;;  %v8553_v44 = vmax.bf16 %v2399_v54, %v2188_v34  ;;  %v11448_v57 = vor.u32 %v8327_v42, %v8282_v9 }
 0x189   : > { %v8557_v3 = vmax.bf16 %v2402_v31, %v2189_v25  ;;  %v8561_v23 = vmax.bf16 %v8543_v45, %v8537_v63  ;;  %v8565_v47 = vmax.bf16 %v8545_v12, %v8541_v55  ;;  %v11449_v58 = vor.u32 %v8331_v20, %v8329_v11 }
 0x18a   : > { %v1316_v37 = vrot.slane %v11448_v57, 4  ;;  %v2529_v34 = vmax.bf16 %v8553_v44, %v8549_v4  ;;  %v1328_v59 = vshrl.u32 %v1160_v6, 16  ;;  %v1331_v25 = vshll.u32 %v1160_v6, 16 }
 0x18b   : > { %v1326_v48 = vrot.slane %v11449_v58, 4  ;;  %v2530_v41 = vmax.bf16 %v8557_v3, %v8551_v60  ;;  %v1337_v39 = vshll.u32 %v8555_v24, 16  ;;  %v1341_v42 = vshrl.u32 %v8555_v24, 16 }
 0x18c   : > { %v1321_v56 = vsel %vm7729_vm8, %v1316_v37, %v8329_v11  ;;  %v2561_v35 = vmax.bf16 %v2529_v34, %v8561_v23  ;;  %v1330_v0 = vrot.slane %v1328_v59, 4  ;;  %v1333_v36 = vrot.slane %v1331_v25, 5 }
 0x18d   : > { %v1347_v20 = vshll.u32 %v8567_v19, 16  ;;  %v2562_v28 = vmax.bf16 %v2530_v41, %v8565_v47  ;;  %v1339_v22 = vrot.slane %v1337_v39, 5  ;;  %v1343_v16 = vrot.slane %v1341_v42, 4 }
 0x18e   : > { %v1351_v15 = vshrl.u32 %v8567_v19, 16  ;;  %v8589_v52 = vmax.bf16 %v2561_v35, %v8180_v8  ;;  %v1334_v11 = vor.u32 %v1333_v36, %v1330_v0  ;;  %v11451_v29 = vsel %vm7729_vm8, %v8298_v2, %v8282_v9 }
 0x18f   : > { %v1349_v26 = vrot.slane %v1347_v20, 5  ;;  %v8597_v10 = vmax.bf16 %v11451_v29, %v8205_v14  ;;  %v8600_v49 = vmax.bf16 %v2562_v28, %v8191_v53  ;;  %v1344_v7 = vor.u32 %v1343_v16, %v1339_v22  ;;  %v11457_v29 = vld [vmem:[#allocation35_spill] sm:$0xff] }
 0x190   : > { %11450 = vst [vmem:[#allocation43_spill] sm:$0xff] %v8589_v52  ;;  %v1353_v62 = vrot.slane %v1351_v15, 4  ;;  %v1861_v32 = vmax.bf16 %v1321_v56, %v8259_v43  ;;  %v2699_v54 = vrot.slane %v8589_v52, 7  ;;  %v1335_v1 = vrot.slane %v1334_v11, 4  ;;  %v11456_v11 = vld [vmem:[#allocation42_spill] sm:$0xff] }
 0x191   : > { %11452 = vst [vmem:[#allocation44_spill] sm:$0xff] %v8600_v49  ;;  %v1862_v21 = vmax.bf16 %v1326_v48, %v8269_v27  ;;  %v6928_v31 = vrot.slane %v8306_v5, 9  ;;  %v2701_v57 = vrot.slane %v8600_v49, 7  ;;  %v1345_v37 = vrot.slane %v1344_v7, 4  ;;  %v11458_v7 = vld [vmem:[#allocation27_spill] sm:$0xff] }
 0x192   : > { %v1354_v9 = vor.u32 %v1353_v62, %v1349_v26  ;;  %v1976_v14 = vrot.slane %v8316_v33, 5  ;;  %v2700_v2 = vrot.slane %v2699_v54, 4  ;;  %2799 = vst.msk [vmem:[#allocation2 + $0xc0] sm:$0xe] %vm1099_vm13, %v2699_v54  ;;  %v1340_v34 = vsel %vm7729_vm8, %v1335_v1, %v1339_v22  ;;  %v11455_v22 = vld [vmem:[#allocation41_spill] sm:$0xff] }
 0x193   : > { %v11453_v58 = vmax.bf16 %v8342_v18, %v7750_v40  ;;  %v6929_v48 = vrot.slane %v8363_v51, 9  ;;  %v2703_v25 = vrot.slane %v2701_v57, 4  ;;  %v1350_v41 = vsel %vm7729_vm8, %v1345_v37, %v1349_v26 }
 0x194   : > { %v1355_v56 = vrot.slane %v1354_v9, 4  ;;  %v8617_v39 = vmax.bf16 %v1340_v34, %v1160_v6  ;;  %v2702_v42 = vsel %vm7903_vm15, %v2700_v2, %v2701_v57  ;;  %v1864_v35 = vmax.bf16 %v1350_v41, %v8555_v24 }
 0x195   : > { %v1979_v59 = vrot.slane %v11453_v58, 5  ;;  %v8624_v0 = vsel %vm7864_vm14, %v6928_v31, %v1976_v14  ;;  %v1978_v40 = vrot.slane %v1976_v14, 4  ;;  %2800 = vst.msk [vmem:[#allocation2 + $0xc4] sm:$0xf] %vm830_vm2, %v2702_v42  ;;  %v1983_v20 = vrot.slane %v8373_v61, 5 }
 0x196   : > { %2801 = vst.msk [vmem:[#allocation2 + $0xc8] sm:$0x1] %vm845_vm3, %v2703_v25  ;;  %v1865_v36 = vmax.bf16 %v1355_v56, %v8567_v19  ;;  %v11454_v6 = vmax.bf16 %v8382_v13, %v7807_v46  ;;  %v6930_v16 = vrot.slane %v11455_v22, 9  ;;  %v1990_v26 = vrot.slane %v11456_v11, 5 }
 0x197   : > { %v1980_v15 = vsel %vm7864_vm14, %v1978_v40, %v1979_v59  ;;  %v11459_v62 = vmax.bf16 %v11457_v29, %v11458_v7  ;;  %v6931_v1 = vrot.slane %v8597_v10, 9  ;;  %v1984_v31 = vsel %vm7864_vm14, %v6929_v48, %v1983_v20  ;;  %v2194_v40 = vld [vmem:[#allocation2] sm:$0xc] }
 0x198   : > { %v1986_v28 = vrot.slane %v11454_v6, 5  ;;  %v1985_v57 = vrot.slane %v1983_v20, 4  ;;  %v1997_v37 = vrot.slane %v1861_v32, 5  ;;  %v2000_v46 = vrot.slane %v1862_v21, 5 }
 0x199   : > { %v1993_v54 = vrot.slane %v11459_v62, 5  ;;  %v8645_v9 = vsel %vm7864_vm14, %v6930_v16, %v1990_v26  ;;  %v1992_v14 = vrot.slane %v1990_v26, 4  ;;  %v6932_v2 = vrot.slane %v8617_v39, 9  ;;  %v2195_v16 = vld [vmem:[#allocation2 + $0xc] sm:$0xc] }
 0x19a   : > { %v2004_v34 = vrot.slane %v1864_v35, 5  ;;  %v1987_v58 = vsel %vm7864_vm14, %v1985_v57, %v1986_v28  ;;  %v1998_v59 = vsel %vm7864_vm14, %v6931_v1, %v1997_v37  ;;  %v1999_v25 = vrot.slane %v1997_v37, 4 }
 0x19b   : > { %v2007_v41 = vrot.slane %v1865_v36, 5  ;;  %v1994_v48 = vsel %vm7864_vm14, %v1992_v14, %v1993_v54  ;;  %v2154_v42 = vmax.bf16 %v8624_v0, %v8306_v5  ;;  %v2155_v6 = vmax.bf16 %v1980_v15, %v8316_v33  ;;  %v2196_v0 = vld [vmem:[#allocation2 + $0x18] sm:$0xc] }
 0x19c   : > { %v2005_v21 = vsel %vm7864_vm14, %v6932_v2, %v2004_v34  ;;  %v2006_v56 = vrot.slane %v2004_v34, 4  ;;  %v2001_v20 = vsel %vm7864_vm14, %v1999_v25, %v2000_v46  ;;  %v2156_v28 = vmax.bf16 %v1984_v31, %v8363_v51  ;;  %v2197_v51 = vld [vmem:[#allocation2 + $0x24] sm:$0xc]  ;;  %v11460_v31 = vld [vmem:[#allocation37_spill] sm:$0xff]  ;;  %v11461_v46 = vld [vmem:[#allocation39_spill] sm:$0xff] }
 0x19d   : > { %v2157_v36 = vmax.bf16 %v1987_v58, %v8373_v61  ;;  %v2158_v29 = vmax.bf16 %v8645_v9, %v11455_v22  ;;  %v2159_v62 = vmax.bf16 %v1994_v48, %v11456_v11  ;;  %v2160_v5 = vmax.bf16 %v1998_v59, %v8597_v10  ;;  %v2198_v2 = vld [vmem:[#allocation2 + $0x30] sm:$0xc]  ;;  %v11462_v9 = vld [vmem:[#allocation26_spill] sm:$0xff] }
 0x19e   : > { %v2008_v26 = vsel %vm7864_vm14, %v2006_v56, %v2007_v41  ;;  %v2161_v54 = vmax.bf16 %v2001_v20, %v1861_v32  ;;  %v2162_v1 = vmax.bf16 %v2005_v21, %v8617_v39  ;;  %v6948_v15 = vrot.slane %v2194_v40, 10 }
 0x19f   : > { %v2163_v33 = vmax.bf16 %v2008_v26, %v1864_v35  ;;  %v2279_v61 = vrot.slane %v11460_v31, 6  ;;  %v2282_v57 = vrot.slane %v8342_v18, 6  ;;  %v6949_v37 = vrot.slane %v2195_v16, 10 }
 0x1a0   : > { %v2286_v14 = vrot.slane %v11461_v46, 6  ;;  %v2289_v22 = vrot.slane %v8382_v13, 6  ;;  %v6950_v11 = vrot.slane %v2196_v0, 10  ;;  %v2293_v10 = vrot.slane %v11462_v9, 6 }
 0x1a1   : > { %v2296_v32 = vrot.slane %v11458_v7, 6  ;;  %v2280_v39 = vsel %vm8160_vm5, %v6948_v15, %v2279_v61  ;;  %v2281_v35 = vrot.slane %v2279_v61, 4  ;;  %v6951_v25 = vrot.slane %v2197_v51, 10 }
 0x1a2   : > { %v2287_v34 = vsel %vm8160_vm5, %v6949_v37, %v2286_v14  ;;  %v2288_v58 = vrot.slane %v2286_v14, 4  ;;  %v2294_v18 = vsel %vm8160_vm5, %v6950_v11, %v2293_v10  ;;  %v2295_v59 = vrot.slane %v2293_v10, 4 }
 0x1a3   : > { %v2300_v13 = vrot.slane %v8259_v43, 6  ;;  %v2283_v41 = vsel %vm8160_vm5, %v2281_v35, %v2282_v57  ;;  %v2303_v48 = vrot.slane %v8269_v27, 6  ;;  %v6952_v21 = vrot.slane %v2198_v2, 10  ;;  %v1163_v57 = vld [vmem:[#allocation2 + $0x3c] sm:$0xf] }
 0x1a4   : > { %v2290_v7 = vsel %vm8160_vm5, %v2288_v58, %v2289_v22  ;;  %v2297_v56 = vsel %vm8160_vm5, %v2295_v59, %v2296_v32  ;;  %v2307_v16 = vrot.slane %v8555_v24, 6  ;;  %v2310_v43 = vrot.slane %v8567_v19, 6 }
 0x1a5   : > { %v2301_v40 = vsel %vm8160_vm5, %v6951_v25, %v2300_v13  ;;  %v2302_v20 = vrot.slane %v2300_v13, 4  ;;  %v2457_v26 = vmax.bf16 %v2280_v39, %v2154_v42  ;;  %v2458_v0 = vmax.bf16 %v2283_v41, %v2155_v6  ;;  %v1164_v42 = vld [vmem:[#allocation2 + $0x40] sm:$0xf]  ;;  %v8706_v6 = vld [vmem:[#allocation2 + $0x44] sm:$0x3] }
 0x1a6   : > { %v8694_v15 = vmax.bf16 %v2287_v34, %v2156_v28  ;;  %v2308_v27 = vsel %vm8160_vm5, %v6952_v21, %v2307_v16  ;;  %v2309_v31 = vrot.slane %v2307_v16, 4  ;;  %v8700_v61 = vmax.bf16 %v2290_v7, %v2157_v36 }
 0x1a7   : > { %v2304_v51 = vsel %vm8160_vm5, %v2302_v20, %v2303_v48  ;;  %v8702_v37 = vmax.bf16 %v2294_v18, %v2158_v29  ;;  %v8704_v46 = vmax.bf16 %v2297_v56, %v2159_v62  ;;  %v2463_v24 = vmax.bf16 %v2301_v40, %v2160_v5 }
 0x1a8   : > { %v2464_v19 = vmax.bf16 %v2304_v51, %v2161_v54  ;;  %v2311_v28 = vsel %vm8160_vm5, %v2309_v31, %v2310_v43  ;;  %v8710_v14 = vmax.bf16 %v2308_v27, %v2162_v1  ;;  %v2497_v2 = vmax.bf16 %v8694_v15, %v2457_v26  ;;  %v2199_v1 = vld [vmem:[#allocation2 + $0x3c] sm:$0xc] }
 0x1a9   : > { %v2498_v36 = vmax.bf16 %v8700_v61, %v2458_v0  ;;  %v8714_v22 = vmax.bf16 %v2311_v28, %v2163_v33  ;;  %v8717_v29 = vmax.bf16 %v2463_v24, %v8702_v37  ;;  %v1357_v5 = vshrl.u32 %v1163_v57, 16 }
 0x1aa   : > { %v8720_v62 = vmax.bf16 %v2464_v19, %v8704_v46  ;;  %v1360_v54 = vshll.u32 %v1163_v57, 16  ;;  %v1366_v11 = vshll.u32 %v1164_v42, 16  ;;  %v1370_v9 = vshrl.u32 %v1164_v42, 16 }
 0x1ab   : > { %v1376_v10 = vshll.u32 %v8706_v6, 16  ;;  %v2533_v32 = vmax.bf16 %v8717_v29, %v2497_v2  ;;  %v1359_v35 = vrot.slane %v1357_v5, 4  ;;  %v1380_v33 = vshrl.u32 %v8706_v6, 16 }
 0x1ac   : > { %v2534_v39 = vmax.bf16 %v8720_v62, %v2498_v36  ;;  %v1362_v34 = vrot.slane %v1360_v54, 5  ;;  %v1368_v58 = vrot.slane %v1366_v11, 5  ;;  %v1372_v18 = vrot.slane %v1370_v9, 4  ;;  %v1166_v54 = vld [vmem:[#allocation2 + $0x48] sm:$0xf] }
 0x1ad   : > { %v1378_v59 = vrot.slane %v1376_v10, 5  ;;  %v2565_v25 = vmax.bf16 %v2533_v32, %v8710_v14  ;;  %v1382_v41 = vrot.slane %v1380_v33, 4  ;;  %v6953_v7 = vrot.slane %v2199_v1, 10  ;;  %v8743_v32 = vld [vmem:[#allocation2 + $0x4c] sm:$0xf] }
 0x1ae   : > { %v2566_v13 = vmax.bf16 %v2534_v39, %v8714_v22  ;;  %v1363_v48 = vor.u32 %v1362_v34, %v1359_v35  ;;  %v1373_v21 = vor.u32 %v1372_v18, %v1368_v58  ;;  %v2314_v56 = vrot.slane %v1164_v42, 6 }
 0x1af   : > { %v2317_v40 = vrot.slane %v8706_v6, 6  ;;  %v2629_v43 = vrot.slane %v2565_v25, 7  ;;  %v1383_v26 = vor.u32 %v1382_v41, %v1378_v59  ;;  %v2499_v5 = vmax.bf16 %v8702_v37, %v8694_v15 }
 0x1b0   : > { %v2631_v20 = vrot.slane %v2566_v13, 7  ;;  %v7048_v16 = vcombine.low %v2565_v25, %v2566_v13  ;;  %v1364_v0 = vrot.slane %v1363_v48, 4  ;;  %v1374_v51 = vrot.slane %v1373_v21, 4  ;;  %v1168_v25 = vld [vmem:[#allocation2 + $0x50] sm:$0x3] }
 0x1b1   : > { %v2315_v27 = vsel %vm8160_vm5, %v6953_v7, %v2314_v56  ;;  %v2316_v31 = vrot.slane %v2314_v56, 4  ;;  %v2630_v2 = vrot.slane %v2629_v43, 4  ;;  %2757 = vst.msk [vmem:[#allocation2 + $0x18] sm:$0xe] %vm1099_vm13, %v2629_v43  ;;  %v1384_v36 = vrot.slane %v1383_v26, 4 }
 0x1b2   : > { %v2633_v28 = vrot.slane %v2631_v20, 4  ;;  %5958 = vrot.lane.b32.xlu0 %v7048_v16, %s7537_s13  ;;  %v1369_v11 = vsel %vm7729_vm8, %v1364_v0, %v1368_v58  ;;  %v1379_v9 = vsel %vm7729_vm8, %v1374_v51, %v1378_v59  ;;  %v2500_v1 = vmax.bf16 %v8704_v46, %v8700_v61  ;;  %v2200_v7 = vld [vmem:[#allocation2 + $0x48] sm:$0xc] }
 0x1b3   : > { %v2318_v10 = vsel %vm8160_vm5, %v2316_v31, %v2317_v40  ;;  %v2632_v15 = vsel %vm7903_vm15, %v2630_v2, %v2631_v20  ;;  %v1866_v37 = vmax.bf16 %v1369_v11, %v1163_v57  ;;  %v1867_v39 = vmax.bf16 %v1379_v9, %v1164_v42 }
 0x1b4   : > { %2759 = vst.msk [vmem:[#allocation2 + $0x20] sm:$0x1] %vm845_vm3, %v2633_v28  ;;  %v1868_v35 = vmax.bf16 %v1384_v36, %v8706_v6  ;;  %v8751_v33 = vmax.bf16 %v8710_v14, %v2463_v24  ;;  %v8754_v34 = vmax.bf16 %v8714_v22, %v2464_v19  ;;  %v1386_v61 = vshrl.u32 %v1166_v54, 16 }
 0x1b5   : > { %2758 = vst.msk [vmem:[#allocation2 + $0x1c] sm:$0xf] %vm830_vm2, %v2632_v15  ;;  %v1389_v46 = vshll.u32 %v1166_v54, 16  ;;  %v6933_v58 = vrot.slane %v1866_v37, 9  ;;  %v2011_v18 = vrot.slane %v1867_v39, 5  ;;  %v1395_v13 = vshll.u32 %v8743_v32, 16 }
 0x1b6   : > { %v2014_v59 = vrot.slane %v1868_v35, 5  ;;  %v2535_v57 = vmax.bf16 %v8751_v33, %v2499_v5  ;;  %v2536_v42 = vmax.bf16 %v8754_v34, %v2500_v1  ;;  %v1388_v6 = vrot.slane %v1386_v61, 4 }
 0x1b7   : > { %v1391_v41 = vrot.slane %v1389_v46, 5  ;;  %v2012_v24 = vsel %vm7864_vm14, %v6933_v58, %v2011_v18  ;;  %v2013_v19 = vrot.slane %v2011_v18, 4  ;;  %v1397_v48 = vrot.slane %v1395_v13, 5 }
 0x1b8   : > { %v1399_v21 = vshrl.u32 %v8743_v32, 16  ;;  %v2164_v56 = vmax.bf16 %v2012_v24, %v1866_v37  ;;  %v1405_v20 = vshll.u32 %v1168_v25, 16  ;;  %v1409_v16 = vshrl.u32 %v1168_v25, 16 }
 0x1b9   : > { %v1392_v40 = vor.u32 %v1391_v41, %v1388_v6  ;;  %v2015_v43 = vsel %vm7864_vm14, %v2013_v19, %v2014_v59  ;;  %v6954_v0 = vrot.slane %v2200_v7, 10  ;;  %v2321_v51 = vrot.slane %v8743_v32, 6  ;;  %v1170_v7 = vld [vmem:[#allocation2 + $0x58] sm:$0xf] }
 0x1ba   : > { %v1401_v26 = vrot.slane %v1399_v21, 4  ;;  %v2165_v31 = vmax.bf16 %v2015_v43, %v1867_v39  ;;  %v8765_v28 = vmax.bf16 %v2315_v27, %v2164_v56  ;;  %v1407_v36 = vrot.slane %v1405_v20, 5  ;;  %v8793_v56 = vld [vmem:[#allocation2 + $0x5c] sm:$0x3] }
 0x1bb   : > { %v1393_v2 = vrot.slane %v1392_v40, 4  ;;  %v1411_v11 = vrot.slane %v1409_v16, 4  ;;  %v2322_v9 = vsel %vm8160_vm5, %v6954_v0, %v2321_v51  ;;  %v2323_v1 = vrot.slane %v2321_v51, 4 }
 0x1bc   : > { %v1402_v5 = vor.u32 %v1401_v26, %v1397_v48  ;;  %v8769_v15 = vmax.bf16 %v2318_v10, %v2165_v31  ;;  %v2567_v37 = vmax.bf16 %v2535_v57, %v8765_v28  ;;  %v2324_v61 = vrot.slane %v1168_v25, 6  ;;  %v1169_v57 = vld [vmem:[#allocation2 + $0x54] sm:$0xf] }
 0x1bd   : > { %v1398_v35 = vsel %vm7729_vm8, %v1393_v2, %v1397_v48  ;;  %v1412_v39 = vor.u32 %v1411_v11, %v1407_v36  ;;  %v8776_v58 = vmax.bf16 %v8765_v28, %v8710_v14  ;;  %v1415_v40 = vshrl.u32 %v1169_v57, 16  ;;  %v2201_v31 = vld [vmem:[#allocation2 + $0x54] sm:$0xc] }
 0x1be   : > { %v1403_v46 = vrot.slane %v1402_v5, 4  ;;  %v1869_v27 = vmax.bf16 %v1398_v35, %v1166_v54  ;;  %v2568_v18 = vmax.bf16 %v2536_v42, %v8769_v15  ;;  %v2634_v59 = vrot.slane %v2567_v37, 7 }
 0x1bf   : > { %v2325_v10 = vsel %vm8160_vm5, %v2323_v1, %v2324_v61  ;;  %v8783_v13 = vmax.bf16 %v8769_v15, %v8714_v22  ;;  %v1413_v41 = vrot.slane %v1412_v39, 4  ;;  %v2537_v14 = vmax.bf16 %v8776_v58, %v8717_v29 }
 0x1c0   : > { %v1408_v6 = vsel %vm7729_vm8, %v1403_v46, %v1407_v36  ;;  %v6934_v54 = vrot.slane %v1869_v27, 9  ;;  %v2636_v24 = vrot.slane %v2568_v18, 7  ;;  %v7049_v42 = vcombine.low %v2567_v37, %v2568_v18  ;;  %2760 = vst.msk [vmem:[#allocation2 + $0x24] sm:$0xe] %vm1099_vm13, %v2634_v59 }
 0x1c1   : > { %v2635_v19 = vrot.slane %v2634_v59, 4  ;;  %v1870_v48 = vmax.bf16 %v1408_v6, %v8743_v32  ;;  %v1871_v21 = vmax.bf16 %v1413_v41, %v1168_v25  ;;  %v2538_v22 = vmax.bf16 %v8783_v13, %v8720_v62 }
 0x1c2   : > { %v1418_v20 = vshll.u32 %v1169_v57, 16  ;;  %v2638_v16 = vrot.slane %v2636_v24, 4  ;;  %5960 = vrot.lane.b32.xlu0 %v7049_v42, %s7537_s13  ;;  %v1424_v26 = vshll.u32 %v1170_v7, 16  ;;  %v1417_v32 = vrot.slane %v1415_v40, 4 }
 0x1c3   : > { %v2637_v29 = vsel %vm7903_vm15, %v2635_v19, %v2636_v24  ;;  %v2018_v43 = vrot.slane %v1870_v48, 5  ;;  %v2021_v0 = vrot.slane %v1871_v21, 5  ;;  %v1428_v51 = vshrl.u32 %v1170_v7, 16 }
 0x1c4   : > { %2761 = vst.msk [vmem:[#allocation2 + $0x28] sm:$0xf] %vm830_vm2, %v2637_v29  ;;  %v1420_v25 = vrot.slane %v1418_v20, 5  ;;  %v1426_v36 = vrot.slane %v1424_v26, 5  ;;  %v1434_v5 = vshll.u32 %v8793_v56, 16  ;;  %v1438_v35 = vshrl.u32 %v8793_v56, 16 }
 0x1c5   : > { %2762 = vst.msk [vmem:[#allocation2 + $0x2c] sm:$0x1] %vm845_vm3, %v2638_v16  ;;  %v2019_v62 = vsel %vm7864_vm14, %v6934_v54, %v2018_v43  ;;  %v2020_v2 = vrot.slane %v2018_v43, 4  ;;  %v1430_v37 = vrot.slane %v1428_v51, 4  ;;  %v6955_v39 = vrot.slane %v2201_v31, 10 }
 0x1c6   : > { %v2166_v11 = vmax.bf16 %v2019_v62, %v1869_v27  ;;  %v1421_v1 = vor.u32 %v1420_v25, %v1417_v32  ;;  %v1436_v46 = vrot.slane %v1434_v5, 5  ;;  %v2328_v18 = vrot.slane %v1170_v7, 6  ;;  %v1172_v32 = vld [vmem:[#allocation2 + $0x60] sm:$0xf]  ;;  %v1173_v62 = vld [vmem:[#allocation2 + $0x64] sm:$0xf] }
 0x1c7   : > { %v2022_v61 = vsel %vm7864_vm14, %v2020_v2, %v2021_v0  ;;  %v1431_v54 = vor.u32 %v1430_v37, %v1426_v36  ;;  %v1440_v24 = vrot.slane %v1438_v35, 4  ;;  %v2331_v19 = vrot.slane %v8793_v56, 6  ;;  %v2202_v37 = vld [vmem:[#allocation2 + $0x60] sm:$0xc]  ;;  %v1174_v35 = vld [vmem:[#allocation2 + $0x68] sm:$0x3] }
 0x1c8   : > { %v2167_v59 = vmax.bf16 %v2022_v61, %v1870_v48  ;;  %v8806_v6 = vmax.bf16 %v2322_v9, %v2166_v11  ;;  %v1422_v41 = vrot.slane %v1421_v1, 4  ;;  %v2329_v42 = vsel %vm8160_vm5, %v6955_v39, %v2328_v18 }
 0x1c9   : > { %v2330_v27 = vrot.slane %v2328_v18, 4  ;;  %v1432_v16 = vrot.slane %v1431_v54, 4  ;;  %v1441_v48 = vor.u32 %v1440_v24, %v1436_v46  ;;  %v1444_v11 = vshrl.u32 %v1172_v32, 16 }
 0x1ca   : > { %v8811_v21 = vmax.bf16 %v2325_v10, %v2167_v59  ;;  %v2569_v40 = vmax.bf16 %v2537_v14, %v8806_v6  ;;  %v1427_v20 = vsel %vm7729_vm8, %v1422_v41, %v1426_v36  ;;  %v8820_v43 = vmax.bf16 %v8806_v6, %v8765_v28 }
 0x1cb   : > { %v1872_v9 = vmax.bf16 %v1427_v20, %v1169_v57  ;;  %v2332_v29 = vsel %vm8160_vm5, %v2330_v27, %v2331_v19  ;;  %v1437_v10 = vsel %vm7729_vm8, %v1432_v16, %v1436_v46  ;;  %v1442_v25 = vrot.slane %v1441_v48, 4 }
 0x1cc   : > { %v2570_v26 = vmax.bf16 %v2538_v22, %v8811_v21  ;;  %v2639_v0 = vrot.slane %v2569_v40, 7  ;;  %v8827_v14 = vmax.bf16 %v8811_v21, %v8769_v15  ;;  %v1873_v57 = vmax.bf16 %v1437_v10, %v1170_v7 }
 0x1cd   : > { %v6935_v51 = vrot.slane %v1872_v9, 9  ;;  %v2539_v31 = vmax.bf16 %v8820_v43, %v8751_v33  ;;  %v1874_v5 = vmax.bf16 %v1442_v25, %v8793_v56  ;;  %v1447_v1 = vshll.u32 %v1172_v32, 16 }
 0x1ce   : > { %v2641_v28 = vrot.slane %v2570_v26, 7  ;;  %v7050_v2 = vcombine.low %v2569_v40, %v2570_v26  ;;  %v2640_v36 = vrot.slane %v2639_v0, 4  ;;  %2763 = vst.msk [vmem:[#allocation2 + $0x30] sm:$0xe] %vm1099_vm13, %v2639_v0  ;;  %v2540_v22 = vmax.bf16 %v8827_v14, %v8754_v34 }
 0x1cf   : > { %v2025_v15 = vrot.slane %v1873_v57, 5  ;;  %v1453_v61 = vshll.u32 %v1173_v62, 16  ;;  %v1457_v46 = vshrl.u32 %v1173_v62, 16  ;;  %v2028_v56 = vrot.slane %v1874_v5, 5 }
 0x1d0   : > { %v2643_v7 = vrot.slane %v2641_v28, 4  ;;  %5962 = vrot.lane.b32.xlu0 %v7050_v2, %s7537_s13  ;;  %v2642_v33 = vsel %vm7903_vm15, %v2640_v36, %v2641_v28  ;;  %v1446_v18 = vrot.slane %v1444_v11, 4  ;;  %v1449_v41 = vrot.slane %v1447_v1, 5 }
 0x1d1   : > { %2764 = vst.msk [vmem:[#allocation2 + $0x34] sm:$0xf] %vm830_vm2, %v2642_v33  ;;  %v2026_v34 = vsel %vm7864_vm14, %v6935_v51, %v2025_v15  ;;  %v2027_v39 = vrot.slane %v2025_v15, 4  ;;  %v1455_v54 = vrot.slane %v1453_v61, 5  ;;  %v1459_v24 = vrot.slane %v1457_v46, 4 }
 0x1d2   : > { %2765 = vst.msk [vmem:[#allocation2 + $0x38] sm:$0x1] %vm845_vm3, %v2643_v7  ;;  %v2168_v59 = vmax.bf16 %v2026_v34, %v1872_v9  ;;  %v1463_v19 = vshll.u32 %v1174_v35, 16  ;;  %v1467_v40 = vshrl.u32 %v1174_v35, 16  ;;  %v6956_v20 = vrot.slane %v2202_v37, 10 }
 0x1d3   : > { %v2029_v27 = vsel %vm7864_vm14, %v2027_v39, %v2028_v56  ;;  %v1450_v26 = vor.u32 %v1449_v41, %v1446_v18  ;;  %v1460_v0 = vor.u32 %v1459_v24, %v1455_v54  ;;  %v2335_v51 = vrot.slane %v1173_v62, 6  ;;  %v1175_v34 = vld [vmem:[#allocation2 + $0x6c] sm:$0xf] }
 0x1d4   : > { %v2169_v16 = vmax.bf16 %v2029_v27, %v1873_v57  ;;  %v8844_v48 = vmax.bf16 %v2329_v42, %v2168_v59  ;;  %v1465_v10 = vrot.slane %v1463_v19, 5  ;;  %v1469_v25 = vrot.slane %v1467_v40, 4  ;;  %v1177_v19 = vld [vmem:[#allocation2 + $0x74] sm:$0x3] }
 0x1d5   : > { %v2338_v28 = vrot.slane %v1174_v35, 6  ;;  %v1451_v36 = vrot.slane %v1450_v26, 4  ;;  %v1461_v5 = vrot.slane %v1460_v0, 4  ;;  %v2336_v11 = vsel %vm8160_vm5, %v6956_v20, %v2335_v51 }
 0x1d6   : > { %v8846_v2 = vmax.bf16 %v2332_v29, %v2169_v16  ;;  %v2571_v9 = vmax.bf16 %v2539_v31, %v8844_v48  ;;  %v1470_v15 = vor.u32 %v1469_v25, %v1465_v10  ;;  %v2337_v1 = vrot.slane %v2335_v51, 4  ;;  %v2203_v25 = vld [vmem:[#allocation2 + $0x6c] sm:$0xc] }
 0x1d7   : > { %v8853_v42 = vmax.bf16 %v8844_v48, %v8806_v6  ;;  %v1456_v29 = vsel %vm7729_vm8, %v1451_v36, %v1455_v54  ;;  %v1466_v31 = vsel %vm7729_vm8, %v1461_v5, %v1465_v10  ;;  %v1473_v40 = vshrl.u32 %v1175_v34, 16 }
 0x1d8   : > { %v2572_v57 = vmax.bf16 %v2540_v22, %v8846_v2  ;;  %v2644_v37 = vrot.slane %v2571_v9, 7  ;;  %v1471_v7 = vrot.slane %v1470_v15, 4  ;;  %v1875_v33 = vmax.bf16 %v1456_v29, %v1172_v32 }
 0x1d9   : > { %v1876_v61 = vmax.bf16 %v1466_v31, %v1173_v62  ;;  %v2339_v46 = vsel %vm8160_vm5, %v2337_v1, %v2338_v28  ;;  %v8865_v22 = vmax.bf16 %v8846_v2, %v8811_v21  ;;  %v2541_v32 = vmax.bf16 %v8853_v42, %v8776_v58  ;;  %v1176_v62 = vld [vmem:[#allocation2 + $0x70] sm:$0xf] }
 0x1da   : > { %v2646_v39 = vrot.slane %v2572_v57, 7  ;;  %v7051_v56 = vcombine.low %v2571_v9, %v2572_v57  ;;  %v2645_v6 = vrot.slane %v2644_v37, 4  ;;  %2766 = vst.msk [vmem:[#allocation2 + $0x3c] sm:$0xe] %vm1099_vm13, %v2644_v37  ;;  %v1877_v18 = vmax.bf16 %v1471_v7, %v1174_v35 }
 0x1db   : > { %v6936_v59 = vrot.slane %v1875_v33, 9  ;;  %v2032_v41 = vrot.slane %v1876_v61, 5  ;;  %v2542_v27 = vmax.bf16 %v8865_v22, %v8783_v13  ;;  %v1476_v58 = vshll.u32 %v1175_v34, 16 }
 0x1dc   : > { %v2648_v54 = vrot.slane %v2646_v39, 4  ;;  %5964 = vrot.lane.b32.xlu1 %v7051_v56, %s7537_s13  ;;  %v2647_v24 = vsel %vm7903_vm15, %v2645_v6, %v2646_v39  ;;  %v2035_v20 = vrot.slane %v1877_v18, 5  ;;  %v1475_v26 = vrot.slane %v1473_v40, 4 }
 0x1dd   : > { %2767 = vst.msk [vmem:[#allocation2 + $0x40] sm:$0xf] %vm830_vm2, %v2647_v24  ;;  %v2033_v21 = vsel %vm7864_vm14, %v6936_v59, %v2032_v41  ;;  %v2034_v35 = vrot.slane %v2032_v41, 4  ;;  %v1482_v0 = vshll.u32 %v1176_v62, 16  ;;  %v1486_v10 = vshrl.u32 %v1176_v62, 16 }
 0x1de   : > { %2768 = vst.msk [vmem:[#allocation2 + $0x44] sm:$0x1] %vm845_vm3, %v2648_v54  ;;  %v2170_v16 = vmax.bf16 %v2033_v21, %v1875_v33  ;;  %v1478_v51 = vrot.slane %v1476_v58, 5  ;;  %v1492_v28 = vshll.u32 %v1177_v19, 16  ;;  %v1496_v9 = vshrl.u32 %v1177_v19, 16 }
 0x1df   : > { %v2036_v13 = vsel %vm7864_vm14, %v2034_v35, %v2035_v20  ;;  %v1484_v15 = vrot.slane %v1482_v0, 5  ;;  %v1488_v1 = vrot.slane %v1486_v10, 4  ;;  %v6957_v31 = vrot.slane %v2203_v25, 10  ;;  %v1178_v58 = vld [vmem:[#allocation2 + $0x78] sm:$0xf] }
 0x1e0   : > { %v2171_v36 = vmax.bf16 %v2036_v13, %v1876_v61  ;;  %v8880_v5 = vmax.bf16 %v2336_v11, %v2170_v16  ;;  %v1479_v57 = vor.u32 %v1478_v51, %v1475_v26  ;;  %v1494_v37 = vrot.slane %v1492_v28, 5  ;;  %v1179_v25 = vld [vmem:[#allocation2 + $0x7c] sm:$0xf]  ;;  %v1180_v13 = vld [vmem:[#allocation2 + $0x80] sm:$0x3] }
 0x1e1   : > { %v1498_v29 = vrot.slane %v1496_v9, 4  ;;  %v1489_v39 = vor.u32 %v1488_v1, %v1484_v15  ;;  %v2342_v56 = vrot.slane %v1176_v62, 6  ;;  %v2345_v59 = vrot.slane %v1177_v19, 6 }
 0x1e2   : > { %v8882_v7 = vmax.bf16 %v2339_v46, %v2171_v36  ;;  %v2573_v33 = vmax.bf16 %v2541_v32, %v8880_v5  ;;  %v1480_v6 = vrot.slane %v1479_v57, 4  ;;  %v8887_v61 = vmax.bf16 %v8880_v5, %v8844_v48 }
 0x1e3   : > { %v1499_v18 = vor.u32 %v1498_v29, %v1494_v37  ;;  %v1490_v54 = vrot.slane %v1489_v39, 4  ;;  %v2343_v24 = vsel %vm8160_vm5, %v6957_v31, %v2342_v56  ;;  %v2344_v40 = vrot.slane %v2342_v56, 4  ;;  %v2204_v29 = vld [vmem:[#allocation2 + $0x78] sm:$0xc] }
 0x1e4   : > { %v2574_v11 = vmax.bf16 %v2542_v27, %v8882_v7  ;;  %v2649_v41 = vrot.slane %v2573_v33, 7  ;;  %v1485_v46 = vsel %vm7729_vm8, %v1480_v6, %v1484_v15  ;;  %v8896_v21 = vmax.bf16 %v8882_v7, %v8846_v2 }
 0x1e5   : > { %v1500_v32 = vrot.slane %v1499_v18, 4  ;;  %v1495_v27 = vsel %vm7729_vm8, %v1490_v54, %v1494_v37  ;;  %v1878_v16 = vmax.bf16 %v1485_v46, %v1175_v34  ;;  %v2346_v10 = vsel %vm8160_vm5, %v2344_v40, %v2345_v59  ;;  %v8914_v59 = vld [vmem:[#allocation2 + $0x84] sm:$0xf] }
 0x1e6   : > { %v2651_v35 = vrot.slane %v2574_v11, 7  ;;  %v7052_v20 = vcombine.low %v2573_v33, %v2574_v11  ;;  %v2650_v48 = vrot.slane %v2649_v41, 4  ;;  %2769 = vst.msk [vmem:[#allocation2 + $0x48] sm:$0xe] %vm1099_vm13, %v2649_v41  ;;  %v1879_v26 = vmax.bf16 %v1495_v27, %v1176_v62 }
 0x1e7   : > { %v1880_v0 = vmax.bf16 %v1500_v32, %v1177_v19  ;;  %v2543_v28 = vmax.bf16 %v8887_v61, %v8820_v43  ;;  %v2544_v9 = vmax.bf16 %v8896_v21, %v8827_v14  ;;  %v6937_v34 = vrot.slane %v1878_v16, 9 }
 0x1e8   : > { %v2653_v51 = vrot.slane %v2651_v35, 4  ;;  %5966 = vrot.lane.b32.xlu0 %v7052_v20, %s7537_s13  ;;  %v2652_v2 = vsel %vm7903_vm15, %v2650_v48, %v2651_v35  ;;  %v2039_v62 = vrot.slane %v1879_v26, 5  ;;  %v1502_v36 = vshrl.u32 %v1178_v58, 16 }
 0x1e9   : > { %2770 = vst.msk [vmem:[#allocation2 + $0x4c] sm:$0xf] %vm830_vm2, %v2652_v2  ;;  %v2042_v19 = vrot.slane %v1880_v0, 5  ;;  %v1505_v15 = vshll.u32 %v1178_v58, 16  ;;  %v1511_v1 = vshll.u32 %v1179_v25, 16  ;;  %v1515_v57 = vshrl.u32 %v1179_v25, 16 }
 0x1ea   : > { %2771 = vst.msk [vmem:[#allocation2 + $0x50] sm:$0x1] %vm845_vm3, %v2653_v51  ;;  %v1521_v37 = vshll.u32 %v1180_v13, 16  ;;  %v2040_v31 = vsel %vm7864_vm14, %v6937_v34, %v2039_v62  ;;  %v2041_v43 = vrot.slane %v2039_v62, 4  ;;  %v1504_v33 = vrot.slane %v1502_v36, 4 }
 0x1eb   : > { %v1525_v39 = vshrl.u32 %v1180_v13, 16  ;;  %v2172_v14 = vmax.bf16 %v2040_v31, %v1878_v16  ;;  %v1507_v56 = vrot.slane %v1505_v15, 5  ;;  %v1513_v6 = vrot.slane %v1511_v1, 5 }
 0x1ec   : > { %v1517_v18 = vrot.slane %v1515_v57, 4  ;;  %v2043_v11 = vsel %vm7864_vm14, %v2041_v43, %v2042_v19  ;;  %v1523_v41 = vrot.slane %v1521_v37, 5  ;;  %v6958_v46 = vrot.slane %v2204_v29, 10 }
 0x1ed   : > { %v1527_v54 = vrot.slane %v1525_v39, 4  ;;  %v2173_v32 = vmax.bf16 %v2043_v11, %v1879_v26  ;;  %v8918_v40 = vmax.bf16 %v2343_v24, %v2172_v14  ;;  %v1508_v35 = vor.u32 %v1507_v56, %v1504_v33 }
 0x1ee   : > { %v1518_v20 = vor.u32 %v1517_v18, %v1513_v6  ;;  %v2349_v27 = vrot.slane %v1179_v25, 6  ;;  %v2352_v0 = vrot.slane %v1180_v13, 6  ;;  %v1531_v16 = vshrl.u32 %v8914_v59, 16 }
 0x1ef   : > { %v1528_v48 = vor.u32 %v1527_v54, %v1523_v41  ;;  %v8921_v51 = vmax.bf16 %v2346_v10, %v2173_v32  ;;  %v2575_v2 = vmax.bf16 %v2543_v28, %v8918_v40  ;;  %v1509_v34 = vrot.slane %v1508_v35, 4 }
 0x1f0   : > { %v1519_v62 = vrot.slane %v1518_v20, 4  ;;  %v2350_v36 = vsel %vm8160_vm5, %v6958_v46, %v2349_v27  ;;  %v2351_v26 = vrot.slane %v2349_v27, 4  ;;  %v8928_v24 = vmax.bf16 %v8918_v40, %v8880_v5 }
 0x1f1   : > { %v1529_v19 = vrot.slane %v1528_v48, 4  ;;  %v2576_v15 = vmax.bf16 %v2544_v9, %v8921_v51  ;;  %v2654_v1 = vrot.slane %v2575_v2, 7  ;;  %v1514_v10 = vsel %vm7729_vm8, %v1509_v34, %v1513_v6  ;;  %v1182_v9 = vld [vmem:[#allocation2 + $0x88] sm:$0xf] }
 0x1f2   : > { %v1524_v28 = vsel %vm7729_vm8, %v1519_v62, %v1523_v41  ;;  %v1881_v57 = vmax.bf16 %v1514_v10, %v1178_v58  ;;  %v2353_v31 = vsel %vm8160_vm5, %v2351_v26, %v2352_v0  ;;  %v8940_v5 = vmax.bf16 %v8921_v51, %v8882_v7  ;;  %v2205_v41 = vld [vmem:[#allocation2 + $0x84] sm:$0xc] }
 0x1f3   : > { %v1882_v37 = vmax.bf16 %v1524_v28, %v1179_v25  ;;  %v1883_v29 = vmax.bf16 %v1529_v19, %v1180_v13  ;;  %v2656_v43 = vrot.slane %v2576_v15, 7  ;;  %v7053_v33 = vcombine.low %v2575_v2, %v2576_v15  ;;  %2772 = vst.msk [vmem:[#allocation2 + $0x54] sm:$0xe] %vm1099_vm13, %v2654_v1  ;;  %v8944_v25 = vld [vmem:[#allocation2 + $0x8c] sm:$0x3] }
 0x1f4   : > { %v2655_v39 = vrot.slane %v2654_v1, 4  ;;  %v6938_v14 = vrot.slane %v1881_v57, 9  ;;  %v2545_v58 = vmax.bf16 %v8928_v24, %v8853_v42  ;;  %v2546_v11 = vmax.bf16 %v8940_v5, %v8865_v22 }
 0x1f5   : > { %v2046_v56 = vrot.slane %v1882_v37, 5  ;;  %v2049_v6 = vrot.slane %v1883_v29, 5  ;;  %v2658_v13 = vrot.slane %v2656_v43, 4  ;;  %5968 = vrot.lane.b32.xlu1 %v7053_v33, %s7537_s13  ;;  %v1533_v7 = vrot.slane %v1531_v16, 4 }
 0x1f6   : > { %v2657_v18 = vsel %vm7903_vm15, %v2655_v39, %v2656_v43  ;;  %v1534_v42 = vshll.u32 %v8914_v59, 16  ;;  %v1540_v32 = vshll.u32 %v1182_v9, 16  ;;  %v1544_v20 = vshrl.u32 %v1182_v9, 16 }
 0x1f7   : > { %2773 = vst.msk [vmem:[#allocation2 + $0x58] sm:$0xf] %vm830_vm2, %v2657_v18  ;;  %v2047_v54 = vsel %vm7864_vm14, %v6938_v14, %v2046_v56  ;;  %v2048_v46 = vrot.slane %v2046_v56, 4  ;;  %v1550_v48 = vshll.u32 %v8944_v25, 16  ;;  %v1554_v27 = vshrl.u32 %v8944_v25, 16 }
 0x1f8   : > { %2774 = vst.msk [vmem:[#allocation2 + $0x5c] sm:$0x1] %vm845_vm3, %v2658_v13  ;;  %v2174_v35 = vmax.bf16 %v2047_v54, %v1881_v57  ;;  %v1536_v0 = vrot.slane %v1534_v42, 5  ;;  %v1542_v16 = vrot.slane %v1540_v32, 5  ;;  %v6959_v2 = vrot.slane %v2205_v41, 10 }
 0x1f9   : > { %v2050_v22 = vsel %vm7864_vm14, %v2048_v46, %v2049_v6  ;;  %v1546_v19 = vrot.slane %v1544_v20, 4  ;;  %v1552_v26 = vrot.slane %v1550_v48, 5  ;;  %v1556_v1 = vrot.slane %v1554_v27, 4  ;;  %v1184_v41 = vld [vmem:[#allocation2 + $0x90] sm:$0xf] }
 0x1fa   : > { %v2175_v34 = vmax.bf16 %v2050_v22, %v1882_v37  ;;  %v8960_v62 = vmax.bf16 %v2350_v36, %v2174_v35  ;;  %v1537_v15 = vor.u32 %v1536_v0, %v1533_v7  ;;  %v2356_v10 = vrot.slane %v1182_v9, 6  ;;  %v1185_v42 = vld [vmem:[#allocation2 + $0x94] sm:$0xf]  ;;  %v1186_v27 = vld [vmem:[#allocation2 + $0x98] sm:$0x3] }
 0x1fb   : > { %v2359_v28 = vrot.slane %v8944_v25, 6  ;;  %v1547_v43 = vor.u32 %v1546_v19, %v1542_v16  ;;  %v1557_v37 = vor.u32 %v1556_v1, %v1552_v26  ;;  %v1560_v0 = vshrl.u32 %v1184_v41, 16 }
 0x1fc   : > { %v8963_v57 = vmax.bf16 %v2353_v31, %v2175_v34  ;;  %v2577_v29 = vmax.bf16 %v2545_v58, %v8960_v62  ;;  %v8968_v33 = vmax.bf16 %v8960_v62, %v8918_v40  ;;  %v1538_v39 = vrot.slane %v1537_v15, 4  ;;  %v2206_v15 = vld [vmem:[#allocation2 + $0x90] sm:$0xc] }
 0x1fd   : > { %v2357_v36 = vsel %vm8160_vm5, %v6959_v2, %v2356_v10  ;;  %v2358_v14 = vrot.slane %v2356_v10, 4  ;;  %v1548_v13 = vrot.slane %v1547_v43, 4  ;;  %v1558_v18 = vrot.slane %v1557_v37, 4 }
 0x1fe   : > { %v2578_v56 = vmax.bf16 %v2546_v11, %v8963_v57  ;;  %v2659_v6 = vrot.slane %v2577_v29, 7  ;;  %v8975_v31 = vmax.bf16 %v8963_v57, %v8921_v51  ;;  %v1543_v58 = vsel %vm7729_vm8, %v1538_v39, %v1542_v16 }
 0x1ff   : > { %v2360_v40 = vsel %vm8160_vm5, %v2358_v14, %v2359_v28  ;;  %v2547_v7 = vmax.bf16 %v8968_v33, %v8887_v61  ;;  %v1553_v51 = vsel %vm7729_vm8, %v1548_v13, %v1552_v26  ;;  %v1884_v32 = vmax.bf16 %v1543_v58, %v8914_v59 }
 0x200   : > { %v2661_v54 = vrot.slane %v2578_v56, 7  ;;  %v7054_v46 = vcombine.low %v2577_v29, %v2578_v56  ;;  %v2660_v11 = vrot.slane %v2659_v6, 4  ;;  %2775 = vst.msk [vmem:[#allocation2 + $0x60] sm:$0xe] %vm1099_vm13, %v2659_v6  ;;  %v1885_v35 = vmax.bf16 %v1553_v51, %v1182_v9 }
 0x201   : > { %v1886_v20 = vmax.bf16 %v1558_v18, %v8944_v25  ;;  %v2548_v48 = vmax.bf16 %v8975_v31, %v8896_v21  ;;  %v1563_v16 = vshll.u32 %v1184_v41, 16  ;;  %v6939_v2 = vrot.slane %v1884_v32, 9 }
 0x202   : > { %v2663_v61 = vrot.slane %v2661_v54, 4  ;;  %5970 = vrot.lane.b32.xlu0 %v7054_v46, %s7537_s13  ;;  %v2662_v22 = vsel %vm7903_vm15, %v2660_v11, %v2661_v54  ;;  %v2053_v34 = vrot.slane %v1885_v35, 5  ;;  %v1569_v9 = vshll.u32 %v1185_v42, 16 }
 0x203   : > { %2776 = vst.msk [vmem:[#allocation2 + $0x64] sm:$0xf] %vm830_vm2, %v2662_v22  ;;  %v2056_v59 = vrot.slane %v1886_v20, 5  ;;  %v1562_v25 = vrot.slane %v1560_v0, 4  ;;  %v1565_v19 = vrot.slane %v1563_v16, 5  ;;  %v1573_v21 = vshrl.u32 %v1185_v42, 16 }
 0x204   : > { %2777 = vst.msk [vmem:[#allocation2 + $0x68] sm:$0x1] %vm845_vm3, %v2663_v61  ;;  %v1579_v26 = vshll.u32 %v1186_v27, 16  ;;  %v2054_v1 = vsel %vm7864_vm14, %v6939_v2, %v2053_v34  ;;  %v2055_v10 = vrot.slane %v2053_v34, 4  ;;  %v1571_v28 = vrot.slane %v1569_v9, 5 }
 0x205   : > { %v1583_v29 = vshrl.u32 %v1186_v27, 16  ;;  %v2176_v43 = vmax.bf16 %v2054_v1, %v1884_v32  ;;  %v1566_v39 = vor.u32 %v1565_v19, %v1562_v25  ;;  %v1575_v37 = vrot.slane %v1573_v21, 4  ;;  %v9021_v19 = vld [vmem:[#allocation2 + $0x9c] sm:$0xf] }
 0x206   : > { %v1581_v14 = vrot.slane %v1579_v26, 5  ;;  %v2057_v56 = vsel %vm7864_vm14, %v2055_v10, %v2056_v59  ;;  %v6960_v13 = vrot.slane %v2206_v15, 10  ;;  %v2363_v58 = vrot.slane %v1185_v42, 6 }
 0x207   : > { %v1585_v6 = vrot.slane %v1583_v29, 4  ;;  %v2177_v18 = vmax.bf16 %v2057_v56, %v1885_v35  ;;  %v8999_v54 = vmax.bf16 %v2357_v36, %v2176_v43  ;;  %v1567_v46 = vrot.slane %v1566_v39, 4  ;;  %v9030_v43 = vld [vmem:[#allocation2 + $0xa4] sm:$0x3] }
 0x208   : > { %v1576_v11 = vor.u32 %v1575_v37, %v1571_v28  ;;  %v2364_v20 = vsel %vm8160_vm5, %v6960_v13, %v2363_v58  ;;  %v2365_v61 = vrot.slane %v2363_v58, 4  ;;  %v2366_v32 = vrot.slane %v1186_v27, 6  ;;  %v9037_v37 = vld [vmem:[#allocation2 + $0xe4] sm:$0xf] }
 0x209   : > { %v1586_v51 = vor.u32 %v1585_v6, %v1581_v14  ;;  %v9003_v22 = vmax.bf16 %v2360_v40, %v2177_v18  ;;  %v2579_v0 = vmax.bf16 %v2547_v7, %v8999_v54  ;;  %v1572_v16 = vsel %vm7729_vm8, %v1567_v46, %v1571_v28 }
 0x20a   : > { %v1577_v2 = vrot.slane %v1576_v11, 4  ;;  %v1887_v35 = vmax.bf16 %v1572_v16, %v1184_v41  ;;  %v2367_v36 = vsel %vm8160_vm5, %v2365_v61, %v2366_v32  ;;  %v9012_v59 = vmax.bf16 %v8999_v54, %v8960_v62  ;;  %v9025_v62 = vld [vmem:[#allocation2 + $0xa0] sm:$0xf]  ;;  %v9048_v32 = vld [vmem:[#allocation2 + $0xe8] sm:$0xf] }
 0x20b   : > { %v1587_v34 = vrot.slane %v1586_v51, 4  ;;  %v2580_v9 = vmax.bf16 %v2548_v48, %v9003_v22  ;;  %v2664_v25 = vrot.slane %v2579_v0, 7  ;;  %v9019_v7 = vmax.bf16 %v9003_v22, %v8963_v57 }
 0x20c   : > { %v1582_v40 = vsel %vm7729_vm8, %v1577_v2, %v1581_v14  ;;  %v6940_v26 = vrot.slane %v1887_v35, 9  ;;  %v2549_v15 = vmax.bf16 %v9012_v59, %v8928_v24  ;;  %v1598_v14 = vshll.u32 %v9025_v62, 16 }
 0x20d   : > { %v1888_v41 = vmax.bf16 %v1582_v40, %v1185_v42  ;;  %v1889_v21 = vmax.bf16 %v1587_v34, %v1186_v27  ;;  %v2666_v1 = vrot.slane %v2580_v9, 7  ;;  %v7055_v48 = vcombine.low %v2579_v0, %v2580_v9  ;;  %2778 = vst.msk [vmem:[#allocation2 + $0x6c] sm:$0xe] %vm1099_vm13, %v2664_v25 }
 0x20e   : > { %v2665_v10 = vrot.slane %v2664_v25, 4  ;;  %v2550_v28 = vmax.bf16 %v9019_v7, %v8940_v5  ;;  %v1589_v42 = vshrl.u32 %v9021_v19, 16  ;;  %v1592_v27 = vshll.u32 %v9021_v19, 16 }
 0x20f   : > { %v2060_v57 = vrot.slane %v1888_v41, 5  ;;  %v2063_v29 = vrot.slane %v1889_v21, 5  ;;  %v2668_v39 = vrot.slane %v2666_v1, 4  ;;  %5972 = vrot.lane.b32.xlu1 %v7055_v48, %s7537_s13  ;;  %v1602_v5 = vshrl.u32 %v9025_v62, 16 }
 0x210   : > { %v2667_v24 = vsel %vm7903_vm15, %v2665_v10, %v2666_v1  ;;  %v1591_v13 = vrot.slane %v1589_v42, 4  ;;  %v1594_v58 = vrot.slane %v1592_v27, 5  ;;  %v1600_v46 = vrot.slane %v1598_v14, 5 }
 0x211   : > { %2779 = vst.msk [vmem:[#allocation2 + $0x70] sm:$0xf] %vm830_vm2, %v2667_v24  ;;  %v2061_v56 = vsel %vm7864_vm14, %v6940_v26, %v2060_v57  ;;  %v2062_v6 = vrot.slane %v2060_v57, 4  ;;  %v1604_v11 = vrot.slane %v1602_v5, 4  ;;  %v1608_v51 = vshll.u32 %v9030_v43, 16 }
 0x212   : > { %2780 = vst.msk [vmem:[#allocation2 + $0x74] sm:$0x1] %vm845_vm3, %v2668_v39  ;;  %v2178_v18 = vmax.bf16 %v2061_v56, %v1887_v35  ;;  %v1595_v0 = vor.u32 %v1594_v58, %v1591_v13  ;;  %v1612_v16 = vshrl.u32 %v9030_v43, 16  ;;  %v1763_v2 = vshrl.u32 %v9037_v37, 16  ;;  %v9058_v57 = vld [vmem:[#allocation2 + $0xec] sm:$0x3] }
 0x213   : > { %v2064_v61 = vsel %vm7864_vm14, %v2062_v6, %v2063_v29  ;;  %v1605_v25 = vor.u32 %v1604_v11, %v1600_v46  ;;  %v1610_v40 = vrot.slane %v1608_v51, 5  ;;  %v1766_v1 = vshll.u32 %v9037_v37, 16 }
 0x214   : > { %v2179_v34 = vmax.bf16 %v2064_v61, %v1888_v41  ;;  %v9052_v9 = vmax.bf16 %v2364_v20, %v2178_v18  ;;  %v1596_v35 = vrot.slane %v1595_v0, 4  ;;  %v1614_v21 = vrot.slane %v1612_v16, 4  ;;  %v2207_v16 = vld [vmem:[#allocation2 + $0x9c] sm:$0xc] }
 0x215   : > { %v1765_v26 = vrot.slane %v1763_v2, 4  ;;  %v1606_v29 = vrot.slane %v1605_v25, 4  ;;  %v1772_v42 = vshll.u32 %v9048_v32, 16  ;;  %v1768_v27 = vrot.slane %v1766_v1, 5 }
 0x216   : > { %v9055_v48 = vmax.bf16 %v2367_v36, %v2179_v34  ;;  %v2581_v10 = vmax.bf16 %v2549_v15, %v9052_v9  ;;  %v1601_v20 = vsel %vm7729_vm8, %v1596_v35, %v1600_v46  ;;  %v1615_v41 = vor.u32 %v1614_v21, %v1610_v40 }
 0x217   : > { %v1776_v39 = vshrl.u32 %v9048_v32, 16  ;;  %v1611_v36 = vsel %vm7729_vm8, %v1606_v29, %v1610_v40  ;;  %v1774_v5 = vrot.slane %v1772_v42, 5  ;;  %v1769_v56 = vor.u32 %v1768_v27, %v1765_v26  ;;  %v2213_v27 = vld [vmem:[#allocation2 + $0xe4] sm:$0xc] }
 0x218   : > { %v2582_v24 = vmax.bf16 %v2550_v28, %v9055_v48  ;;  %v2669_v14 = vrot.slane %v2581_v10, 7  ;;  %v1616_v15 = vrot.slane %v1615_v41, 4  ;;  %v1782_v13 = vshll.u32 %v9058_v57, 16 }
 0x219   : > { %v1778_v6 = vrot.slane %v1776_v39, 4  ;;  %v1786_v46 = vshrl.u32 %v9058_v57, 16  ;;  %v1770_v51 = vrot.slane %v1769_v56, 4  ;;  %v1890_v0 = vmax.bf16 %v1601_v20, %v9021_v19 }
 0x21a   : > { %v2671_v58 = vrot.slane %v2582_v24, 7  ;;  %v7056_v18 = vcombine.low %v2581_v10, %v2582_v24  ;;  %v2670_v11 = vrot.slane %v2669_v14, 4  ;;  %2781 = vst.msk [vmem:[#allocation2 + $0x78] sm:$0xe] %vm1099_vm13, %v2669_v14  ;;  %v1784_v28 = vrot.slane %v1782_v13, 5 }
 0x21b   : > { %v1779_v61 = vor.u32 %v1778_v6, %v1774_v5  ;;  %v1788_v25 = vrot.slane %v1786_v46, 4  ;;  %v1891_v40 = vmax.bf16 %v1611_v36, %v9025_v62  ;;  %v1775_v35 = vsel %vm7729_vm8, %v1770_v51, %v1774_v5 }
 0x21c   : > { %v2673_v2 = vrot.slane %v2671_v58, 4  ;;  %5974 = vrot.lane.b32.xlu0 %v7056_v18, %s7537_s13  ;;  %v2672_v34 = vsel %vm7903_vm15, %v2670_v11, %v2671_v58  ;;  %v1892_v26 = vmax.bf16 %v1616_v15, %v9030_v43  ;;  %v6941_v1 = vrot.slane %v1890_v0, 9 }
 0x21d   : > { %2782 = vst.msk [vmem:[#allocation2 + $0x7c] sm:$0xf] %vm830_vm2, %v2672_v34  ;;  %v1780_v21 = vrot.slane %v1779_v61, 4  ;;  %v1789_v19 = vor.u32 %v1788_v25, %v1784_v28  ;;  %v1908_v10 = vmax.bf16 %v1775_v35, %v9037_v37  ;;  %v2067_v29 = vrot.slane %v1891_v40, 5 }
 0x21e   : > { %2783 = vst.msk [vmem:[#allocation2 + $0x80] sm:$0x1] %vm845_vm3, %v2673_v2  ;;  %v6961_v42 = vrot.slane %v2207_v16, 10  ;;  %v2070_v41 = vrot.slane %v1892_v26, 5  ;;  %v2370_v39 = vrot.slane %v9025_v62, 6  ;;  %v2373_v24 = vrot.slane %v9030_v43, 6 }
 0x21f   : > { %v1785_v20 = vsel %vm7729_vm8, %v1780_v21, %v1784_v28  ;;  %v1790_v14 = vrot.slane %v1789_v19, 4  ;;  %v2068_v5 = vsel %vm7864_vm14, %v6941_v1, %v2067_v29  ;;  %v2069_v15 = vrot.slane %v2067_v29, 4 }
 0x220   : > { %v1909_v36 = vmax.bf16 %v1785_v20, %v9048_v32  ;;  %v6947_v56 = vrot.slane %v1908_v10, 9  ;;  %v2180_v37 = vmax.bf16 %v2068_v5, %v1890_v0  ;;  %v2371_v6 = vsel %vm8160_vm5, %v6961_v42, %v2370_v39 }
 0x221   : > { %v2372_v13 = vrot.slane %v2370_v39, 4  ;;  %v1910_v58 = vmax.bf16 %v1790_v14, %v9058_v57  ;;  %v2071_v62 = vsel %vm7864_vm14, %v2069_v15, %v2070_v41  ;;  %v6967_v43 = vrot.slane %v2213_v27, 10 }
 0x222   : > { %v2109_v18 = vrot.slane %v1909_v36, 5  ;;  %v2181_v11 = vmax.bf16 %v2071_v62, %v1891_v40  ;;  %v2412_v51 = vrot.slane %v9048_v32, 6  ;;  %v2415_v61 = vrot.slane %v9058_v57, 6 }
 0x223   : > { %v2374_v46 = vsel %vm8160_vm5, %v2372_v13, %v2373_v24  ;;  %v2112_v16 = vrot.slane %v1910_v58, 5  ;;  %v2483_v2 = vmax.bf16 %v2371_v6, %v2180_v37  ;;  %v2519_v32 = vmax.bf16 %v9052_v9, %v8999_v54 }
 0x224   : > { %v2110_v28 = vsel %vm7864_vm14, %v6947_v56, %v2109_v18  ;;  %v2111_v0 = vrot.slane %v2109_v18, 4  ;;  %v2413_v25 = vsel %vm8160_vm5, %v6967_v43, %v2412_v51  ;;  %v2414_v35 = vrot.slane %v2412_v51, 4 }
 0x225   : > { %v2192_v34 = vmax.bf16 %v2110_v28, %v1908_v10  ;;  %v2484_v21 = vmax.bf16 %v2374_v46, %v2181_v11  ;;  %v2520_v57 = vmax.bf16 %v9055_v48, %v9003_v22  ;;  %v2521_v26 = vmax.bf16 %v2483_v2, %v9052_v9 }
 0x226   : > { %v2113_v40 = vsel %vm7864_vm14, %v2111_v0, %v2112_v16  ;;  %v2416_v19 = vsel %vm8160_vm5, %v2414_v35, %v2415_v61  ;;  %v2551_v42 = vmax.bf16 %v2519_v32, %v8968_v33  ;;  %v2523_v54 = vmax.bf16 %v8537_v63, %v2483_v2  ;;  %v9166_v16 = vld [vmem:[#allocation2] sm:$0xf] }
 0x227   : > { %v2193_v1 = vmax.bf16 %v2113_v40, %v1909_v36  ;;  %v2495_v10 = vmax.bf16 %v2413_v25, %v2192_v34  ;;  %v2522_v29 = vmax.bf16 %v2484_v21, %v9055_v48  ;;  %v2552_v20 = vmax.bf16 %v2520_v57, %v8975_v31 }
 0x228   : > { %v2553_v41 = vmax.bf16 %v2521_v26, %v9012_v59  ;;  %v2524_v9 = vmax.bf16 %v8541_v55, %v2484_v21  ;;  %v2527_v39 = vmax.bf16 %v8549_v4, %v8543_v45  ;;  %v2583_v24 = vmax.bf16 %v2551_v42, %v2483_v2  ;;  %v9187_v42 = vld [vmem:[#allocation2 + $0xc] sm:$0xf] }
 0x229   : > { %v2496_v27 = vmax.bf16 %v2416_v19, %v2193_v1  ;;  %v2554_v22 = vmax.bf16 %v2522_v29, %v9019_v7  ;;  %v2584_v14 = vmax.bf16 %v2552_v20, %v2484_v21  ;;  %v2528_v48 = vmax.bf16 %v8551_v60, %v8545_v12  ;;  %v9170_v21 = vld [vmem:[#allocation2 + $0x4] sm:$0xf] }
 0x22a   : > { %v2531_v33 = vmax.bf16 %v8180_v8, %v8553_v44  ;;  %v2532_v31 = vmax.bf16 %v8191_v53, %v8557_v3  ;;  %v2555_v59 = vmax.bf16 %v2523_v54, %v2519_v32  ;;  %v2556_v36 = vmax.bf16 %v2524_v9, %v2520_v57 }
 0x22b   : > { %v2557_v7 = vmax.bf16 %v8561_v23, %v2521_v26  ;;  %v2676_v5 = vrot.slane %v2584_v14, 7  ;;  %v7057_v15 = vcombine.low %v2583_v24, %v2584_v14  ;;  %v2558_v56 = vmax.bf16 %v8565_v47, %v2522_v29  ;;  %v9201_v14 = vld [vmem:[#allocation2 + $0x10] sm:$0xf] }
 0x22c   : > { %v2559_v37 = vmax.bf16 %v2527_v39, %v2523_v54  ;;  %v2560_v6 = vmax.bf16 %v2528_v48, %v2524_v9  ;;  %v2563_v13 = vmax.bf16 %v2531_v33, %v2527_v39  ;;  %v2564_v58 = vmax.bf16 %v2532_v31, %v2528_v48 }
 0x22d   : > { %v9128_v62 = vmax.bf16 %v2553_v41, %v8537_v63  ;;  %v2678_v18 = vrot.slane %v2676_v5, 4  ;;  %5976 = vrot.lane.b32.xlu1 %v7057_v15, %s7537_s13  ;;  %v9132_v8 = vmax.bf16 %v2554_v22, %v8541_v55  ;;  %v9135_v53 = vmax.bf16 %v2555_v59, %v8543_v45  ;;  %v9193_v41 = vld [vmem:[#allocation2 + $0x8] sm:$0x3] }
 0x22e   : > { %v9138_v23 = vmax.bf16 %v2556_v36, %v8545_v12  ;;  %v9141_v47 = vmax.bf16 %v2557_v7, %v8549_v4  ;;  %v9144_v43 = vmax.bf16 %v2558_v56, %v8551_v60  ;;  %v9147_v63 = vmax.bf16 %v2559_v37, %v8553_v44  ;;  %v9214_v37 = vld [vmem:[#allocation2 + $0x14] sm:$0x3] }
 0x22f   : > { %11463 = vst [vmem:[#allocation41_spill] sm:$0xff] %v9135_v53  ;;  %v9150_v11 = vmax.bf16 %v2560_v6, %v8557_v3  ;;  %2786 = vst.msk [vmem:[#allocation2 + $0x8c] sm:$0x1] %vm845_vm3, %v2678_v18  ;;  %v9153_v55 = vmax.bf16 %v2563_v13, %v2495_v10  ;;  %v9155_v45 = vmax.bf16 %v2564_v58, %v2496_v27  ;;  %v2674_v12 = vrot.slane %v2583_v24, 7 }
 0x230   : > { %11464 = vst [vmem:[#allocation42_spill] sm:$0xff] %v9138_v23  ;;  %11465 = vst [vmem:[#allocation35_spill] sm:$0xff] %v9141_v47  ;;  %v2679_v46 = vrot.slane %v9128_v62, 7  ;;  %v2681_v4 = vrot.slane %v9132_v8, 7  ;;  %v2684_v60 = vrot.slane %v9135_v53, 7  ;;  %v2686_v51 = vrot.slane %v9138_v23, 7 }
 0x231   : > { %11466 = vst [vmem:[#allocation27_spill] sm:$0xff] %v9144_v43  ;;  %11467 = vst [vmem:[#allocation37_spill] sm:$0xff] %v9147_v63  ;;  %v2689_v44 = vrot.slane %v9141_v47, 7  ;;  %v2675_v61 = vrot.slane %v2674_v12, 4  ;;  %v2691_v28 = vrot.slane %v9144_v43, 7  ;;  %v2694_v0 = vrot.slane %v9147_v63, 7 }
 0x232   : > { %11468 = vst [vmem:[#allocation39_spill] sm:$0xff] %v9150_v11  ;;  %11469 = vst [vmem:[#allocation26_spill] sm:$0xff] %v9153_v55  ;;  %v2680_v3 = vrot.slane %v2679_v46, 4  ;;  %v2683_v2 = vrot.slane %v2681_v4, 4  ;;  %v2685_v34 = vrot.slane %v2684_v60, 4  ;;  %v2688_v25 = vrot.slane %v2686_v51, 4 }
 0x233   : > { %11470 = vst [vmem:[#allocation45_spill] sm:$0xff] %v9155_v45  ;;  %2784 = vst.msk [vmem:[#allocation2 + $0x84] sm:$0xe] %vm1099_vm13, %v2674_v12  ;;  %v2690_v35 = vrot.slane %v2689_v44, 4  ;;  %v2677_v40 = vsel %vm7903_vm15, %v2675_v61, %v2676_v5  ;;  %v2693_v57 = vrot.slane %v2691_v28, 4  ;;  %v2695_v26 = vrot.slane %v2694_v0, 4 }
 0x234   : > { %2787 = vst.msk [vmem:[#allocation2 + $0x90] sm:$0xe] %vm1099_vm13, %v2679_v46  ;;  %2790 = vst.msk [vmem:[#allocation2 + $0x9c] sm:$0xe] %vm1099_vm13, %v2684_v60  ;;  %v2682_v32 = vsel %vm7903_vm15, %v2680_v3, %v2681_v4  ;;  %v2687_v1 = vsel %vm7903_vm15, %v2685_v34, %v2686_v51  ;;  %v2696_v10 = vrot.slane %v9150_v11, 7  ;;  %v2704_v29 = vrot.slane %v9153_v55, 7 }
 0x235   : > { %2793 = vst.msk [vmem:[#allocation2 + $0xa8] sm:$0xe] %vm1099_vm13, %v2689_v44  ;;  %2796 = vst.msk [vmem:[#allocation2 + $0xb4] sm:$0xe] %vm1099_vm13, %v2694_v0  ;;  %v2692_v19 = vsel %vm7903_vm15, %v2690_v35, %v2691_v28  ;;  %v2706_v20 = vrot.slane %v9155_v45, 7  ;;  %v2866_v54 = vshrl.u32 %v9166_v16, 16 }
 0x236   : > { %2785 = vst.msk [vmem:[#allocation2 + $0x88] sm:$0xf] %vm830_vm2, %v2677_v40  ;;  %2788 = vst.msk [vmem:[#allocation2 + $0x94] sm:$0xf] %vm830_vm2, %v2682_v32  ;;  %v2869_v27 = vshll.u32 %v9166_v16, 16  ;;  %v2875_v22 = vshll.u32 %v9170_v21, 16  ;;  %v2697_v9 = vsel %vm7903_vm15, %v2695_v26, %v2696_v10 }
 0x237   : > { %2789 = vst.msk [vmem:[#allocation2 + $0x98] sm:$0x1] %vm845_vm3, %v2683_v2  ;;  %2792 = vst.msk [vmem:[#allocation2 + $0xa4] sm:$0x1] %vm845_vm3, %v2688_v25  ;;  %v2698_v39 = vrot.slane %v2696_v10, 4  ;;  %v2705_v24 = vrot.slane %v2704_v29, 4 }
 0x238   : > { %2791 = vst.msk [vmem:[#allocation2 + $0xa0] sm:$0xf] %vm830_vm2, %v2687_v1  ;;  %2794 = vst.msk [vmem:[#allocation2 + $0xac] sm:$0xf] %vm830_vm2, %v2692_v19  ;;  %v2879_v48 = vshrl.u32 %v9170_v21, 16  ;;  %v2708_v33 = vrot.slane %v2706_v20, 4 }
 0x239   : > { %2795 = vst.msk [vmem:[#allocation2 + $0xb0] sm:$0x1] %vm845_vm3, %v2693_v57  ;;  %v2868_v31 = vrot.slane %v2866_v54, 4  ;;  %v2871_v59 = vrot.slane %v2869_v27, 5  ;;  %v9205_v36 = vrot.slane %v2875_v22, 5  ;;  %v2707_v7 = vsel %vm7903_vm15, %v2705_v24, %v2706_v20 }
 0x23a   : > { %2802 = vst.msk [vmem:[#allocation2 + $0xcc] sm:$0xe] %vm1099_vm13, %v2704_v29  ;;  %v2881_v5 = vrot.slane %v2879_v48, 4  ;;  %v2885_v15 = vshll.u32 %v9193_v41, 16  ;;  %v2889_v56 = vshrl.u32 %v9193_v41, 16  ;;  %v2895_v13 = vshrl.u32 %v9187_v42, 16 }
 0x23b   : > { %2797 = vst.msk [vmem:[#allocation2 + $0xb8] sm:$0xf] %vm830_vm2, %v2697_v9  ;;  %2803 = vst.msk [vmem:[#allocation2 + $0xd0] sm:$0xf] %vm830_vm2, %v2707_v7  ;;  %v2872_v6 = vor.u32 %v2871_v59, %v2868_v31  ;;  %v2898_v58 = vshll.u32 %v9187_v42, 16  ;;  %v2904_v18 = vshll.u32 %v9201_v14, 16 }
 0x23c   : > { %2798 = vst.msk [vmem:[#allocation2 + $0xbc] sm:$0x1] %vm845_vm3, %v2698_v39  ;;  %2804 = vst.msk [vmem:[#allocation2 + $0xd4] sm:$0x1] %vm845_vm3, %v2708_v33  ;;  %v9219_v12 = vld [vmem:[#allocation2 + $0x18] sm:$0xf]  ;;  %v2882_v46 = vor.u32 %v2881_v5, %v9205_v36 }
 0x23d   : > { %v9222_v4 = vrot.slane %v2885_v15, 5  ;;  %v2891_v60 = vrot.slane %v2889_v56, 4  ;;  %v2908_v51 = vshrl.u32 %v9201_v14, 16  ;;  %v9225_v44 = vrot.slane %v2872_v6, 4  ;;  %v9233_v35 = vld [vmem:[#allocation2 + $0x1c] sm:$0xf] }
 0x23e   : > { %v2897_v61 = vrot.slane %v2895_v13, 4  ;;  %v2900_v3 = vrot.slane %v2898_v58, 5  ;;  %v9227_v28 = vrot.slane %v2904_v18, 5  ;;  %v9229_v0 = vrot.slane %v2882_v46, 4  ;;  %v9235_v40 = vld [vmem:[#allocation2 + $0x20] sm:$0x3] }
 0x23f   : > { %v2892_v2 = vor.u32 %v2891_v60, %v9222_v4  ;;  %v2910_v34 = vrot.slane %v2908_v51, 4  ;;  %v2914_v25 = vshll.u32 %v9214_v37, 16  ;;  %v2918_v26 = vshrl.u32 %v9214_v37, 16  ;;  %v9255_v39 = vld [vmem:[#allocation2 + $0x24] sm:$0xf] }
 0x240   : > { %v2901_v57 = vor.u32 %v2900_v3, %v2897_v61  ;;  %v2924_v1 = vshrl.u32 %v9219_v12, 16  ;;  %v2927_v9 = vshll.u32 %v9219_v12, 16  ;;  %v2933_v48 = vshll.u32 %v9233_v35, 16  ;;  %v9262_v59 = vld [vmem:[#allocation2 + $0x28] sm:$0xf] }
 0x241   : > { %v9247_v10 = vrot.slane %v2892_v2, 4  ;;  %v2911_v29 = vor.u32 %v2910_v34, %v9227_v28  ;;  %v9250_v20 = vrot.slane %v2914_v25, 5  ;;  %v2920_v27 = vrot.slane %v2918_v26, 4  ;;  %v9270_v6 = vld [vmem:[#allocation2 + $0x2c] sm:$0x3] }
 0x242   : > { %v9252_v54 = vrot.slane %v2901_v57, 4  ;;  %v2926_v22 = vrot.slane %v2924_v1, 4  ;;  %v2937_v33 = vshrl.u32 %v9233_v35, 16  ;;  %v2943_v31 = vshll.u32 %v9235_v40, 16  ;;  %v2817_v57 = vld [vmem:[#allocation2 + $0x30] sm:$0xf] }
 0x243   : > { %v9257_v24 = vrot.slane %v2911_v29, 4  ;;  %v2921_v5 = vor.u32 %v2920_v27, %v9250_v20  ;;  %v2929_v15 = vrot.slane %v2927_v9, 5  ;;  %v2947_v56 = vshrl.u32 %v9235_v40, 16 }
 0x244   : > { %v2907_v7 = vsel %vm7729_vm8, %v9252_v54, %v9227_v28  ;;  %v2935_v58 = vrot.slane %v2933_v48, 5  ;;  %v2939_v18 = vrot.slane %v2937_v33, 4  ;;  %v2945_v46 = vrot.slane %v2943_v31, 5  ;;  %v9283_v54 = vld [vmem:[#allocation2 + $0x34] sm:$0xf] }
 0x245   : > { %v2917_v13 = vsel %vm7729_vm8, %v9257_v24, %v9250_v20  ;;  %v9276_v60 = vrot.slane %v2921_v5, 4  ;;  %v2930_v51 = vor.u32 %v2929_v15, %v2926_v22  ;;  %v2949_v61 = vrot.slane %v2947_v56, 4  ;;  %v9285_v48 = vld [vmem:[#allocation2 + $0x38] sm:$0x3] }
 0x246   : > { %v2953_v3 = vshrl.u32 %v9255_v39, 16  ;;  %v2940_v28 = vor.u32 %v2939_v18, %v2935_v58  ;;  %v2956_v2 = vshll.u32 %v9255_v39, 16  ;;  %v2962_v34 = vshll.u32 %v9262_v59, 16 }
 0x247   : > { %v2966_v25 = vshrl.u32 %v9262_v59, 16  ;;  %v2931_v26 = vrot.slane %v2930_v51, 4  ;;  %v2950_v1 = vor.u32 %v2949_v61, %v2945_v46  ;;  %v2972_v20 = vshll.u32 %v9270_v6, 16 }
 0x248   : > { %v2955_v29 = vrot.slane %v2953_v3, 4  ;;  %v2941_v27 = vrot.slane %v2940_v28, 4  ;;  %v2958_v22 = vrot.slane %v2956_v2, 5  ;;  %v2964_v9 = vrot.slane %v2962_v34, 5 }
 0x249   : > { %v2968_v24 = vrot.slane %v2966_v25, 4  ;;  %v2936_v33 = vsel %vm7729_vm8, %v2931_v26, %v2935_v58  ;;  %v2951_v31 = vrot.slane %v2950_v1, 4  ;;  %v2974_v5 = vrot.slane %v2972_v20, 5 }
 0x24a   : > { %v2976_v15 = vshrl.u32 %v9270_v6, 16  ;;  %v2946_v56 = vsel %vm7729_vm8, %v2941_v27, %v2945_v46  ;;  %v2959_v18 = vor.u32 %v2958_v22, %v2955_v29  ;;  %v2982_v61 = vshrl.u32 %v2817_v57, 16 }
 0x24b   : > { %v2969_v51 = vor.u32 %v2968_v24, %v2964_v9  ;;  %v2985_v28 = vshll.u32 %v2817_v57, 16  ;;  %v2991_v2 = vshll.u32 %v9283_v54, 16  ;;  %v2995_v34 = vshrl.u32 %v9283_v54, 16 }
 0x24c   : > { %v2978_v3 = vrot.slane %v2976_v15, 4  ;;  %v2960_v25 = vrot.slane %v2959_v18, 4  ;;  %v2984_v32 = vrot.slane %v2982_v61, 4  ;;  %v3001_v58 = vshll.u32 %v9285_v48, 16 }
 0x24d   : > { %v2970_v19 = vrot.slane %v2969_v51, 4  ;;  %v2987_v1 = vrot.slane %v2985_v28, 5  ;;  %v2993_v20 = vrot.slane %v2991_v2, 5  ;;  %v2997_v55 = vrot.slane %v2995_v34, 4 }
 0x24e   : > { %v2979_v26 = vor.u32 %v2978_v3, %v2974_v5  ;;  %v2965_v46 = vsel %vm7729_vm8, %v2960_v25, %v2964_v9  ;;  %v3003_v27 = vrot.slane %v3001_v58, 5  ;;  %v3005_v22 = vshrl.u32 %v9285_v48, 16 }
 0x24f   : > { %v2975_v29 = vsel %vm7729_vm8, %v2970_v19, %v2974_v5  ;;  %v2988_v15 = vor.u32 %v2987_v1, %v2984_v32  ;;  %v2998_v18 = vor.u32 %v2997_v55, %v2993_v20  ;;  %v11471_v51 = vsel %vm7729_vm8, %v9225_v44, %v9205_v36 }
 0x250   : > { %v2980_v24 = vrot.slane %v2979_v26, 4  ;;  %v9306_v61 = vmax.bf16 %v11471_v51, %v9166_v16  ;;  %v3007_v3 = vrot.slane %v3005_v22, 4  ;;  %v11472_v19 = vsel %vm7729_vm8, %v9229_v0, %v9222_v4 }
 0x251   : > { %v3506_v9 = vmax.bf16 %v11472_v19, %v9170_v21  ;;  %v3507_v32 = vmax.bf16 %v9247_v10, %v9193_v41  ;;  %v9317_v55 = vmax.bf16 %v2907_v7, %v9187_v42  ;;  %v2989_v5 = vrot.slane %v2988_v15, 4 }
 0x252   : > { %v2999_v28 = vrot.slane %v2998_v18, 4  ;;  %v3509_v36 = vmax.bf16 %v2917_v13, %v9201_v14  ;;  %v3510_v16 = vmax.bf16 %v9276_v60, %v9214_v37  ;;  %v3008_v44 = vor.u32 %v3007_v3, %v3003_v27 }
 0x253   : > { %v9323_v2 = vmax.bf16 %v2936_v33, %v9219_v12  ;;  %v3512_v4 = vmax.bf16 %v2946_v56, %v9233_v35  ;;  %v3513_v0 = vmax.bf16 %v2951_v31, %v9235_v40  ;;  %v2994_v10 = vsel %vm7729_vm8, %v2989_v5, %v2993_v20 }
 0x254   : > { %v3004_v42 = vsel %vm7729_vm8, %v2999_v28, %v3003_v27  ;;  %v9332_v7 = vmax.bf16 %v2965_v46, %v9255_v39  ;;  %v3515_v13 = vmax.bf16 %v2975_v29, %v9262_v59  ;;  %v3009_v60 = vrot.slane %v3008_v44, 4 }
 0x255   : > { %v3516_v34 = vmax.bf16 %v2980_v24, %v9270_v6  ;;  %v9336_v12 = vmax.bf16 %v2994_v10, %v2817_v57  ;;  %v3518_v33 = vmax.bf16 %v3004_v42, %v9283_v54  ;;  %v6968_v31 = vrot.slane %v9306_v61, 9 }
 0x256   : > { %v3627_v56 = vrot.slane %v3506_v9, 5  ;;  %v3630_v25 = vrot.slane %v3507_v32, 5  ;;  %v6969_v58 = vrot.slane %v9317_v55, 9  ;;  %v3519_v26 = vmax.bf16 %v3009_v60, %v9285_v48 }
 0x257   : > { %v3634_v1 = vrot.slane %v3509_v36, 5  ;;  %v3637_v39 = vrot.slane %v3510_v16, 5  ;;  %v6970_v20 = vrot.slane %v9323_v2, 9  ;;  %v3641_v29 = vrot.slane %v3512_v4, 5 }
 0x258   : > { %v9345_v46 = vsel %vm7864_vm14, %v6968_v31, %v3627_v56  ;;  %v3629_v57 = vrot.slane %v3627_v56, 4  ;;  %v3644_v27 = vrot.slane %v3513_v0, 5  ;;  %v6971_v15 = vrot.slane %v9332_v7, 9  ;;  %v3845_v31 = vld [vmem:[#allocation2] sm:$0xc] }
 0x259   : > { %v9349_v22 = vsel %vm7864_vm14, %v6969_v58, %v3634_v1  ;;  %v3636_v24 = vrot.slane %v3634_v1, 4  ;;  %v3648_v18 = vrot.slane %v3515_v13, 5  ;;  %v9356_v3 = vsel %vm7864_vm14, %v6970_v20, %v3641_v29  ;;  %v3846_v1 = vld [vmem:[#allocation2 + $0xc] sm:$0xc] }
 0x25a   : > { %v3631_v51 = vsel %vm7864_vm14, %v3629_v57, %v3630_v25  ;;  %v3643_v19 = vrot.slane %v3641_v29, 4  ;;  %v3651_v32 = vrot.slane %v3516_v34, 5  ;;  %v6972_v44 = vrot.slane %v9336_v12, 9  ;;  %v3847_v29 = vld [vmem:[#allocation2 + $0x18] sm:$0xc] }
 0x25b   : > { %v3638_v5 = vsel %vm7864_vm14, %v3636_v24, %v3637_v39  ;;  %v9362_v28 = vsel %vm7864_vm14, %v6971_v15, %v3648_v18  ;;  %v3650_v16 = vrot.slane %v3648_v18, 4  ;;  %v3655_v10 = vrot.slane %v3518_v33, 5 }
 0x25c   : > { %v3645_v0 = vsel %vm7864_vm14, %v3643_v19, %v3644_v27  ;;  %v3658_v42 = vrot.slane %v3519_v26, 5  ;;  %v3805_v60 = vmax.bf16 %v9345_v46, %v9306_v61  ;;  %v3806_v56 = vmax.bf16 %v3631_v51, %v3506_v9 }
 0x25d   : > { %v3652_v34 = vsel %vm7864_vm14, %v3650_v16, %v3651_v32  ;;  %v3807_v25 = vmax.bf16 %v9349_v22, %v9317_v55  ;;  %v3808_v58 = vmax.bf16 %v3638_v5, %v3509_v36  ;;  %v3656_v39 = vsel %vm7864_vm14, %v6972_v44, %v3655_v10  ;;  %v3848_v36 = vld [vmem:[#allocation2 + $0x24] sm:$0xc] }
 0x25e   : > { %v3657_v20 = vrot.slane %v3655_v10, 4  ;;  %v3809_v26 = vmax.bf16 %v9356_v3, %v9323_v2  ;;  %v3810_v57 = vmax.bf16 %v3645_v0, %v3512_v4  ;;  %v3811_v61 = vmax.bf16 %v9362_v28, %v9332_v7  ;;  %v3849_v7 = vld [vmem:[#allocation2 + $0x30] sm:$0xc] }
 0x25f   : > { %v3812_v46 = vmax.bf16 %v3652_v34, %v3515_v13  ;;  %v3813_v9 = vmax.bf16 %v3656_v39, %v9336_v12  ;;  %v6988_v27 = vrot.slane %v3845_v31, 10  ;;  %v3927_v22 = vrot.slane %v9170_v21, 6  ;;  %v2820_v39 = vld [vmem:[#allocation2 + $0x3c] sm:$0xf] }
 0x260   : > { %v3659_v55 = vsel %vm7864_vm14, %v3657_v20, %v3658_v42  ;;  %v3930_v24 = vrot.slane %v9193_v41, 6  ;;  %v6989_v15 = vrot.slane %v3846_v1, 10  ;;  %v3934_v2 = vrot.slane %v9201_v14, 6 }
 0x261   : > { %v3814_v18 = vmax.bf16 %v3659_v55, %v3518_v33  ;;  %v3937_v4 = vrot.slane %v9214_v37, 6  ;;  %v6990_v51 = vrot.slane %v3847_v29, 10  ;;  %v3928_v13 = vsel %vm8160_vm5, %v6988_v27, %v3927_v22 }
 0x262   : > { %v3929_v12 = vrot.slane %v3927_v22, 4  ;;  %v3941_v3 = vrot.slane %v9233_v35, 6  ;;  %v3944_v19 = vrot.slane %v9235_v40, 6  ;;  %v3935_v21 = vsel %vm8160_vm5, %v6989_v15, %v3934_v2 }
 0x263   : > { %v3936_v41 = vrot.slane %v3934_v2, 4  ;;  %v6991_v32 = vrot.slane %v3848_v36, 10  ;;  %v3948_v33 = vrot.slane %v9262_v59, 6  ;;  %v3951_v28 = vrot.slane %v9270_v6, 6 }
 0x264   : > { %v3931_v14 = vsel %vm8160_vm5, %v3929_v12, %v3930_v24  ;;  %v3942_v37 = vsel %vm8160_vm5, %v6990_v51, %v3941_v3  ;;  %v3943_v5 = vrot.slane %v3941_v3, 4  ;;  %v6992_v44 = vrot.slane %v3849_v7, 10 }
 0x265   : > { %v3938_v35 = vsel %vm8160_vm5, %v3936_v41, %v3937_v4  ;;  %v3949_v40 = vsel %vm8160_vm5, %v6991_v32, %v3948_v33  ;;  %v3950_v16 = vrot.slane %v3948_v33, 4  ;;  %v3955_v0 = vrot.slane %v9283_v54, 6  ;;  %v2821_v54 = vld [vmem:[#allocation2 + $0x40] sm:$0xf] }
 0x266   : > { %v3945_v59 = vsel %vm8160_vm5, %v3943_v5, %v3944_v19  ;;  %v3958_v10 = vrot.slane %v9285_v48, 6  ;;  %v4105_v42 = vmax.bf16 %v3928_v13, %v3805_v60  ;;  %v4106_v6 = vmax.bf16 %v3931_v14, %v3806_v56 }
 0x267   : > { %v3952_v31 = vsel %vm8160_vm5, %v3950_v16, %v3951_v28  ;;  %v9408_v34 = vmax.bf16 %v3935_v21, %v3807_v25  ;;  %v9410_v1 = vmax.bf16 %v3938_v35, %v3808_v58  ;;  %v3956_v20 = vsel %vm8160_vm5, %v6992_v44, %v3955_v0  ;;  %v9421_v25 = vld [vmem:[#allocation2 + $0x44] sm:$0x3] }
 0x268   : > { %v3957_v29 = vrot.slane %v3955_v0, 4  ;;  %v9414_v27 = vmax.bf16 %v3942_v37, %v3809_v26  ;;  %v9416_v55 = vmax.bf16 %v3945_v59, %v3810_v57  ;;  %v4111_v48 = vmax.bf16 %v3949_v40, %v3811_v61 }
 0x269   : > { %v4112_v60 = vmax.bf16 %v3952_v31, %v3812_v46  ;;  %v9418_v36 = vmax.bf16 %v3956_v20, %v3813_v9  ;;  %v4145_v56 = vmax.bf16 %v9408_v34, %v4105_v42  ;;  %v4146_v22 = vmax.bf16 %v9410_v1, %v4106_v6  ;;  %v3850_v9 = vld [vmem:[#allocation2 + $0x3c] sm:$0xc] }
 0x26a   : > { %v3959_v58 = vsel %vm8160_vm5, %v3957_v29, %v3958_v10  ;;  %v3011_v24 = vshrl.u32 %v2820_v39, 16  ;;  %v3014_v15 = vshll.u32 %v2820_v39, 16  ;;  %v9429_v57 = vmax.bf16 %v4111_v48, %v9414_v27 }
 0x26b   : > { %v9426_v26 = vmax.bf16 %v3959_v58, %v3814_v18  ;;  %v9432_v61 = vmax.bf16 %v4112_v60, %v9416_v55  ;;  %v3020_v46 = vshll.u32 %v2821_v54, 16  ;;  %v3024_v51 = vshrl.u32 %v2821_v54, 16  ;;  %v2823_v58 = vld [vmem:[#allocation2 + $0x48] sm:$0xf] }
 0x26c   : > { %v3013_v2 = vrot.slane %v3011_v24, 4  ;;  %v3016_v4 = vrot.slane %v3014_v15, 5  ;;  %v3030_v7 = vshll.u32 %v9421_v25, 16  ;;  %v4181_v13 = vmax.bf16 %v9429_v57, %v4145_v56 }
 0x26d   : > { %v4182_v12 = vmax.bf16 %v9432_v61, %v4146_v22  ;;  %v3022_v3 = vrot.slane %v3020_v46, 5  ;;  %v3034_v18 = vshrl.u32 %v9421_v25, 16  ;;  %v3026_v21 = vrot.slane %v3024_v51, 4 }
 0x26e   : > { %v3017_v19 = vor.u32 %v3016_v4, %v3013_v2  ;;  %v3032_v41 = vrot.slane %v3030_v7, 5  ;;  %v6993_v32 = vrot.slane %v3850_v9, 10  ;;  %v4213_v33 = vmax.bf16 %v4181_v13, %v9418_v36  ;;  %v2824_v9 = vld [vmem:[#allocation2 + $0x4c] sm:$0xf]  ;;  %v9462_v7 = vld [vmem:[#allocation2 + $0x50] sm:$0x3] }
 0x26f   : > { %v4214_v14 = vmax.bf16 %v4182_v12, %v9426_v26  ;;  %v3036_v37 = vrot.slane %v3034_v18, 4  ;;  %v3962_v5 = vrot.slane %v2821_v54, 6  ;;  %v3027_v35 = vor.u32 %v3026_v21, %v3022_v3 }
 0x270   : > { %v3018_v28 = vrot.slane %v3017_v19, 4  ;;  %v3965_v40 = vrot.slane %v9421_v25, 6  ;;  %v4147_v16 = vmax.bf16 %v9414_v27, %v9408_v34  ;;  %v4277_v44 = vrot.slane %v4213_v33, 7 }
 0x271   : > { %v4279_v59 = vrot.slane %v4214_v14, 7  ;;  %v7064_v0 = vcombine.low %v4213_v33, %v4214_v14  ;;  %v3037_v10 = vor.u32 %v3036_v37, %v3032_v41  ;;  %v3028_v31 = vrot.slane %v3027_v35, 4 }
 0x272   : > { %v3023_v42 = vsel %vm7729_vm8, %v3018_v28, %v3022_v3  ;;  %v3963_v6 = vsel %vm8160_vm5, %v6993_v32, %v3962_v5  ;;  %v3964_v20 = vrot.slane %v3962_v5, 4  ;;  %v4278_v29 = vrot.slane %v4277_v44, 4  ;;  %4405 = vst.msk [vmem:[#allocation2 + $0x18] sm:$0xe] %vm1099_vm13, %v4277_v44  ;;  %v3851_v32 = vld [vmem:[#allocation2 + $0x48] sm:$0xc] }
 0x273   : > { %v4281_v56 = vrot.slane %v4279_v59, 4  ;;  %6071 = vrot.lane.b32.xlu1 %v7064_v0, %s7538_s14  ;;  %v3038_v34 = vrot.slane %v3037_v10, 4  ;;  %v3520_v27 = vmax.bf16 %v3023_v42, %v2820_v39  ;;  %v3033_v22 = vsel %vm7729_vm8, %v3028_v31, %v3032_v41 }
 0x274   : > { %v3966_v24 = vsel %vm8160_vm5, %v3964_v20, %v3965_v40  ;;  %v4148_v15 = vmax.bf16 %v9416_v55, %v9410_v1  ;;  %v9456_v46 = vmax.bf16 %v9418_v36, %v4111_v48  ;;  %v4280_v2 = vsel %vm7903_vm15, %v4278_v29, %v4279_v59 }
 0x275   : > { %4407 = vst.msk [vmem:[#allocation2 + $0x20] sm:$0x1] %vm845_vm3, %v4281_v56  ;;  %v3521_v39 = vmax.bf16 %v3033_v22, %v2821_v54  ;;  %v3522_v4 = vmax.bf16 %v3038_v34, %v9421_v25  ;;  %v6973_v51 = vrot.slane %v3520_v27, 9  ;;  %v9466_v13 = vmax.bf16 %v9426_v26, %v4112_v60 }
 0x276   : > { %4406 = vst.msk [vmem:[#allocation2 + $0x1c] sm:$0xf] %vm830_vm2, %v4280_v2  ;;  %v4183_v1 = vmax.bf16 %v9456_v46, %v4147_v16  ;;  %v3040_v55 = vshrl.u32 %v2823_v58, 16  ;;  %v3043_v48 = vshll.u32 %v2823_v58, 16  ;;  %v3049_v18 = vshll.u32 %v2824_v9, 16 }
 0x277   : > { %v3662_v12 = vrot.slane %v3521_v39, 5  ;;  %v3665_v3 = vrot.slane %v3522_v4, 5  ;;  %v3053_v19 = vshrl.u32 %v2824_v9, 16  ;;  %v4184_v54 = vmax.bf16 %v9466_v13, %v4148_v15 }
 0x278   : > { %v3042_v21 = vrot.slane %v3040_v55, 4  ;;  %v3045_v25 = vrot.slane %v3043_v48, 5  ;;  %v3059_v41 = vshll.u32 %v9462_v7, 16  ;;  %v3051_v14 = vrot.slane %v3049_v18, 5 }
 0x279   : > { %v3663_v33 = vsel %vm7864_vm14, %v6973_v51, %v3662_v12  ;;  %v3664_v60 = vrot.slane %v3662_v12, 4  ;;  %v3055_v37 = vrot.slane %v3053_v19, 4  ;;  %v3063_v40 = vshrl.u32 %v9462_v7, 16 }
 0x27a   : > { %v3815_v5 = vmax.bf16 %v3663_v33, %v3520_v27  ;;  %v3046_v28 = vor.u32 %v3045_v25, %v3042_v21  ;;  %v3061_v35 = vrot.slane %v3059_v41, 5  ;;  %v6994_v59 = vrot.slane %v3851_v32, 10  ;;  %v2827_v21 = vld [vmem:[#allocation2 + $0x58] sm:$0xf] }
 0x27b   : > { %v3666_v16 = vsel %vm7864_vm14, %v3664_v60, %v3665_v3  ;;  %v3056_v44 = vor.u32 %v3055_v37, %v3051_v14  ;;  %v3969_v0 = vrot.slane %v2824_v9, 6  ;;  %v3065_v20 = vrot.slane %v3063_v40, 4  ;;  %v9508_v60 = vld [vmem:[#allocation2 + $0x5c] sm:$0x3] }
 0x27c   : > { %v3816_v10 = vmax.bf16 %v3666_v16, %v3521_v39  ;;  %v9476_v42 = vmax.bf16 %v3963_v6, %v3815_v5  ;;  %v3047_v31 = vrot.slane %v3046_v28, 4  ;;  %v3972_v27 = vrot.slane %v9462_v7, 6  ;;  %v9486_v39 = vld [vmem:[#allocation2 + $0x54] sm:$0xf] }
 0x27d   : > { %v3057_v29 = vrot.slane %v3056_v44, 4  ;;  %v3970_v56 = vsel %vm8160_vm5, %v6994_v59, %v3969_v0  ;;  %v3971_v34 = vrot.slane %v3969_v0, 4  ;;  %v3066_v4 = vor.u32 %v3065_v20, %v3061_v35 }
 0x27e   : > { %v9481_v22 = vmax.bf16 %v3966_v24, %v3816_v10  ;;  %v4215_v15 = vmax.bf16 %v4183_v1, %v9476_v42  ;;  %v3052_v2 = vsel %vm7729_vm8, %v3047_v31, %v3051_v14  ;;  %v9494_v48 = vmax.bf16 %v9476_v42, %v9418_v36 }
 0x27f   : > { %v3062_v6 = vsel %vm7729_vm8, %v3057_v29, %v3061_v35  ;;  %v3523_v51 = vmax.bf16 %v3052_v2, %v2823_v58  ;;  %v3973_v55 = vsel %vm8160_vm5, %v3971_v34, %v3972_v27  ;;  %v3067_v12 = vrot.slane %v3066_v4, 4  ;;  %v3852_v35 = vld [vmem:[#allocation2 + $0x54] sm:$0xc] }
 0x280   : > { %v4216_v24 = vmax.bf16 %v4184_v54, %v9481_v22  ;;  %v4282_v1 = vrot.slane %v4215_v15, 7  ;;  %v3524_v3 = vmax.bf16 %v3062_v6, %v2824_v9  ;;  %v9499_v19 = vmax.bf16 %v9481_v22, %v9426_v26 }
 0x281   : > { %v6974_v18 = vrot.slane %v3523_v51, 9  ;;  %v4185_v58 = vmax.bf16 %v9494_v48, %v9429_v57  ;;  %v3069_v25 = vshrl.u32 %v9486_v39, 16  ;;  %v3525_v54 = vmax.bf16 %v3067_v12, %v9462_v7 }
 0x282   : > { %v4283_v41 = vrot.slane %v4282_v1, 4  ;;  %v4284_v32 = vrot.slane %v4216_v24, 7  ;;  %4408 = vst.msk [vmem:[#allocation2 + $0x24] sm:$0xe] %vm1099_vm13, %v4282_v1  ;;  %v7065_v36 = vcombine.low %v4215_v15, %v4216_v24  ;;  %v3669_v33 = vrot.slane %v3524_v3, 5 }
 0x283   : > { %v4186_v9 = vmax.bf16 %v9499_v19, %v9432_v61  ;;  %v3071_v26 = vrot.slane %v3069_v25, 4  ;;  %v3072_v14 = vshll.u32 %v9486_v39, 16  ;;  %v3672_v5 = vrot.slane %v3525_v54, 5 }
 0x284   : > { %v4285_v57 = vsel %vm7903_vm15, %v4283_v41, %v4284_v32  ;;  %v4286_v37 = vrot.slane %v4284_v32, 4  ;;  %6073 = vrot.lane.b32.xlu1 %v7065_v36, %s7538_s14  ;;  %v3078_v28 = vshll.u32 %v2827_v21, 16  ;;  %v3670_v7 = vsel %vm7864_vm14, %v6974_v18, %v3669_v33 }
 0x285   : > { %4409 = vst.msk [vmem:[#allocation2 + $0x28] sm:$0xf] %vm830_vm2, %v4285_v57  ;;  %v3671_v61 = vrot.slane %v3669_v33, 4  ;;  %v3074_v40 = vrot.slane %v3072_v14, 5  ;;  %v3082_v16 = vshrl.u32 %v2827_v21, 16  ;;  %v3817_v44 = vmax.bf16 %v3670_v7, %v3523_v51 }
 0x286   : > { %4410 = vst.msk [vmem:[#allocation2 + $0x2c] sm:$0x1] %vm845_vm3, %v4286_v37  ;;  %v3080_v59 = vrot.slane %v3078_v28, 5  ;;  %v3088_v0 = vshll.u32 %v9508_v60, 16  ;;  %v3092_v10 = vshrl.u32 %v9508_v60, 16  ;;  %v6995_v34 = vrot.slane %v3852_v35, 10 }
 0x287   : > { %v3673_v31 = vsel %vm7864_vm14, %v3671_v61, %v3672_v5  ;;  %v3075_v20 = vor.u32 %v3074_v40, %v3071_v26  ;;  %v3084_v29 = vrot.slane %v3082_v16, 4  ;;  %v9522_v15 = vmax.bf16 %v3970_v56, %v3817_v44  ;;  %v2830_v35 = vld [vmem:[#allocation2 + $0x64] sm:$0xf]  ;;  %v9552_v16 = vld [vmem:[#allocation2 + $0x68] sm:$0x3] }
 0x288   : > { %v3818_v27 = vmax.bf16 %v3673_v31, %v3524_v3  ;;  %v3090_v2 = vrot.slane %v3088_v0, 5  ;;  %v3094_v4 = vrot.slane %v3092_v10, 4  ;;  %v3976_v1 = vrot.slane %v2827_v21, 6 }
 0x289   : > { %v3076_v6 = vrot.slane %v3075_v20, 4  ;;  %v3085_v24 = vor.u32 %v3084_v29, %v3080_v59  ;;  %v3979_v51 = vrot.slane %v9508_v60, 6  ;;  %v4217_v18 = vmax.bf16 %v4185_v58, %v9522_v15  ;;  %v2829_v58 = vld [vmem:[#allocation2 + $0x60] sm:$0xf] }
 0x28a   : > { %v9525_v12 = vmax.bf16 %v3973_v55, %v3818_v27  ;;  %v3095_v25 = vor.u32 %v3094_v4, %v3090_v2  ;;  %v9530_v41 = vmax.bf16 %v9522_v15, %v9476_v42  ;;  %v3977_v32 = vsel %vm8160_vm5, %v6995_v34, %v3976_v1  ;;  %v3853_v20 = vld [vmem:[#allocation2 + $0x60] sm:$0xc] }
 0x28b   : > { %v3081_v56 = vsel %vm7729_vm8, %v3076_v6, %v3080_v59  ;;  %v3086_v3 = vrot.slane %v3085_v24, 4  ;;  %v3978_v36 = vrot.slane %v3976_v1, 4  ;;  %v4287_v33 = vrot.slane %v4217_v18, 7  ;;  %v9563_v1 = vld [vmem:[#allocation2 + $0x6c] sm:$0xf] }
 0x28c   : > { %v4218_v54 = vmax.bf16 %v4186_v9, %v9525_v12  ;;  %v3096_v55 = vrot.slane %v3095_v25, 4  ;;  %v3526_v26 = vmax.bf16 %v3081_v56, %v9486_v39  ;;  %v9544_v57 = vmax.bf16 %v9525_v12, %v9481_v22 }
 0x28d   : > { %v3091_v14 = vsel %vm7729_vm8, %v3086_v3, %v3090_v2  ;;  %v3980_v42 = vsel %vm8160_vm5, %v3978_v36, %v3979_v51  ;;  %v4187_v37 = vmax.bf16 %v9530_v41, %v9456_v46  ;;  %v4288_v5 = vrot.slane %v4287_v33, 4  ;;  %4411 = vst.msk [vmem:[#allocation2 + $0x30] sm:$0xe] %vm1099_vm13, %v4287_v33 }
 0x28e   : > { %v4289_v9 = vrot.slane %v4218_v54, 7  ;;  %v7066_v28 = vcombine.low %v4217_v18, %v4218_v54  ;;  %v3527_v39 = vmax.bf16 %v3091_v14, %v2827_v21  ;;  %v3528_v7 = vmax.bf16 %v3096_v55, %v9508_v60 }
 0x28f   : > { %v6975_v61 = vrot.slane %v3526_v26, 9  ;;  %v4188_v40 = vmax.bf16 %v9544_v57, %v9466_v13  ;;  %v3098_v22 = vshrl.u32 %v2829_v58, 16  ;;  %v3101_v0 = vshll.u32 %v2829_v58, 16 }
 0x290   : > { %v4290_v44 = vsel %vm7903_vm15, %v4288_v5, %v4289_v9  ;;  %v4291_v46 = vrot.slane %v4289_v9, 4  ;;  %6075 = vrot.lane.b32.xlu0 %v7066_v28, %s7538_s14  ;;  %v3676_v59 = vrot.slane %v3527_v39, 5  ;;  %v3679_v21 = vrot.slane %v3528_v7, 5 }
 0x291   : > { %4412 = vst.msk [vmem:[#allocation2 + $0x34] sm:$0xf] %vm830_vm2, %v4290_v44  ;;  %v3100_v10 = vrot.slane %v3098_v22, 4  ;;  %v3107_v60 = vshll.u32 %v2830_v35, 16  ;;  %v3111_v31 = vshrl.u32 %v2830_v35, 16  ;;  %v3103_v34 = vrot.slane %v3101_v0, 5 }
 0x292   : > { %4413 = vst.msk [vmem:[#allocation2 + $0x38] sm:$0x1] %vm845_vm3, %v4291_v46  ;;  %v3677_v13 = vsel %vm7864_vm14, %v6975_v61, %v3676_v59  ;;  %v3678_v29 = vrot.slane %v3676_v59, 4  ;;  %v3117_v27 = vshll.u32 %v9552_v16, 16  ;;  %v3121_v24 = vshrl.u32 %v9552_v16, 16 }
 0x293   : > { %v3819_v2 = vmax.bf16 %v3677_v13, %v3526_v26  ;;  %v3109_v4 = vrot.slane %v3107_v60, 5  ;;  %v3113_v6 = vrot.slane %v3111_v31, 4  ;;  %v3104_v18 = vor.u32 %v3103_v34, %v3100_v10  ;;  %v2833_v13 = vld [vmem:[#allocation2 + $0x70] sm:$0xf] }
 0x294   : > { %v3680_v51 = vsel %vm7864_vm14, %v3678_v29, %v3679_v21  ;;  %v3119_v25 = vrot.slane %v3117_v27, 5  ;;  %v6996_v56 = vrot.slane %v3853_v20, 10  ;;  %v3123_v33 = vrot.slane %v3121_v24, 4  ;;  %v9597_v27 = vld [vmem:[#allocation2 + $0x74] sm:$0x3] }
 0x295   : > { %v3820_v3 = vmax.bf16 %v3680_v51, %v3527_v39  ;;  %v9567_v36 = vmax.bf16 %v3977_v32, %v3819_v2  ;;  %v3114_v54 = vor.u32 %v3113_v6, %v3109_v4  ;;  %v3105_v55 = vrot.slane %v3104_v18, 4 }
 0x296   : > { %v3983_v14 = vrot.slane %v2830_v35, 6  ;;  %v3986_v26 = vrot.slane %v9552_v16, 6  ;;  %v3127_v5 = vshrl.u32 %v9563_v1, 16  ;;  %v3124_v61 = vor.u32 %v3123_v33, %v3119_v25 }
 0x297   : > { %v9571_v9 = vmax.bf16 %v3980_v42, %v3820_v3  ;;  %v4219_v28 = vmax.bf16 %v4187_v37, %v9567_v36  ;;  %v3115_v7 = vrot.slane %v3114_v54, 4  ;;  %v3110_v22 = vsel %vm7729_vm8, %v3105_v55, %v3109_v4 }
 0x298   : > { %v3984_v32 = vsel %vm8160_vm5, %v6996_v56, %v3983_v14  ;;  %v3985_v39 = vrot.slane %v3983_v14, 4  ;;  %v9580_v44 = vmax.bf16 %v9567_v36, %v9522_v15  ;;  %v3125_v37 = vrot.slane %v3124_v61, 4  ;;  %v9827_v45 = vld [vmem:[#allocation2 + $0x34] sm:$0xf] }
 0x299   : > { %v4220_v46 = vmax.bf16 %v4188_v40, %v9571_v9  ;;  %v4292_v59 = vrot.slane %v4219_v28, 7  ;;  %v3120_v42 = vsel %vm7729_vm8, %v3115_v7, %v3119_v25  ;;  %v3529_v0 = vmax.bf16 %v3110_v22, %v2829_v58 }
 0x29a   : > { %v3530_v21 = vmax.bf16 %v3120_v42, %v2830_v35  ;;  %v3987_v10 = vsel %vm8160_vm5, %v3985_v39, %v3986_v26  ;;  %v9589_v60 = vmax.bf16 %v9571_v9, %v9525_v12  ;;  %v3531_v40 = vmax.bf16 %v3125_v37, %v9552_v16  ;;  %v3854_v16 = vld [vmem:[#allocation2 + $0x6c] sm:$0xc] }
 0x29b   : > { %v4293_v31 = vrot.slane %v4292_v59, 4  ;;  %v4294_v20 = vrot.slane %v4220_v46, 7  ;;  %4414 = vst.msk [vmem:[#allocation2 + $0x3c] sm:$0xe] %vm1099_vm13, %v4292_v59  ;;  %v7067_v15 = vcombine.low %v4219_v28, %v4220_v46  ;;  %v6976_v29 = vrot.slane %v3529_v0, 9 }
 0x29c   : > { %v3683_v34 = vrot.slane %v3530_v21, 5  ;;  %v4189_v58 = vmax.bf16 %v9580_v44, %v9494_v48  ;;  %v4190_v35 = vmax.bf16 %v9589_v60, %v9499_v19  ;;  %v3686_v4 = vrot.slane %v3531_v40, 5 }
 0x29d   : > { %v4295_v12 = vsel %vm7903_vm15, %v4293_v31, %v4294_v20  ;;  %v4296_v2 = vrot.slane %v4294_v20, 4  ;;  %6077 = vrot.lane.b32.xlu1 %v7067_v15, %s7538_s14  ;;  %v3129_v6 = vrot.slane %v3127_v5, 4  ;;  %v3130_v51 = vshll.u32 %v9563_v1, 16 }
 0x29e   : > { %4415 = vst.msk [vmem:[#allocation2 + $0x40] sm:$0xf] %vm830_vm2, %v4295_v12  ;;  %v3684_v24 = vsel %vm7864_vm14, %v6976_v29, %v3683_v34  ;;  %v3685_v48 = vrot.slane %v3683_v34, 4  ;;  %v3136_v19 = vshll.u32 %v2833_v13, 16  ;;  %v3140_v25 = vshrl.u32 %v2833_v13, 16 }
 0x29f   : > { %4416 = vst.msk [vmem:[#allocation2 + $0x44] sm:$0x1] %vm845_vm3, %v4296_v2  ;;  %v3821_v18 = vmax.bf16 %v3684_v24, %v3529_v0  ;;  %v3146_v56 = vshll.u32 %v9597_v27, 16  ;;  %v3150_v3 = vshrl.u32 %v9597_v27, 16  ;;  %v3132_v33 = vrot.slane %v3130_v51, 5 }
 0x2a0   : > { %v3687_v54 = vsel %vm7864_vm14, %v3685_v48, %v3686_v4  ;;  %v3138_v55 = vrot.slane %v3136_v19, 5  ;;  %v6997_v14 = vrot.slane %v3854_v16, 10  ;;  %v3142_v28 = vrot.slane %v3140_v25, 4  ;;  %v2835_v2 = vld [vmem:[#allocation2 + $0x78] sm:$0xf] }
 0x2a1   : > { %v3822_v26 = vmax.bf16 %v3687_v54, %v3530_v21  ;;  %v9611_v5 = vmax.bf16 %v3984_v32, %v3821_v18  ;;  %v3148_v7 = vrot.slane %v3146_v56, 5  ;;  %v3133_v61 = vor.u32 %v3132_v33, %v3129_v6  ;;  %v2836_v16 = vld [vmem:[#allocation2 + $0x7c] sm:$0xf]  ;;  %v2837_v18 = vld [vmem:[#allocation2 + $0x80] sm:$0x3] }
 0x2a2   : > { %v3152_v22 = vrot.slane %v3150_v3, 4  ;;  %v3990_v39 = vrot.slane %v2833_v13, 6  ;;  %v3993_v46 = vrot.slane %v9597_v27, 6  ;;  %v3143_v37 = vor.u32 %v3142_v28, %v3138_v55 }
 0x2a3   : > { %v9614_v59 = vmax.bf16 %v3987_v10, %v3822_v26  ;;  %v4221_v42 = vmax.bf16 %v4189_v58, %v9611_v5  ;;  %v9619_v0 = vmax.bf16 %v9611_v5, %v9567_v36  ;;  %v3134_v31 = vrot.slane %v3133_v61, 4  ;;  %v3855_v26 = vld [vmem:[#allocation2 + $0x78] sm:$0xc] }
 0x2a4   : > { %v3153_v21 = vor.u32 %v3152_v22, %v3148_v7  ;;  %v3991_v32 = vsel %vm8160_vm5, %v6997_v14, %v3990_v39  ;;  %v3992_v20 = vrot.slane %v3990_v39, 4  ;;  %v3144_v29 = vrot.slane %v3143_v37, 4 }
 0x2a5   : > { %v4222_v15 = vmax.bf16 %v4190_v35, %v9614_v59  ;;  %v4297_v40 = vrot.slane %v4221_v42, 7  ;;  %v9626_v10 = vmax.bf16 %v9614_v59, %v9571_v9  ;;  %v3139_v34 = vsel %vm7729_vm8, %v3134_v31, %v3138_v55 }
 0x2a6   : > { %v3154_v58 = vrot.slane %v3153_v21, 4  ;;  %v3994_v36 = vsel %vm8160_vm5, %v3992_v20, %v3993_v46  ;;  %v4191_v12 = vmax.bf16 %v9619_v0, %v9530_v41  ;;  %v3149_v9 = vsel %vm7729_vm8, %v3144_v29, %v3148_v7 }
 0x2a7   : > { %v4298_v4 = vrot.slane %v4297_v40, 4  ;;  %v4299_v6 = vrot.slane %v4222_v15, 7  ;;  %4417 = vst.msk [vmem:[#allocation2 + $0x48] sm:$0xe] %vm1099_vm13, %v4297_v40  ;;  %v7068_v35 = vcombine.low %v4221_v42, %v4222_v15  ;;  %v3532_v24 = vmax.bf16 %v3139_v34, %v9563_v1 }
 0x2a8   : > { %v3533_v48 = vmax.bf16 %v3149_v9, %v2833_v13  ;;  %v3534_v51 = vmax.bf16 %v3154_v58, %v9597_v27  ;;  %v4192_v19 = vmax.bf16 %v9626_v10, %v9544_v57  ;;  %v3156_v56 = vshrl.u32 %v2835_v2, 16 }
 0x2a9   : > { %v4300_v41 = vsel %vm7903_vm15, %v4298_v4, %v4299_v6  ;;  %v4301_v25 = vrot.slane %v4299_v6, 4  ;;  %6079 = vrot.lane.b32.xlu0 %v7068_v35, %s7538_s14  ;;  %v3159_v3 = vshll.u32 %v2835_v2, 16  ;;  %v6977_v54 = vrot.slane %v3532_v24, 9 }
 0x2aa   : > { %4418 = vst.msk [vmem:[#allocation2 + $0x4c] sm:$0xf] %vm830_vm2, %v4300_v41  ;;  %v3690_v33 = vrot.slane %v3533_v48, 5  ;;  %v3693_v1 = vrot.slane %v3534_v51, 5  ;;  %v3165_v13 = vshll.u32 %v2836_v16, 16  ;;  %v3158_v27 = vrot.slane %v3156_v56, 4 }
 0x2ab   : > { %4419 = vst.msk [vmem:[#allocation2 + $0x50] sm:$0x1] %vm845_vm3, %v4301_v25  ;;  %v3161_v55 = vrot.slane %v3159_v3, 5  ;;  %v3169_v57 = vshrl.u32 %v2836_v16, 16  ;;  %v3175_v14 = vshll.u32 %v2837_v18, 16  ;;  %v3179_v22 = vshrl.u32 %v2837_v18, 16 }
 0x2ac   : > { %v3691_v28 = vsel %vm7864_vm14, %v6977_v54, %v3690_v33  ;;  %v3692_v7 = vrot.slane %v3690_v33, 4  ;;  %v3167_v61 = vrot.slane %v3165_v13, 5  ;;  %v6998_v20 = vrot.slane %v3855_v26, 10 }
 0x2ad   : > { %v3823_v39 = vmax.bf16 %v3691_v28, %v3532_v24  ;;  %v3162_v46 = vor.u32 %v3161_v55, %v3158_v27  ;;  %v3171_v42 = vrot.slane %v3169_v57, 4  ;;  %v3177_v37 = vrot.slane %v3175_v14, 5  ;;  %v2839_v57 = vld [vmem:[#allocation2 + $0x88] sm:$0xf] }
 0x2ae   : > { %v3694_v31 = vsel %vm7864_vm14, %v3692_v7, %v3693_v1  ;;  %v3181_v21 = vrot.slane %v3179_v22, 4  ;;  %v3997_v15 = vrot.slane %v2836_v16, 6  ;;  %v4000_v9 = vrot.slane %v2837_v18, 6  ;;  %v2838_v1 = vld [vmem:[#allocation2 + $0x84] sm:$0xf] }
 0x2af   : > { %v3824_v40 = vmax.bf16 %v3694_v31, %v3533_v48  ;;  %v9650_v29 = vmax.bf16 %v3991_v32, %v3823_v39  ;;  %v3163_v34 = vrot.slane %v3162_v46, 4  ;;  %v3172_v58 = vor.u32 %v3171_v42, %v3167_v61  ;;  %v3856_v46 = vld [vmem:[#allocation2 + $0x84] sm:$0xc] }
 0x2b0   : > { %v3182_v4 = vor.u32 %v3181_v21, %v3177_v37  ;;  %v3998_v6 = vsel %vm8160_vm5, %v6998_v20, %v3997_v15  ;;  %v3999_v35 = vrot.slane %v3997_v15, 4  ;;  %v3198_v39 = vshrl.u32 %v2839_v57, 16 }
 0x2b1   : > { %v9654_v24 = vmax.bf16 %v3994_v36, %v3824_v40  ;;  %v4223_v51 = vmax.bf16 %v4191_v12, %v9650_v29  ;;  %v3168_v41 = vsel %vm7729_vm8, %v3163_v34, %v3167_v61  ;;  %v3173_v25 = vrot.slane %v3172_v58, 4 }
 0x2b2   : > { %v3183_v56 = vrot.slane %v3182_v4, 4  ;;  %v3535_v48 = vmax.bf16 %v3168_v41, %v2835_v2  ;;  %v4001_v32 = vsel %vm8160_vm5, %v3999_v35, %v4000_v9  ;;  %v9663_v3 = vmax.bf16 %v9650_v29, %v9611_v5 }
 0x2b3   : > { %v4224_v54 = vmax.bf16 %v4192_v19, %v9654_v24  ;;  %v4302_v33 = vrot.slane %v4223_v51, 7  ;;  %v3178_v36 = vsel %vm7729_vm8, %v3173_v25, %v3177_v37  ;;  %v9670_v12 = vmax.bf16 %v9654_v24, %v9614_v59  ;;  %v9677_v59 = vld [vmem:[#allocation2 + $0x8c] sm:$0x3] }
 0x2b4   : > { %v3536_v13 = vmax.bf16 %v3178_v36, %v2836_v16  ;;  %v3537_v2 = vmax.bf16 %v3183_v56, %v2837_v18  ;;  %v6978_v27 = vrot.slane %v3535_v48, 9  ;;  %v4193_v55 = vmax.bf16 %v9663_v3, %v9580_v44 }
 0x2b5   : > { %v4303_v5 = vrot.slane %v4302_v33, 4  ;;  %v4304_v14 = vrot.slane %v4224_v54, 7  ;;  %4420 = vst.msk [vmem:[#allocation2 + $0x54] sm:$0xe] %vm1099_vm13, %v4302_v33  ;;  %v7069_v19 = vcombine.low %v4223_v51, %v4224_v54  ;;  %v4194_v26 = vmax.bf16 %v9670_v12, %v9589_v60 }
 0x2b6   : > { %v3697_v28 = vrot.slane %v3536_v13, 5  ;;  %v3700_v7 = vrot.slane %v3537_v2, 5  ;;  %v3185_v61 = vshrl.u32 %v2838_v1, 16  ;;  %v3188_v16 = vshll.u32 %v2838_v1, 16 }
 0x2b7   : > { %v4305_v18 = vsel %vm7903_vm15, %v4303_v5, %v4304_v14  ;;  %v4306_v22 = vrot.slane %v4304_v14, 4  ;;  %6081 = vrot.lane.b32.xlu1 %v7069_v19, %s7538_s14  ;;  %v3194_v44 = vshll.u32 %v2839_v57, 16  ;;  %v3200_v15 = vrot.slane %v3198_v39, 4 }
 0x2b8   : > { %4421 = vst.msk [vmem:[#allocation2 + $0x58] sm:$0xf] %vm830_vm2, %v4305_v18  ;;  %v3698_v60 = vsel %vm7864_vm14, %v6978_v27, %v3697_v28  ;;  %v3699_v42 = vrot.slane %v3697_v28, 4  ;;  %v3187_v37 = vrot.slane %v3185_v61, 4  ;;  %v3190_v31 = vrot.slane %v3188_v16, 5 }
 0x2b9   : > { %4422 = vst.msk [vmem:[#allocation2 + $0x5c] sm:$0x1] %vm845_vm3, %v4306_v22  ;;  %v3825_v21 = vmax.bf16 %v3698_v60, %v3535_v48  ;;  %v3196_v20 = vrot.slane %v3194_v44, 5  ;;  %v3204_v40 = vshll.u32 %v9677_v59, 16  ;;  %v3208_v4 = vshrl.u32 %v9677_v59, 16 }
 0x2ba   : > { %v3701_v34 = vsel %vm7864_vm14, %v3699_v42, %v3700_v7  ;;  %v3191_v58 = vor.u32 %v3190_v31, %v3187_v37  ;;  %v6999_v35 = vrot.slane %v3856_v46, 10  ;;  %v4004_v33 = vrot.slane %v2839_v57, 6  ;;  %v9713_v22 = vld [vmem:[#allocation2] sm:$0xf]  ;;  %v9716_v60 = vld [vmem:[#allocation2 + $0x4] sm:$0xf] }
 0x2bb   : > { %v3826_v9 = vmax.bf16 %v3701_v34, %v3536_v13  ;;  %v9690_v51 = vmax.bf16 %v3998_v6, %v3825_v21  ;;  %v3201_v41 = vor.u32 %v3200_v15, %v3196_v20  ;;  %v3206_v25 = vrot.slane %v3204_v40, 5  ;;  %v9726_v21 = vld [vmem:[#allocation2 + $0x8] sm:$0x3] }
 0x2bc   : > { %v3192_v56 = vrot.slane %v3191_v58, 4  ;;  %v3210_v54 = vrot.slane %v3208_v4, 4  ;;  %v4007_v48 = vrot.slane %v9677_v59, 6  ;;  %v4005_v14 = vsel %vm8160_vm5, %v6999_v35, %v4004_v33  ;;  %v9735_v58 = vld [vmem:[#allocation2 + $0xc] sm:$0xf] }
 0x2bd   : > { %v9693_v36 = vmax.bf16 %v4001_v32, %v3826_v9  ;;  %v4225_v2 = vmax.bf16 %v4193_v55, %v9690_v51  ;;  %v3202_v27 = vrot.slane %v3201_v41, 4  ;;  %v9698_v5 = vmax.bf16 %v9690_v51, %v9650_v29 }
 0x2be   : > { %v3197_v6 = vsel %vm7729_vm8, %v3192_v56, %v3196_v20  ;;  %v3211_v13 = vor.u32 %v3210_v54, %v3206_v25  ;;  %v4006_v19 = vrot.slane %v4004_v33, 4  ;;  %v4514_v20 = vshrl.u32 %v9713_v22, 16 }
 0x2bf   : > { %v4226_v28 = vmax.bf16 %v4194_v26, %v9693_v36  ;;  %v4307_v7 = vrot.slane %v4225_v2, 7  ;;  %v3207_v32 = vsel %vm7729_vm8, %v3202_v27, %v3206_v25  ;;  %v3538_v55 = vmax.bf16 %v3197_v6, %v2838_v1 }
 0x2c0   : > { %v3212_v61 = vrot.slane %v3211_v13, 4  ;;  %v3539_v16 = vmax.bf16 %v3207_v32, %v2839_v57  ;;  %v4008_v29 = vsel %vm8160_vm5, %v4006_v19, %v4007_v48  ;;  %v9711_v18 = vmax.bf16 %v9693_v36, %v9654_v24 }
 0x2c1   : > { %v4309_v44 = vrot.slane %v4226_v28, 7  ;;  %v7070_v39 = vcombine.low %v4225_v2, %v4226_v28  ;;  %v4308_v46 = vrot.slane %v4307_v7, 4  ;;  %4423 = vst.msk [vmem:[#allocation2 + $0x60] sm:$0xe] %vm1099_vm13, %v4307_v7  ;;  %v6979_v26 = vrot.slane %v3538_v55, 9 }
 0x2c2   : > { %v3540_v1 = vmax.bf16 %v3212_v61, %v9677_v59  ;;  %v3704_v57 = vrot.slane %v3539_v16, 5  ;;  %v4195_v42 = vmax.bf16 %v9698_v5, %v9619_v0  ;;  %v4196_v24 = vmax.bf16 %v9711_v18, %v9626_v10  ;;  %v9746_v2 = vld [vmem:[#allocation2 + $0x10] sm:$0xf] }
 0x2c3   : > { %v4311_v37 = vrot.slane %v4309_v44, 4  ;;  %6083 = vrot.lane.b32.xlu0 %v7070_v39, %s7538_s14  ;;  %v4310_v31 = vsel %vm7903_vm15, %v4308_v46, %v4309_v44  ;;  %v4517_v15 = vshll.u32 %v9713_v22, 16  ;;  %v4523_v10 = vshll.u32 %v9716_v60, 16 }
 0x2c4   : > { %4424 = vst.msk [vmem:[#allocation2 + $0x64] sm:$0xf] %vm830_vm2, %v4310_v31  ;;  %v3705_v0 = vsel %vm7864_vm14, %v6979_v26, %v3704_v57  ;;  %v3706_v59 = vrot.slane %v3704_v57, 4  ;;  %v3707_v40 = vrot.slane %v3540_v1, 5  ;;  %v4516_v4 = vrot.slane %v4514_v20, 4 }
 0x2c5   : > { %4425 = vst.msk [vmem:[#allocation2 + $0x68] sm:$0x1] %vm845_vm3, %v4311_v37  ;;  %v3827_v34 = vmax.bf16 %v3705_v0, %v3538_v55  ;;  %v4519_v35 = vrot.slane %v4517_v15, 5  ;;  %v4527_v9 = vshrl.u32 %v9716_v60, 16  ;;  %v9740_v25 = vrot.slane %v4523_v10, 5 }
 0x2c6   : > { %v3708_v41 = vsel %vm7864_vm14, %v3706_v59, %v3707_v40  ;;  %v4533_v56 = vshll.u32 %v9726_v21, 16  ;;  %v4537_v54 = vshrl.u32 %v9726_v21, 16  ;;  %v4543_v28 = vshrl.u32 %v9735_v58, 16  ;;  %v9761_v57 = vld [vmem:[#allocation2 + $0x14] sm:$0x3] }
 0x2c7   : > { %v3828_v33 = vmax.bf16 %v3708_v41, %v3539_v16  ;;  %v9744_v48 = vmax.bf16 %v4005_v14, %v3827_v34  ;;  %v4520_v27 = vor.u32 %v4519_v35, %v4516_v4  ;;  %v4529_v6 = vrot.slane %v4527_v9, 4  ;;  %v9769_v37 = vld [vmem:[#allocation2 + $0x18] sm:$0xf]  ;;  %v9781_v34 = vld [vmem:[#allocation2 + $0x1c] sm:$0xf] }
 0x2c8   : > { %v9748_v13 = vrot.slane %v4533_v56, 5  ;;  %v4539_v19 = vrot.slane %v4537_v54, 4  ;;  %v4546_v7 = vshll.u32 %v9735_v58, 16  ;;  %v4545_v44 = vrot.slane %v4543_v28, 4 }
 0x2c9   : > { %v9752_v32 = vmax.bf16 %v4008_v29, %v3828_v33  ;;  %v4227_v55 = vmax.bf16 %v4195_v42, %v9744_v48  ;;  %v9755_v61 = vrot.slane %v4520_v27, 4  ;;  %v4530_v14 = vor.u32 %v4529_v6, %v9740_v25  ;;  %v9790_v33 = vld [vmem:[#allocation2 + $0x20] sm:$0x3]  ;;  %v4465_v29 = vld [vmem:[#allocation2 + $0x30] sm:$0xf] }
 0x2ca   : > { %v4540_v16 = vor.u32 %v4539_v19, %v9748_v13  ;;  %v4548_v39 = vrot.slane %v4546_v7, 5  ;;  %v4552_v46 = vshll.u32 %v9746_v2, 16  ;;  %v4556_v0 = vshrl.u32 %v9746_v2, 16  ;;  %v9795_v19 = vld [vmem:[#allocation2 + $0x24] sm:$0xf] }
 0x2cb   : > { %v4228_v26 = vmax.bf16 %v4196_v24, %v9752_v32  ;;  %v4312_v1 = vrot.slane %v4227_v55, 7  ;;  %v9767_v42 = vrot.slane %v4530_v14, 4  ;;  %v4562_v9 = vshll.u32 %v9761_v57, 16 }
 0x2cc   : > { %v9771_v31 = vrot.slane %v4540_v16, 4  ;;  %v4549_v20 = vor.u32 %v4548_v39, %v4545_v44  ;;  %v9773_v15 = vrot.slane %v4552_v46, 5  ;;  %v4558_v35 = vrot.slane %v4556_v0, 4 }
 0x2cd   : > { %v4314_v24 = vrot.slane %v4228_v26, 7  ;;  %v7071_v59 = vcombine.low %v4227_v55, %v4228_v26  ;;  %v4313_v40 = vrot.slane %v4312_v1, 4  ;;  %4426 = vst.msk [vmem:[#allocation2 + $0x6c] sm:$0xe] %vm1099_vm13, %v4312_v1  ;;  %v4566_v41 = vshrl.u32 %v9761_v57, 16 }
 0x2ce   : > { %v9783_v4 = vrot.slane %v4549_v20, 4  ;;  %v4572_v27 = vshrl.u32 %v9769_v37, 16  ;;  %v4575_v6 = vshll.u32 %v9769_v37, 16  ;;  %v4559_v7 = vor.u32 %v4558_v35, %v9773_v15  ;;  %v9807_v26 = vld [vmem:[#allocation2 + $0x28] sm:$0xf] }
 0x2cf   : > { %v4316_v56 = vrot.slane %v4314_v24, 4  ;;  %6085 = vrot.lane.b32.xlu1 %v7071_v59, %s7538_s14  ;;  %v4315_v54 = vsel %vm7903_vm15, %v4313_v40, %v4314_v24  ;;  %v9802_v55 = vrot.slane %v4562_v9, 5  ;;  %v4568_v14 = vrot.slane %v4566_v41, 4  ;;  %v9814_v59 = vld [vmem:[#allocation2 + $0x2c] sm:$0x3] }
 0x2d0   : > { %4427 = vst.msk [vmem:[#allocation2 + $0x70] sm:$0xf] %vm830_vm2, %v4315_v54  ;;  %v4574_v16 = vrot.slane %v4572_v27, 4  ;;  %v4577_v44 = vrot.slane %v4575_v6, 5  ;;  %v4581_v39 = vshll.u32 %v9781_v34, 16  ;;  %v4585_v46 = vshrl.u32 %v9781_v34, 16 }
 0x2d1   : > { %4428 = vst.msk [vmem:[#allocation2 + $0x74] sm:$0x1] %vm845_vm3, %v4316_v56  ;;  %v9809_v1 = vrot.slane %v4559_v7, 4  ;;  %v4569_v20 = vor.u32 %v4568_v14, %v9802_v55  ;;  %v4591_v0 = vshll.u32 %v9790_v33, 16  ;;  %v4595_v24 = vshrl.u32 %v9790_v33, 16 }
 0x2d2   : > { %v4578_v40 = vor.u32 %v4577_v44, %v4574_v16  ;;  %v4583_v35 = vrot.slane %v4581_v39, 5  ;;  %v4587_v9 = vrot.slane %v4585_v46, 4  ;;  %v4601_v41 = vshrl.u32 %v9795_v19, 16 }
 0x2d3   : > { %v4565_v56 = vsel %vm7729_vm8, %v9809_v1, %v9802_v55  ;;  %v9821_v54 = vrot.slane %v4569_v20, 4  ;;  %v4593_v27 = vrot.slane %v4591_v0, 5  ;;  %v4597_v6 = vrot.slane %v4595_v24, 4  ;;  %v9832_v24 = vld [vmem:[#allocation2 + $0x38] sm:$0x3] }
 0x2d4   : > { %v4579_v7 = vrot.slane %v4578_v40, 4  ;;  %v4588_v14 = vor.u32 %v4587_v9, %v4583_v35  ;;  %v4603_v28 = vrot.slane %v4601_v41, 4  ;;  %v4604_v10 = vshll.u32 %v9795_v19, 16 }
 0x2d5   : > { %v4598_v16 = vor.u32 %v4597_v6, %v4593_v27  ;;  %v4610_v44 = vshll.u32 %v9807_v26, 16  ;;  %v4614_v39 = vshrl.u32 %v9807_v26, 16  ;;  %v4620_v46 = vshll.u32 %v9814_v59, 16 }
 0x2d6   : > { %v4584_v55 = vsel %vm7729_vm8, %v4579_v7, %v4583_v35  ;;  %v4589_v1 = vrot.slane %v4588_v14, 4  ;;  %v4606_v20 = vrot.slane %v4604_v10, 5  ;;  %v4624_v0 = vshrl.u32 %v9814_v59, 16 }
 0x2d7   : > { %v4599_v40 = vrot.slane %v4598_v16, 4  ;;  %v4612_v9 = vrot.slane %v4610_v44, 5  ;;  %v4616_v41 = vrot.slane %v4614_v39, 4  ;;  %v4622_v6 = vrot.slane %v4620_v46, 5 }
 0x2d8   : > { %v4594_v52 = vsel %vm7729_vm8, %v4589_v1, %v4593_v27  ;;  %v4607_v49 = vor.u32 %v4606_v20, %v4603_v28  ;;  %v4626_v63 = vrot.slane %v4624_v0, 4  ;;  %v4630_v11 = vshrl.u32 %v4465_v29, 16 }
 0x2d9   : > { %v4617_v47 = vor.u32 %v4616_v41, %v4612_v9  ;;  %v4633_v43 = vshll.u32 %v4465_v29, 16  ;;  %v4639_v35 = vshll.u32 %v9827_v45, 16  ;;  %v4643_v10 = vshrl.u32 %v9827_v45, 16 }
 0x2da   : > { %v4608_v7 = vrot.slane %v4607_v49, 4  ;;  %v4627_v14 = vor.u32 %v4626_v63, %v4622_v6  ;;  %v4632_v53 = vrot.slane %v4630_v11, 4  ;;  %v4649_v16 = vshll.u32 %v9832_v24, 16 }
 0x2db   : > { %v4618_v44 = vrot.slane %v4617_v47, 4  ;;  %v4635_v39 = vrot.slane %v4633_v43, 5  ;;  %v4641_v46 = vrot.slane %v4639_v35, 5  ;;  %v4645_v23 = vrot.slane %v4643_v10, 4 }
 0x2dc   : > { %v4613_v28 = vsel %vm7729_vm8, %v4608_v7, %v4612_v9  ;;  %v4628_v27 = vrot.slane %v4627_v14, 4  ;;  %v4651_v1 = vrot.slane %v4649_v16, 5  ;;  %v4653_v20 = vshrl.u32 %v9832_v24, 16 }
 0x2dd   : > { %v4623_v0 = vsel %vm7729_vm8, %v4618_v44, %v4622_v6  ;;  %v4636_v41 = vor.u32 %v4635_v39, %v4632_v53  ;;  %v4646_v49 = vor.u32 %v4645_v23, %v4641_v46  ;;  %v11473_v47 = vsel %vm7729_vm8, %v9755_v61, %v9740_v25 }
 0x2de   : > { %v9850_v43 = vmax.bf16 %v11473_v47, %v9713_v22  ;;  %v4655_v63 = vrot.slane %v4653_v20, 4  ;;  %v11474_v11 = vsel %vm7729_vm8, %v9767_v42, %v9748_v13  ;;  %v5155_v53 = vmax.bf16 %v9771_v31, %v9726_v21 }
 0x2df   : > { %v5154_v9 = vmax.bf16 %v11474_v11, %v9716_v60  ;;  %v11475_v23 = vsel %vm7729_vm8, %v9783_v4, %v9773_v15  ;;  %v4637_v22 = vrot.slane %v4636_v41, 4  ;;  %v4647_v61 = vrot.slane %v4646_v49, 4 }
 0x2e0   : > { %v9866_v25 = vmax.bf16 %v11475_v23, %v9735_v58  ;;  %v5157_v6 = vmax.bf16 %v4565_v56, %v9746_v2  ;;  %v5158_v35 = vmax.bf16 %v9821_v54, %v9761_v57  ;;  %v4656_v13 = vor.u32 %v4655_v63, %v4651_v1 }
 0x2e1   : > { %v9872_v42 = vmax.bf16 %v4584_v55, %v9769_v37  ;;  %v5160_v31 = vmax.bf16 %v4594_v52, %v9781_v34  ;;  %v5161_v10 = vmax.bf16 %v4599_v40, %v9790_v33  ;;  %v4642_v15 = vsel %vm7729_vm8, %v4637_v22, %v4641_v46 }
 0x2e2   : > { %v4652_v58 = vsel %vm7729_vm8, %v4647_v61, %v4651_v1  ;;  %v9881_v4 = vmax.bf16 %v4613_v28, %v9795_v19  ;;  %v5163_v56 = vmax.bf16 %v4623_v0, %v9807_v26  ;;  %v4657_v54 = vrot.slane %v4656_v13, 4 }
 0x2e3   : > { %v5164_v7 = vmax.bf16 %v4628_v27, %v9814_v59  ;;  %v9885_v37 = vmax.bf16 %v4642_v15, %v4465_v29  ;;  %v5166_v52 = vmax.bf16 %v4652_v58, %v9827_v45  ;;  %v7008_v55 = vrot.slane %v9850_v43, 9 }
 0x2e4   : > { %v5275_v40 = vrot.slane %v5154_v9, 5  ;;  %v5278_v14 = vrot.slane %v5155_v53, 5  ;;  %v7009_v16 = vrot.slane %v9866_v25, 9  ;;  %v5167_v44 = vmax.bf16 %v4657_v54, %v9832_v24  ;;  %v5493_v54 = vld [vmem:[#allocation2] sm:$0xc] }
 0x2e5   : > { %v5282_v39 = vrot.slane %v5157_v6, 5  ;;  %v5285_v19 = vrot.slane %v5158_v35, 5  ;;  %v7010_v46 = vrot.slane %v9872_v42, 9  ;;  %v5289_v27 = vrot.slane %v5160_v31, 5 }
 0x2e6   : > { %v9894_v28 = vsel %vm7864_vm14, %v7008_v55, %v5275_v40  ;;  %v5277_v29 = vrot.slane %v5275_v40, 4  ;;  %v5292_v1 = vrot.slane %v5161_v10, 5  ;;  %v7011_v41 = vrot.slane %v9881_v4, 9 }
 0x2e7   : > { %v9898_v20 = vsel %vm7864_vm14, %v7009_v16, %v5282_v39  ;;  %v5284_v0 = vrot.slane %v5282_v39, 4  ;;  %v5296_v49 = vrot.slane %v5163_v56, 5  ;;  %v9905_v63 = vsel %vm7864_vm14, %v7010_v46, %v5289_v27  ;;  %v5494_v16 = vld [vmem:[#allocation2 + $0xc] sm:$0xc] }
 0x2e8   : > { %v5279_v47 = vsel %vm7864_vm14, %v5277_v29, %v5278_v14  ;;  %v5291_v11 = vrot.slane %v5289_v27, 4  ;;  %v5299_v53 = vrot.slane %v5164_v7, 5  ;;  %v7012_v35 = vrot.slane %v9885_v37, 9  ;;  %v5495_v29 = vld [vmem:[#allocation2 + $0x18] sm:$0xc] }
 0x2e9   : > { %v5286_v23 = vsel %vm7864_vm14, %v5284_v0, %v5285_v19  ;;  %v9911_v22 = vsel %vm7864_vm14, %v7011_v41, %v5296_v49  ;;  %v5298_v61 = vrot.slane %v5296_v49, 4  ;;  %v5303_v10 = vrot.slane %v5166_v52, 5 }
 0x2ea   : > { %v5293_v13 = vsel %vm7864_vm14, %v5291_v11, %v5292_v1  ;;  %v5306_v15 = vrot.slane %v5167_v44, 5  ;;  %v5453_v58 = vmax.bf16 %v9894_v28, %v9850_v43  ;;  %v5454_v55 = vmax.bf16 %v5279_v47, %v5154_v9 }
 0x2eb   : > { %v5300_v7 = vsel %vm7864_vm14, %v5298_v61, %v5299_v53  ;;  %v5455_v40 = vmax.bf16 %v9898_v20, %v9866_v25  ;;  %v5456_v14 = vmax.bf16 %v5286_v23, %v5157_v6  ;;  %v5304_v39 = vsel %vm7864_vm14, %v7012_v35, %v5303_v10  ;;  %v5496_v6 = vld [vmem:[#allocation2 + $0x24] sm:$0xc] }
 0x2ec   : > { %v5305_v19 = vrot.slane %v5303_v10, 4  ;;  %v5457_v44 = vmax.bf16 %v9905_v63, %v9872_v42  ;;  %v5458_v46 = vmax.bf16 %v5293_v13, %v5160_v31  ;;  %v5459_v43 = vmax.bf16 %v9911_v22, %v9881_v4  ;;  %v5497_v4 = vld [vmem:[#allocation2 + $0x30] sm:$0xc] }
 0x2ed   : > { %v5460_v28 = vmax.bf16 %v5300_v7, %v5163_v56  ;;  %v5461_v9 = vmax.bf16 %v5304_v39, %v9885_v37  ;;  %v7028_v27 = vrot.slane %v5493_v54, 10  ;;  %v5575_v1 = vrot.slane %v9716_v60, 6 }
 0x2ee   : > { %v5307_v25 = vsel %vm7864_vm14, %v5305_v19, %v5306_v15  ;;  %v5578_v20 = vrot.slane %v9726_v21, 6  ;;  %v7029_v0 = vrot.slane %v5494_v16, 10  ;;  %v5582_v42 = vrot.slane %v9746_v2, 6  ;;  %v4468_v16 = vld [vmem:[#allocation2 + $0x3c] sm:$0xf] }
 0x2ef   : > { %v5462_v41 = vmax.bf16 %v5307_v25, %v5166_v52  ;;  %v5585_v31 = vrot.slane %v9761_v57, 6  ;;  %v7030_v49 = vrot.slane %v5495_v29, 10  ;;  %v5576_v56 = vsel %vm8160_vm5, %v7028_v27, %v5575_v1  ;;  %v4469_v25 = vld [vmem:[#allocation2 + $0x40] sm:$0xf] }
 0x2f0   : > { %v5577_v37 = vrot.slane %v5575_v1, 4  ;;  %v5589_v47 = vrot.slane %v9781_v34, 6  ;;  %v5592_v63 = vrot.slane %v9790_v33, 6  ;;  %v5583_v60 = vsel %vm8160_vm5, %v7029_v0, %v5582_v42 }
 0x2f1   : > { %v5584_v21 = vrot.slane %v5582_v42, 4  ;;  %v7031_v11 = vrot.slane %v5496_v6, 10  ;;  %v5596_v52 = vrot.slane %v9807_v26, 6  ;;  %v5599_v23 = vrot.slane %v9814_v59, 6 }
 0x2f2   : > { %v5579_v2 = vsel %vm8160_vm5, %v5577_v37, %v5578_v20  ;;  %v5590_v57 = vsel %vm8160_vm5, %v7030_v49, %v5589_v47  ;;  %v5591_v53 = vrot.slane %v5589_v47, 4  ;;  %v7032_v61 = vrot.slane %v5497_v4, 10 }
 0x2f3   : > { %v5586_v34 = vsel %vm8160_vm5, %v5584_v21, %v5585_v31  ;;  %v5597_v33 = vsel %vm8160_vm5, %v7031_v11, %v5596_v52  ;;  %v5598_v22 = vrot.slane %v5596_v52, 4  ;;  %v5603_v35 = vrot.slane %v9827_v45, 6 }
 0x2f4   : > { %v5593_v26 = vsel %vm8160_vm5, %v5591_v53, %v5592_v63  ;;  %v5606_v13 = vrot.slane %v9832_v24, 6  ;;  %v5753_v10 = vmax.bf16 %v5576_v56, %v5453_v58  ;;  %v5754_v59 = vmax.bf16 %v5579_v2, %v5454_v55  ;;  %v4470_v58 = vld [vmem:[#allocation2 + $0x44] sm:$0x3] }
 0x2f5   : > { %v5600_v15 = vsel %vm8160_vm5, %v5598_v22, %v5599_v23  ;;  %v5755_v54 = vmax.bf16 %v5583_v60, %v5455_v40  ;;  %v9957_v7 = vmax.bf16 %v5586_v34, %v5456_v14  ;;  %v5604_v39 = vsel %vm8160_vm5, %v7032_v61, %v5603_v35 }
 0x2f6   : > { %v5605_v19 = vrot.slane %v5603_v35, 4  ;;  %v5757_v29 = vmax.bf16 %v5590_v57, %v5457_v44  ;;  %v5758_v27 = vmax.bf16 %v5593_v26, %v5458_v46  ;;  %v5759_v6 = vmax.bf16 %v5597_v33, %v5459_v43  ;;  %v5498_v43 = vld [vmem:[#allocation2 + $0x3c] sm:$0xc] }
 0x2f7   : > { %v5760_v45 = vmax.bf16 %v5600_v15, %v5460_v28  ;;  %v9961_v1 = vmax.bf16 %v5604_v39, %v5461_v9  ;;  %v5793_v24 = vmax.bf16 %v5755_v54, %v5753_v10  ;;  %v5794_v40 = vmax.bf16 %v9957_v7, %v5754_v59 }
 0x2f8   : > { %v5607_v55 = vsel %vm8160_vm5, %v5605_v19, %v5606_v13  ;;  %v4659_v14 = vshrl.u32 %v4468_v16, 16  ;;  %v4662_v20 = vshll.u32 %v4468_v16, 16  ;;  %v9968_v42 = vmax.bf16 %v5759_v6, %v5757_v29  ;;  %v2841_v13 = vld [vmem:[#allocation2 + $0x90] sm:$0xf] }
 0x2f9   : > { %v9966_v0 = vmax.bf16 %v5607_v55, %v5462_v41  ;;  %v9970_v44 = vmax.bf16 %v5760_v45, %v5758_v27  ;;  %v4668_v46 = vshll.u32 %v4469_v25, 16  ;;  %v4672_v31 = vshrl.u32 %v4469_v25, 16  ;;  %v2842_v55 = vld [vmem:[#allocation2 + $0x94] sm:$0xf] }
 0x2fa   : > { %v4661_v28 = vrot.slane %v4659_v14, 4  ;;  %v4664_v9 = vrot.slane %v4662_v20, 5  ;;  %v4678_v49 = vshll.u32 %v4470_v58, 16  ;;  %v5829_v4 = vmax.bf16 %v9968_v42, %v5793_v24 }
 0x2fb   : > { %v5830_v56 = vmax.bf16 %v9970_v44, %v5794_v40  ;;  %v4670_v37 = vrot.slane %v4668_v46, 5  ;;  %v4682_v47 = vshrl.u32 %v4470_v58, 16  ;;  %v4674_v60 = vrot.slane %v4672_v31, 4 }
 0x2fc   : > { %v4665_v63 = vor.u32 %v4664_v9, %v4661_v28  ;;  %v4680_v41 = vrot.slane %v4678_v49, 5  ;;  %v7033_v21 = vrot.slane %v5498_v43, 10  ;;  %v5861_v11 = vmax.bf16 %v5829_v4, %v9961_v1  ;;  %v3857_v28 = vld [vmem:[#allocation2 + $0x90] sm:$0xc] }
 0x2fd   : > { %v5862_v52 = vmax.bf16 %v5830_v56, %v9966_v0  ;;  %v4684_v2 = vrot.slane %v4682_v47, 4  ;;  %v5610_v57 = vrot.slane %v4469_v25, 6  ;;  %v4675_v23 = vor.u32 %v4674_v60, %v4670_v37 }
 0x2fe   : > { %v4666_v53 = vrot.slane %v4665_v63, 4  ;;  %v5613_v34 = vrot.slane %v4470_v58, 6  ;;  %v5795_v33 = vmax.bf16 %v5757_v29, %v5755_v54  ;;  %v5796_v59 = vmax.bf16 %v5758_v27, %v9957_v7  ;;  %v2843_v27 = vld [vmem:[#allocation2 + $0x98] sm:$0x3] }
 0x2ff   : > { %v7080_v22 = vcombine.low %v5861_v11, %v5862_v52  ;;  %v4685_v61 = vor.u32 %v4684_v2, %v4680_v41  ;;  %v5611_v26 = vsel %vm8160_vm5, %v7033_v21, %v5610_v57  ;;  %v5612_v35 = vrot.slane %v5610_v57, 4 }
 0x300   : > { %v4671_v10 = vsel %vm7729_vm8, %v4666_v53, %v4670_v37  ;;  %v4676_v15 = vrot.slane %v4675_v23, 4  ;;  %v9982_v39 = vmax.bf16 %v9961_v1, %v5759_v6  ;;  %v9988_v24 = vmax.bf16 %v9966_v0, %v5760_v45 }
 0x301   : > { %6216 = vrot.lane.b32.xlu0 %v7080_v22, %s7539_s15  ;;  %v4686_v54 = vrot.slane %v4685_v61, 4  ;;  %v5168_v19 = vmax.bf16 %v4671_v10, %v4468_v16  ;;  %v5614_v29 = vsel %vm8160_vm5, %v5612_v35, %v5613_v34  ;;  %v3214_v6 = vshrl.u32 %v2841_v13, 16 }
 0x302   : > { %v4681_v40 = vsel %vm7729_vm8, %v4676_v15, %v4680_v41  ;;  %v5831_v7 = vmax.bf16 %v9982_v39, %v5795_v33  ;;  %v3217_v14 = vshll.u32 %v2841_v13, 16  ;;  %v5832_v16 = vmax.bf16 %v9988_v24, %v5796_v59 }
 0x303   : > { %v5169_v20 = vmax.bf16 %v4681_v40, %v4469_v25  ;;  %v5170_v46 = vmax.bf16 %v4686_v54, %v4470_v58  ;;  %v7013_v43 = vrot.slane %v5168_v19, 9  ;;  %v3216_v9 = vrot.slane %v3214_v6, 4 }
 0x304   : > { %v3219_v31 = vrot.slane %v3217_v14, 5  ;;  %v3223_v49 = vshll.u32 %v2842_v55, 16  ;;  %v3227_v45 = vshrl.u32 %v2842_v55, 16  ;;  %v3233_v37 = vshll.u32 %v2843_v27, 16  ;;  %v4471_v14 = vld [vmem:[#allocation2 + $0x48] sm:$0xf] }
 0x305   : > { %v5310_v4 = vrot.slane %v5169_v20, 5  ;;  %v5313_v56 = vrot.slane %v5170_v46, 5  ;;  %v3237_v47 = vshrl.u32 %v2843_v27, 16  ;;  %v7000_v21 = vrot.slane %v3857_v28, 10 }
 0x306   : > { %v3220_v63 = vor.u32 %v3219_v31, %v3216_v9  ;;  %v3225_v60 = vrot.slane %v3223_v49, 5  ;;  %v3229_v41 = vrot.slane %v3227_v45, 4  ;;  %v3235_v11 = vrot.slane %v3233_v37, 5  ;;  %v10019_v49 = vld [vmem:[#allocation2 + $0x50] sm:$0x3] }
 0x307   : > { %v5311_v25 = vsel %vm7864_vm14, %v7013_v43, %v5310_v4  ;;  %v5312_v58 = vrot.slane %v5310_v4, 4  ;;  %v3239_v52 = vrot.slane %v3237_v47, 4  ;;  %v4011_v23 = vrot.slane %v2842_v55, 6 }
 0x308   : > { %v5463_v2 = vmax.bf16 %v5311_v25, %v5168_v19  ;;  %v3221_v57 = vrot.slane %v3220_v63, 4  ;;  %v3230_v53 = vor.u32 %v3229_v41, %v3225_v60  ;;  %v4014_v22 = vrot.slane %v2843_v27, 6  ;;  %v5499_v41 = vld [vmem:[#allocation2 + $0x48] sm:$0xc] }
 0x309   : > { %v5314_v34 = vsel %vm7864_vm14, %v5312_v58, %v5313_v56  ;;  %v3240_v33 = vor.u32 %v3239_v52, %v3235_v11  ;;  %v10000_v61 = vmax.bf16 %v9744_v48, %v9690_v51  ;;  %v4012_v40 = vsel %vm8160_vm5, %v7000_v21, %v4011_v23 }
 0x30a   : > { %v5464_v35 = vmax.bf16 %v5314_v34, %v5169_v20  ;;  %v10002_v10 = vmax.bf16 %v5611_v26, %v5463_v2  ;;  %v3226_v15 = vsel %vm7729_vm8, %v3221_v57, %v3225_v60  ;;  %v3231_v59 = vrot.slane %v3230_v53, 4  ;;  %v4472_v20 = vld [vmem:[#allocation2 + $0x4c] sm:$0xf] }
 0x30b   : > { %v3241_v54 = vrot.slane %v3240_v33, 4  ;;  %v3541_v19 = vmax.bf16 %v3226_v15, %v2841_v13  ;;  %v4013_v6 = vrot.slane %v4011_v23, 4  ;;  %v10015_v26 = vmax.bf16 %v9752_v32, %v9693_v36 }
 0x30c   : > { %v10008_v46 = vmax.bf16 %v5614_v29, %v5464_v35  ;;  %v5863_v43 = vmax.bf16 %v5831_v7, %v10002_v10  ;;  %v3236_v51 = vsel %vm7729_vm8, %v3231_v59, %v3235_v11  ;;  %v4197_v7 = vmax.bf16 %v10000_v61, %v9663_v3 }
 0x30d   : > { %v3542_v28 = vmax.bf16 %v3236_v51, %v2842_v55  ;;  %v3543_v9 = vmax.bf16 %v3241_v54, %v2843_v27  ;;  %v6980_v13 = vrot.slane %v3541_v19, 9  ;;  %v4015_v31 = vsel %vm8160_vm5, %v4013_v6, %v4014_v22 }
 0x30e   : > { %v5864_v29 = vmax.bf16 %v5832_v16, %v10008_v46  ;;  %v4198_v45 = vmax.bf16 %v10015_v26, %v9670_v12  ;;  %v4688_v4 = vshrl.u32 %v4471_v14, 16  ;;  %v4691_v37 = vshll.u32 %v4471_v14, 16 }
 0x30f   : > { %v3711_v36 = vrot.slane %v3542_v28, 5  ;;  %v3714_v56 = vrot.slane %v3543_v9, 5  ;;  %v4697_v55 = vshll.u32 %v4472_v20, 16  ;;  %v4701_v63 = vshrl.u32 %v4472_v20, 16 }
 0x310   : > { %v7081_v27 = vcombine.low %v5863_v43, %v5864_v29  ;;  %v4690_v47 = vrot.slane %v4688_v4, 4  ;;  %v4707_v60 = vshll.u32 %v10019_v49, 16  ;;  %v4693_v25 = vrot.slane %v4691_v37, 5 }
 0x311   : > { %v3712_v16 = vsel %vm7864_vm14, %v6980_v13, %v3711_v36  ;;  %v3713_v21 = vrot.slane %v3711_v36, 4  ;;  %v4699_v3 = vrot.slane %v4697_v55, 5  ;;  %v4703_v58 = vrot.slane %v4701_v63, 4 }
 0x312   : > { %6218 = vrot.lane.b32.xlu1 %v7081_v27, %s7539_s15  ;;  %v3829_v12 = vmax.bf16 %v3712_v16, %v3541_v19  ;;  %v4709_v11 = vrot.slane %v4707_v60, 5  ;;  %v4711_v52 = vshrl.u32 %v10019_v49, 16  ;;  %v4694_v57 = vor.u32 %v4693_v25, %v4690_v47  ;;  %v2845_v47 = vld [vmem:[#allocation2 + $0xa0] sm:$0xf] }
 0x313   : > { %v3715_v2 = vsel %vm7864_vm14, %v3713_v21, %v3714_v56  ;;  %v7034_v53 = vrot.slane %v5499_v41, 10  ;;  %v5617_v23 = vrot.slane %v4472_v20, 6  ;;  %v4704_v22 = vor.u32 %v4703_v58, %v4699_v3  ;;  %v2844_v56 = vld [vmem:[#allocation2 + $0x9c] sm:$0xf]  ;;  %v10062_v21 = vld [vmem:[#allocation2 + $0xa4] sm:$0x3] }
 0x314   : > { %v3830_v34 = vmax.bf16 %v3715_v2, %v3542_v28  ;;  %v10033_v33 = vmax.bf16 %v4012_v40, %v3829_v12  ;;  %v4713_v35 = vrot.slane %v4711_v52, 4  ;;  %v4695_v15 = vrot.slane %v4694_v57, 4  ;;  %v3858_v12 = vld [vmem:[#allocation2 + $0x9c] sm:$0xc] }
 0x315   : > { %v5618_v59 = vsel %vm8160_vm5, %v7034_v53, %v5617_v23  ;;  %v5619_v54 = vrot.slane %v5617_v23, 4  ;;  %v5620_v19 = vrot.slane %v10019_v49, 6  ;;  %v4705_v51 = vrot.slane %v4704_v22, 4 }
 0x316   : > { %v10038_v6 = vmax.bf16 %v4015_v31, %v3830_v34  ;;  %v4229_v43 = vmax.bf16 %v4197_v7, %v10033_v33  ;;  %v4714_v9 = vor.u32 %v4713_v35, %v4709_v11  ;;  %v4700_v28 = vsel %vm7729_vm8, %v4695_v15, %v4699_v3 }
 0x317   : > { %v5621_v40 = vsel %vm8160_vm5, %v5619_v54, %v5620_v19  ;;  %v10047_v13 = vmax.bf16 %v10002_v10, %v9961_v1  ;;  %v10051_v29 = vmax.bf16 %v10008_v46, %v9966_v0  ;;  %v4710_v7 = vsel %vm7729_vm8, %v4705_v51, %v4709_v11 }
 0x318   : > { %v4230_v31 = vmax.bf16 %v4198_v45, %v10038_v6  ;;  %v4317_v4 = vrot.slane %v4229_v43, 7  ;;  %v4715_v36 = vrot.slane %v4714_v9, 4  ;;  %v5171_v37 = vmax.bf16 %v4700_v28, %v4471_v14 }
 0x319   : > { %v5172_v55 = vmax.bf16 %v4710_v7, %v4472_v20  ;;  %v5833_v27 = vmax.bf16 %v10047_v13, %v9968_v42  ;;  %v5834_v1 = vmax.bf16 %v10051_v29, %v9970_v44  ;;  %v3243_v14 = vshrl.u32 %v2844_v56, 16 }
 0x31a   : > { %v4319_v63 = vrot.slane %v4230_v31, 7  ;;  %v7072_v0 = vcombine.low %v4229_v43, %v4230_v31  ;;  %v4318_v60 = vrot.slane %v4317_v4, 4  ;;  %4429 = vst.msk [vmem:[#allocation2 + $0x78] sm:$0xe] %vm1099_vm13, %v4317_v4  ;;  %v5173_v45 = vmax.bf16 %v4715_v36, %v10019_v49 }
 0x31b   : > { %v7014_v41 = vrot.slane %v5171_v37, 9  ;;  %v5317_v16 = vrot.slane %v5172_v55, 5  ;;  %v3246_v20 = vshll.u32 %v2844_v56, 16  ;;  %v3252_v3 = vshll.u32 %v2845_v47, 16 }
 0x31c   : > { %v4321_v25 = vrot.slane %v4319_v63, 4  ;;  %6087 = vrot.lane.b32.xlu0 %v7072_v0, %s7538_s14  ;;  %v4320_v42 = vsel %vm7903_vm15, %v4318_v60, %v4319_v63  ;;  %v5320_v44 = vrot.slane %v5173_v45, 5  ;;  %v3245_v11 = vrot.slane %v3243_v14, 4 }
 0x31d   : > { %4430 = vst.msk [vmem:[#allocation2 + $0x7c] sm:$0xf] %vm830_vm2, %v4320_v42  ;;  %v5318_v49 = vsel %vm7864_vm14, %v7014_v41, %v5317_v16  ;;  %v5319_v58 = vrot.slane %v5317_v16, 4  ;;  %v3248_v52 = vrot.slane %v3246_v20, 5  ;;  %v3254_v57 = vrot.slane %v3252_v3, 5 }
 0x31e   : > { %4431 = vst.msk [vmem:[#allocation2 + $0x80] sm:$0x1] %vm845_vm3, %v4321_v25  ;;  %v5465_v2 = vmax.bf16 %v5318_v49, %v5171_v37  ;;  %v3256_v53 = vshrl.u32 %v2845_v47, 16  ;;  %v3262_v23 = vshll.u32 %v10062_v21, 16  ;;  %v3266_v35 = vshrl.u32 %v10062_v21, 16 }
 0x31f   : > { %v5321_v34 = vsel %vm7864_vm14, %v5319_v58, %v5320_v44  ;;  %v3249_v22 = vor.u32 %v3248_v52, %v3245_v11  ;;  %v7001_v15 = vrot.slane %v3858_v12, 10  ;;  %v4018_v31 = vrot.slane %v2845_v47, 6  ;;  %v4474_v16 = vld [vmem:[#allocation2 + $0x54] sm:$0xf]  ;;  %v4475_v42 = vld [vmem:[#allocation2 + $0x58] sm:$0xf] }
 0x320   : > { %v5466_v54 = vmax.bf16 %v5321_v34, %v5172_v55  ;;  %v10075_v19 = vmax.bf16 %v5618_v59, %v5465_v2  ;;  %v3258_v43 = vrot.slane %v3256_v53, 4  ;;  %v3264_v51 = vrot.slane %v3262_v23, 5  ;;  %v4476_v44 = vld [vmem:[#allocation2 + $0x5c] sm:$0x3]  ;;  %v5500_v2 = vld [vmem:[#allocation2 + $0x54] sm:$0xc] }
 0x321   : > { %v3250_v9 = vrot.slane %v3249_v22, 4  ;;  %v3268_v28 = vrot.slane %v3266_v35, 4  ;;  %v4021_v4 = vrot.slane %v10062_v21, 6  ;;  %v10083_v63 = vmax.bf16 %v10033_v33, %v9744_v48 }
 0x322   : > { %v10078_v7 = vmax.bf16 %v5621_v40, %v5466_v54  ;;  %v5865_v36 = vmax.bf16 %v5833_v27, %v10075_v19  ;;  %v3259_v37 = vor.u32 %v3258_v43, %v3254_v57  ;;  %v4019_v0 = vsel %vm8160_vm5, %v7001_v15, %v4018_v31 }
 0x323   : > { %v3255_v59 = vsel %vm7729_vm8, %v3250_v9, %v3254_v57  ;;  %v3269_v55 = vor.u32 %v3268_v28, %v3264_v51  ;;  %v4020_v60 = vrot.slane %v4018_v31, 4  ;;  %v10092_v27 = vmax.bf16 %v10038_v6, %v9752_v32 }
 0x324   : > { %v5866_v45 = vmax.bf16 %v5834_v1, %v10078_v7  ;;  %v3260_v41 = vrot.slane %v3259_v37, 4  ;;  %v3544_v40 = vmax.bf16 %v3255_v59, %v2844_v56  ;;  %v4199_v20 = vmax.bf16 %v10083_v63, %v9698_v5 }
 0x325   : > { %v3270_v14 = vrot.slane %v3269_v55, 4  ;;  %v4022_v48 = vsel %vm8160_vm5, %v4020_v60, %v4021_v4  ;;  %v7058_v25 = vcombine.low %v9128_v62, %v9132_v8  ;;  %v4200_v32 = vmax.bf16 %v10092_v27, %v9711_v18 }
 0x326   : > { %v7082_v1 = vcombine.low %v5865_v36, %v5866_v45  ;;  %v3265_v56 = vsel %vm7729_vm8, %v3260_v41, %v3264_v51  ;;  %v6981_v3 = vrot.slane %v3544_v40, 9  ;;  %v4717_v58 = vshrl.u32 %v4474_v16, 16 }
 0x327   : > { %v3545_v12 = vmax.bf16 %v3265_v56, %v2845_v47  ;;  %v3546_v49 = vmax.bf16 %v3270_v14, %v10062_v21  ;;  %v4720_v11 = vshll.u32 %v4474_v16, 16  ;;  %v4726_v5 = vshll.u32 %v4475_v42, 16 }
 0x328   : > { %6220 = vrot.lane.b32.xlu0 %v7082_v1, %s7539_s15  ;;  %v4730_v52 = vshrl.u32 %v4475_v42, 16  ;;  %v4736_v62 = vshll.u32 %v4476_v44, 16  ;;  %v4740_v8 = vshrl.u32 %v4476_v44, 16  ;;  %v4719_v23 = vrot.slane %v4717_v58, 4 }
 0x329   : > { %v3718_v57 = vrot.slane %v3545_v12, 5  ;;  %v3721_v53 = vrot.slane %v3546_v49, 5  ;;  %v4722_v34 = vrot.slane %v4720_v11, 5  ;;  %v4728_v22 = vrot.slane %v4726_v5, 5 }
 0x32a   : > { %v4732_v35 = vrot.slane %v4730_v52, 4  ;;  %v4738_v15 = vrot.slane %v4736_v62, 5  ;;  %v4742_v18 = vrot.slane %v4740_v8, 4  ;;  %v7035_v43 = vrot.slane %v5500_v2, 10  ;;  %v10134_v52 = vld [vmem:[#allocation2 + $0x64] sm:$0xf] }
 0x32b   : > { %v3719_v47 = vsel %vm7864_vm14, %v6981_v3, %v3718_v57  ;;  %v3720_v21 = vrot.slane %v3718_v57, 4  ;;  %v4723_v54 = vor.u32 %v4722_v34, %v4719_v23  ;;  %v5624_v31 = vrot.slane %v4475_v42, 6  ;;  %v10140_v23 = vld [vmem:[#allocation2 + $0x68] sm:$0x3] }
 0x32c   : > { %v3831_v51 = vmax.bf16 %v3719_v47, %v3544_v40  ;;  %5978 = vrot.lane.b32.xlu0 %v7058_v25, %s7537_s13  ;;  %v4733_v9 = vor.u32 %v4732_v35, %v4728_v22  ;;  %v4743_v28 = vor.u32 %v4742_v18, %v4738_v15  ;;  %v5627_v37 = vrot.slane %v4476_v44, 6 }
 0x32d   : > { %v3722_v4 = vsel %vm7864_vm14, %v3720_v21, %v3721_v53  ;;  %v4724_v36 = vrot.slane %v4723_v54, 4  ;;  %v10113_v59 = vmax.bf16 %v10075_v19, %v10002_v10  ;;  %v5625_v14 = vsel %vm8160_vm5, %v7035_v43, %v5624_v31 }
 0x32e   : > { %v3832_v55 = vmax.bf16 %v3722_v4, %v3545_v12  ;;  %v10115_v60 = vmax.bf16 %v4019_v0, %v3831_v51  ;;  %v4734_v45 = vrot.slane %v4733_v9, 4  ;;  %v4744_v41 = vrot.slane %v4743_v28, 4  ;;  %v4477_v12 = vld [vmem:[#allocation2 + $0x60] sm:$0xf] }
 0x32f   : > { %v4729_v40 = vsel %vm7729_vm8, %v4724_v36, %v4728_v22  ;;  %v5626_v25 = vrot.slane %v5624_v31, 4  ;;  %v10123_v1 = vmax.bf16 %v10078_v7, %v10008_v46  ;;  %v5835_v5 = vmax.bf16 %v10113_v59, %v9982_v39 }
 0x330   : > { %v10125_v56 = vmax.bf16 %v4022_v48, %v3832_v55  ;;  %v4231_v10 = vmax.bf16 %v4199_v20, %v10115_v60  ;;  %v4739_v0 = vsel %vm7729_vm8, %v4734_v45, %v4738_v15  ;;  %v5174_v3 = vmax.bf16 %v4729_v40, %v4474_v16 }
 0x331   : > { %v5175_v49 = vmax.bf16 %v4739_v0, %v4475_v42  ;;  %v5176_v58 = vmax.bf16 %v4744_v41, %v4476_v44  ;;  %v5628_v11 = vsel %vm8160_vm5, %v5626_v25, %v5627_v37  ;;  %v5836_v20 = vmax.bf16 %v10123_v1, %v9988_v24  ;;  %v5501_v24 = vld [vmem:[#allocation2 + $0x60] sm:$0xc] }
 0x332   : > { %v4232_v46 = vmax.bf16 %v4200_v32, %v10125_v56  ;;  %v4322_v48 = vrot.slane %v4231_v10, 7  ;;  %v7015_v62 = vrot.slane %v5174_v3, 9  ;;  %v4746_v2 = vshrl.u32 %v4477_v12, 16 }
 0x333   : > { %v5324_v8 = vrot.slane %v5175_v49, 5  ;;  %v5327_v16 = vrot.slane %v5176_v58, 5  ;;  %v4749_v42 = vshll.u32 %v4477_v12, 16  ;;  %v4755_v39 = vshll.u32 %v10134_v52, 16 }
 0x334   : > { %v4324_v44 = vrot.slane %v4232_v46, 7  ;;  %v7073_v57 = vcombine.low %v4231_v10, %v4232_v46  ;;  %v4323_v53 = vrot.slane %v4322_v48, 4  ;;  %4432 = vst.msk [vmem:[#allocation2 + $0x84] sm:$0xe] %vm1099_vm13, %v4322_v48  ;;  %v4748_v22 = vrot.slane %v4746_v2, 4 }
 0x335   : > { %v5325_v32 = vsel %vm7864_vm14, %v7015_v62, %v5324_v8  ;;  %v5326_v34 = vrot.slane %v5324_v8, 4  ;;  %v4751_v35 = vrot.slane %v4749_v42, 5  ;;  %v4757_v21 = vrot.slane %v4755_v39, 5  ;;  %v11476_v42 = vld [vmem:[#allocation42_spill] sm:$0xff] }
 0x336   : > { %v4326_v15 = vrot.slane %v4324_v44, 4  ;;  %6089 = vrot.lane.b32.xlu1 %v7073_v57, %s7538_s14  ;;  %v4325_v18 = vsel %vm7903_vm15, %v4323_v53, %v4324_v44  ;;  %v5467_v47 = vmax.bf16 %v5325_v32, %v5174_v3  ;;  %v4759_v51 = vshrl.u32 %v10134_v52, 16  ;;  %v11477_v44 = vld [vmem:[#allocation41_spill] sm:$0xff]  ;;  %v4481_v53 = vld [vmem:[#allocation2 + $0x70] sm:$0xf] }
 0x337   : > { %4433 = vst.msk [vmem:[#allocation2 + $0x88] sm:$0xf] %vm830_vm2, %v4325_v18  ;;  %v5328_v54 = vsel %vm7864_vm14, %v5326_v34, %v5327_v16  ;;  %v4752_v43 = vor.u32 %v4751_v35, %v4748_v22  ;;  %v4765_v9 = vshll.u32 %v10140_v23, 16  ;;  %v4769_v4 = vshrl.u32 %v10140_v23, 16  ;;  %v4482_v32 = vld [vmem:[#allocation2 + $0x74] sm:$0x3] }
 0x338   : > { %4434 = vst.msk [vmem:[#allocation2 + $0x8c] sm:$0x1] %vm845_vm3, %v4326_v15  ;;  %v5468_v28 = vmax.bf16 %v5328_v54, %v5175_v49  ;;  %v10154_v31 = vmax.bf16 %v5625_v14, %v5467_v47  ;;  %v7036_v36 = vrot.slane %v5501_v24, 10  ;;  %v4761_v55 = vrot.slane %v4759_v51, 4 }
 0x339   : > { %v4753_v37 = vrot.slane %v4752_v43, 4  ;;  %v4767_v45 = vrot.slane %v4765_v9, 5  ;;  %v5631_v41 = vrot.slane %v10134_v52, 6  ;;  %v4771_v10 = vrot.slane %v4769_v4, 4 }
 0x33a   : > { %v10158_v40 = vmax.bf16 %v5628_v11, %v5468_v28  ;;  %v5867_v25 = vmax.bf16 %v5835_v5, %v10154_v31  ;;  %v5634_v0 = vrot.slane %v10140_v23, 6  ;;  %v4762_v14 = vor.u32 %v4761_v55, %v4757_v21  ;;  %v4480_v5 = vld [vmem:[#allocation2 + $0x6c] sm:$0xf] }
 0x33b   : > { %v4758_v3 = vsel %vm7729_vm8, %v4753_v37, %v4757_v21  ;;  %v5632_v49 = vsel %vm8160_vm5, %v7036_v36, %v5631_v41  ;;  %v5633_v58 = vrot.slane %v5631_v41, 4  ;;  %v4772_v48 = vor.u32 %v4771_v10, %v4767_v45  ;;  %v5502_v21 = vld [vmem:[#allocation2 + $0x6c] sm:$0xc] }
 0x33c   : > { %v5868_v46 = vmax.bf16 %v5836_v20, %v10158_v40  ;;  %v5177_v62 = vmax.bf16 %v4758_v3, %v4477_v12  ;;  %v10169_v11 = vmax.bf16 %v10154_v31, %v10075_v19  ;;  %v4763_v8 = vrot.slane %v4762_v14, 4 }
 0x33d   : > { %v5635_v16 = vsel %vm8160_vm5, %v5633_v58, %v5634_v0  ;;  %v10175_v2 = vmax.bf16 %v10158_v40, %v10078_v7  ;;  %v7059_v57 = vcombine.low %v11477_v44, %v11476_v42  ;;  %v4773_v39 = vrot.slane %v4772_v48, 4  ;;  %v2847_v58 = vld [vmem:[#allocation2 + $0xa8] sm:$0xf] }
 0x33e   : > { %v7083_v20 = vcombine.low %v5867_v25, %v5868_v46  ;;  %v7016_v12 = vrot.slane %v5177_v62, 9  ;;  %v5837_v19 = vmax.bf16 %v10169_v11, %v10047_v13  ;;  %v4768_v34 = vsel %vm7729_vm8, %v4763_v8, %v4767_v45 }
 0x33f   : > { %v5838_v22 = vmax.bf16 %v10175_v2, %v10051_v29  ;;  %v4775_v35 = vshrl.u32 %v4480_v5, 16  ;;  %v4778_v7 = vshll.u32 %v4480_v5, 16  ;;  %v5178_v24 = vmax.bf16 %v4768_v34, %v10134_v52 }
 0x340   : > { %6222 = vrot.lane.b32.xlu1 %v7083_v20, %s7539_s15  ;;  %v5179_v15 = vmax.bf16 %v4773_v39, %v10140_v23  ;;  %v4784_v18 = vshll.u32 %v4481_v53, 16  ;;  %v4788_v47 = vshrl.u32 %v4481_v53, 16  ;;  %v4794_v43 = vshll.u32 %v4482_v32, 16 }
 0x341   : > { %v4777_v54 = vrot.slane %v4775_v35, 4  ;;  %v4780_v13 = vrot.slane %v4778_v7, 5  ;;  %v4798_v51 = vshrl.u32 %v4482_v32, 16  ;;  %v5331_v9 = vrot.slane %v5178_v24, 5 }
 0x342   : > { %v5334_v28 = vrot.slane %v5179_v15, 5  ;;  %v4786_v4 = vrot.slane %v4784_v18, 5  ;;  %v4790_v36 = vrot.slane %v4788_v47, 4  ;;  %v4796_v37 = vrot.slane %v4794_v43, 5 }
 0x343   : > { %v4781_v29 = vor.u32 %v4780_v13, %v4777_v54  ;;  %v4800_v55 = vrot.slane %v4798_v51, 4  ;;  %v7037_v45 = vrot.slane %v5502_v21, 10  ;;  %v5332_v52 = vsel %vm7864_vm14, %v7016_v12, %v5331_v9 }
 0x344   : > { %v5333_v41 = vrot.slane %v5331_v9, 4  ;;  %5980 = vrot.lane.b32.xlu1 %v7059_v57, %s7537_s13  ;;  %v4791_v23 = vor.u32 %v4790_v36, %v4786_v4  ;;  %v5638_v25 = vrot.slane %v4481_v53, 6  ;;  %v5469_v10 = vmax.bf16 %v5332_v52, %v5177_v62  ;;  %v3859_v9 = vld [vmem:[#allocation2 + $0xa8] sm:$0xc] }
 0x345   : > { %v4782_v0 = vrot.slane %v4781_v29, 4  ;;  %v4801_v3 = vor.u32 %v4800_v55, %v4796_v37  ;;  %v5641_v14 = vrot.slane %v4482_v32, 6  ;;  %v3272_v35 = vshrl.u32 %v2847_v58, 16 }
 0x346   : > { %v5335_v46 = vsel %vm7864_vm14, %v5333_v41, %v5334_v28  ;;  %v4792_v48 = vrot.slane %v4791_v23, 4  ;;  %v5639_v8 = vsel %vm8160_vm5, %v7037_v45, %v5638_v25  ;;  %v5640_v42 = vrot.slane %v5638_v25, 4 }
 0x347   : > { %v5470_v44 = vmax.bf16 %v5335_v46, %v5178_v24  ;;  %v10195_v20 = vmax.bf16 %v5632_v49, %v5469_v10  ;;  %v4787_v57 = vsel %vm7729_vm8, %v4782_v0, %v4786_v4  ;;  %v4802_v39 = vrot.slane %v4801_v3, 4  ;;  %v2848_v49 = vld [vmem:[#allocation2 + $0xac] sm:$0xf] }
 0x348   : > { %v4797_v62 = vsel %vm7729_vm8, %v4792_v48, %v4796_v37  ;;  %v5180_v12 = vmax.bf16 %v4787_v57, %v4480_v5  ;;  %v5642_v34 = vsel %vm8160_vm5, %v5640_v42, %v5641_v14  ;;  %v3274_v54 = vrot.slane %v3272_v35, 4 }
 0x349   : > { %v10203_v7 = vmax.bf16 %v5635_v16, %v5470_v44  ;;  %v5869_v15 = vmax.bf16 %v5837_v19, %v10195_v20  ;;  %v5181_v18 = vmax.bf16 %v4797_v62, %v4481_v53  ;;  %v5182_v24 = vmax.bf16 %v4802_v39, %v4482_v32  ;;  %v2849_v19 = vld [vmem:[#allocation2 + $0xb0] sm:$0x3] }
 0x34a   : > { %v7017_v47 = vrot.slane %v5180_v12, 9  ;;  %v10208_v21 = vmax.bf16 %v10195_v20, %v10154_v31  ;;  %v3275_v13 = vshll.u32 %v2847_v58, 16  ;;  %v3281_v28 = vshll.u32 %v2848_v49, 16 }
 0x34b   : > { %v5870_v5 = vmax.bf16 %v5838_v22, %v10203_v7  ;;  %v5338_v43 = vrot.slane %v5181_v18, 5  ;;  %v5341_v51 = vrot.slane %v5182_v24, 5  ;;  %v10213_v16 = vmax.bf16 %v10203_v7, %v10158_v40 }
 0x34c   : > { %v5839_v53 = vmax.bf16 %v10208_v21, %v10113_v59  ;;  %v3277_v32 = vrot.slane %v3275_v13, 5  ;;  %v3285_v4 = vshrl.u32 %v2848_v49, 16  ;;  %v3283_v40 = vrot.slane %v3281_v28, 5 }
 0x34d   : > { %v7084_v31 = vcombine.low %v5869_v15, %v5870_v5  ;;  %v5339_v36 = vsel %vm7864_vm14, %v7017_v47, %v5338_v43  ;;  %v5340_v29 = vrot.slane %v5338_v43, 4  ;;  %v5840_v22 = vmax.bf16 %v10213_v16, %v10123_v1  ;;  %v4483_v15 = vld [vmem:[#allocation2 + $0x78] sm:$0xf] }
 0x34e   : > { %v5471_v37 = vmax.bf16 %v5339_v36, %v5180_v12  ;;  %v3278_v55 = vor.u32 %v3277_v32, %v3274_v54  ;;  %v3287_v45 = vrot.slane %v3285_v4, 4  ;;  %v3291_v52 = vshll.u32 %v2849_v19, 16  ;;  %v4484_v54 = vld [vmem:[#allocation2 + $0x7c] sm:$0xf] }
 0x34f   : > { %6224 = vrot.lane.b32.xlu0 %v7084_v31, %s7539_s15  ;;  %v5342_v59 = vsel %vm7864_vm14, %v5340_v29, %v5341_v51  ;;  %v3295_v41 = vshrl.u32 %v2849_v19, 16  ;;  %v7002_v23 = vrot.slane %v3859_v9, 10  ;;  %v4025_v1 = vrot.slane %v2848_v49, 6  ;;  %v4485_v51 = vld [vmem:[#allocation2 + $0x80] sm:$0x3] }
 0x350   : > { %v5472_v25 = vmax.bf16 %v5342_v59, %v5181_v18  ;;  %v10224_v10 = vmax.bf16 %v5639_v8, %v5471_v37  ;;  %v3279_v0 = vrot.slane %v3278_v55, 4  ;;  %v3288_v3 = vor.u32 %v3287_v45, %v3283_v40  ;;  %v5503_v37 = vld [vmem:[#allocation2 + $0x78] sm:$0xc] }
 0x351   : > { %v3293_v14 = vrot.slane %v3291_v52, 5  ;;  %v3297_v46 = vrot.slane %v3295_v41, 4  ;;  %v4028_v48 = vrot.slane %v2849_v19, 6  ;;  %v4026_v8 = vsel %vm8160_vm5, %v7002_v23, %v4025_v1 }
 0x352   : > { %v10226_v42 = vmax.bf16 %v5642_v34, %v5472_v25  ;;  %v5871_v44 = vmax.bf16 %v5839_v53, %v10224_v10  ;;  %v3284_v57 = vsel %vm7729_vm8, %v3279_v0, %v3283_v40  ;;  %v3289_v39 = vrot.slane %v3288_v3, 4 }
 0x353   : > { %v3298_v62 = vor.u32 %v3297_v46, %v3293_v14  ;;  %v3547_v12 = vmax.bf16 %v3284_v57, %v2847_v58  ;;  %v4027_v35 = vrot.slane %v4025_v1, 4  ;;  %v10238_v34 = vmax.bf16 %v10115_v60, %v10033_v33 }
 0x354   : > { %v5872_v18 = vmax.bf16 %v5840_v22, %v10226_v42  ;;  %v3294_v24 = vsel %vm7729_vm8, %v3289_v39, %v3293_v14  ;;  %v10242_v47 = vmax.bf16 %v10125_v56, %v10038_v6  ;;  %v4804_v32 = vshrl.u32 %v4483_v15, 16 }
 0x355   : > { %v3299_v58 = vrot.slane %v3298_v62, 4  ;;  %v3548_v13 = vmax.bf16 %v3294_v24, %v2848_v49  ;;  %v6982_v5 = vrot.slane %v3547_v12, 9  ;;  %v4029_v43 = vsel %vm8160_vm5, %v4027_v35, %v4028_v48 }
 0x356   : > { %v7085_v9 = vcombine.low %v5871_v44, %v5872_v18  ;;  %v4201_v53 = vmax.bf16 %v10238_v34, %v10000_v61  ;;  %v4202_v33 = vmax.bf16 %v10242_v47, %v10015_v26  ;;  %v4807_v6 = vshll.u32 %v4483_v15, 16 }
 0x357   : > { %v3549_v28 = vmax.bf16 %v3299_v58, %v2849_v19  ;;  %v3725_v4 = vrot.slane %v3548_v13, 5  ;;  %v4813_v31 = vshll.u32 %v4484_v54, 16  ;;  %v4806_v49 = vrot.slane %v4804_v32, 4 }
 0x358   : > { %6226 = vrot.lane.b32.xlu1 %v7085_v9, %s7539_s15  ;;  %v4817_v36 = vshrl.u32 %v4484_v54, 16  ;;  %v4823_v29 = vshll.u32 %v4485_v51, 16  ;;  %v4827_v22 = vshrl.u32 %v4485_v51, 16  ;;  %v4809_v45 = vrot.slane %v4807_v6, 5 }
 0x359   : > { %v3726_v55 = vsel %vm7864_vm14, %v6982_v5, %v3725_v4  ;;  %v3727_v40 = vrot.slane %v3725_v4, 4  ;;  %v3728_v61 = vrot.slane %v3549_v28, 5  ;;  %v4815_v26 = vrot.slane %v4813_v31, 5  ;;  %v2851_v31 = vld [vmem:[#allocation2 + $0xb8] sm:$0xf] }
 0x35a   : > { %v3833_v59 = vmax.bf16 %v3726_v55, %v3547_v12  ;;  %v4819_v52 = vrot.slane %v4817_v36, 4  ;;  %v4825_v19 = vrot.slane %v4823_v29, 5  ;;  %v4810_v23 = vor.u32 %v4809_v45, %v4806_v49 }
 0x35b   : > { %v3729_v41 = vsel %vm7864_vm14, %v3727_v40, %v3728_v61  ;;  %v4829_v25 = vrot.slane %v4827_v22, 4  ;;  %v7038_v0 = vrot.slane %v5503_v37, 10  ;;  %v5645_v1 = vrot.slane %v4484_v54, 6  ;;  %v3860_v61 = vld [vmem:[#allocation2 + $0xb4] sm:$0xc] }
 0x35c   : > { %v3834_v3 = vmax.bf16 %v3729_v41, %v3548_v13  ;;  %v10255_v14 = vmax.bf16 %v4026_v8, %v3833_v59  ;;  %v4820_v46 = vor.u32 %v4819_v52, %v4815_v26  ;;  %v4811_v48 = vrot.slane %v4810_v23, 4 }
 0x35d   : > { %v4830_v44 = vor.u32 %v4829_v25, %v4825_v19  ;;  %v5648_v57 = vrot.slane %v4485_v51, 6  ;;  %v10259_v39 = vmax.bf16 %v10224_v10, %v10195_v20  ;;  %v5646_v18 = vsel %vm8160_vm5, %v7038_v0, %v5645_v1 }
 0x35e   : > { %v10261_v62 = vmax.bf16 %v4029_v43, %v3834_v3  ;;  %v4233_v12 = vmax.bf16 %v4201_v53, %v10255_v14  ;;  %v4821_v35 = vrot.slane %v4820_v46, 4  ;;  %v4816_v8 = vsel %vm7729_vm8, %v4811_v48, %v4815_v26  ;;  %v2850_v53 = vld [vmem:[#allocation2 + $0xb4] sm:$0xf] }
 0x35f   : > { %v4831_v24 = vrot.slane %v4830_v44, 4  ;;  %v5647_v58 = vrot.slane %v5645_v1, 4  ;;  %v10270_v13 = vmax.bf16 %v10226_v42, %v10203_v7  ;;  %v5183_v9 = vmax.bf16 %v4816_v8, %v4483_v15 }
 0x360   : > { %v4234_v20 = vmax.bf16 %v4202_v33, %v10261_v62  ;;  %v4327_v5 = vrot.slane %v4233_v12, 7  ;;  %v4826_v43 = vsel %vm7729_vm8, %v4821_v35, %v4825_v19  ;;  %v5841_v6 = vmax.bf16 %v10259_v39, %v10169_v11 }
 0x361   : > { %v5184_v32 = vmax.bf16 %v4826_v43, %v4484_v54  ;;  %v5185_v28 = vmax.bf16 %v4831_v24, %v4485_v51  ;;  %v5649_v4 = vsel %vm8160_vm5, %v5647_v58, %v5648_v57  ;;  %v7018_v33 = vrot.slane %v5183_v9, 9  ;;  %v2852_v54 = vld [vmem:[#allocation2 + $0xbc] sm:$0x3] }
 0x362   : > { %v4329_v49 = vrot.slane %v4234_v20, 7  ;;  %v7074_v7 = vcombine.low %v4233_v12, %v4234_v20  ;;  %v4328_v36 = vrot.slane %v4327_v5, 4  ;;  %4435 = vst.msk [vmem:[#allocation2 + $0x90] sm:$0xe] %vm1099_vm13, %v4327_v5  ;;  %v5842_v15 = vmax.bf16 %v10270_v13, %v10175_v2 }
 0x363   : > { %v5345_v29 = vrot.slane %v5184_v32, 5  ;;  %v5348_v22 = vrot.slane %v5185_v28, 5  ;;  %v3301_v51 = vshrl.u32 %v2850_v53, 16  ;;  %v3304_v55 = vshll.u32 %v2850_v53, 16 }
 0x364   : > { %v4331_v37 = vrot.slane %v4329_v49, 4  ;;  %6091 = vrot.lane.b32.xlu0 %v7074_v7, %s7538_s14  ;;  %v4330_v11 = vsel %vm7903_vm15, %v4328_v36, %v4329_v49  ;;  %v3310_v40 = vshll.u32 %v2851_v31, 16  ;;  %v3314_v52 = vshrl.u32 %v2851_v31, 16 }
 0x365   : > { %4436 = vst.msk [vmem:[#allocation2 + $0x94] sm:$0xf] %vm830_vm2, %v4330_v11  ;;  %v5346_v45 = vsel %vm7864_vm14, %v7018_v33, %v5345_v29  ;;  %v5347_v59 = vrot.slane %v5345_v29, 4  ;;  %v3303_v26 = vrot.slane %v3301_v51, 4  ;;  %v3306_v19 = vrot.slane %v3304_v55, 5  ;;  %v11478_v55 = vld [vmem:[#allocation27_spill] sm:$0xff] }
 0x366   : > { %4437 = vst.msk [vmem:[#allocation2 + $0x98] sm:$0x1] %vm845_vm3, %v4331_v37  ;;  %v5473_v2 = vmax.bf16 %v5346_v45, %v5183_v9  ;;  %v3312_v41 = vrot.slane %v3310_v40, 5  ;;  %v3320_v23 = vshll.u32 %v2852_v54, 16  ;;  %v3316_v0 = vrot.slane %v3314_v52, 4  ;;  %v11479_v40 = vld [vmem:[#allocation35_spill] sm:$0xff] }
 0x367   : > { %v5349_v25 = vsel %vm7864_vm14, %v5347_v59, %v5348_v22  ;;  %v3324_v3 = vshrl.u32 %v2852_v54, 16  ;;  %v7003_v46 = vrot.slane %v3860_v61, 10  ;;  %v3307_v44 = vor.u32 %v3306_v19, %v3303_v26  ;;  %v10315_v51 = vld [vmem:[#allocation2 + $0x8c] sm:$0x3] }
 0x368   : > { %v5474_v1 = vmax.bf16 %v5349_v25, %v5184_v32  ;;  %v10291_v48 = vmax.bf16 %v5646_v18, %v5473_v2  ;;  %v3322_v57 = vrot.slane %v3320_v23, 5  ;;  %v3317_v12 = vor.u32 %v3316_v0, %v3312_v41 }
 0x369   : > { %v3326_v35 = vrot.slane %v3324_v3, 4  ;;  %v4032_v8 = vrot.slane %v2851_v31, 6  ;;  %v4035_v24 = vrot.slane %v2852_v54, 6  ;;  %v3308_v5 = vrot.slane %v3307_v44, 4 }
 0x36a   : > { %v10293_v58 = vmax.bf16 %v5649_v4, %v5474_v1  ;;  %v5873_v20 = vmax.bf16 %v5841_v6, %v10291_v48  ;;  %v10298_v43 = vmax.bf16 %v10255_v14, %v10115_v60  ;;  %v3318_v9 = vrot.slane %v3317_v12, 4  ;;  %v4486_v60 = vld [vmem:[#allocation2 + $0x84] sm:$0xf] }
 0x36b   : > { %v3327_v28 = vor.u32 %v3326_v35, %v3322_v57  ;;  %v4033_v18 = vsel %vm8160_vm5, %v7003_v46, %v4032_v8  ;;  %v4034_v32 = vrot.slane %v4032_v8, 4  ;;  %v3313_v7 = vsel %vm7729_vm8, %v3308_v5, %v3312_v41 }
 0x36c   : > { %v5874_v49 = vmax.bf16 %v5842_v15, %v10293_v58  ;;  %v10307_v4 = vmax.bf16 %v10261_v62, %v10125_v56  ;;  %v4203_v6 = vmax.bf16 %v10298_v43, %v10083_v63  ;;  %v3323_v36 = vsel %vm7729_vm8, %v3318_v9, %v3322_v57  ;;  %v4487_v15 = vld [vmem:[#allocation2 + $0x88] sm:$0xf] }
 0x36d   : > { %v3328_v33 = vrot.slane %v3327_v28, 4  ;;  %v3550_v29 = vmax.bf16 %v3313_v7, %v2850_v53  ;;  %v4036_v22 = vsel %vm8160_vm5, %v4034_v32, %v4035_v24  ;;  %v3551_v11 = vmax.bf16 %v3323_v36, %v2851_v31 }
 0x36e   : > { %v7086_v37 = vcombine.low %v5873_v20, %v5874_v49  ;;  %v4204_v56 = vmax.bf16 %v10307_v4, %v10092_v27  ;;  %v7060_v63 = vcombine.low %v11479_v40, %v11478_v55  ;;  %v4833_v59 = vshrl.u32 %v4486_v60, 16  ;;  %v5504_v27 = vld [vmem:[#allocation2 + $0x84] sm:$0xc] }
 0x36f   : > { %v3552_v61 = vmax.bf16 %v3328_v33, %v2852_v54  ;;  %v6983_v45 = vrot.slane %v3550_v29, 9  ;;  %v4836_v26 = vshll.u32 %v4486_v60, 16  ;;  %v3732_v53 = vrot.slane %v3551_v11, 5 }
 0x370   : > { %6228 = vrot.lane.b32.xlu0 %v7086_v37, %s7539_s15  ;;  %v4842_v52 = vshll.u32 %v4487_v15, 16  ;;  %v4846_v2 = vshrl.u32 %v4487_v15, 16  ;;  %v4852_v19 = vshll.u32 %v10315_v51, 16  ;;  %v4835_v23 = vrot.slane %v4833_v59, 4 }
 0x371   : > { %v3735_v41 = vrot.slane %v3552_v61, 5  ;;  %v4838_v31 = vrot.slane %v4836_v26, 5  ;;  %v4856_v25 = vshrl.u32 %v10315_v51, 16  ;;  %v3733_v0 = vsel %vm7864_vm14, %v6983_v45, %v3732_v53 }
 0x372   : > { %v3734_v54 = vrot.slane %v3732_v53, 4  ;;  %v4844_v3 = vrot.slane %v4842_v52, 5  ;;  %v4848_v46 = vrot.slane %v4846_v2, 4  ;;  %v3835_v1 = vmax.bf16 %v3733_v0, %v3550_v29  ;;  %v11480_v52 = vld [vmem:[#allocation5_spill] sm:$0xff]  ;;  %v11481_v2 = vld [vmem:[#allocation7_spill] sm:$0xff] }
 0x373   : > { %v4839_v44 = vor.u32 %v4838_v31, %v4835_v23  ;;  %v4854_v57 = vrot.slane %v4852_v19, 5  ;;  %v4858_v12 = vrot.slane %v4856_v25, 4  ;;  %v7039_v24 = vrot.slane %v5504_v27, 10  ;;  %v4490_v31 = vld [vmem:[#allocation2 + $0x94] sm:$0xf] }
 0x374   : > { %v3736_v35 = vsel %vm7864_vm14, %v3734_v54, %v3735_v41  ;;  %5982 = vrot.lane.b32.xlu0 %v7060_v63, %s7537_s13  ;;  %v4849_v8 = vor.u32 %v4848_v46, %v4844_v3  ;;  %v5652_v20 = vrot.slane %v4487_v15, 6  ;;  %v10329_v9 = vmax.bf16 %v4033_v18, %v3835_v1  ;;  %v10357_v41 = vld [vmem:[#allocation2 + $0x90] sm:$0xf] }
 0x375   : > { %v3836_v5 = vmax.bf16 %v3736_v35, %v3551_v11  ;;  %v4840_v28 = vrot.slane %v4839_v44, 4  ;;  %v4859_v32 = vor.u32 %v4858_v12, %v4854_v57  ;;  %v5655_v33 = vrot.slane %v10315_v51, 6 }
 0x376   : > { %v4850_v49 = vrot.slane %v4849_v8, 4  ;;  %v5653_v7 = vsel %vm8160_vm5, %v7039_v24, %v5652_v20  ;;  %v5654_v36 = vrot.slane %v5652_v20, 4  ;;  %v4235_v37 = vmax.bf16 %v4203_v6, %v10329_v9  ;;  %v5505_v24 = vld [vmem:[#allocation2 + $0x90] sm:$0xc] }
 0x377   : > { %v10334_v29 = vmax.bf16 %v4036_v22, %v3836_v5  ;;  %v4845_v55 = vsel %vm7729_vm8, %v4840_v28, %v4844_v3  ;;  %v4860_v40 = vrot.slane %v4859_v32, 4  ;;  %v10345_v61 = vmax.bf16 %v10291_v48, %v10224_v10 }
 0x378   : > { %v4855_v18 = vsel %vm7729_vm8, %v4850_v49, %v4854_v57  ;;  %v5186_v11 = vmax.bf16 %v4845_v55, %v4486_v60  ;;  %v5656_v63 = vsel %vm8160_vm5, %v5654_v36, %v5655_v33  ;;  %v4332_v45 = vrot.slane %v4235_v37, 7 }
 0x379   : > { %v4236_v22 = vmax.bf16 %v4204_v56, %v10334_v29  ;;  %v5187_v59 = vmax.bf16 %v4855_v18, %v4487_v15  ;;  %v5188_v6 = vmax.bf16 %v4860_v40, %v10315_v51  ;;  %v10351_v53 = vmax.bf16 %v10293_v58, %v10226_v42  ;;  %v5959_v51 = vpop.permute.xlu0 %5958 }
 0x37a   : > { %v7019_v26 = vrot.slane %v5186_v11, 9  ;;  %v5843_v60 = vmax.bf16 %v10345_v61, %v10208_v21  ;;  %v814_v19 = vpack.c.bf16 %v11481_v2, %v11480_v52  ;;  %v4333_v56 = vrot.slane %v4332_v45, 4  ;;  %4438 = vst.msk [vmem:[#allocation2 + $0x9c] sm:$0xe] %vm1099_vm13, %v4332_v45  ;;  %v4491_v21 = vld [vmem:[#allocation2 + $0x98] sm:$0x3] }
 0x37b   : > { %v4334_v10 = vrot.slane %v4236_v22, 7  ;;  %v7075_v23 = vcombine.low %v4235_v37, %v4236_v22  ;;  %v5352_v15 = vrot.slane %v5187_v59, 5  ;;  %v5355_v25 = vrot.slane %v5188_v6, 5 }
 0x37c   : > { %v5844_v42 = vmax.bf16 %v10351_v53, %v10213_v16  ;;  %5894 = vst.msk [vmem:[#allocation3] sm:$0xff] %vm5893_vm0, %v814_v19  ;;  %v4862_v16 = vshrl.u32 %v10357_v41, 16  ;;  %v4865_v1 = vshll.u32 %v10357_v41, 16  ;;  %v4871_v44 = vshll.u32 %v4490_v31, 16 }
 0x37d   : > { %v4336_v27 = vrot.slane %v4334_v10, 4  ;;  %6093 = vrot.lane.b32.xlu1 %v7075_v23, %s7538_s14  ;;  %v4335_v0 = vsel %vm7903_vm15, %v4333_v56, %v4334_v10  ;;  %v5353_v54 = vsel %vm7864_vm14, %v7019_v26, %v5352_v15  ;;  %v5354_v3 = vrot.slane %v5352_v15, 4  ;;  %6007 = vst.msk [vmem:[#allocation3] sm:$0xff] %vm6006_vm6, %v5959_v51 }
 0x37e   : > { %4439 = vst.msk [vmem:[#allocation2 + $0xa0] sm:$0xf] %vm830_vm2, %v4335_v0  ;;  %v5475_v46 = vmax.bf16 %v5353_v54, %v5186_v11  ;;  %v4875_v12 = vshrl.u32 %v4490_v31, 16  ;;  %v4881_v35 = vshll.u32 %v4491_v21, 16  ;;  %v4885_v8 = vshrl.u32 %v4491_v21, 16 }
 0x37f   : > { %4440 = vst.msk [vmem:[#allocation2 + $0xa4] sm:$0x1] %vm845_vm3, %v4336_v27  ;;  %v5356_v57 = vsel %vm7864_vm14, %v5354_v3, %v5355_v25  ;;  %v4864_v28 = vrot.slane %v4862_v16, 4  ;;  %v4867_v32 = vrot.slane %v4865_v1, 5  ;;  %v4873_v49 = vrot.slane %v4871_v44, 5  ;;  %v11484_v1 = vld [vmem:[#allocation4_spill] sm:$0xff] }
 0x380   : > { %v5476_v20 = vmax.bf16 %v5356_v57, %v5187_v59  ;;  %v10375_v5 = vmax.bf16 %v5653_v7, %v5475_v46  ;;  %v4877_v36 = vrot.slane %v4875_v12, 4  ;;  %v4883_v33 = vrot.slane %v4881_v35, 5  ;;  %v11482_v46 = vld [vmem:[#allocation39_spill] sm:$0xff]  ;;  %v5961_v57 = vpop.permute.xlu0 %5960 }
 0x381   : > { %v4887_v37 = vrot.slane %v4885_v8, 4  ;;  %v4868_v18 = vor.u32 %v4867_v32, %v4864_v28  ;;  %v7040_v11 = vrot.slane %v5505_v24, 10  ;;  %v5659_v6 = vrot.slane %v4490_v31, 6  ;;  %v4492_v23 = vld [vmem:[#allocation2 + $0x9c] sm:$0xf] }
 0x382   : > { %v10377_v55 = vmax.bf16 %v5656_v63, %v5476_v20  ;;  %v5875_v40 = vmax.bf16 %v5843_v60, %v10375_v5  ;;  %v4878_v22 = vor.u32 %v4877_v36, %v4873_v49  ;;  %v5662_v26 = vrot.slane %v4491_v21, 6  ;;  %v5506_v35 = vld [vmem:[#allocation2 + $0x9c] sm:$0xc] }
 0x383   : > { %v4888_v45 = vor.u32 %v4887_v37, %v4883_v33  ;;  %v4869_v7 = vrot.slane %v4868_v18, 4  ;;  %v10383_v52 = vmax.bf16 %v10375_v5, %v10291_v48  ;;  %v5660_v60 = vsel %vm8160_vm5, %v7040_v11, %v5659_v6 }
 0x384   : > { %v5876_v59 = vmax.bf16 %v5844_v42, %v10377_v55  ;;  %v10387_v2 = vmax.bf16 %v10377_v55, %v10293_v58  ;;  %v4879_v63 = vrot.slane %v4878_v22, 4  ;;  %v5661_v10 = vrot.slane %v5659_v6, 4 }
 0x385   : > { %v4889_v19 = vrot.slane %v4888_v45, 4  ;;  %v4874_v15 = vsel %vm7729_vm8, %v4869_v7, %v4873_v49  ;;  %v5845_v51 = vmax.bf16 %v10383_v52, %v10259_v39  ;;  %v4493_v25 = vld [vmem:[#allocation2 + $0xa0] sm:$0xf]  ;;  %v11483_v39 = vld [vmem:[#allocation37_spill] sm:$0xff]  ;;  %v4891_v12 = vshrl.u32 %v4492_v23, 16 }
 0x386   : > { %v7087_v56 = vcombine.low %v5875_v40, %v5876_v59  ;;  %v5846_v48 = vmax.bf16 %v10387_v2, %v10270_v13  ;;  %v4884_v58 = vsel %vm7729_vm8, %v4879_v63, %v4883_v33  ;;  %v5189_v42 = vmax.bf16 %v4874_v15, %v10357_v41  ;;  %v10402_v54 = vld [vmem:[#allocation2 + $0xa4] sm:$0x3]  ;;  %v10413_v40 = vld [vmem:[#allocation2 + $0xc0] sm:$0xf] }
 0x387   : > { %v5191_v27 = vmax.bf16 %v4889_v19, %v4491_v21  ;;  %v5663_v0 = vsel %vm8160_vm5, %v5661_v10, %v5662_v26  ;;  %v5190_v3 = vmax.bf16 %v4884_v58, %v4490_v31  ;;  %v7061_v16 = vcombine.low %v11483_v39, %v11482_v46  ;;  %v11485_v13 = vld [vmem:[#allocation6_spill] sm:$0xff] }
 0x388   : > { %6230 = vrot.lane.b32.xlu1 %v7087_v56, %s7539_s15  ;;  %v815_v44 = vpack.c.bf16 %v11485_v13, %v11484_v1  ;;  %v7020_v8 = vrot.slane %v5189_v42, 9  ;;  %v4894_v21 = vshll.u32 %v4492_v23, 16  ;;  %v4900_v24 = vshll.u32 %v4493_v25, 16 }
 0x389   : > { %v5362_v41 = vrot.slane %v5191_v27, 5  ;;  %v5359_v20 = vrot.slane %v5190_v3, 5  ;;  %v4893_v28 = vrot.slane %v4891_v12, 4  ;;  %v4904_v32 = vshrl.u32 %v4493_v25, 16 }
 0x38a   : > { %5895 = vst.msk [vmem:[#allocation3 + $0x8] sm:$0xff] %vm5893_vm0, %v815_v44  ;;  %v4910_v31 = vshll.u32 %v10402_v54, 16  ;;  %v4896_v49 = vrot.slane %v4894_v21, 5  ;;  %v4902_v36 = vrot.slane %v4900_v24, 5  ;;  %v4914_v33 = vshrl.u32 %v10402_v54, 16 }
 0x38b   : > { %6008 = vst.msk [vmem:[#allocation3 + $0x8] sm:$0xff] %vm6006_vm6, %v5961_v57  ;;  %v7041_v37 = vrot.slane %v5506_v35, 10  ;;  %v5360_v18 = vsel %vm7864_vm14, %v7020_v8, %v5359_v20  ;;  %v5361_v11 = vrot.slane %v5359_v20, 4  ;;  %v4906_v22 = vrot.slane %v4904_v32, 4  ;;  %v2854_v35 = vld [vmem:[#allocation2 + $0xc4] sm:$0xf] }
 0x38c   : > { %5984 = vrot.lane.b32.xlu1 %v7061_v16, %s7537_s13  ;;  %v4912_v45 = vrot.slane %v4910_v31, 5  ;;  %v5477_v6 = vmax.bf16 %v5360_v18, %v5189_v42  ;;  %v4897_v26 = vor.u32 %v4896_v49, %v4893_v28  ;;  %v4916_v59 = vrot.slane %v4914_v33, 4  ;;  %v2855_v20 = vld [vmem:[#allocation2 + $0xc8] sm:$0x3]  ;;  %v3861_v49 = vld [vmem:[#allocation2 + $0xc0] sm:$0xc] }
 0x38d   : > { %v5666_v7 = vrot.slane %v4493_v25, 6  ;;  %v5363_v63 = vsel %vm7864_vm14, %v5361_v11, %v5362_v41  ;;  %v4907_v19 = vor.u32 %v4906_v22, %v4902_v36  ;;  %v5669_v10 = vrot.slane %v10402_v54, 6 }
 0x38e   : > { %v3330_v56 = vshrl.u32 %v10413_v40, 16  ;;  %v5478_v15 = vmax.bf16 %v5363_v63, %v5190_v3  ;;  %v10422_v58 = vmax.bf16 %v5660_v60, %v5477_v6  ;;  %v4898_v27 = vrot.slane %v4897_v26, 4 }
 0x38f   : > { %v4917_v46 = vor.u32 %v4916_v59, %v4912_v45  ;;  %v4908_v39 = vrot.slane %v4907_v19, 4  ;;  %v5667_v42 = vsel %vm8160_vm5, %v7041_v37, %v5666_v7  ;;  %v5668_v16 = vrot.slane %v5666_v7, 4 }
 0x390   : > { %v3332_v1 = vrot.slane %v3330_v56, 4  ;;  %v10426_v13 = vmax.bf16 %v5663_v0, %v5478_v15  ;;  %v5877_v44 = vmax.bf16 %v5845_v51, %v10422_v58  ;;  %v4903_v57 = vsel %vm7729_vm8, %v4898_v27, %v4902_v36 }
 0x391   : > { %v4918_v12 = vrot.slane %v4917_v46, 4  ;;  %v4913_v60 = vsel %vm7729_vm8, %v4908_v39, %v4912_v45  ;;  %v5192_v3 = vmax.bf16 %v4903_v57, %v4492_v23  ;;  %v5670_v8 = vsel %vm8160_vm5, %v5668_v16, %v5669_v10 }
 0x392   : > { %v10437_v41 = vmax.bf16 %v10422_v58, %v10375_v5  ;;  %v5878_v0 = vmax.bf16 %v5846_v48, %v10426_v13  ;;  %v5193_v21 = vmax.bf16 %v4913_v60, %v4493_v25  ;;  %v10443_v24 = vmax.bf16 %v10426_v13, %v10377_v55 }
 0x393   : > { %v5194_v51 = vmax.bf16 %v4918_v12, %v10402_v54  ;;  %v7021_v28 = vrot.slane %v5192_v3, 9  ;;  %v3333_v32 = vshll.u32 %v10413_v40, 16  ;;  %v3339_v31 = vshll.u32 %v2854_v35, 16 }
 0x394   : > { %v5847_v23 = vmax.bf16 %v10437_v41, %v10345_v61  ;;  %v7088_v5 = vcombine.low %v5877_v44, %v5878_v0  ;;  %v5366_v36 = vrot.slane %v5193_v21, 5  ;;  %v5848_v48 = vmax.bf16 %v10443_v24, %v10351_v53 }
 0x395   : > { %v5369_v33 = vrot.slane %v5194_v51, 5  ;;  %v3335_v25 = vrot.slane %v3333_v32, 5  ;;  %v3341_v54 = vrot.slane %v3339_v31, 5  ;;  %v3343_v37 = vshrl.u32 %v2854_v35, 16  ;;  %v11487_v32 = vld [vmem:[#allocation11_spill] sm:$0xff] }
 0x396   : > { %v3349_v55 = vshll.u32 %v2855_v20, 16  ;;  %6232 = vrot.lane.b32.xlu0 %v7088_v5, %s7539_s15  ;;  %v5367_v18 = vsel %vm7864_vm14, %v7021_v28, %v5366_v36  ;;  %v5368_v61 = vrot.slane %v5366_v36, 4  ;;  %v3353_v11 = vshrl.u32 %v2855_v20, 16  ;;  %v10486_v5 = vld [vmem:[#allocation2 + $0xd4] sm:$0x3] }
 0x397   : > { %v7004_v22 = vrot.slane %v3861_v49, 10  ;;  %v5479_v45 = vmax.bf16 %v5367_v18, %v5192_v3  ;;  %v3336_v6 = vor.u32 %v3335_v25, %v3332_v1  ;;  %v3345_v26 = vrot.slane %v3343_v37, 4  ;;  %v5963_v49 = vpop.permute.xlu0 %5962 }
 0x398   : > { %v3351_v59 = vrot.slane %v3349_v55, 5  ;;  %v5370_v7 = vsel %vm7864_vm14, %v5368_v61, %v5369_v33  ;;  %v3355_v53 = vrot.slane %v3353_v11, 4  ;;  %v4039_v63 = vrot.slane %v2854_v35, 6  ;;  %v10495_v61 = vld [vmem:[#allocation2 + $0xd8] sm:$0xf] }
 0x399   : > { %v4042_v19 = vrot.slane %v2855_v20, 6  ;;  %v5480_v10 = vmax.bf16 %v5370_v7, %v5193_v21  ;;  %v10455_v56 = vmax.bf16 %v5667_v42, %v5479_v45  ;;  %v3337_v15 = vrot.slane %v3336_v6, 4 }
 0x39a   : > { %v3346_v27 = vor.u32 %v3345_v26, %v3341_v54  ;;  %v3356_v46 = vor.u32 %v3355_v53, %v3351_v59  ;;  %v4040_v39 = vsel %vm8160_vm5, %v7004_v22, %v4039_v63  ;;  %v4041_v16 = vrot.slane %v4039_v63, 4 }
 0x39b   : > { %v10461_v1 = vmax.bf16 %v10329_v9, %v10255_v14  ;;  %v10463_v44 = vmax.bf16 %v5670_v8, %v5480_v10  ;;  %v5879_v57 = vmax.bf16 %v5847_v23, %v10455_v56  ;;  %v3342_v12 = vsel %vm7729_vm8, %v3337_v15, %v3341_v54  ;;  %v10475_v14 = vld [vmem:[#allocation2 + $0xcc] sm:$0xf]  ;;  %v10477_v8 = vld [vmem:[#allocation2 + $0xd0] sm:$0xf] }
 0x39c   : > { %v3347_v42 = vrot.slane %v3346_v27, 4  ;;  %v3357_v60 = vrot.slane %v3356_v46, 4  ;;  %v3553_v3 = vmax.bf16 %v3342_v12, %v10413_v40  ;;  %v4043_v0 = vsel %vm8160_vm5, %v4041_v16, %v4042_v19  ;;  %v11486_v40 = vld [vmem:[#allocation9_spill] sm:$0xff] }
 0x39d   : > { %v10473_v21 = vmax.bf16 %v10334_v29, %v10261_v62  ;;  %v5880_v51 = vmax.bf16 %v5848_v48, %v10463_v44  ;;  %v4205_v23 = vmax.bf16 %v10461_v1, %v10238_v34  ;;  %v816_v31 = vpack.c.bf16 %v11487_v32, %v11486_v40 }
 0x39e   : > { %v3352_v28 = vsel %vm7729_vm8, %v3347_v42, %v3351_v59  ;;  %v3555_v36 = vmax.bf16 %v3357_v60, %v2855_v20  ;;  %v6984_v33 = vrot.slane %v3553_v3, 9  ;;  %v3359_v48 = vshrl.u32 %v10475_v14, 16  ;;  %v10517_v60 = vld [vmem:[#allocation2 + $0xe0] sm:$0x3] }
 0x39f   : > { %v3554_v62 = vmax.bf16 %v3352_v28, %v2854_v35  ;;  %v4206_v25 = vmax.bf16 %v10473_v21, %v10242_v47  ;;  %v7089_v54 = vcombine.low %v5879_v57, %v5880_v51  ;;  %5896 = vst.msk [vmem:[#allocation3 + $0x10] sm:$0xff] %vm5893_vm0, %v816_v31  ;;  %v3362_v37 = vshll.u32 %v10475_v14, 16  ;;  %v10500_v47 = vld [vmem:[#allocation2 + $0xdc] sm:$0xf]  ;;  %v2862_v28 = vld [vmem:[#allocation2 + $0xe4] sm:$0xf] }
 0x3a0   : > { %v3368_v34 = vshll.u32 %v10477_v8, 16  ;;  %v3742_v18 = vrot.slane %v3555_v36, 5  ;;  %6009 = vst.msk [vmem:[#allocation3 + $0x10] sm:$0xff] %vm6006_vm6, %v5963_v49  ;;  %v3372_v35 = vshrl.u32 %v10477_v8, 16  ;;  %v3378_v20 = vshll.u32 %v10486_v5, 16 }
 0x3a1   : > { %v3739_v55 = vrot.slane %v3554_v62, 5  ;;  %6234 = vrot.lane.b32.xlu1 %v7089_v54, %s7539_s15  ;;  %v3361_v11 = vrot.slane %v3359_v48, 4  ;;  %v3364_v22 = vrot.slane %v3362_v37, 5  ;;  %v3382_v6 = vshrl.u32 %v10486_v5, 16 }
 0x3a2   : > { %v10502_v45 = vrot.slane %v3368_v34, 5  ;;  %v3374_v7 = vrot.slane %v3372_v35, 4  ;;  %v10507_v53 = vrot.slane %v3378_v20, 5  ;;  %v3388_v15 = vshrl.u32 %v10495_v61, 16  ;;  %v10533_v35 = vld [vmem:[#allocation2 + $0xe8] sm:$0xf] }
 0x3a3   : > { %v3740_v26 = vsel %vm7864_vm14, %v6984_v33, %v3739_v55  ;;  %v3741_v59 = vrot.slane %v3739_v55, 4  ;;  %v3365_v19 = vor.u32 %v3364_v22, %v3361_v11  ;;  %v3384_v10 = vrot.slane %v3382_v6, 4 }
 0x3a4   : > { %v3837_v63 = vmax.bf16 %v3740_v26, %v3553_v3  ;;  %v3375_v46 = vor.u32 %v3374_v7, %v10502_v45  ;;  %v3391_v16 = vshll.u32 %v10495_v61, 16  ;;  %v3397_v57 = vshll.u32 %v10500_v47, 16  ;;  %v10536_v7 = vld [vmem:[#allocation2 + $0xec] sm:$0x3] }
 0x3a5   : > { %v3743_v27 = vsel %vm7864_vm14, %v3741_v59, %v3742_v18  ;;  %v3366_v51 = vrot.slane %v3365_v19, 4  ;;  %v3385_v3 = vor.u32 %v3384_v10, %v10507_v53  ;;  %v3390_v32 = vrot.slane %v3388_v15, 4 }
 0x3a6   : > { %v3838_v12 = vmax.bf16 %v3743_v27, %v3554_v62  ;;  %v10515_v42 = vmax.bf16 %v4040_v39, %v3837_v63  ;;  %v3376_v40 = vrot.slane %v3375_v46, 4  ;;  %v3393_v31 = vrot.slane %v3391_v16, 5 }
 0x3a7   : > { %v3399_v49 = vrot.slane %v3397_v57, 5  ;;  %v3371_v62 = vsel %vm7729_vm8, %v3366_v51, %v10502_v45  ;;  %v3386_v39 = vrot.slane %v3385_v3, 4  ;;  %v3401_v37 = vshrl.u32 %v10500_v47, 16 }
 0x3a8   : > { %v10520_v36 = vmax.bf16 %v4043_v0, %v3838_v12  ;;  %v4237_v33 = vmax.bf16 %v4205_v23, %v10515_v42  ;;  %v3381_v54 = vsel %vm7729_vm8, %v3376_v40, %v10507_v53  ;;  %v3394_v48 = vor.u32 %v3393_v31, %v3390_v32 }
 0x3a9   : > { %v3407_v34 = vshll.u32 %v10517_v60, 16  ;;  %v3411_v18 = vshrl.u32 %v10517_v60, 16  ;;  %v3417_v23 = vshrl.u32 %v2862_v28, 16  ;;  %v3403_v11 = vrot.slane %v3401_v37, 4 }
 0x3aa   : > { %v4238_v55 = vmax.bf16 %v4206_v25, %v10520_v36  ;;  %v4337_v0 = vrot.slane %v4237_v33, 7  ;;  %v3395_v20 = vrot.slane %v3394_v48, 4  ;;  %v3420_v45 = vshll.u32 %v2862_v28, 16 }
 0x3ab   : > { %v3409_v22 = vrot.slane %v3407_v34, 5  ;;  %v3413_v53 = vrot.slane %v3411_v18, 4  ;;  %v3404_v63 = vor.u32 %v3403_v11, %v3399_v49  ;;  %v3419_v19 = vrot.slane %v3417_v23, 4 }
 0x3ac   : > { %v4339_v6 = vrot.slane %v4238_v55, 7  ;;  %v7076_v26 = vcombine.low %v4237_v33, %v4238_v55  ;;  %v4338_v59 = vrot.slane %v4337_v0, 4  ;;  %4441 = vst.msk [vmem:[#allocation2 + $0xa8] sm:$0xe] %vm1099_vm13, %v4337_v0  ;;  %v3400_v25 = vsel %vm7729_vm8, %v3395_v20, %v3399_v49 }
 0x3ad   : > { %v3422_v10 = vrot.slane %v3420_v45, 5  ;;  %v3414_v46 = vor.u32 %v3413_v53, %v3409_v22  ;;  %v3426_v16 = vshll.u32 %v10533_v35, 16  ;;  %v3405_v57 = vrot.slane %v3404_v63, 4 }
 0x3ae   : > { %v4341_v15 = vrot.slane %v4339_v6, 4  ;;  %6095 = vrot.lane.b32.xlu0 %v7076_v26, %s7538_s14  ;;  %v4340_v27 = vsel %vm7903_vm15, %v4338_v59, %v4339_v6  ;;  %v3430_v51 = vshrl.u32 %v10533_v35, 16  ;;  %v3436_v3 = vshll.u32 %v10536_v7, 16 }
 0x3af   : > { %4442 = vst.msk [vmem:[#allocation2 + $0xac] sm:$0xf] %vm830_vm2, %v4340_v27  ;;  %v3423_v12 = vor.u32 %v3422_v10, %v3419_v19  ;;  %v3415_v40 = vrot.slane %v3414_v46, 4  ;;  %v3428_v32 = vrot.slane %v3426_v16, 5  ;;  %v3440_v31 = vshrl.u32 %v10536_v7, 16 }
 0x3b0   : > { %4443 = vst.msk [vmem:[#allocation2 + $0xb0] sm:$0x1] %vm845_vm3, %v4341_v15  ;;  %v10550_v49 = vmax.bf16 %v3371_v62, %v10475_v14  ;;  %v3410_v33 = vsel %vm7729_vm8, %v3405_v57, %v3409_v22  ;;  %v3432_v37 = vrot.slane %v3430_v51, 4  ;;  %v3438_v34 = vrot.slane %v3436_v3, 5  ;;  %v3862_v10 = vld [vmem:[#allocation2 + $0xcc] sm:$0xc] }
 0x3b1   : > { %v3424_v48 = vrot.slane %v3423_v12, 4  ;;  %v3442_v55 = vrot.slane %v3440_v31, 4  ;;  %v3557_v0 = vmax.bf16 %v3381_v54, %v10477_v8  ;;  %v3558_v18 = vmax.bf16 %v3386_v39, %v10486_v5  ;;  %v3863_v3 = vld [vmem:[#allocation2 + $0xd8] sm:$0xc] }
 0x3b2   : > { %v3559_v23 = vmax.bf16 %v3400_v25, %v10495_v61  ;;  %v3433_v11 = vor.u32 %v3432_v37, %v3428_v32  ;;  %v3560_v14 = vmax.bf16 %v3410_v33, %v10500_v47  ;;  %v3561_v62 = vmax.bf16 %v3415_v40, %v10517_v60 }
 0x3b3   : > { %v3429_v20 = vsel %vm7729_vm8, %v3424_v48, %v3428_v32  ;;  %v3443_v45 = vor.u32 %v3442_v55, %v3438_v34  ;;  %v6985_v6 = vrot.slane %v10550_v49, 9  ;;  %v3746_v26 = vrot.slane %v3557_v0, 5  ;;  %v3864_v55 = vld [vmem:[#allocation2 + $0xe4] sm:$0xc] }
 0x3b4   : > { %v3562_v22 = vmax.bf16 %v3429_v20, %v2862_v28  ;;  %v3434_v59 = vrot.slane %v3433_v11, 4  ;;  %v3749_v53 = vrot.slane %v3558_v18, 5  ;;  %v6986_v54 = vrot.slane %v3559_v23, 9 }
 0x3b5   : > { %v3753_v63 = vrot.slane %v3560_v14, 5  ;;  %v3444_v39 = vrot.slane %v3443_v45, 4  ;;  %v3747_v61 = vsel %vm7864_vm14, %v6985_v6, %v3746_v26  ;;  %v3748_v25 = vrot.slane %v3746_v26, 4  ;;  %v10583_v26 = vpop.permute.xlu1 %5964 }
 0x3b6   : > { %v3756_v19 = vrot.slane %v3561_v62, 5  ;;  %v3439_v15 = vsel %vm7729_vm8, %v3434_v59, %v3438_v34  ;;  %v6987_v46 = vrot.slane %v3562_v22, 9  ;;  %v3839_v51 = vmax.bf16 %v3747_v61, %v10550_v49 }
 0x3b7   : > { %v3754_v28 = vsel %vm7864_vm14, %v6986_v54, %v3753_v63  ;;  %v3755_v27 = vrot.slane %v3753_v63, 4  ;;  %v3563_v16 = vmax.bf16 %v3439_v15, %v10533_v35  ;;  %v3564_v57 = vmax.bf16 %v3444_v39, %v10536_v7 }
 0x3b8   : > { %v3750_v12 = vsel %vm7864_vm14, %v3748_v25, %v3749_v53  ;;  %v3841_v31 = vmax.bf16 %v3754_v28, %v3559_v23  ;;  %v7005_v33 = vrot.slane %v3862_v10, 10  ;;  %v4046_v18 = vrot.slane %v10477_v8, 6 }
 0x3b9   : > { %v3757_v40 = vsel %vm7864_vm14, %v3755_v27, %v3756_v19  ;;  %v3840_v32 = vmax.bf16 %v3750_v12, %v3557_v0  ;;  %v3760_v48 = vrot.slane %v3563_v16, 5  ;;  %v3763_v37 = vrot.slane %v3564_v57, 5  ;;  %v10597_v28 = vpop.permute.xlu1 %5968 }
 0x3ba   : > { %v3842_v34 = vmax.bf16 %v3757_v40, %v3560_v14  ;;  %v4049_v20 = vrot.slane %v10486_v5, 6  ;;  %v7006_v11 = vrot.slane %v3863_v3, 10  ;;  %v4053_v62 = vrot.slane %v10500_v47, 6 }
 0x3bb   : > { %v4056_v49 = vrot.slane %v10517_v60, 6  ;;  %v3761_v45 = vsel %vm7864_vm14, %v6987_v46, %v3760_v48  ;;  %v3762_v6 = vrot.slane %v3760_v48, 4  ;;  %v4047_v0 = vsel %vm8160_vm5, %v7005_v33, %v4046_v18 }
 0x3bc   : > { %v4048_v23 = vrot.slane %v4046_v18, 4  ;;  %v3843_v14 = vmax.bf16 %v3761_v45, %v3562_v22  ;;  %v4054_v8 = vsel %vm8160_vm5, %v7006_v11, %v4053_v62  ;;  %v4055_v5 = vrot.slane %v4053_v62, 4  ;;  %v10627_v11 = vpop.permute.xlu0 %5966 }
 0x3bd   : > { %v7007_v59 = vrot.slane %v3864_v55, 10  ;;  %v3764_v47 = vsel %vm7864_vm14, %v3762_v6, %v3763_v37  ;;  %v4060_v53 = vrot.slane %v10533_v35, 6  ;;  %v4063_v54 = vrot.slane %v10536_v7, 6  ;;  %v10614_v37 = vpop.permute.xlu1 %5972 }
 0x3be   : > { %v4050_v60 = vsel %vm8160_vm5, %v4048_v23, %v4049_v20  ;;  %v3844_v63 = vmax.bf16 %v3764_v47, %v3563_v16  ;;  %v4057_v39 = vsel %vm8160_vm5, %v4055_v5, %v4056_v49  ;;  %v4139_v22 = vmax.bf16 %v4047_v0, %v3839_v51  ;;  %v10604_v16 = vld [vmem:[#allocation2 + $0xa8] sm:$0xf] }
 0x3bf   : > { %v4140_v61 = vmax.bf16 %v4050_v60, %v3840_v32  ;;  %v4061_v25 = vsel %vm8160_vm5, %v7007_v59, %v4060_v53  ;;  %v4062_v19 = vrot.slane %v4060_v53, 4  ;;  %v4141_v10 = vmax.bf16 %v4054_v8, %v3841_v31  ;;  %v10638_v53 = vld [vmem:[#allocation2 + $0xb0] sm:$0x3] }
 0x3c0   : > { %v4142_v15 = vmax.bf16 %v4057_v39, %v3842_v34  ;;  %v4143_v27 = vmax.bf16 %v4061_v25, %v3843_v14  ;;  %v4175_v35 = vmax.bf16 %v10515_v42, %v10329_v9  ;;  %v4176_v7 = vmax.bf16 %v10520_v36, %v10334_v29  ;;  %v5507_v25 = vld [vmem:[#allocation2 + $0xa8] sm:$0xc] }
 0x3c1   : > { %v4177_v46 = vmax.bf16 %v4139_v22, %v10515_v42  ;;  %v4064_v57 = vsel %vm8160_vm5, %v4062_v19, %v4063_v54  ;;  %v4178_v12 = vmax.bf16 %v4140_v61, %v10520_v36  ;;  %v4179_v51 = vmax.bf16 %v4141_v10, %v4139_v22  ;;  %v10633_v5 = vpop.permute.xlu1 %5976  ;;  %v10642_v19 = vpop.permute.xlu0 %5970 }
 0x3c2   : > { %v4180_v3 = vmax.bf16 %v4142_v15, %v4140_v61  ;;  %v4144_v40 = vmax.bf16 %v4064_v57, %v3844_v63  ;;  %v4207_v32 = vmax.bf16 %v4175_v35, %v10298_v43  ;;  %v4208_v31 = vmax.bf16 %v4176_v7, %v10307_v4 }
 0x3c3   : > { %v4209_v9 = vmax.bf16 %v4177_v46, %v10461_v1  ;;  %v4210_v29 = vmax.bf16 %v4178_v12, %v10473_v21  ;;  %v4211_v33 = vmax.bf16 %v4179_v51, %v4175_v35  ;;  %v4920_v48 = vshrl.u32 %v10604_v16, 16  ;;  %v10625_v1 = vld [vmem:[#allocation2 + $0xac] sm:$0xf] }
 0x3c4   : > { %v4212_v42 = vmax.bf16 %v4180_v3, %v4176_v7  ;;  %v4239_v34 = vmax.bf16 %v4207_v32, %v4139_v22  ;;  %v4240_v55 = vmax.bf16 %v4208_v31, %v4140_v61  ;;  %v4923_v18 = vshll.u32 %v10604_v16, 16 }
 0x3c5   : > { %v10616_v36 = vmax.bf16 %v4209_v9, %v4141_v10  ;;  %v10619_v20 = vmax.bf16 %v4210_v29, %v4142_v15  ;;  %v10621_v43 = vmax.bf16 %v4211_v33, %v4143_v27  ;;  %v4922_v21 = vrot.slane %v4920_v48, 4  ;;  %v10667_v33 = vpop.permute.xlu0 %5974 }
 0x3c6   : > { %v10623_v4 = vmax.bf16 %v4212_v42, %v4144_v40  ;;  %v4344_v62 = vrot.slane %v4240_v55, 7  ;;  %v7077_v49 = vcombine.low %v4239_v34, %v4240_v55  ;;  %v4342_v45 = vrot.slane %v4239_v34, 7  ;;  %v10669_v42 = vpop.permute.xlu1 %6071 }
 0x3c7   : > { %v4347_v6 = vrot.slane %v10616_v36, 7  ;;  %v4349_v0 = vrot.slane %v10619_v20, 7  ;;  %v4352_v23 = vrot.slane %v10621_v43, 7  ;;  %v4925_v8 = vrot.slane %v4923_v18, 5 }
 0x3c8   : > { %v4354_v14 = vrot.slane %v10623_v4, 7  ;;  %v4346_v59 = vrot.slane %v4344_v62, 4  ;;  %6097 = vrot.lane.b32.xlu1 %v7077_v49, %s7538_s14  ;;  %v4343_v47 = vrot.slane %v4342_v45, 4  ;;  %4444 = vst.msk [vmem:[#allocation2 + $0xb4] sm:$0xe] %vm1099_vm13, %v4342_v45  ;;  %v4929_v54 = vshll.u32 %v10625_v1, 16 }
 0x3c9   : > { %v4348_v60 = vrot.slane %v4347_v6, 4  ;;  %4447 = vst.msk [vmem:[#allocation2 + $0xc0] sm:$0xe] %vm1099_vm13, %v4347_v6  ;;  %v4351_v63 = vrot.slane %v4349_v0, 4  ;;  %v4353_v39 = vrot.slane %v4352_v23, 4  ;;  %v4926_v61 = vor.u32 %v4925_v8, %v4922_v21  ;;  %v11488_v49 = vld [vmem:[#allocation8_spill] sm:$0xff] }
 0x3ca   : > { %v4356_v22 = vrot.slane %v4354_v14, 4  ;;  %4450 = vst.msk [vmem:[#allocation2 + $0xcc] sm:$0xe] %vm1099_vm13, %v4352_v23  ;;  %v4345_v10 = vsel %vm7903_vm15, %v4343_v47, %v4344_v62  ;;  %v4931_v27 = vrot.slane %v4929_v54, 5  ;;  %v4933_v35 = vshrl.u32 %v10625_v1, 16  ;;  %v11489_v45 = vld [vmem:[#allocation10_spill] sm:$0xff] }
 0x3cb   : > { %4446 = vst.msk [vmem:[#allocation2 + $0xbc] sm:$0x1] %vm845_vm3, %v4346_v59  ;;  %v4350_v15 = vsel %vm7903_vm15, %v4348_v60, %v4349_v0  ;;  %v4355_v7 = vsel %vm7903_vm15, %v4353_v39, %v4354_v14  ;;  %4449 = vst.msk [vmem:[#allocation2 + $0xc8] sm:$0x1] %vm845_vm3, %v4351_v63  ;;  %v4927_v46 = vrot.slane %v4926_v61, 4  ;;  %v4939_v57 = vshll.u32 %v10638_v53, 16  ;;  %v10689_v39 = vpop.permute.xlu0 %6075 }
 0x3cc   : > { %4452 = vst.msk [vmem:[#allocation2 + $0xd4] sm:$0x1] %vm845_vm3, %v4356_v22  ;;  %v4943_v12 = vshrl.u32 %v10638_v53, 16  ;;  %v4935_v51 = vrot.slane %v4933_v35, 4  ;;  %v7042_v3 = vrot.slane %v5507_v25, 10  ;;  %v5673_v50 = vrot.slane %v10625_v1, 6 }
 0x3cd   : > { %4445 = vst.msk [vmem:[#allocation2 + $0xb8] sm:$0xf] %vm830_vm2, %v4345_v10  ;;  %4448 = vst.msk [vmem:[#allocation2 + $0xc4] sm:$0xf] %vm830_vm2, %v4350_v15  ;;  %v5676_v40 = vrot.slane %v10638_v53, 6  ;;  %v4932_v32 = vsel %vm7729_vm8, %v4927_v46, %v4931_v27  ;;  %v4941_v31 = vrot.slane %v4939_v57, 5  ;;  %v10665_v29 = vmax.bf16 %v10455_v56, %v10422_v58  ;;  %v10701_v57 = vpop.permute.xlu1 %6073 }
 0x3ce   : > { %4451 = vst.msk [vmem:[#allocation2 + $0xd0] sm:$0xf] %vm830_vm2, %v4355_v7  ;;  %v4945_v9 = vrot.slane %v4943_v12, 4  ;;  %v4936_v48 = vor.u32 %v4935_v51, %v4931_v27  ;;  %v5195_v34 = vmax.bf16 %v4932_v32, %v10604_v16  ;;  %v5675_v55 = vrot.slane %v5673_v50, 4  ;;  %v11490_v59 = vld [vmem:[#allocation44_spill] sm:$0xff]  ;;  %v11491_v47 = vld [vmem:[#allocation43_spill] sm:$0xff] }
 0x3cf   : > { %v5674_v21 = vsel %vm8160_vm5, %v7042_v3, %v5673_v50  ;;  %v10676_v62 = vmax.bf16 %v10463_v44, %v10426_v13  ;;  %v817_v58 = vpack.c.bf16 %v11489_v45, %v11488_v49  ;;  %v4498_v6 = vld [vmem:[#allocation2 + $0xb4] sm:$0xf]  ;;  %v5849_v16 = vmax.bf16 %v10665_v29, %v10383_v52 }
 0x3d0   : > { %v4946_v18 = vor.u32 %v4945_v9, %v4941_v31  ;;  %v4937_v0 = vrot.slane %v4936_v48, 4  ;;  %v7022_v23 = vrot.slane %v5195_v34, 9  ;;  %v5677_v14 = vsel %vm8160_vm5, %v5675_v55, %v5676_v40  ;;  %v5508_v15 = vld [vmem:[#allocation2 + $0xb4] sm:$0xc] }
 0x3d1   : > { %5897 = vst.msk [vmem:[#allocation3 + $0x18] sm:$0xff] %vm5893_vm0, %v817_v58  ;;  %v7062_v60 = vcombine.low %v11491_v47, %v11490_v59  ;;  %v4949_v54 = vshrl.u32 %v4498_v6, 16  ;;  %v4952_v63 = vshll.u32 %v4498_v6, 16  ;;  %v5850_v61 = vmax.bf16 %v10676_v62, %v10387_v2 }
 0x3d2   : > { %v4947_v8 = vrot.slane %v4946_v18, 4  ;;  %v10687_v13 = vld [vmem:[#allocation2 + $0xbc] sm:$0x3]  ;;  %v4942_v22 = vsel %vm7729_vm8, %v4937_v0, %v4941_v31  ;;  %6010 = vst.msk [vmem:[#allocation3 + $0x18] sm:$0xff] %vm6006_vm6, %v10583_v26  ;;  %v7043_v40 = vrot.slane %v5508_v15, 10  ;;  %v10703_v31 = vpop.permute.xlu0 %6079  ;;  %v10710_v0 = vpop.permute.xlu1 %6077  ;;  %vm6119_vm2 = vcmask 48160  }
 0x3d3   : > { %v4968_v25 = vshll.u32 %v10687_v13, 16  ;;  %v4972_v10 = vshrl.u32 %v10687_v13, 16  ;;  %v5196_v27 = vmax.bf16 %v4942_v22, %v10625_v1  ;;  %v4951_v7 = vrot.slane %v4949_v54, 4  ;;  %v10705_v18 = vld [vmem:[#allocation2 + $0xc0] sm:$0xf]  ;;  %v11492_v15 = vld [vmem:[#allocation13_spill] sm:$0xff] }
 0x3d4   : > { %v4499_v52 = vld [vmem:[#allocation2 + $0xb8] sm:$0xf]  ;;  %v5197_v35 = vmax.bf16 %v4947_v8, %v10638_v53  ;;  %v4954_v46 = vrot.slane %v4952_v63, 5  ;;  %v5683_v58 = vrot.slane %v10687_v13, 6  ;;  %vm6264_vm3 = vcmask 64560   ;;  %6120 = vst.msk [vmem:[#allocation3] sm:$0xff] %vm6119_vm2, %v10669_v42 }
 0x3d5   : > { %v4958_v12 = vshll.u32 %v4499_v52, 16  ;;  %v4962_v51 = vshrl.u32 %v4499_v52, 16  ;;  %v4970_v2 = vrot.slane %v4968_v25, 5  ;;  %v4974_v3 = vrot.slane %v4972_v10, 4  ;;  %6121 = vst.msk [vmem:[#allocation3 + $0x8] sm:$0xff] %vm6119_vm2, %v10701_v57  ;;  %6122 = vst.msk [vmem:[#allocation3 + $0x10] sm:$0xff] %vm6119_vm2, %v10689_v39 }
 0x3d6   : > { %v5373_v50 = vrot.slane %v5196_v27, 5  ;;  %v4955_v26 = vor.u32 %v4954_v46, %v4951_v7  ;;  %v5680_v32 = vrot.slane %v4499_v52, 6  ;;  %v5376_v9 = vrot.slane %v5197_v35, 5  ;;  %v10721_v46 = vpop.permute.xlu0 %6083  ;;  %6123 = vst.msk [vmem:[#allocation3 + $0x18] sm:$0xff] %vm6119_vm2, %v10710_v0  ;;  %v11509_v42 = vld [vmem:[#allocation25_spill] sm:$0xff]  ;;  %v11511_v0 = vld [vmem:[#allocation24_spill] sm:$0xff] }
 0x3d7   : > { %v4960_v48 = vrot.slane %v4958_v12, 5  ;;  %v4964_v55 = vrot.slane %v4962_v51, 4  ;;  %v4975_v1 = vor.u32 %v4974_v3, %v4970_v2  ;;  %v4978_v7 = vshrl.u32 %v10705_v18, 16  ;;  %v11510_v39 = vld [vmem:[#allocation29_spill] sm:$0xff] }
 0x3d8   : > { %v5374_v53 = vsel %vm7864_vm14, %v7022_v23, %v5373_v50  ;;  %v5375_v49 = vrot.slane %v5373_v50, 4  ;;  %v4956_v45 = vrot.slane %v4955_v26, 4  ;;  %v5681_v22 = vsel %vm8160_vm5, %v7043_v40, %v5680_v32  ;;  %v11493_v23 = vld [vmem:[#allocation15_spill] sm:$0xff]  ;;  %v4502_v40 = vld [vmem:[#allocation2 + $0xc4] sm:$0xf] }
 0x3d9   : > { %v5481_v8 = vmax.bf16 %v5374_v53, %v5195_v34  ;;  %v4965_v54 = vor.u32 %v4964_v55, %v4960_v48  ;;  %v4976_v63 = vrot.slane %v4975_v1, 4  ;;  %v818_v35 = vpack.c.bf16 %v11493_v23, %v11492_v15  ;;  %v10728_v55 = vpop.permute.xlu1 %6081 }
 0x3da   : > { %v5377_v25 = vsel %vm7864_vm14, %v5375_v49, %v5376_v9  ;;  %v4961_v10 = vsel %vm7729_vm8, %v4956_v45, %v4960_v48  ;;  %v5682_v26 = vrot.slane %v5680_v32, 4  ;;  %v4980_v9 = vrot.slane %v4978_v7, 4 }
 0x3db   : > { %v5482_v12 = vmax.bf16 %v5377_v25, %v5196_v27  ;;  %v10723_v34 = vmax.bf16 %v5674_v21, %v5481_v8  ;;  %v4966_v51 = vrot.slane %v4965_v54, 4  ;;  %v5198_v3 = vmax.bf16 %v4961_v10, %v4498_v6  ;;  %5898 = vst.msk [vmem:[#allocation3 + $0x20] sm:$0xff] %vm5893_vm0, %v818_v35  ;;  %v10737_v6 = vld [vmem:[#allocation2 + $0xc8] sm:$0x3] }
 0x3dc   : > { %v5200_v50 = vmax.bf16 %v4976_v63, %v10687_v13  ;;  %v4981_v48 = vshll.u32 %v10705_v18, 16  ;;  %6011 = vst.msk [vmem:[#allocation3 + $0x20] sm:$0xff] %vm6006_vm6, %v10627_v11  ;;  %v4987_v54 = vshll.u32 %v4502_v40, 16  ;;  %v4991_v63 = vshrl.u32 %v4502_v40, 16 }
 0x3dd   : > { %v10730_v1 = vmax.bf16 %v5677_v14, %v5482_v12  ;;  %v5881_v53 = vmax.bf16 %v5849_v16, %v10723_v34  ;;  %v4971_v21 = vsel %vm7729_vm8, %v4966_v51, %v4970_v2  ;;  %v7023_v27 = vrot.slane %v5198_v3, 9  ;;  %v10743_v14 = vpop.permute.xlu0 %6216  ;;  %v10753_v15 = vpop.permute.xlu1 %6085  ;;  %6124 = vst.msk [vmem:[#allocation3 + $0x20] sm:$0xff] %vm6119_vm2, %v10703_v31 }
 0x3de   : > { %v5199_v32 = vmax.bf16 %v4971_v21, %v4499_v52  ;;  %v5383_v49 = vrot.slane %v5200_v50, 5  ;;  %v10741_v45 = vmax.bf16 %v10723_v34, %v10455_v56  ;;  %v4983_v8 = vrot.slane %v4981_v48, 5  ;;  %v5509_v56 = vld [vmem:[#allocation2 + $0xc0] sm:$0xc]  ;;  %6265 = vst.msk [vmem:[#allocation3] sm:$0xff] %vm6264_vm3, %v10743_v14  ;;  %v11514_v14 = vld [vmem:[#allocation33_spill] sm:$0xff] }
 0x3df   : > { %v5882_v16 = vmax.bf16 %v5850_v61, %v10730_v1  ;;  %v10748_v2 = vmax.bf16 %v10730_v1, %v10463_v44  ;;  %v4997_v10 = vshll.u32 %v10737_v6, 16  ;;  %v4989_v35 = vrot.slane %v4987_v54, 5 }
 0x3e0   : > { %v5380_v11 = vrot.slane %v5199_v32, 5  ;;  %v5851_v52 = vmax.bf16 %v10741_v45, %v10437_v41  ;;  %v4984_v25 = vor.u32 %v4983_v8, %v4980_v9  ;;  %v4993_v7 = vrot.slane %v4991_v63, 4 }
 0x3e1   : > { %v7090_v23 = vcombine.low %v5881_v53, %v5882_v16  ;;  %v5852_v61 = vmax.bf16 %v10748_v2, %v10443_v24  ;;  %v4999_v50 = vrot.slane %v4997_v10, 5  ;;  %v5001_v48 = vshrl.u32 %v10737_v6, 16  ;;  %v10768_v54 = vpop.permute.xlu0 %6087 }
 0x3e2   : > { %v5381_v44 = vsel %vm7864_vm14, %v7023_v27, %v5380_v11  ;;  %v5382_v12 = vrot.slane %v5380_v11, 4  ;;  %v4985_v51 = vrot.slane %v4984_v25, 4  ;;  %v4994_v9 = vor.u32 %v4993_v7, %v4989_v35  ;;  %v10766_v27 = vpop.permute.xlu1 %6218  ;;  %v11495_v7 = vld [vmem:[#allocation26_spill] sm:$0xff] }
 0x3e3   : > { %6236 = vrot.lane.b32.xlu0 %v7090_v23, %s7539_s15  ;;  %v5483_v41 = vmax.bf16 %v5381_v44, %v5198_v3  ;;  %v7044_v21 = vrot.slane %v5509_v56, 10  ;;  %v5687_v8 = vrot.slane %v4502_v40, 6  ;;  %v5690_v16 = vrot.slane %v10737_v6, 6  ;;  %6266 = vst.msk [vmem:[#allocation3 + $0x8] sm:$0xff] %vm6264_vm3, %v10766_v27 }
 0x3e4   : > { %v5384_v53 = vsel %vm7864_vm14, %v5382_v12, %v5383_v49  ;;  %v4990_v24 = vsel %vm7729_vm8, %v4985_v51, %v4989_v35  ;;  %v4995_v3 = vrot.slane %v4994_v9, 4  ;;  %v5003_v25 = vrot.slane %v5001_v48, 4  ;;  %v11494_v35 = vld [vmem:[#allocation45_spill] sm:$0xff]  ;;  %v10801_v48 = vld [vmem:[#allocation2 + $0xd0] sm:$0xf] }
 0x3e5   : > { %v5484_v63 = vmax.bf16 %v5384_v53, %v5199_v32  ;;  %v10770_v11 = vmax.bf16 %v5681_v22, %v5483_v41  ;;  %v5684_v49 = vsel %vm8160_vm5, %v5682_v26, %v5683_v58  ;;  %v5201_v10 = vmax.bf16 %v4990_v24, %v10705_v18  ;;  %v10789_v26 = vld [vmem:[#allocation2 + $0xcc] sm:$0xf]  ;;  %v11497_v41 = vld [vmem:[#allocation14_spill] sm:$0xff] }
 0x3e6   : > { %v5688_v56 = vsel %vm8160_vm5, %v7044_v21, %v5687_v8  ;;  %v5689_v23 = vrot.slane %v5687_v8, 4  ;;  %v5000_v32 = vsel %vm7729_vm8, %v4995_v3, %v4999_v50  ;;  %v5004_v13 = vor.u32 %v5003_v25, %v4999_v50  ;;  %v11496_v50 = vld [vmem:[#allocation12_spill] sm:$0xff]  ;;  %v10812_v53 = vpop.permute.xlu1 %6089 }
 0x3e7   : > { %5986 = vrot.lane.b32.xlu0 %v7062_v60, %s7537_s13  ;;  %v10783_v22 = vmax.bf16 %v5684_v49, %v5484_v63  ;;  %v7063_v58 = vcombine.low %v11495_v7, %v11494_v35  ;;  %v5883_v18 = vmax.bf16 %v5851_v52, %v10770_v11  ;;  %v5202_v44 = vmax.bf16 %v5000_v32, %v4502_v40  ;;  %v10818_v63 = vld [vmem:[#allocation2 + $0xd4] sm:$0x3] }
 0x3e8   : > { %v7024_v12 = vrot.slane %v5201_v10, 9  ;;  %v10794_v51 = vmax.bf16 %v10770_v11, %v10723_v34  ;;  %v5005_v47 = vrot.slane %v5004_v13, 4  ;;  %v5691_v60 = vsel %vm8160_vm5, %v5689_v23, %v5690_v16 }
 0x3e9   : > { %v5884_v59 = vmax.bf16 %v5852_v61, %v10783_v22  ;;  %v819_v9 = vpack.c.bf16 %v11497_v41, %v11496_v50  ;;  %v5387_v21 = vrot.slane %v5202_v44, 5  ;;  %v10805_v40 = vmax.bf16 %v10783_v22, %v10730_v1  ;;  %v10810_v61 = vpop.permute.xlu0 %6220 }
 0x3ea   : > { %v5007_v52 = vshrl.u32 %v10789_v26, 16  ;;  %v5203_v8 = vmax.bf16 %v5005_v47, %v10737_v6  ;;  %v5853_v16 = vmax.bf16 %v10794_v51, %v10665_v29  ;;  %v5010_v1 = vshll.u32 %v10789_v26, 16  ;;  %6267 = vst.msk [vmem:[#allocation3 + $0x10] sm:$0xff] %vm6264_vm3, %v10810_v61  ;;  %v11516_v61 = vld [vmem:[#allocation32_spill] sm:$0xff] }
 0x3eb   : > { %v7091_v24 = vcombine.low %v5883_v18, %v5884_v59  ;;  %5899 = vst.msk [vmem:[#allocation3 + $0x28] sm:$0xff] %vm5893_vm0, %v819_v9  ;;  %v5388_v3 = vsel %vm7864_vm14, %v7024_v12, %v5387_v21  ;;  %v5389_v25 = vrot.slane %v5387_v21, 4  ;;  %v5016_v23 = vshll.u32 %v10801_v48, 16  ;;  %v5510_v59 = vld [vmem:[#allocation2 + $0xcc] sm:$0xc] }
 0x3ec   : > { %6012 = vst.msk [vmem:[#allocation3 + $0x28] sm:$0xff] %vm6006_vm6, %v10597_v28  ;;  %v5009_v49 = vrot.slane %v5007_v52, 4  ;;  %v5390_v6 = vrot.slane %v5203_v8, 5  ;;  %v5485_v29 = vmax.bf16 %v5388_v3, %v5201_v10  ;;  %v5012_v32 = vrot.slane %v5010_v1, 5 }
 0x3ed   : > { %6238 = vrot.lane.b32.xlu1 %v7091_v24, %s7539_s15  ;;  %v5020_v13 = vshrl.u32 %v10801_v48, 16  ;;  %v5854_v35 = vmax.bf16 %v10805_v40, %v10676_v62  ;;  %v5018_v7 = vrot.slane %v5016_v23, 5  ;;  %v5026_v18 = vshll.u32 %v10818_v63, 16  ;;  %v10837_v24 = vpop.permute.xlu0 %5978  ;;  %v10839_v62 = vpop.permute.xlu1 %6222  ;;  %6125 = vst.msk [vmem:[#allocation3 + $0x28] sm:$0xff] %vm6119_vm2, %v10728_v55 }
 0x3ee   : > { %v5030_v12 = vshrl.u32 %v10818_v63, 16  ;;  %v5391_v28 = vsel %vm7864_vm14, %v5389_v25, %v5390_v6  ;;  %v10834_v47 = vmax.bf16 %v5688_v56, %v5485_v29  ;;  %v5013_v50 = vor.u32 %v5012_v32, %v5009_v49  ;;  %v10846_v6 = vld [vmem:[#allocation2 + $0xd8] sm:$0xf]  ;;  %6268 = vst.msk [vmem:[#allocation3 + $0x18] sm:$0xff] %vm6264_vm3, %v10839_v62 }
 0x3ef   : > { %v5022_v41 = vrot.slane %v5020_v13, 4  ;;  %v5486_v10 = vmax.bf16 %v5391_v28, %v5202_v44  ;;  %v5028_v9 = vrot.slane %v5026_v18, 5  ;;  %v5694_v52 = vrot.slane %v10801_v48, 6  ;;  %v11498_v13 = vld [vmem:[#allocation17_spill] sm:$0xff]  ;;  %v11499_v18 = vld [vmem:[#allocation19_spill] sm:$0xff] }
 0x3f0   : > { %v5032_v21 = vrot.slane %v5030_v12, 4  ;;  %v5014_v8 = vrot.slane %v5013_v50, 4  ;;  %v7045_v3 = vrot.slane %v5510_v59, 10  ;;  %v5697_v25 = vrot.slane %v10818_v63, 6  ;;  %v4508_v50 = vld [vmem:[#allocation2 + $0xdc] sm:$0xf] }
 0x3f1   : > { %5988 = vrot.lane.b32.xlu1 %v7063_v58, %s7537_s13  ;;  %v5023_v1 = vor.u32 %v5022_v41, %v5018_v7  ;;  %v10843_v56 = vmax.bf16 %v5691_v60, %v5486_v10  ;;  %v5885_v49 = vmax.bf16 %v5853_v16, %v10834_v47  ;;  %v5696_v23 = vrot.slane %v5694_v52, 4 }
 0x3f2   : > { %v5033_v44 = vor.u32 %v5032_v21, %v5028_v9  ;;  %v5019_v29 = vsel %vm7729_vm8, %v5014_v8, %v5018_v7  ;;  %v10852_v58 = vmax.bf16 %v10834_v47, %v10770_v11  ;;  %v820_v12 = vpack.c.bf16 %v11499_v18, %v11498_v13  ;;  %v10878_v8 = vpop.permute.xlu0 %6224  ;;  %v5511_v13 = vld [vmem:[#allocation2 + $0xd8] sm:$0xc] }
 0x3f3   : > { %v5024_v32 = vrot.slane %v5023_v1, 4  ;;  %v5886_v60 = vmax.bf16 %v5854_v35, %v10843_v56  ;;  %v5204_v16 = vmax.bf16 %v5019_v29, %v10789_v26  ;;  %v5695_v28 = vsel %vm8160_vm5, %v7045_v3, %v5694_v52  ;;  %v10869_v35 = vld [vmem:[#allocation2 + $0xe0] sm:$0x3]  ;;  %6269 = vst.msk [vmem:[#allocation3 + $0x20] sm:$0xff] %vm6264_vm3, %v10878_v8  ;;  %v11517_v8 = vld [vmem:[#allocation36_spill] sm:$0xff] }
 0x3f4   : > { %v5034_v59 = vrot.slane %v5033_v44, 4  ;;  %v5698_v41 = vsel %vm8160_vm5, %v5696_v23, %v5697_v25  ;;  %v10866_v11 = vmax.bf16 %v10843_v56, %v10783_v22  ;;  %5900 = vst.msk [vmem:[#allocation3 + $0x30] sm:$0xff] %vm5893_vm0, %v820_v12  ;;  %v5036_v26 = vshrl.u32 %v10846_v6, 16  ;;  %v10880_v22 = vpop.permute.xlu1 %5980 }
 0x3f5   : > { %v5029_v7 = vsel %vm7729_vm8, %v5024_v32, %v5028_v9  ;;  %v7092_v10 = vcombine.low %v5885_v49, %v5886_v60  ;;  %v5855_v9 = vmax.bf16 %v10852_v58, %v10741_v45  ;;  %6013 = vst.msk [vmem:[#allocation3 + $0x30] sm:$0xff] %vm6006_vm6, %v10642_v19  ;;  %v7025_v1 = vrot.slane %v5204_v16, 9 }
 0x3f6   : > { %v5205_v21 = vmax.bf16 %v5029_v7, %v10801_v48  ;;  %v5206_v52 = vmax.bf16 %v5034_v59, %v10818_v63  ;;  %v5038_v3 = vrot.slane %v5036_v26, 4  ;;  %v5039_v25 = vshll.u32 %v10846_v6, 16  ;;  %6126 = vst.msk [vmem:[#allocation3 + $0x30] sm:$0xff] %vm6119_vm2, %v10721_v46 }
 0x3f7   : > { %v5045_v44 = vshll.u32 %v4508_v50, 16  ;;  %6240 = vrot.lane.b32.xlu0 %v7092_v10, %s7539_s15  ;;  %v5856_v63 = vmax.bf16 %v10866_v11, %v10748_v2  ;;  %v5049_v49 = vshrl.u32 %v4508_v50, 16  ;;  %v5055_v45 = vshll.u32 %v10869_v35, 16 }
 0x3f8   : > { %v5394_v48 = vrot.slane %v5205_v21, 5  ;;  %v5397_v23 = vrot.slane %v5206_v52, 5  ;;  %v5041_v19 = vrot.slane %v5039_v25, 5  ;;  %v5059_v32 = vshrl.u32 %v10869_v35, 16 }
 0x3f9   : > { %v5047_v29 = vrot.slane %v5045_v44, 5  ;;  %v5051_v60 = vrot.slane %v5049_v49, 4  ;;  %v5057_v59 = vrot.slane %v5055_v45, 5  ;;  %v5701_v34 = vrot.slane %v4508_v50, 6  ;;  %v10900_v49 = vpop.permute.xlu0 %6091 }
 0x3fa   : > { %v5395_v18 = vsel %vm7864_vm14, %v7025_v1, %v5394_v48  ;;  %v5396_v12 = vrot.slane %v5394_v48, 4  ;;  %v5042_v26 = vor.u32 %v5041_v19, %v5038_v3  ;;  %v5061_v10 = vrot.slane %v5059_v32, 4  ;;  %v10898_v48 = vpop.permute.xlu1 %6226  ;;  %11501 = vst [vmem:[#allocation42_spill] sm:$0xff] %v10900_v49 }
 0x3fb   : > { %v5487_v7 = vmax.bf16 %v5395_v18, %v5204_v16  ;;  %v11500_v2 = vcombine.low %v10616_v36, %v10619_v20  ;;  %v5052_v25 = vor.u32 %v5051_v60, %v5047_v29  ;;  %v7046_v44 = vrot.slane %v5511_v13, 10  ;;  %v11502_v18 = vld [vmem:[#allocation16_spill] sm:$0xff]  ;;  %v4510_v60 = vld [vmem:[#allocation2 + $0xe4] sm:$0xf]  ;;  %6270 = vst.msk [vmem:[#allocation3 + $0x28] sm:$0xff] %vm6264_vm3, %v10898_v48 }
 0x3fc   : > { %v5398_v52 = vsel %vm7864_vm14, %v5396_v12, %v5397_v23  ;;  %v7079_v1 = vcombine.low %v10621_v43, %v10623_v4  ;;  %v5043_v3 = vrot.slane %v5042_v26, 4  ;;  %v5062_v45 = vor.u32 %v5061_v10, %v5057_v59  ;;  %v11503_v23 = vld [vmem:[#allocation18_spill] sm:$0xff]  ;;  %v11518_v48 = vld [vmem:[#allocation40_spill] sm:$0xff] }
 0x3fd   : > { %6099 = vrot.lane.b32.xlu0 %v11500_v2, %s7538_s14  ;;  %v5488_v16 = vmax.bf16 %v5398_v52, %v5205_v21  ;;  %v5704_v19 = vrot.slane %v10869_v35, 6  ;;  %v10903_v32 = vmax.bf16 %v5695_v28, %v5487_v7  ;;  %v5053_v36 = vrot.slane %v5052_v25, 4  ;;  %v10926_v52 = vld [vmem:[#allocation2 + $0xec] sm:$0x3] }
 0x3fe   : > { %v5703_v20 = vrot.slane %v5701_v34, 4  ;;  %v821_v12 = vpack.c.bf16 %v11503_v23, %v11502_v18  ;;  %v5048_v43 = vsel %vm7729_vm8, %v5043_v3, %v5047_v29  ;;  %v5063_v4 = vrot.slane %v5062_v45, 4 }
 0x3ff   : > { %v10907_v13 = vmax.bf16 %v5698_v41, %v5488_v16  ;;  %v5887_v21 = vmax.bf16 %v5855_v9, %v10903_v32  ;;  %v5058_v26 = vsel %vm7729_vm8, %v5053_v36, %v5057_v59  ;;  %v5207_v28 = vmax.bf16 %v5048_v43, %v10846_v6  ;;  %v4511_v9 = vld [vmem:[#allocation2 + $0xe8] sm:$0xf] }
 0x400   : > { %v5702_v7 = vsel %vm8160_vm5, %v7046_v44, %v5701_v34  ;;  %5901 = vst.msk [vmem:[#allocation3 + $0x38] sm:$0xff] %vm5893_vm0, %v821_v12  ;;  %v5208_v10 = vmax.bf16 %v5058_v26, %v4508_v50  ;;  %v5209_v2 = vmax.bf16 %v5063_v4, %v10869_v35  ;;  %v5705_v29 = vsel %vm8160_vm5, %v5703_v20, %v5704_v19  ;;  %v10928_v44 = vpop.permute.xlu0 %6228  ;;  %v10930_v50 = vpop.permute.xlu1 %6093  ;;  %v5512_v26 = vld [vmem:[#allocation2 + $0xe4] sm:$0xc] }
 0x401   : > { %v5888_v41 = vmax.bf16 %v5856_v63, %v10907_v13  ;;  %6014 = vst.msk [vmem:[#allocation3 + $0x38] sm:$0xff] %vm6006_vm6, %v10614_v37  ;;  %v7026_v59 = vrot.slane %v5207_v28, 9  ;;  %v5825_v6 = vmax.bf16 %v10903_v32, %v10834_v47  ;;  %v5065_v34 = vshrl.u32 %v4510_v60, 16  ;;  %11504 = vst [vmem:[#allocation41_spill] sm:$0xff] %v10930_v50 }
 0x402   : > { %v5068_v25 = vshll.u32 %v4510_v60, 16  ;;  %v5401_v63 = vrot.slane %v5208_v10, 5  ;;  %v5404_v16 = vrot.slane %v5209_v2, 5  ;;  %v5826_v3 = vmax.bf16 %v10907_v13, %v10843_v56  ;;  %6127 = vst.msk [vmem:[#allocation3 + $0x38] sm:$0xff] %vm6119_vm2, %v10753_v15 }
 0x403   : > { %v7093_v35 = vcombine.low %v5887_v21, %v5888_v41  ;;  %v5067_v37 = vrot.slane %v5065_v34, 4  ;;  %v5074_v19 = vshll.u32 %v4511_v9, 16  ;;  %v5078_v36 = vshrl.u32 %v4511_v9, 16  ;;  %6271 = vst.msk [vmem:[#allocation3 + $0x30] sm:$0xff] %vm6264_vm3, %v10928_v44 }
 0x404   : > { %v5070_v45 = vrot.slane %v5068_v25, 5  ;;  %v5402_v47 = vsel %vm7864_vm14, %v7026_v59, %v5401_v63  ;;  %v5403_v20 = vrot.slane %v5401_v63, 4  ;;  %v5084_v18 = vshll.u32 %v10926_v52, 16  ;;  %v10943_v50 = vpop.permute.xlu0 %5982  ;;  %v6231_v49 = vpop.permute.xlu1 %6230 }
 0x405   : > { %6242 = vrot.lane.b32.xlu1 %v7093_v35, %s7539_s15  ;;  %v5088_v23 = vshrl.u32 %v10926_v52, 16  ;;  %v5489_v12 = vmax.bf16 %v5402_v47, %v5207_v28  ;;  %v5076_v4 = vrot.slane %v5074_v19, 5  ;;  %v5080_v21 = vrot.slane %v5078_v36, 4  ;;  %v11505_v19 = vld [vmem:[#allocation21_spill] sm:$0xff]  ;;  %v11506_v36 = vld [vmem:[#allocation23_spill] sm:$0xff]  ;;  %6272 = vst.msk [vmem:[#allocation3 + $0x38] sm:$0xff] %vm6264_vm3, %v6231_v49 }
 0x406   : > { %v5071_v43 = vor.u32 %v5070_v45, %v5067_v37  ;;  %v5405_v56 = vsel %vm7864_vm14, %v5403_v20, %v5404_v16  ;;  %v5857_v41 = vmax.bf16 %v5825_v6, %v10794_v51  ;;  %v5086_v2 = vrot.slane %v5084_v18, 5  ;;  %v11520_v49 = vld [vmem:[#allocation38_spill] sm:$0xff] }
 0x407   : > { %v5090_v34 = vrot.slane %v5088_v23, 4  ;;  %v5490_v25 = vmax.bf16 %v5405_v56, %v5208_v10  ;;  %v5858_v59 = vmax.bf16 %v5826_v3, %v10805_v40  ;;  %v5081_v63 = vor.u32 %v5080_v21, %v5076_v4 }
 0x408   : > { %v5072_v35 = vrot.slane %v5071_v43, 4  ;;  %v7047_v37 = vrot.slane %v5512_v26, 10  ;;  %v5708_v45 = vrot.slane %v4511_v9, 6  ;;  %v822_v16 = vpack.c.bf16 %v11506_v36, %v11505_v19  ;;  %v11508_v26 = vld [vmem:[#allocation22_spill] sm:$0xff]  ;;  %v11522_v38 = vld [vmem:[#allocation41_spill] sm:$0xff] }
 0x409   : > { %6101 = vrot.lane.b32.xlu1 %v7079_v1, %s7538_s14  ;;  %v5091_v28 = vor.u32 %v5090_v34, %v5086_v2  ;;  %v10948_v47 = vmax.bf16 %v5702_v7, %v5489_v12  ;;  %v10950_v51 = vmax.bf16 %v5705_v29, %v5490_v25  ;;  %v5082_v10 = vrot.slane %v5081_v63, 4  ;;  %v11519_v25 = vld [vmem:[#allocation34_spill] sm:$0xff]  ;;  %v6282_v36 = vld [vmem:[#allocation3 + $0x8] sm:$0xff] }
 0x40a   : > { %v5077_v40 = vsel %vm7729_vm8, %v5072_v35, %v5076_v4  ;;  %5902 = vst.msk [vmem:[#allocation3 + $0x40] sm:$0xff] %vm5893_vm0, %v822_v16  ;;  %v5711_v7 = vrot.slane %v10926_v52, 6  ;;  %v5709_v12 = vsel %vm8160_vm5, %v7047_v37, %v5708_v45  ;;  %v5710_v4 = vrot.slane %v5708_v45, 4  ;;  %v11521_v19 = vld [vmem:[#allocation42_spill] sm:$0xff] }
 0x40b   : > { %v5092_v6 = vrot.slane %v5091_v28, 4  ;;  %v10954_v3 = vmax.bf16 %v5077_v40, %v4510_v60  ;;  %v5889_v1 = vmax.bf16 %v5857_v41, %v10948_v47  ;;  %v5890_v20 = vmax.bf16 %v5858_v59, %v10950_v51  ;;  %6015 = vst.msk [vmem:[#allocation3 + $0x40] sm:$0xff] %vm6006_vm6, %v10667_v33  ;;  %v6297_v33 = vld [vmem:[%s11333_s4] sm:$0xf]  ;;  %v5985_v41 = vpop.permute.xlu1 %5984 }
 0x40c   : > { %v5087_v18 = vsel %vm7729_vm8, %v5082_v10, %v5086_v2  ;;  %v5827_v21 = vmax.bf16 %v10948_v47, %v10903_v32  ;;  %v823_v56 = vpack.c.bf16 %v11508_v26, %v11507_v30  ;;  %v5828_v34 = vmax.bf16 %v10950_v51, %v10907_v13  ;;  %6128 = vst.msk [vmem:[#allocation3 + $0x40] sm:$0xff] %vm6119_vm2, %v10768_v54  ;;  %v11512_v32 = vld [vmem:[#allocation28_spill] sm:$0xff]  ;;  %v11515_v54 = vld [vmem:[#allocation30_spill] sm:$0xff]  ;;  %v6284_v47 = vld [vmem:[#allocation3 + $0x18] sm:$0xff] }
 0x40d   : > { %v5211_v29 = vmax.bf16 %v5087_v18, %v4511_v9  ;;  %v5212_v23 = vmax.bf16 %v5092_v6, %v10926_v52  ;;  %v7027_v60 = vrot.slane %v10954_v3, 9  ;;  %v7094_v43 = vcombine.low %v5889_v1, %v5890_v20  ;;  %v6233_v9 = vpop.permute.xlu0 %6232  ;;  %7253 = vmatprep.subr.msk.bf16.mxu1 %vm6347_vm7, %v6297_v33  ;;  %v6283_v16 = vld [vmem:[#allocation3 + $0x10] sm:$0xff]  ;;  %v6285_v51 = vld [vmem:[#allocation3 + $0x20] sm:$0xff]  ;;  %v6286_v10 = vld [vmem:[#allocation3 + $0x28] sm:$0xff] }
 0x40e   : > { %5903 = vst.msk [vmem:[#allocation3 + $0x48] sm:$0xff] %vm5893_vm0, %v823_v56  ;;  %v824_v57 = vpack.c.bf16 %v11510_v39, %v11509_v42  ;;  %v825_v13 = vpack.c.bf16 %v11512_v32, %v11511_v0  ;;  %v6349_v46 = vsel %vm6347_vm7, %v6297_v33, 0  ;;  %v827_v62 = vpack.c.bf16 %v11516_v61, %v11515_v54  ;;  %v6287_v6 = vld [vmem:[#allocation3 + $0x30] sm:$0xff] }
 0x40f   : > { %v5408_v52 = vrot.slane %v5211_v29, 5  ;;  %v5411_v2 = vrot.slane %v5212_v23, 5  ;;  %6244 = vrot.lane.b32.xlu0 %v7094_v43, %s7539_s15  ;;  %6016 = vst.msk [vmem:[#allocation3 + $0x48] sm:$0xff] %vm6006_vm6, %v10633_v5  ;;  %v11513_v5 = vld [vmem:[#allocation31_spill] sm:$0xff]  ;;  %7219 = vmatpush3.bf16.msra.mxu1 %v6349_v46  ;;  %v828_v44 = vpack.c.bf16 %v11518_v48, %v11517_v8  ;;  %v829_v59 = vpack.c.bf16 %v11520_v49, %v11519_v25  ;;  %v11093_v39 = vld [vmem:[%s11335_s6] ss:$0 sm:$0xff] }
 0x410   : > { %v826_v15 = vpack.c.bf16 %v11514_v14, %v11513_v5  ;;  %6273 = vst.msk [vmem:[#allocation3 + $0x40] sm:$0xff] %vm6264_vm3, %v6233_v9  ;;  %v5859_v37 = vmax.bf16 %v5827_v21, %v10852_v58  ;;  %v5860_v45 = vmax.bf16 %v5828_v34, %v10866_v11  ;;  %vm6298_vm8 = vcmask 64512   ;;  %v11088_v34 = vld [vmem:[%s11334_s5] ss:$0 sm:$0xff] }
 0x411   : > { %v5409_v31 = vsel %vm7864_vm14, %v7027_v60, %v5408_v52  ;;  %v5410_v55 = vrot.slane %v5408_v52, 4  ;;  %6129 = vst.msk [vmem:[#allocation3 + $0x48] sm:$0xff] %vm6119_vm2, %v10812_v53  ;;  %v5712_v53 = vsel %vm8160_vm5, %v5710_v4, %v5711_v7 }
 0x412   : > { %v5491_v27 = vmax.bf16 %v5409_v31, %v10954_v3  ;;  %5904 = vst.msk [vmem:[#allocation3 + $0x50] sm:$0xff] %vm5893_vm0, %v824_v57  ;;  %5905 = vst.msk [vmem:[#allocation3 + $0x58] sm:$0xff] %vm5893_vm0, %v825_v13  ;;  %v6288_v3 = vld [vmem:[#allocation3 + $0x38] sm:$0xff] }
 0x413   : > { %v5412_v35 = vsel %vm7864_vm14, %v5410_v55, %v5411_v2  ;;  %6017 = vst.msk [vmem:[#allocation3 + $0x50] sm:$0xff] %vm6006_vm6, %v10837_v24  ;;  %6018 = vst.msk [vmem:[#allocation3 + $0x58] sm:$0xff] %vm6006_vm6, %v10880_v22  ;;  %v6235_v17 = vpop.permute.xlu1 %6234  ;;  %v6281_v22 = vld [vmem:[#allocation3] sm:$0xff] }
 0x414   : > { %5906 = vst.msk [vmem:[#allocation3 + $0x60] sm:$0xff] %vm5893_vm0, %v826_v15  ;;  %v5492_v63 = vmax.bf16 %v5412_v35, %v5211_v29  ;;  %v5791_v28 = vmax.bf16 %v5709_v12, %v5491_v27  ;;  %5907 = vst.msk [vmem:[#allocation3 + $0x68] sm:$0xff] %vm5893_vm0, %v827_v62  ;;  %7220 = vmatprep.mubr.msk.bf16.mxu1 %vm6298_vm8, %v6281_v22 }
 0x415   : > { %6130 = vst.msk [vmem:[#allocation3 + $0x50] sm:$0xff] %vm6119_vm2, %v11521_v19  ;;  %6131 = vst.msk [vmem:[#allocation3 + $0x58] sm:$0xff] %vm6119_vm2, %v11522_v38  ;;  %7221 = vmatmul.mubr.msk.bf16.vlgmr.msra.gmra.mrb[0].mxu1 %vm6298_vm8, %v6282_v36 }
 0x416   : > { %6019 = vst.msk [vmem:[#allocation3 + $0x60] sm:$0xff] %vm6006_vm6, %v10943_v50  ;;  %6020 = vst.msk [vmem:[#allocation3 + $0x68] sm:$0xff] %vm6006_vm6, %v5985_v41  ;;  %v5792_v24 = vmax.bf16 %v5712_v53, %v5492_v63  ;;  %v5891_v58 = vmax.bf16 %v5859_v37, %v5791_v28  ;;  %7224 = vmatprep.mubr.msk.bf16.mxu1 %vm6298_vm8, %v6283_v16 }
 0x417   : > { %5908 = vst.msk [vmem:[#allocation3 + $0x70] sm:$0xff] %vm5893_vm0, %v828_v44  ;;  %5909 = vst.msk [vmem:[#allocation3 + $0x78] sm:$0xff] %vm5893_vm0, %v829_v59  ;;  %v6289_v1 = vld [vmem:[#allocation3 + $0x40] sm:$0xff] }
 0x418   : > { %6274 = vst.msk [vmem:[#allocation3 + $0x48] sm:$0xff] %vm6264_vm3, %v6235_v17  ;;  %v5892_v11 = vmax.bf16 %v5860_v45, %v5792_v24 }
 0x41a   : > { %v7095_v50 = vcombine.low %v5891_v58, %v5892_v11 }
 0x41c   : > { %6246 = vrot.lane.b32.xlu1 %v7095_v50, %s7539_s15 }
 0x41d   : > { %7225 = vmatmul.mubr.msk.bf16.gmra.mrb[4].mxu1 %vm6298_vm8, %v6284_v47 }
 0x41e   : > { %7228 = vmatprep.mubr.msk.bf16.mxu1 %vm6298_vm8, %v6285_v51 }
 0x41f   : > { %v6290_v20 = vld [vmem:[#allocation3 + $0x48] sm:$0xff] }
 0x420   : > { %v6096_v40 = vpop.permute.xlu0 %6095 }
 0x421   : > { %6132 = vst.msk [vmem:[#allocation3 + $0x60] sm:$0xff] %vm6119_vm2, %v6096_v40 }
 0x425   : > { %7229 = vmatmul.mubr.msk.bf16.gmra.mrb[8].mxu1 %vm6298_vm8, %v6286_v10 }
 0x426   : > { %7232 = vmatprep.mubr.msk.bf16.mxu1 %vm6298_vm8, %v6287_v6 }
 0x42d   : > { %7233 = vmatmul.mubr.msk.bf16.gmra.mrb[12].mxu1 %vm6298_vm8, %v6288_v3 }
 0x42e   : > { %7236 = vmatprep.mubr.msk.bf16.mxu1 %vm6298_vm8, %v6289_v1 }
 0x435   : > { %7237 = vmatmul.mubr.msk.bf16.gmra.mrb[16].mxu1 %vm6298_vm8, %v6290_v20 }
 0x43a   : > { %v6098_v18 = vpop.permute.xlu1 %6097 }
 0x43b   : > { %6133 = vst.msk [vmem:[#allocation3 + $0x68] sm:$0xff] %vm6119_vm2, %v6098_v18 }
 0x455   : > { %v6237_v7 = vpop.permute.xlu0 %6236 }
 0x456   : > { %6275 = vst.msk [vmem:[#allocation3 + $0x50] sm:$0xff] %vm6264_vm3, %v6237_v7 }
 0x459   : > { %v5987_v29 = vpop.permute.xlu0 %5986 }
 0x45a   : > { %6021 = vst.msk [vmem:[#allocation3 + $0x70] sm:$0xff] %vm6006_vm6, %v5987_v29 }
 0x45d   : > { %v6291_v23 = vld [vmem:[#allocation3 + $0x50] sm:$0xff] }
 0x45e   : > { %7240 = vmatprep.mubr.msk.bf16.mxu1 %vm6298_vm8, %v6291_v23 }
 0x45f   : > { %v6239_v60 = vpop.permute.xlu1 %6238 }
 0x460   : > { %6276 = vst.msk [vmem:[#allocation3 + $0x58] sm:$0xff] %vm6264_vm3, %v6239_v60 }
 0x463   : > { %v5989_v12 = vpop.permute.xlu1 %5988 }
 0x464   : > { %6022 = vst.msk [vmem:[#allocation3 + $0x78] sm:$0xff] %vm6006_vm6, %v5989_v12 }
 0x467   : > { %v6292_v43 = vld [vmem:[#allocation3 + $0x58] sm:$0xff] }
 0x468   : > { %7241 = vmatmul.mubr.msk.bf16.gmra.mrb[20].mxu1 %vm6298_vm8, %v6292_v43 }
 0x469   : > { %v6241_v4 = vpop.permute.xlu0 %6240 }
 0x46a   : > { %6277 = vst.msk [vmem:[#allocation3 + $0x60] sm:$0xff] %vm6264_vm3, %v6241_v4 }
 0x46f   : > { %v6100_v21 = vpop.permute.xlu0 %6099 }
 0x470   : > { %6134 = vst.msk [vmem:[#allocation3 + $0x70] sm:$0xff] %vm6119_vm2, %v6100_v21 }
 0x471   : > { %v6293_v30 = vld [vmem:[#allocation3 + $0x60] sm:$0xff] }
 0x472   : > { %7244 = vmatprep.mubr.msk.bf16.mxu1 %vm6298_vm8, %v6293_v30 }
 0x477   : > { %v6243_v26 = vpop.permute.xlu1 %6242 }
 0x478   : > { %6278 = vst.msk [vmem:[#allocation3 + $0x68] sm:$0xff] %vm6264_vm3, %v6243_v26 }
 0x47b   : > { %v6102_v56 = vpop.permute.xlu1 %6101 }
 0x47c   : > { %6135 = vst.msk [vmem:[#allocation3 + $0x78] sm:$0xff] %vm6119_vm2, %v6102_v56 }
 0x47f   : > { %v6294_v33 = vld [vmem:[#allocation3 + $0x68] sm:$0xff] }
 0x480   : > { %7245 = vmatmul.mubr.msk.bf16.gmra.mrb[24].mxu1 %vm6298_vm8, %v6294_v33 }
 0x481   : > { %v6245_v9 = vpop.permute.xlu0 %6244 }
 0x482   : > { %6279 = vst.msk [vmem:[#allocation3 + $0x70] sm:$0xff] %vm6264_vm3, %v6245_v9 }
 0x489   : > { %v6295_v41 = vld [vmem:[#allocation3 + $0x70] sm:$0xff] }
 0x48a   : > { %7248 = vmatprep.mubr.msk.bf16.mxu1 %vm6298_vm8, %v6295_v41 }
 0x48e   : > { %v6247_v52 = vpop.permute.xlu1 %6246 }
 0x48f   : > { %6280 = vst.msk [vmem:[#allocation3 + $0x78] sm:$0xff] %vm6264_vm3, %v6247_v52 }
 0x496   : > { %v6296_v2 = vld [vmem:[#allocation3 + $0x78] sm:$0xff] }
 0x497   : > { %7249 = vmatmul.mubr.msk.bf16.gmra.mrb[28].mxu1 %vm6298_vm8, %v6296_v2 }
 0x4e8   : > { %v7222_v42 = vpop.f32.mrb[0].mxu1 }
 0x4e9   : > { %v6521_v57 = vmul.f32 %v7222_v42, %v11088_v34  ;;  %v6385_v0 = vpop.f32.mrb[1].mxu1 }
 0x4ea   : > { %v6519_v32 = vmul.f32 %v11088_v34, %v6385_v0  ;;  %v7223_v13 = vpop.f32.mrb[2].mxu1 }
 0x4eb   : > { %v11098_v31 = vadd.f32 %v11093_v39, %v6521_v57  ;;  %v6522_v55 = vmul.f32 %v7223_v13, %v11088_v34  ;;  %v6388_v46 = vpop.f32.mrb[3].mxu1 }
 0x4ec   : > { %v11102_v5 = vadd.f32 %v11093_v39, %v6519_v32  ;;  %v6520_v14 = vmul.f32 %v11088_v34, %v6388_v46 }
 0x4ed   : > { %v6592_v15 = vsub.f32 0.0, %v11098_v31  ;;  %v11107_v27 = vadd.f32 %v11093_v39, %v6522_v55 }
 0x4ee   : > { %v6590_v54 = vsub.f32 0.0, %v11102_v5  ;;  %v11111_v61 = vadd.f32 %v11093_v39, %v6520_v14 }
 0x4ef   : > { %v6626_v62 = vmul.f32 1.442695, %v6592_v15  ;;  %v6593_v8 = vsub.f32 0.0, %v11107_v27 }
 0x4f0   : > { %v6622_v48 = vmul.f32 1.442695, %v6590_v54  ;;  %v6591_v44 = vsub.f32 0.0, %v11111_v61  ;;  %v7226_v25 = vpop.f32.mrb[4].mxu1 }
 0x4f1   : > { %7394 = vpow2.f32 %v6626_v62  ;;  %v6628_v49 = vmul.f32 1.442695, %v6593_v8  ;;  %v6525_v59 = vmul.f32 %v7226_v25, %v11088_v34  ;;  %v6401_v35 = vpop.f32.mrb[5].mxu1 }
 0x4f2   : > { %7396 = vpow2.f32 %v6622_v48  ;;  %v6624_v53 = vmul.f32 1.442695, %v6591_v44  ;;  %v6523_v63 = vmul.f32 %v11088_v34, %v6401_v35  ;;  %v7227_v28 = vpop.f32.mrb[6].mxu1 }
 0x4f3   : > { %7398 = vpow2.f32 %v6628_v49  ;;  %v11118_v37 = vadd.f32 %v11093_v39, %v6525_v59  ;;  %v6526_v45 = vmul.f32 %v7227_v28, %v11088_v34  ;;  %v6404_v19 = vpop.f32.mrb[7].mxu1 }
 0x4f4   : > { %7400 = vpow2.f32 %v6624_v53  ;;  %v11122_v38 = vadd.f32 %v11093_v39, %v6523_v63  ;;  %v6524_v17 = vmul.f32 %v11088_v34, %v6404_v19 }
 0x4f5   : > { %v6596_v24 = vsub.f32 0.0, %v11118_v37  ;;  %v11127_v58 = vadd.f32 %v11093_v39, %v6526_v45 }
 0x4f6   : > { %v6594_v11 = vsub.f32 0.0, %v11122_v38  ;;  %v11131_v22 = vadd.f32 %v11093_v39, %v6524_v17 }
 0x4f7   : > { %v6634_v36 = vmul.f32 1.442695, %v6596_v24  ;;  %v6597_v16 = vsub.f32 0.0, %v11127_v58 }
 0x4f8   : > { %v6630_v50 = vmul.f32 1.442695, %v6594_v11  ;;  %v6595_v47 = vsub.f32 0.0, %v11131_v22  ;;  %v7230_v51 = vpop.f32.mrb[8].mxu1 }
 0x4f9   : > { %7402 = vpow2.f32 %v6634_v36  ;;  %v6636_v40 = vmul.f32 1.442695, %v6597_v16  ;;  %v6529_v10 = vmul.f32 %v7230_v51, %v11088_v34  ;;  %v6417_v6 = vpop.f32.mrb[9].mxu1 }
 0x4fa   : > { %7404 = vpow2.f32 %v6630_v50  ;;  %v6632_v3 = vmul.f32 1.442695, %v6595_v47  ;;  %v6527_v1 = vmul.f32 %v11088_v34, %v6417_v6  ;;  %v7231_v20 = vpop.f32.mrb[10].mxu1 }
 0x4fb   : > { %v7395_v18 = vpop.eup %7394  ;;  %7406 = vpow2.f32 %v6636_v40  ;;  %v11138_v7 = vadd.f32 %v11093_v39, %v6529_v10  ;;  %v6530_v29 = vmul.f32 %v7231_v20, %v11088_v34  ;;  %v6420_v23 = vpop.f32.mrb[11].mxu1 }
 0x4fc   : > { %v7397_v60 = vpop.eup %7396  ;;  %v6688_v12 = vadd.f32 1.0, %v7395_v18  ;;  %7408 = vpow2.f32 %v6632_v3  ;;  %v11142_v43 = vadd.f32 %v11093_v39, %v6527_v1  ;;  %v6528_v4 = vmul.f32 %v11088_v34, %v6420_v23 }
 0x4fd   : > { %v7399_v21 = vpop.eup %7398  ;;  %v6686_v30 = vadd.f32 1.0, %v7397_v60  ;;  %v6600_v26 = vsub.f32 0.0, %v11138_v7  ;;  %v11147_v56 = vadd.f32 %v11093_v39, %v6530_v29 }
 0x4fe   : > { %v7401_v33 = vpop.eup %7400  ;;  %7410 = vrcp.f32 %v6688_v12  ;;  %v6689_v9 = vadd.f32 1.0, %v7399_v21  ;;  %v6598_v41 = vsub.f32 0.0, %v11142_v43  ;;  %v11151_v52 = vadd.f32 %v11093_v39, %v6528_v4 }
 0x4ff   : > { %7412 = vrcp.f32 %v6686_v30  ;;  %v6687_v2 = vadd.f32 1.0, %v7401_v33  ;;  %v6642_v42 = vmul.f32 1.442695, %v6600_v26  ;;  %v6601_v57 = vsub.f32 0.0, %v11147_v56 }
 0x500   : > { %7414 = vrcp.f32 %v6689_v9  ;;  %v6638_v0 = vmul.f32 1.442695, %v6598_v41  ;;  %v6599_v32 = vsub.f32 0.0, %v11151_v52  ;;  %v7234_v13 = vpop.f32.mrb[12].mxu1 }
 0x501   : > { %7416 = vrcp.f32 %v6687_v2  ;;  %v6644_v55 = vmul.f32 1.442695, %v6601_v57  ;;  %v6533_v46 = vmul.f32 %v7234_v13, %v11088_v34  ;;  %v6433_v14 = vpop.f32.mrb[13].mxu1 }
 0x502   : > { %7418 = vpow2.f32 %v6642_v42  ;;  %v6640_v15 = vmul.f32 1.442695, %v6599_v32  ;;  %v6531_v54 = vmul.f32 %v11088_v34, %v6433_v14  ;;  %v7235_v62 = vpop.f32.mrb[14].mxu1 }
 0x503   : > { %v7403_v8 = vpop.eup %7402  ;;  %7420 = vpow2.f32 %v6638_v0  ;;  %v11158_v48 = vadd.f32 %v11093_v39, %v6533_v46  ;;  %v6534_v44 = vmul.f32 %v7235_v62, %v11088_v34  ;;  %v6436_v25 = vpop.f32.mrb[15].mxu1 }
 0x504   : > { %v7405_v49 = vpop.eup %7404  ;;  %v6692_v59 = vadd.f32 1.0, %v7403_v8  ;;  %7422 = vpow2.f32 %v6644_v55  ;;  %v11162_v35 = vadd.f32 %v11093_v39, %v6531_v54  ;;  %v6532_v53 = vmul.f32 %v11088_v34, %v6436_v25 }
 0x505   : > { %v7407_v63 = vpop.eup %7406  ;;  %v6690_v28 = vadd.f32 1.0, %v7405_v49  ;;  %7424 = vpow2.f32 %v6640_v15  ;;  %v6604_v45 = vsub.f32 0.0, %v11158_v48  ;;  %v11167_v19 = vadd.f32 %v11093_v39, %v6534_v44 }
 0x506   : > { %v7409_v17 = vpop.eup %7408  ;;  %7426 = vrcp.f32 %v6692_v59  ;;  %v6693_v24 = vadd.f32 1.0, %v7407_v63  ;;  %v6602_v11 = vsub.f32 0.0, %v11162_v35  ;;  %v11171_v36 = vadd.f32 %v11093_v39, %v6532_v53 }
 0x507   : > { %7428 = vrcp.f32 %v6690_v28  ;;  %v6691_v16 = vadd.f32 1.0, %v7409_v17  ;;  %v6650_v50 = vmul.f32 1.442695, %v6604_v45  ;;  %v6605_v47 = vsub.f32 0.0, %v11167_v19 }
 0x508   : > { %v7411_v51 = vpop.eup %7410  ;;  %7430 = vrcp.f32 %v6693_v24  ;;  %v6646_v40 = vmul.f32 1.442695, %v6602_v11  ;;  %v6603_v10 = vsub.f32 0.0, %v11171_v36  ;;  %v7238_v6 = vpop.f32.mrb[16].mxu1 }
 0x509   : > { %v7413_v3 = vpop.eup %7412  ;;  %v6752_v1 = vmul.f32 %v7411_v51, %v11098_v31  ;;  %7432 = vrcp.f32 %v6691_v16  ;;  %v6652_v20 = vmul.f32 1.442695, %v6605_v47  ;;  %v6537_v18 = vmul.f32 %v7238_v6, %v11088_v34  ;;  %v6449_v29 = vpop.f32.mrb[17].mxu1 }
 0x50a   : > { %v7415_v23 = vpop.eup %7414  ;;  %v6750_v60 = vmul.f32 %v7413_v3, %v11102_v5  ;;  %7434 = vpow2.f32 %v6650_v50  ;;  %v6648_v12 = vmul.f32 1.442695, %v6603_v10  ;;  %v6535_v4 = vmul.f32 %v11088_v34, %v6449_v29  ;;  %v7239_v21 = vpop.f32.mrb[18].mxu1 }
 0x50b   : > { %v7417_v30 = vpop.eup %7416  ;;  %6784 = vst.msk [vmem:[%s11179_s26 + $0x10] sm:$0xff] %vm330_vm1, %v6752_v1  ;;  %v6753_v31 = vmul.f32 %v7415_v23, %v11107_v27  ;;  %7436 = vpow2.f32 %v6646_v40  ;;  %v11190_v26 = vadd.f32 %v11093_v39, %v6537_v18  ;;  %v6538_v33 = vmul.f32 %v7239_v21, %v11088_v34  ;;  %v6452_v9 = vpop.f32.mrb[19].mxu1 }
 0x50c   : > { %v7419_v5 = vpop.eup %7418  ;;  %6782 = vst.msk [vmem:[%s11179_s26] sm:$0xff] %vm330_vm1, %v6750_v60  ;;  %v6751_v41 = vmul.f32 %v7417_v30, %v11111_v61  ;;  %7438 = vpow2.f32 %v6652_v20  ;;  %v11197_v2 = vadd.f32 %v11093_v39, %v6535_v4  ;;  %v6536_v42 = vmul.f32 %v11088_v34, %v6452_v9 }
 0x50d   : > { %v7421_v27 = vpop.eup %7420  ;;  %6785 = vst.msk [vmem:[%s11179_s26 + $0x18] sm:$0xff] %vm330_vm1, %v6753_v31  ;;  %v6696_v57 = vadd.f32 1.0, %v7419_v5  ;;  %7440 = vpow2.f32 %v6648_v12  ;;  %v6608_v0 = vsub.f32 0.0, %v11190_v26  ;;  %v11204_v32 = vadd.f32 %v11093_v39, %v6538_v33 }
 0x50e   : > { %v7423_v13 = vpop.eup %7422  ;;  %6783 = vst.msk [vmem:[%s11179_s26 + $0x8] sm:$0xff] %vm330_vm1, %v6751_v41  ;;  %v6694_v61 = vadd.f32 1.0, %v7421_v27  ;;  %v6606_v55 = vsub.f32 0.0, %v11197_v2  ;;  %v11210_v46 = vadd.f32 %v11093_v39, %v6536_v42 }
 0x50f   : > { %v7425_v14 = vpop.eup %7424  ;;  %7442 = vrcp.f32 %v6696_v57  ;;  %v6697_v15 = vadd.f32 1.0, %v7423_v13  ;;  %v6658_v54 = vmul.f32 1.442695, %v6608_v0  ;;  %v6609_v62 = vsub.f32 0.0, %v11204_v32 }
 0x510   : > { %v7427_v8 = vpop.eup %7426  ;;  %7444 = vrcp.f32 %v6694_v61  ;;  %v6695_v44 = vadd.f32 1.0, %v7425_v14  ;;  %v6654_v25 = vmul.f32 1.442695, %v6606_v55  ;;  %v6607_v49 = vsub.f32 0.0, %v11210_v46 }
 0x511   : > { %v7429_v59 = vpop.eup %7428  ;;  %v6756_v53 = vmul.f32 %v7427_v8, %v11118_v37  ;;  %7446 = vrcp.f32 %v6697_v15  ;;  %v6660_v63 = vmul.f32 1.442695, %v6609_v62 }
 0x512   : > { %v7431_v28 = vpop.eup %7430  ;;  %v6754_v45 = vmul.f32 %v7429_v59, %v11122_v38  ;;  %7448 = vrcp.f32 %v6695_v44  ;;  %v6656_v17 = vmul.f32 1.442695, %v6607_v49 }
 0x513   : > { %v7433_v24 = vpop.eup %7432  ;;  %6788 = vst.msk [vmem:[%s11179_s26 + $0x30] sm:$0xff] %vm330_vm1, %v6756_v53  ;;  %v6757_v11 = vmul.f32 %v7431_v28, %v11127_v58  ;;  %7450 = vpow2.f32 %v6658_v54 }
 0x514   : > { %v7435_v16 = vpop.eup %7434  ;;  %6786 = vst.msk [vmem:[%s11179_s26 + $0x20] sm:$0xff] %vm330_vm1, %v6754_v45  ;;  %v6755_v37 = vmul.f32 %v7433_v24, %v11131_v22  ;;  %7452 = vpow2.f32 %v6654_v25 }
 0x515   : > { %v7437_v50 = vpop.eup %7436  ;;  %6789 = vst.msk [vmem:[%s11179_s26 + $0x38] sm:$0xff] %vm330_vm1, %v6757_v11  ;;  %v6700_v47 = vadd.f32 1.0, %v7435_v16  ;;  %7454 = vpow2.f32 %v6660_v63 }
 0x516   : > { %v7439_v38 = vpop.eup %7438  ;;  %6787 = vst.msk [vmem:[%s11179_s26 + $0x28] sm:$0xff] %vm330_vm1, %v6755_v37  ;;  %v6698_v51 = vadd.f32 1.0, %v7437_v50  ;;  %7456 = vpow2.f32 %v6656_v17 }
 0x517   : > { %v7441_v40 = vpop.eup %7440  ;;  %7458 = vrcp.f32 %v6700_v47  ;;  %v6701_v58 = vadd.f32 1.0, %v7439_v38 }
 0x518   : > { %7460 = vrcp.f32 %v6698_v51  ;;  %v6699_v10 = vadd.f32 1.0, %v7441_v40 }
 0x519   : > { %v7443_v22 = vpop.eup %7442  ;;  %7462 = vrcp.f32 %v6701_v58 }
 0x51a   : > { %v7445_v6 = vpop.eup %7444  ;;  %v6760_v3 = vmul.f32 %v7443_v22, %v11138_v7  ;;  %7464 = vrcp.f32 %v6699_v10 }
 0x51b   : > { %v7447_v1 = vpop.eup %7446  ;;  %v6758_v20 = vmul.f32 %v7445_v6, %v11142_v43 }
 0x51c   : > { %v7449_v18 = vpop.eup %7448  ;;  %6792 = vst.msk [vmem:[%s11179_s26 + $0x50] sm:$0xff] %vm330_vm1, %v6760_v3  ;;  %v6761_v29 = vmul.f32 %v7447_v1, %v11147_v56 }
 0x51d   : > { %v7451_v23 = vpop.eup %7450  ;;  %6790 = vst.msk [vmem:[%s11179_s26 + $0x40] sm:$0xff] %vm330_vm1, %v6758_v20  ;;  %v6759_v60 = vmul.f32 %v7449_v18, %v11151_v52 }
 0x51e   : > { %v7453_v12 = vpop.eup %7452  ;;  %6793 = vst.msk [vmem:[%s11179_s26 + $0x58] sm:$0xff] %vm330_vm1, %v6761_v29  ;;  %v6704_v4 = vadd.f32 1.0, %v7451_v23 }
 0x51f   : > { %v7455_v21 = vpop.eup %7454  ;;  %6791 = vst.msk [vmem:[%s11179_s26 + $0x48] sm:$0xff] %vm330_vm1, %v6759_v60  ;;  %v6702_v7 = vadd.f32 1.0, %v7453_v12 }
 0x520   : > { %v7457_v43 = vpop.eup %7456  ;;  %7466 = vrcp.f32 %v6704_v4  ;;  %v6705_v30 = vadd.f32 1.0, %v7455_v21 }
 0x521   : > { %v7459_v56 = vpop.eup %7458  ;;  %7468 = vrcp.f32 %v6702_v7  ;;  %v6703_v31 = vadd.f32 1.0, %v7457_v43 }
 0x522   : > { %v7461_v33 = vpop.eup %7460  ;;  %v6764_v52 = vmul.f32 %v7459_v56, %v11158_v48  ;;  %7470 = vrcp.f32 %v6705_v30 }
 0x523   : > { %v7463_v9 = vpop.eup %7462  ;;  %v6762_v5 = vmul.f32 %v7461_v33, %v11162_v35  ;;  %7472 = vrcp.f32 %v6703_v31 }
 0x524   : > { %v7465_v41 = vpop.eup %7464  ;;  %6796 = vst.msk [vmem:[%s11179_s26 + $0x70] sm:$0xff] %vm330_vm1, %v6764_v52  ;;  %v6765_v42 = vmul.f32 %v7463_v9, %v11167_v19 }
 0x525   : > { %6794 = vst.msk [vmem:[%s11179_s26 + $0x60] sm:$0xff] %vm330_vm1, %v6762_v5  ;;  %v6763_v27 = vmul.f32 %v7465_v41, %v11171_v36 }
 0x526   : > { %6797 = vst.msk [vmem:[%s11179_s26 + $0x78] sm:$0xff] %vm330_vm1, %v6765_v42 }
 0x527   : > { %6795 = vst.msk [vmem:[%s11179_s26 + $0x68] sm:$0xff] %vm330_vm1, %v6763_v27 }
 0x52a   : > { %v7467_v48 = vpop.eup %7466 }
 0x52b   : > { %v7469_v57 = vpop.eup %7468  ;;  %v6768_v35 = vmul.f32 %v7467_v48, %v11190_v26 }
 0x52c   : > { %v7471_v0 = vpop.eup %7470  ;;  %v6766_v13 = vmul.f32 %v7469_v57, %v11197_v2 }
 0x52d   : > { %v7473_v61 = vpop.eup %7472  ;;  %6800 = vst.msk [vmem:[%s11179_s26 + $0x90] sm:$0xff] %vm330_vm1, %v6768_v35  ;;  %v6769_v19 = vmul.f32 %v7471_v0, %v11204_v32 }
 0x52e   : > { %6798 = vst.msk [vmem:[%s11179_s26 + $0x80] sm:$0xff] %vm330_vm1, %v6766_v13  ;;  %v6767_v36 = vmul.f32 %v7473_v61, %v11210_v46 }
 0x52f   : > { %6801 = vst.msk [vmem:[%s11179_s26 + $0x98] sm:$0xff] %vm330_vm1, %v6769_v19 }
 0x530   : > { %6799 = vst.msk [vmem:[%s11179_s26 + $0x88] sm:$0xff] %vm330_vm1, %v6767_v36 }
 0x53b   : > { %v7242_v55 = vpop.f32.mrb[20].mxu1 }
 0x53c   : > { %v6541_v14 = vmul.f32 %v7242_v55, %v11088_v34  ;;  %v6465_v26 = vpop.f32.mrb[21].mxu1 }
 0x53d   : > { %v6539_v15 = vmul.f32 %v11088_v34, %v6465_v26  ;;  %v7243_v2 = vpop.f32.mrb[22].mxu1 }
 0x53e   : > { %v6580_v54 = vadd.f32 %v11093_v39, %v6541_v14  ;;  %v6542_v62 = vmul.f32 %v7243_v2, %v11088_v34  ;;  %v6468_v32 = vpop.f32.mrb[23].mxu1 }
 0x53f   : > { %v6578_v8 = vadd.f32 %v11093_v39, %v6539_v15  ;;  %v6540_v46 = vmul.f32 %v11088_v34, %v6468_v32 }
 0x540   : > { %v6612_v44 = vsub.f32 0.0, %v6580_v54  ;;  %v6581_v25 = vadd.f32 %v11093_v39, %v6542_v62 }
 0x541   : > { %v6610_v49 = vsub.f32 0.0, %v6578_v8  ;;  %v6579_v59 = vadd.f32 %v11093_v39, %v6540_v46 }
 0x542   : > { %v6666_v53 = vmul.f32 1.442695, %v6612_v44  ;;  %v6613_v63 = vsub.f32 0.0, %v6581_v25 }
 0x543   : > { %v6662_v28 = vmul.f32 1.442695, %v6610_v49  ;;  %v6611_v45 = vsub.f32 0.0, %v6579_v59 }
 0x544   : > { %7474 = vpow2.f32 %v6666_v53  ;;  %v6668_v17 = vmul.f32 1.442695, %v6613_v63 }
 0x545   : > { %7476 = vpow2.f32 %v6662_v28  ;;  %v6664_v24 = vmul.f32 1.442695, %v6611_v45 }
 0x546   : > { %7478 = vpow2.f32 %v6668_v17 }
 0x547   : > { %7480 = vpow2.f32 %v6664_v24 }
 0x54e   : > { %v7475_v11 = vpop.eup %7474 }
 0x54f   : > { %v7477_v16 = vpop.eup %7476  ;;  %v6708_v37 = vadd.f32 1.0, %v7475_v11 }
 0x550   : > { %v7479_v50 = vpop.eup %7478  ;;  %v6706_v47 = vadd.f32 1.0, %v7477_v16 }
 0x551   : > { %v7481_v38 = vpop.eup %7480  ;;  %7482 = vrcp.f32 %v6708_v37  ;;  %v6709_v51 = vadd.f32 1.0, %v7479_v50 }
 0x552   : > { %7484 = vrcp.f32 %v6706_v47  ;;  %v6707_v40 = vadd.f32 1.0, %v7481_v38 }
 0x553   : > { %7486 = vrcp.f32 %v6709_v51  ;;  %v7246_v58 = vpop.f32.mrb[24].mxu1 }
 0x554   : > { %7488 = vrcp.f32 %v6707_v40  ;;  %v6545_v10 = vmul.f32 %v7246_v58, %v11088_v34  ;;  %v6481_v22 = vpop.f32.mrb[25].mxu1 }
 0x555   : > { %v6543_v6 = vmul.f32 %v11088_v34, %v6481_v22  ;;  %v7247_v3 = vpop.f32.mrb[26].mxu1 }
 0x556   : > { %v11273_v1 = vadd.f32 %v11093_v39, %v6545_v10  ;;  %v6546_v20 = vmul.f32 %v7247_v3, %v11088_v34  ;;  %v6484_v18 = vpop.f32.mrb[27].mxu1 }
 0x557   : > { %v11277_v29 = vadd.f32 %v11093_v39, %v6543_v6  ;;  %v6544_v23 = vmul.f32 %v11088_v34, %v6484_v18 }
 0x558   : > { %v6616_v60 = vsub.f32 0.0, %v11273_v1  ;;  %v11282_v12 = vadd.f32 %v11093_v39, %v6546_v20 }
 0x559   : > { %v6614_v4 = vsub.f32 0.0, %v11277_v29  ;;  %v11286_v21 = vadd.f32 %v11093_v39, %v6544_v23 }
 0x55a   : > { %v6674_v7 = vmul.f32 1.442695, %v6616_v60  ;;  %v6617_v43 = vsub.f32 0.0, %v11282_v12 }
 0x55b   : > { %v7483_v30 = vpop.eup %7482  ;;  %v6670_v56 = vmul.f32 1.442695, %v6614_v4  ;;  %v6615_v31 = vsub.f32 0.0, %v11286_v21 }
 0x55c   : > { %v7485_v33 = vpop.eup %7484  ;;  %v6772_v52 = vmul.f32 %v7483_v30, %v6580_v54  ;;  %7490 = vpow2.f32 %v6674_v7  ;;  %v6676_v9 = vmul.f32 1.442695, %v6617_v43 }
 0x55d   : > { %v7487_v5 = vpop.eup %7486  ;;  %v6770_v41 = vmul.f32 %v7485_v33, %v6578_v8  ;;  %7492 = vpow2.f32 %v6670_v56  ;;  %v6672_v42 = vmul.f32 1.442695, %v6615_v31 }
 0x55e   : > { %v7489_v27 = vpop.eup %7488  ;;  %6804 = vst.msk [vmem:[%s11179_s26 + $0xb0] sm:$0xff] %vm330_vm1, %v6772_v52  ;;  %v6773_v48 = vmul.f32 %v7487_v5, %v6581_v25  ;;  %7494 = vpow2.f32 %v6676_v9 }
 0x55f   : > { %6802 = vst.msk [vmem:[%s11179_s26 + $0xa0] sm:$0xff] %vm330_vm1, %v6770_v41  ;;  %v6771_v57 = vmul.f32 %v7489_v27, %v6579_v59  ;;  %7496 = vpow2.f32 %v6672_v42 }
 0x560   : > { %6805 = vst.msk [vmem:[%s11179_s26 + $0xb8] sm:$0xff] %vm330_vm1, %v6773_v48 }
 0x561   : > { %6803 = vst.msk [vmem:[%s11179_s26 + $0xa8] sm:$0xff] %vm330_vm1, %v6771_v57 }
 0x566   : > { %v7491_v35 = vpop.eup %7490 }
 0x567   : > { %v7493_v0 = vpop.eup %7492  ;;  %v6712_v13 = vadd.f32 1.0, %v7491_v35 }
 0x568   : > { %v7495_v61 = vpop.eup %7494  ;;  %v6710_v19 = vadd.f32 1.0, %v7493_v0 }
 0x569   : > { %v7497_v36 = vpop.eup %7496  ;;  %7498 = vrcp.f32 %v6712_v13  ;;  %v6713_v55 = vadd.f32 1.0, %v7495_v61 }
 0x56a   : > { %7500 = vrcp.f32 %v6710_v19  ;;  %v6711_v14 = vadd.f32 1.0, %v7497_v36  ;;  %v7250_v26 = vpop.f32.mrb[28].mxu1 }
 0x56b   : > { %7502 = vrcp.f32 %v6713_v55  ;;  %v6549_v15 = vmul.f32 %v7250_v26, %v11088_v34  ;;  %v6497_v2 = vpop.f32.mrb[29].mxu1 }
 0x56c   : > { %7504 = vrcp.f32 %v6711_v14  ;;  %v6547_v54 = vmul.f32 %v11088_v34, %v6497_v2  ;;  %v7251_v62 = vpop.f32.mrb[30].mxu1 }
 0x56d   : > { %v6588_v32 = vadd.f32 %v11093_v39, %v6549_v15  ;;  %v6550_v8 = vmul.f32 %v7251_v62, %v11088_v34  ;;  %v6500_v46 = vpop.f32.mrb[31].mxu1 }
 0x56e   : > { %v6586_v44 = vadd.f32 %v11093_v39, %v6547_v54  ;;  %v6548_v25 = vmul.f32 %v11088_v34, %v6500_v46 }
 0x56f   : > { %v6620_v49 = vsub.f32 0.0, %v6588_v32  ;;  %v6589_v59 = vadd.f32 %v11093_v39, %v6550_v8 }
 0x570   : > { %v6618_v53 = vsub.f32 0.0, %v6586_v44  ;;  %v6587_v63 = vadd.f32 %v11093_v39, %v6548_v25 }
 0x571   : > { %v6682_v28 = vmul.f32 1.442695, %v6620_v49  ;;  %v6621_v45 = vsub.f32 0.0, %v6589_v59 }
 0x572   : > { %v6678_v17 = vmul.f32 1.442695, %v6618_v53  ;;  %v6619_v24 = vsub.f32 0.0, %v6587_v63 }
 0x573   : > { %v7499_v11 = vpop.eup %7498  ;;  %7506 = vpow2.f32 %v6682_v28  ;;  %v6684_v16 = vmul.f32 1.442695, %v6621_v45 }
 0x574   : > { %v7501_v37 = vpop.eup %7500  ;;  %v6776_v34 = vmul.f32 %v7499_v11, %v11273_v1  ;;  %7508 = vpow2.f32 %v6678_v17  ;;  %v6680_v50 = vmul.f32 1.442695, %v6619_v24 }
 0x575   : > { %v7503_v47 = vpop.eup %7502  ;;  %v6774_v38 = vmul.f32 %v7501_v37, %v11277_v29  ;;  %7510 = vpow2.f32 %v6684_v16 }
 0x576   : > { %v7505_v39 = vpop.eup %7504  ;;  %6808 = vst.msk [vmem:[%s11179_s26 + $0xd0] sm:$0xff] %vm330_vm1, %v6776_v34  ;;  %v6777_v51 = vmul.f32 %v7503_v47, %v11282_v12  ;;  %7512 = vpow2.f32 %v6680_v50 }
 0x577   : > { %6806 = vst.msk [vmem:[%s11179_s26 + $0xc0] sm:$0xff] %vm330_vm1, %v6774_v38  ;;  %v6775_v40 = vmul.f32 %v7505_v39, %v11286_v21 }
 0x578   : > { %6809 = vst.msk [vmem:[%s11179_s26 + $0xd8] sm:$0xff] %vm330_vm1, %v6777_v51 }
 0x579   : > { %6807 = vst.msk [vmem:[%s11179_s26 + $0xc8] sm:$0xff] %vm330_vm1, %v6775_v40 }
 0x57d   : > { %v7507_v58 = vpop.eup %7506 }
 0x57e   : > { %v7509_v10 = vpop.eup %7508  ;;  %v6716_v22 = vadd.f32 1.0, %v7507_v58 }
 0x57f   : > { %v7511_v6 = vpop.eup %7510  ;;  %v6714_v3 = vadd.f32 1.0, %v7509_v10 }
 0x580   : > { %v7513_v1 = vpop.eup %7512  ;;  %7514 = vrcp.f32 %v6716_v22  ;;  %v6717_v20 = vadd.f32 1.0, %v7511_v6 }
 0x581   : > { %7516 = vrcp.f32 %v6714_v3  ;;  %v6715_v18 = vadd.f32 1.0, %v7513_v1 }
 0x582   : > { %7518 = vrcp.f32 %v6717_v20 }
 0x583   : > { %7520 = vrcp.f32 %v6715_v18 }
 0x58a   : > { %v7515_v29 = vpop.eup %7514 }
 0x58b   : > { %v7517_v23 = vpop.eup %7516  ;;  %v6780_v60 = vmul.f32 %v7515_v29, %v6588_v32 }
 0x58c   : > { %v7519_v12 = vpop.eup %7518  ;;  %v6778_v4 = vmul.f32 %v7517_v23, %v6586_v44 }
 0x58d   : > { %v7521_v21 = vpop.eup %7520  ;;  %6812 = vst.msk [vmem:[%s11179_s26 + $0xf0] sm:$0xff] %vm330_vm1, %v6780_v60  ;;  %v6781_v7 = vmul.f32 %v7519_v12, %v6589_v59 }
 0x58e   : > { %6810 = vst.msk [vmem:[%s11179_s26 + $0xe0] sm:$0xff] %vm330_vm1, %v6778_v4  ;;  %v6779_v43 = vmul.f32 %v7521_v21, %v6587_v63 }
 0x58f   : > { %6813 = vst.msk [vmem:[%s11179_s26 + $0xf8] sm:$0xff] %vm330_vm1, %v6781_v7 }
 0x590   : > { %6811 = vst.msk [vmem:[%s11179_s26 + $0xe8] sm:$0xff] %vm330_vm1, %v6779_v43 }
 0x591 PF: > { %s17_s24 = sadd.s32 1, %s7534_s24  }
 0x592   : > { %p14_p4 = scmp.ge.s32.totalorder %s17_s24, 4  }
 0x594   :  { %16 = sbr.rel (!%p14_p4) target bundleno = 1 (0x1), region = 80 }

</bundles_post_ra>
